<compile_context>
chip_gen: v7x
topology: tpu7x:2x2x1
jax: 0.10.0
libtpu: 0.0.40
codegen_flags: <defaults>
</compile_context>

<pallas_src>
import jax
import jax.numpy as jnp
from jax import lax
from jax.experimental import pallas as pl
from jax.experimental.pallas import tpu as pltpu

SOS_TOKEN = 1
NEG_INF = -1e30


def _round_up(x, m):
    return (x + m - 1) // m * m


def _pick_chunk(vp):
    for c in (1024, 512, 256, 128):
        if vp % c == 0:
            return c
    return vp


def greedy_decode_kernel(
    seq_ref,                                 # (T,) int32, SMEM
    emb_ref,                                 # (Vp, Hp) VMEM  shared embedding (encoder)
    e_wih_ref, e_whh_ref,                    # encoder GRU (Hp, 3Hp)
    e_bih_ref, e_bhh_ref,                    # encoder GRU biases (1, 3Hp)
    d_whh_ref, d_bhh_ref,                    # decoder GRU hh (Hp, 3Hp) / (1, 3Hp)
    wc_ref, bc_ref,                          # concat proj (2Hp, Hp) / (1, Hp)
    egx_hbm_ref,                             # (Vp, 3Hp) HBM: emb @ dec_w_ih + dec_b_ih
    wo_hbm_ref, bo_hbm_ref,                  # (Hp, Vp), (1, Vp) HBM
    tokens_ref, scores_ref,                  # outputs: (max_length,) SMEM
    enc_ref,                                 # scratch (T, Hp) VMEM   encoder outputs
    gx_ref,                                  # scratch (T, 3Hp) VMEM  encoder ih gates
    egx_ref, wo_ref, bo_ref,                 # scratch VMEM copies of decoder tables
    dma_sem,                                 # DMA semaphores (3,)
    tok_ref,                                 # scratch (max_length+1,) int32 SMEM
):
    T = seq_ref.shape[0]
    Hp = emb_ref.shape[1]
    Vp = egx_ref.shape[0]
    max_length = tokens_ref.shape[0]
    CH = _pick_chunk(Vp)
    n_chunks = Vp // CH

    # Kick off HBM->VMEM copies of decoder-only tables; they complete under the
    # encoder phase (nothing reads them before the wait below).
    egx_cp = pltpu.make_async_copy(egx_hbm_ref, egx_ref, dma_sem.at[0])
    wo_cp = pltpu.make_async_copy(wo_hbm_ref, wo_ref, dma_sem.at[1])
    bo_cp = pltpu.make_async_copy(bo_hbm_ref, bo_ref, dma_sem.at[2])
    egx_cp.start()
    wo_cp.start()
    bo_cp.start()

    # ---------------- Encoder: single-layer GRU over the input sequence ----------
    # TODO(synk): encoder/decoder submodules are undefined in the source; a
    # unidirectional single-layer GRU encoder is used and input_length packing
    # (pack_padded_sequence) is ignored -- the full sequence is processed.
    # Hoist the input-to-hidden half off the recurrence: gather all T embedding
    # rows (T is a small compile-time constant) and do one M=T matmul.
    x_all = jnp.concatenate(
        [emb_ref[pl.ds(seq_ref[t], 1), :] for t in range(T)], axis=0)       # (T, Hp)
    gx_ref[...] = (jnp.dot(x_all, e_wih_ref[...], preferred_element_type=jnp.float32)
                   + e_bih_ref[...])                                        # (T, 3Hp)

    def enc_step(t, h):
        gx = gx_ref[pl.ds(t, 1), :]                                         # (1, 3Hp)
        gh = (jnp.dot(h, e_whh_ref[...], preferred_element_type=jnp.float32)
              + e_bhh_ref[...])
        r = jax.nn.sigmoid(gx[:, :Hp] + gh[:, :Hp])
        z = jax.nn.sigmoid(gx[:, Hp:2 * Hp] + gh[:, Hp:2 * Hp])
        n = jnp.tanh(gx[:, 2 * Hp:] + r * gh[:, 2 * Hp:])
        h_new = (1.0 - z) * n + z * h
        enc_ref[pl.ds(t, 1), :] = h_new                                     # enc out t
        return h_new

    enc_hidden = lax.fori_loop(0, T, enc_step, jnp.zeros((1, Hp), jnp.float32),
                               unroll=True)

    # Decoder tables must now be resident; loop-invariant attention operands are
    # hoisted (one transpose total instead of a transposed contraction per step).
    egx_cp.wait()
    wo_cp.wait()
    bo_cp.wait()
    enc = enc_ref[...]                       # (T, Hp)
    enc_t = enc.T                            # (Hp, T)
    chunk_iota = lax.broadcasted_iota(jnp.int32, (1, CH), 1)

    # ---------------- Greedy decoding loop (GreedySearchDecoder.forward) ---------
    tok_ref[0] = jnp.int32(SOS_TOKEN)

    def dec_step(t, h):
        tok = tok_ref[t]                                   # previous token (SMEM)
        gx = egx_ref[pl.ds(tok, 1), :]                     # prefolded emb @ W_ih + b_ih
        gh = (jnp.dot(h, d_whh_ref[...], preferred_element_type=jnp.float32)
              + d_bhh_ref[...])
        r = jax.nn.sigmoid(gx[:, :Hp] + gh[:, :Hp])
        z = jax.nn.sigmoid(gx[:, Hp:2 * Hp] + gh[:, Hp:2 * Hp])
        n = jnp.tanh(gx[:, 2 * Hp:] + r * gh[:, 2 * Hp:])
        h_new = (1.0 - z) * n + z * h

        # Luong "dot" attention over encoder outputs.
        energies = jnp.dot(h_new, enc_t, preferred_element_type=jnp.float32)  # (1, T)
        attn = jax.nn.softmax(energies, axis=-1)
        context = jnp.dot(attn, enc, preferred_element_type=jnp.float32)      # (1, Hp)

        # tanh(concat([h, context]) @ W_concat + b) as one fused matmul.
        cat = jnp.concatenate([h_new, context], axis=1)                        # (1, 2Hp)
        concat_out = jnp.tanh(
            jnp.dot(cat, wc_ref[...], preferred_element_type=jnp.float32)
            + bc_ref[...])

        # Output projection tiled over the vocab with an online max / sum-exp /
        # first-argmax (torch.max(softmax(logits), dim=1) semantics).  Padded
        # vocab columns carry a -1e30 bias: they never win the argmax and
        # contribute 0 to the softmax sum.
        run_max = jnp.full((1, 1), NEG_INF, jnp.float32)
        run_sum = jnp.zeros((1, 1), jnp.float32)
        best_logit = jnp.float32(NEG_INF)
        best_idx = jnp.int32(0)
        for c in range(n_chunks):
            lo = c * CH
            logits_c = (jnp.dot(concat_out, wo_ref[:, lo:lo + CH],
                                preferred_element_type=jnp.float32)
                        + bo_ref[:, lo:lo + CH])                               # (1, CH)
            c_max = jnp.max(logits_c, axis=1, keepdims=True)                   # (1, 1)
            new_max = jnp.maximum(run_max, c_max)
            run_sum = (run_sum * jnp.exp(run_max - new_max)
                       + jnp.sum(jnp.exp(logits_c - new_max), axis=1, keepdims=True))
            run_max = new_max
            # first-max index within the chunk; strict ">" across chunks keeps the
            # earliest global index on ties (torch.max semantics).
            c_arg = (jnp.min(jnp.where(logits_c == c_max, chunk_iota, CH))
                     .astype(jnp.int32) + lo)
            c_max_s = c_max[0, 0]
            better = c_max_s > best_logit
            best_idx = jnp.where(better, c_arg, best_idx)
            best_logit = jnp.where(better, c_max_s, best_logit)

        # max softmax prob = exp(max - max) / sum_exp = 1 / run_sum (EUP vrcp).
        score = pl.reciprocal(run_sum, approx=True)[0, 0]

        tokens_ref[t] = best_idx
        scores_ref[t] = score
        tok_ref[t + 1] = best_idx
        return h_new

    # decoder_hidden = encoder_hidden[:n_layers]  (n_layers = 1)
    lax.fori_loop(0, max_length, dec_step, enc_hidden, unroll=True)


def greedy_search_decode(input_seq, input_length, prepared, max_length):
    """Mirrors GreedySearchDecoder.forward(input_seq, input_length, max_length)."""
    del input_length  # TODO(synk): packing by input_length is not applied (full seq used)
    T = int(input_seq.shape[0])
    Hp = prepared["embedding"].shape[1]
    Vp = prepared["w_out"].shape[1]
    assert T % 8 == 0, "seq length must be a multiple of 8 (sublane tile)"  # TODO(synk): pad+mask for general T

    vmem = pl.BlockSpec(memory_space=pltpu.MemorySpace.VMEM)
    smem = pl.BlockSpec(memory_space=pltpu.MemorySpace.SMEM)
    anymem = pl.BlockSpec(memory_space=pl.ANY)

    # Conservative VMEM budget: actual residency * 2 + headroom, capped well
    # under v7x's 64 MiB per-TensorCore physical VMEM.
    # TODO(synk): on v7x at chatbot-scale vocab, store E_gx / W_out as bf16 (or
    # DMA E_gx per-row from HBM after each argmax) to stay within 64 MiB.
    weight_bytes = sum(int(v.size) * v.dtype.itemsize for v in prepared.values())
    scratch_bytes = 4 * (T * Hp + T * 3 * Hp + Vp * 3 * Hp + Hp * Vp + Vp)
    vmem_limit = int(min(max(2 * (weight_bytes + scratch_bytes) + (4 << 20),
                             16 << 20), 56 << 20))

    tokens, scores = pl.pallas_call(
        greedy_decode_kernel,
        out_shape=(
            jax.ShapeDtypeStruct((max_length,), jnp.int32),   # torch.long -> int32 on TPU
            jax.ShapeDtypeStruct((max_length,), jnp.float32),
        ),
        in_specs=[smem] + [vmem] * 9 + [anymem] * 3,
        out_specs=(smem, smem),
        scratch_shapes=[
            pltpu.VMEM((T, Hp), jnp.float32),            # encoder outputs
            pltpu.VMEM((T, 3 * Hp), jnp.float32),        # encoder ih gates (all steps)
            pltpu.VMEM((Vp, 3 * Hp), jnp.float32),       # prefolded decoder ih table
            pltpu.VMEM((Hp, Vp), jnp.float32),           # output projection weight
            pltpu.VMEM((1, Vp), jnp.float32),            # output projection bias
            pltpu.SemaphoreType.DMA((3,)),
            pltpu.SMEM((max_length + 1,), jnp.int32),    # token feedback chain
        ],
        compiler_params=pltpu.CompilerParams(vmem_limit_bytes=vmem_limit),
    )(
        input_seq.astype(jnp.int32),
        prepared["embedding"],
        prepared["enc_w_ih"], prepared["enc_w_hh"],
        prepared["enc_b_ih"], prepared["enc_b_hh"],
        prepared["dec_w_hh"], prepared["dec_b_hh"],
        prepared["w_concat"], prepared["b_concat"],
        prepared["dec_egx"],
        prepared["w_out"], prepared["b_out"],
    )
    return tokens, scores


def init_params(key, vocab_size, hidden_size):
    """Raw (PyTorch-like) parameter shapes."""
    ks = jax.random.split(key, 14)
    bound = hidden_size ** -0.5

    def u(k, shape):
        return jax.random.uniform(k, shape, jnp.float32, -bound, bound)

    return dict(
        embedding=u(ks[0], (vocab_size, hidden_size)),
        enc_w_ih=u(ks[1], (3, hidden_size, hidden_size)),
        enc_w_hh=u(ks[2], (3, hidden_size, hidden_size)),
        enc_b_ih=u(ks[3], (3, 1, hidden_size)),
        enc_b_hh=u(ks[4], (3, 1, hidden_size)),
        dec_w_ih=u(ks[5], (3, hidden_size, hidden_size)),
        dec_w_hh=u(ks[6], (3, hidden_size, hidden_size)),
        dec_b_ih=u(ks[7], (3, 1, hidden_size)),
        dec_b_hh=u(ks[8], (3, 1, hidden_size)),
        w_concat=u(ks[9], (2, hidden_size, hidden_size)),
        b_concat=u(ks[10], (1, hidden_size)),
        w_out=u(ks[11], (hidden_size, vocab_size)),
        b_out=u(ks[12], (1, vocab_size)),
    )


def prepare_params(raw, vocab_size, hidden_size):
    """Pad to lane-friendly sizes, pre-fuse GRU / concat weights, pre-fold the
    decoder embedding into its input-to-hidden gates.

    Zero padding keeps the math identical (padded hidden lanes stay exactly 0
    through the GRU recurrence); padded vocab columns get a -1e30 output bias
    so they never win the argmax and contribute 0 to the softmax sum.
    """
    Hp = _round_up(hidden_size, 128)
    Vp = _round_up(vocab_size, 128)

    def pad2(x, r, c, value=0.0):
        return jnp.pad(x, ((0, r - x.shape[0]), (0, c - x.shape[1])),
                       constant_values=value)

    def stack_w(w):   # (3, H, H) -> (Hp, 3*Hp), gate order r,z,n preserved
        return jnp.concatenate([pad2(w[g], Hp, Hp) for g in range(3)], axis=1)

    def stack_b(b):   # (3, 1, H) -> (1, 3*Hp)
        return jnp.concatenate([pad2(b[g], 1, Hp) for g in range(3)], axis=1)

    emb_p = pad2(raw["embedding"], Vp, Hp)
    dec_w_ih = stack_w(raw["dec_w_ih"])
    dec_b_ih = stack_b(raw["dec_b_ih"])
    # Pre-fold: one dynamic row read per decode step replaces gather + ih matmul.
    dec_egx = jnp.dot(emb_p, dec_w_ih) + dec_b_ih            # (Vp, 3*Hp)

    return dict(
        embedding=emb_p,
        enc_w_ih=stack_w(raw["enc_w_ih"]), enc_w_hh=stack_w(raw["enc_w_hh"]),
        enc_b_ih=stack_b(raw["enc_b_ih"]), enc_b_hh=stack_b(raw["enc_b_hh"]),
        dec_w_hh=stack_w(raw["dec_w_hh"]), dec_b_hh=stack_b(raw["dec_b_hh"]),
        dec_egx=dec_egx,
        # concat proj: rows [0:Hp) multiply rnn_output, rows [Hp:2Hp) multiply context
        w_concat=jnp.concatenate(
            [pad2(raw["w_concat"][0], Hp, Hp), pad2(raw["w_concat"][1], Hp, Hp)],
            axis=0),
        b_concat=pad2(raw["b_concat"], 1, Hp),
        w_out=pad2(raw["w_out"], Hp, Vp),
        b_out=pad2(raw["b_out"], 1, Vp, value=NEG_INF),
    )


if __name__ == "__main__":
    VOCAB, HIDDEN, SEQ_LEN, MAX_LENGTH = 64, 32, 8, 8

    key = jax.random.PRNGKey(0)
    pkey, skey = jax.random.split(key)
    raw_params = init_params(pkey, VOCAB, HIDDEN)
    prepared = prepare_params(raw_params, VOCAB, HIDDEN)

    # input_seq: (seq_len,) token ids (PyTorch shape (seq_len, 1) with batch squeezed)
    input_seq = jax.random.randint(skey, (SEQ_LEN,), 2, VOCAB, dtype=jnp.int32)
    input_length = jnp.int32(SEQ_LEN)

    all_tokens, all_scores = greedy_search_decode(
        input_seq, input_length, prepared, MAX_LENGTH)
    jax.block_until_ready((all_tokens, all_scores))

    assert all_tokens.shape == (MAX_LENGTH,) and all_scores.shape == (MAX_LENGTH,)
    assert bool(jnp.all(all_tokens >= 0)) and bool(jnp.all(all_tokens < VOCAB))
    assert bool(jnp.all(all_scores > 0.0)) and bool(jnp.all(all_scores <= 1.0 + 1e-3))
    print("KERNEL_OK")
</pallas_src>

<mosaic_0001>
module attributes {stable_mosaic.version = 11 : i64} {
  func.func @greedy_decode_kernel(%arg0: memref<8xi32, #tpu.memory_space<smem>>, %arg1: memref<128x128xf32, #tpu.memory_space<vmem>>, %arg2: memref<128x384xf32, #tpu.memory_space<vmem>>, %arg3: memref<128x384xf32, #tpu.memory_space<vmem>>, %arg4: memref<1x384xf32, #tpu.memory_space<vmem>>, %arg5: memref<1x384xf32, #tpu.memory_space<vmem>>, %arg6: memref<128x384xf32, #tpu.memory_space<vmem>>, %arg7: memref<1x384xf32, #tpu.memory_space<vmem>>, %arg8: memref<256x128xf32, #tpu.memory_space<vmem>>, %arg9: memref<1x128xf32, #tpu.memory_space<vmem>>, %arg10: memref<128x384xf32, #tpu.memory_space<any>>, %arg11: memref<128x128xf32, #tpu.memory_space<any>>, %arg12: memref<1x128xf32, #tpu.memory_space<any>>, %arg13: memref<8xi32, #tpu.memory_space<smem>>, %arg14: memref<8xf32, #tpu.memory_space<smem>>, %arg15: memref<8x128xf32, #tpu.memory_space<vmem>>, %arg16: memref<8x384xf32, #tpu.memory_space<vmem>>, %arg17: memref<128x384xf32, #tpu.memory_space<vmem>>, %arg18: memref<128x128xf32, #tpu.memory_space<vmem>>, %arg19: memref<1x128xf32, #tpu.memory_space<vmem>>, %arg20: memref<3x!tpu.dma_semaphore, #tpu.memory_space<semaphore_mem>>, %arg21: memref<9xi32, #tpu.memory_space<smem>>) attributes {dimension_semantics = [], scalar_prefetch = 0 : i64, scratch_operands = 7 : i64, tpu.core_type = #tpu.core_type<tc>} {
    %c0_i32 = arith.constant 0 : i32
    %0 = tpu.memref_slice %arg20[%c0_i32] : memref<3x!tpu.dma_semaphore, #tpu.memory_space<semaphore_mem>> -> memref<1x!tpu.dma_semaphore, #tpu.memory_space<semaphore_mem>>
    %1 = tpu.memref_squeeze %0 : memref<1x!tpu.dma_semaphore, #tpu.memory_space<semaphore_mem>> -> memref<!tpu.dma_semaphore, #tpu.memory_space<semaphore_mem>>
    tpu.enqueue_dma source(%arg10 : memref<128x384xf32, #tpu.memory_space<any>>) target(%arg17 : memref<128x384xf32, #tpu.memory_space<vmem>>) target_semaphore(%1 : memref<!tpu.dma_semaphore, #tpu.memory_space<semaphore_mem>>)
    %c1_i32 = arith.constant 1 : i32
    %2 = tpu.memref_slice %arg20[%c1_i32] : memref<3x!tpu.dma_semaphore, #tpu.memory_space<semaphore_mem>> -> memref<1x!tpu.dma_semaphore, #tpu.memory_space<semaphore_mem>>
    %3 = tpu.memref_squeeze %2 : memref<1x!tpu.dma_semaphore, #tpu.memory_space<semaphore_mem>> -> memref<!tpu.dma_semaphore, #tpu.memory_space<semaphore_mem>>
    tpu.enqueue_dma source(%arg11 : memref<128x128xf32, #tpu.memory_space<any>>) target(%arg18 : memref<128x128xf32, #tpu.memory_space<vmem>>) target_semaphore(%3 : memref<!tpu.dma_semaphore, #tpu.memory_space<semaphore_mem>>)
    %c2_i32 = arith.constant 2 : i32
    %4 = tpu.memref_slice %arg20[%c2_i32] : memref<3x!tpu.dma_semaphore, #tpu.memory_space<semaphore_mem>> -> memref<1x!tpu.dma_semaphore, #tpu.memory_space<semaphore_mem>>
    %5 = tpu.memref_squeeze %4 : memref<1x!tpu.dma_semaphore, #tpu.memory_space<semaphore_mem>> -> memref<!tpu.dma_semaphore, #tpu.memory_space<semaphore_mem>>
    tpu.enqueue_dma source(%arg12 : memref<1x128xf32, #tpu.memory_space<any>>) target(%arg19 : memref<1x128xf32, #tpu.memory_space<vmem>>) target_semaphore(%5 : memref<!tpu.dma_semaphore, #tpu.memory_space<semaphore_mem>>)
    %c0 = arith.constant 0 : index
    %6 = memref.load %arg0[%c0] : memref<8xi32, #tpu.memory_space<smem>>
    %7 = arith.index_cast %6 : i32 to index
    %c0_0 = arith.constant 0 : index
    %8 = vector.load %arg1[%7, %c0_0] : memref<128x128xf32, #tpu.memory_space<vmem>>, vector<1x128xf32>
    %c1 = arith.constant 1 : index
    %9 = memref.load %arg0[%c1] : memref<8xi32, #tpu.memory_space<smem>>
    %10 = arith.index_cast %9 : i32 to index
    %c0_1 = arith.constant 0 : index
    %11 = vector.load %arg1[%10, %c0_1] : memref<128x128xf32, #tpu.memory_space<vmem>>, vector<1x128xf32>
    %c2 = arith.constant 2 : index
    %12 = memref.load %arg0[%c2] : memref<8xi32, #tpu.memory_space<smem>>
    %13 = arith.index_cast %12 : i32 to index
    %c0_2 = arith.constant 0 : index
    %14 = vector.load %arg1[%13, %c0_2] : memref<128x128xf32, #tpu.memory_space<vmem>>, vector<1x128xf32>
    %c3 = arith.constant 3 : index
    %15 = memref.load %arg0[%c3] : memref<8xi32, #tpu.memory_space<smem>>
    %16 = arith.index_cast %15 : i32 to index
    %c0_3 = arith.constant 0 : index
    %17 = vector.load %arg1[%16, %c0_3] : memref<128x128xf32, #tpu.memory_space<vmem>>, vector<1x128xf32>
    %c4 = arith.constant 4 : index
    %18 = memref.load %arg0[%c4] : memref<8xi32, #tpu.memory_space<smem>>
    %19 = arith.index_cast %18 : i32 to index
    %c0_4 = arith.constant 0 : index
    %20 = vector.load %arg1[%19, %c0_4] : memref<128x128xf32, #tpu.memory_space<vmem>>, vector<1x128xf32>
    %c5 = arith.constant 5 : index
    %21 = memref.load %arg0[%c5] : memref<8xi32, #tpu.memory_space<smem>>
    %22 = arith.index_cast %21 : i32 to index
    %c0_5 = arith.constant 0 : index
    %23 = vector.load %arg1[%22, %c0_5] : memref<128x128xf32, #tpu.memory_space<vmem>>, vector<1x128xf32>
    %c6 = arith.constant 6 : index
    %24 = memref.load %arg0[%c6] : memref<8xi32, #tpu.memory_space<smem>>
    %25 = arith.index_cast %24 : i32 to index
    %c0_6 = arith.constant 0 : index
    %26 = vector.load %arg1[%25, %c0_6] : memref<128x128xf32, #tpu.memory_space<vmem>>, vector<1x128xf32>
    %c7 = arith.constant 7 : index
    %27 = memref.load %arg0[%c7] : memref<8xi32, #tpu.memory_space<smem>>
    %28 = arith.index_cast %27 : i32 to index
    %c0_7 = arith.constant 0 : index
    %29 = vector.load %arg1[%28, %c0_7] : memref<128x128xf32, #tpu.memory_space<vmem>>, vector<1x128xf32>
    %30 = tpu.concatenate %8, %11, %14, %17, %20, %23, %26, %29 in 0 : vector<1x128xf32>, vector<1x128xf32>, vector<1x128xf32>, vector<1x128xf32>, vector<1x128xf32>, vector<1x128xf32>, vector<1x128xf32>, vector<1x128xf32> -> vector<8x128xf32>
    %c0_8 = arith.constant 0 : index
    %c0_9 = arith.constant 0 : index
    %31 = vector.load %arg2[%c0_8, %c0_9] : memref<128x384xf32, #tpu.memory_space<vmem>>, vector<128x384xf32>
    %cst = arith.constant dense<0.000000e+00> : vector<8x384xf32>
    %32 = tpu.matmul %30, %31, %cst {dimension_numbers = #tpu.dot_dimension_numbers<[1], [0], [0], [1], [0, 0, 1, 1], [], []>} : vector<8x128xf32>, vector<128x384xf32>, vector<8x384xf32> -> vector<8x384xf32>
    %c0_10 = arith.constant 0 : index
    %c0_11 = arith.constant 0 : index
    %33 = vector.load %arg4[%c0_10, %c0_11] : memref<1x384xf32, #tpu.memory_space<vmem>>, vector<1x384xf32>
    %34 = vector.broadcast %33 : vector<1x384xf32> to vector<8x384xf32>
    %35 = arith.addf %32, %34 : vector<8x384xf32>
    %c0_12 = arith.constant 0 : index
    %c0_13 = arith.constant 0 : index
    %36 = vector.load %arg16[%c0_12, %c0_13] : memref<8x384xf32, #tpu.memory_space<vmem>>, vector<8x384xf32>
    tpu.vector_store %arg16[%c0_12, %c0_13], %35 {strides = array<i32>} : memref<8x384xf32, #tpu.memory_space<vmem>>, vector<8x384xf32>,
    %cst_14 = arith.constant 0.000000e+00 : f32
    %37 = vector.broadcast %cst_14 : f32 to vector<1x128xf32>
    %c0_i32_15 = arith.constant 0 : i32
    %38 = arith.index_cast %c0_i32_15 : i32 to index
    %c0_16 = arith.constant 0 : index
    %39 = vector.load %arg16[%38, %c0_16] : memref<8x384xf32, #tpu.memory_space<vmem>>, vector<1x384xf32>
    %c0_17 = arith.constant 0 : index
    %c0_18 = arith.constant 0 : index
    %40 = vector.load %arg3[%c0_17, %c0_18] : memref<128x384xf32, #tpu.memory_space<vmem>>, vector<128x384xf32>
    %cst_19 = arith.constant dense<0.000000e+00> : vector<1x384xf32>
    %41 = tpu.matmul %37, %40, %cst_19 {dimension_numbers = #tpu.dot_dimension_numbers<[1], [0], [0], [1], [0, 0, 1, 1], [], []>} : vector<1x128xf32>, vector<128x384xf32>, vector<1x384xf32> -> vector<1x384xf32>
    %c0_20 = arith.constant 0 : index
    %c0_21 = arith.constant 0 : index
    %42 = vector.load %arg5[%c0_20, %c0_21] : memref<1x384xf32, #tpu.memory_space<vmem>>, vector<1x384xf32>
    %43 = arith.addf %41, %42 : vector<1x384xf32>
    %44 = vector.extract_strided_slice %39 {offsets = [0, 0], sizes = [1, 128], strides = [1, 1]} : vector<1x384xf32> to vector<1x128xf32>
    %45 = vector.extract_strided_slice %43 {offsets = [0, 0], sizes = [1, 128], strides = [1, 1]} : vector<1x384xf32> to vector<1x128xf32>
    %46 = arith.addf %44, %45 : vector<1x128xf32>
    %47 = arith.negf %46 : vector<1x128xf32>
    %48 = math.exp %47 : vector<1x128xf32>
    %cst_22 = arith.constant 1.000000e+00 : f32
    %49 = vector.broadcast %cst_22 : f32 to vector<1x128xf32>
    %50 = arith.addf %49, %48 : vector<1x128xf32>
    %51 = arith.divf %49, %50 : vector<1x128xf32>
    %52 = vector.extract_strided_slice %39 {offsets = [0, 128], sizes = [1, 128], strides = [1, 1]} : vector<1x384xf32> to vector<1x128xf32>
    %53 = vector.extract_strided_slice %43 {offsets = [0, 128], sizes = [1, 128], strides = [1, 1]} : vector<1x384xf32> to vector<1x128xf32>
    %54 = arith.addf %52, %53 : vector<1x128xf32>
    %55 = arith.negf %54 : vector<1x128xf32>
    %56 = math.exp %55 : vector<1x128xf32>
    %cst_23 = arith.constant 1.000000e+00 : f32
    %57 = vector.broadcast %cst_23 : f32 to vector<1x128xf32>
    %58 = arith.addf %57, %56 : vector<1x128xf32>
    %59 = arith.divf %57, %58 : vector<1x128xf32>
    %60 = vector.extract_strided_slice %39 {offsets = [0, 256], sizes = [1, 128], strides = [1, 1]} : vector<1x384xf32> to vector<1x128xf32>
    %61 = vector.extract_strided_slice %43 {offsets = [0, 256], sizes = [1, 128], strides = [1, 1]} : vector<1x384xf32> to vector<1x128xf32>
    %62 = arith.mulf %51, %61 : vector<1x128xf32>
    %63 = arith.addf %60, %62 : vector<1x128xf32>
    %64 = math.tanh %63 : vector<1x128xf32>
    %cst_24 = arith.constant 1.000000e+00 : f32
    %65 = vector.broadcast %cst_24 : f32 to vector<1x128xf32>
    %66 = arith.subf %65, %59 : vector<1x128xf32>
    %67 = arith.mulf %66, %64 : vector<1x128xf32>
    %68 = arith.mulf %59, %37 : vector<1x128xf32>
    %69 = arith.addf %67, %68 : vector<1x128xf32>
    %70 = arith.index_cast %c0_i32_15 : i32 to index
    %c0_25 = arith.constant 0 : index
    %71 = vector.load %arg15[%70, %c0_25] : memref<8x128xf32, #tpu.memory_space<vmem>>, vector<1x128xf32>
    tpu.vector_store %arg15[%70, %c0_25], %69 {strides = array<i32>} : memref<8x128xf32, #tpu.memory_space<vmem>>, vector<1x128xf32>,
    %c1_i32_26 = arith.constant 1 : i32
    %72 = arith.index_cast %c1_i32_26 : i32 to index
    %c0_27 = arith.constant 0 : index
    %73 = vector.load %arg16[%72, %c0_27] : memref<8x384xf32, #tpu.memory_space<vmem>>, vector<1x384xf32>
    %c0_28 = arith.constant 0 : index
    %c0_29 = arith.constant 0 : index
    %74 = vector.load %arg3[%c0_28, %c0_29] : memref<128x384xf32, #tpu.memory_space<vmem>>, vector<128x384xf32>
    %cst_30 = arith.constant dense<0.000000e+00> : vector<1x384xf32>
    %75 = tpu.matmul %69, %74, %cst_30 {dimension_numbers = #tpu.dot_dimension_numbers<[1], [0], [0], [1], [0, 0, 1, 1], [], []>} : vector<1x128xf32>, vector<128x384xf32>, vector<1x384xf32> -> vector<1x384xf32>
    %c0_31 = arith.constant 0 : index
    %c0_32 = arith.constant 0 : index
    %76 = vector.load %arg5[%c0_31, %c0_32] : memref<1x384xf32, #tpu.memory_space<vmem>>, vector<1x384xf32>
    %77 = arith.addf %75, %76 : vector<1x384xf32>
    %78 = vector.extract_strided_slice %73 {offsets = [0, 0], sizes = [1, 128], strides = [1, 1]} : vector<1x384xf32> to vector<1x128xf32>
    %79 = vector.extract_strided_slice %77 {offsets = [0, 0], sizes = [1, 128], strides = [1, 1]} : vector<1x384xf32> to vector<1x128xf32>
    %80 = arith.addf %78, %79 : vector<1x128xf32>
    %81 = arith.negf %80 : vector<1x128xf32>
    %82 = math.exp %81 : vector<1x128xf32>
    %cst_33 = arith.constant 1.000000e+00 : f32
    %83 = vector.broadcast %cst_33 : f32 to vector<1x128xf32>
    %84 = arith.addf %83, %82 : vector<1x128xf32>
    %85 = arith.divf %83, %84 : vector<1x128xf32>
    %86 = vector.extract_strided_slice %73 {offsets = [0, 128], sizes = [1, 128], strides = [1, 1]} : vector<1x384xf32> to vector<1x128xf32>
    %87 = vector.extract_strided_slice %77 {offsets = [0, 128], sizes = [1, 128], strides = [1, 1]} : vector<1x384xf32> to vector<1x128xf32>
    %88 = arith.addf %86, %87 : vector<1x128xf32>
    %89 = arith.negf %88 : vector<1x128xf32>
    %90 = math.exp %89 : vector<1x128xf32>
    %cst_34 = arith.constant 1.000000e+00 : f32
    %91 = vector.broadcast %cst_34 : f32 to vector<1x128xf32>
    %92 = arith.addf %91, %90 : vector<1x128xf32>
    %93 = arith.divf %91, %92 : vector<1x128xf32>
    %94 = vector.extract_strided_slice %73 {offsets = [0, 256], sizes = [1, 128], strides = [1, 1]} : vector<1x384xf32> to vector<1x128xf32>
    %95 = vector.extract_strided_slice %77 {offsets = [0, 256], sizes = [1, 128], strides = [1, 1]} : vector<1x384xf32> to vector<1x128xf32>
    %96 = arith.mulf %85, %95 : vector<1x128xf32>
    %97 = arith.addf %94, %96 : vector<1x128xf32>
    %98 = math.tanh %97 : vector<1x128xf32>
    %cst_35 = arith.constant 1.000000e+00 : f32
    %99 = vector.broadcast %cst_35 : f32 to vector<1x128xf32>
    %100 = arith.subf %99, %93 : vector<1x128xf32>
    %101 = arith.mulf %100, %98 : vector<1x128xf32>
    %102 = arith.mulf %93, %69 : vector<1x128xf32>
    %103 = arith.addf %101, %102 : vector<1x128xf32>
    %104 = arith.index_cast %c1_i32_26 : i32 to index
    %c0_36 = arith.constant 0 : index
    %105 = vector.load %arg15[%104, %c0_36] : memref<8x128xf32, #tpu.memory_space<vmem>>, vector<1x128xf32>
    tpu.vector_store %arg15[%104, %c0_36], %103 {strides = array<i32>} : memref<8x128xf32, #tpu.memory_space<vmem>>, vector<1x128xf32>,
    %c2_i32_37 = arith.constant 2 : i32
    %106 = arith.index_cast %c2_i32_37 : i32 to index
    %c0_38 = arith.constant 0 : index
    %107 = vector.load %arg16[%106, %c0_38] : memref<8x384xf32, #tpu.memory_space<vmem>>, vector<1x384xf32>
    %c0_39 = arith.constant 0 : index
    %c0_40 = arith.constant 0 : index
    %108 = vector.load %arg3[%c0_39, %c0_40] : memref<128x384xf32, #tpu.memory_space<vmem>>, vector<128x384xf32>
    %cst_41 = arith.constant dense<0.000000e+00> : vector<1x384xf32>
    %109 = tpu.matmul %103, %108, %cst_41 {dimension_numbers = #tpu.dot_dimension_numbers<[1], [0], [0], [1], [0, 0, 1, 1], [], []>} : vector<1x128xf32>, vector<128x384xf32>, vector<1x384xf32> -> vector<1x384xf32>
    %c0_42 = arith.constant 0 : index
    %c0_43 = arith.constant 0 : index
    %110 = vector.load %arg5[%c0_42, %c0_43] : memref<1x384xf32, #tpu.memory_space<vmem>>, vector<1x384xf32>
    %111 = arith.addf %109, %110 : vector<1x384xf32>
    %112 = vector.extract_strided_slice %107 {offsets = [0, 0], sizes = [1, 128], strides = [1, 1]} : vector<1x384xf32> to vector<1x128xf32>
    %113 = vector.extract_strided_slice %111 {offsets = [0, 0], sizes = [1, 128], strides = [1, 1]} : vector<1x384xf32> to vector<1x128xf32>
    %114 = arith.addf %112, %113 : vector<1x128xf32>
    %115 = arith.negf %114 : vector<1x128xf32>
    %116 = math.exp %115 : vector<1x128xf32>
    %cst_44 = arith.constant 1.000000e+00 : f32
    %117 = vector.broadcast %cst_44 : f32 to vector<1x128xf32>
    %118 = arith.addf %117, %116 : vector<1x128xf32>
    %119 = arith.divf %117, %118 : vector<1x128xf32>
    %120 = vector.extract_strided_slice %107 {offsets = [0, 128], sizes = [1, 128], strides = [1, 1]} : vector<1x384xf32> to vector<1x128xf32>
    %121 = vector.extract_strided_slice %111 {offsets = [0, 128], sizes = [1, 128], strides = [1, 1]} : vector<1x384xf32> to vector<1x128xf32>
    %122 = arith.addf %120, %121 : vector<1x128xf32>
    %123 = arith.negf %122 : vector<1x128xf32>
    %124 = math.exp %123 : vector<1x128xf32>
    %cst_45 = arith.constant 1.000000e+00 : f32
    %125 = vector.broadcast %cst_45 : f32 to vector<1x128xf32>
    %126 = arith.addf %125, %124 : vector<1x128xf32>
    %127 = arith.divf %125, %126 : vector<1x128xf32>
    %128 = vector.extract_strided_slice %107 {offsets = [0, 256], sizes = [1, 128], strides = [1, 1]} : vector<1x384xf32> to vector<1x128xf32>
    %129 = vector.extract_strided_slice %111 {offsets = [0, 256], sizes = [1, 128], strides = [1, 1]} : vector<1x384xf32> to vector<1x128xf32>
    %130 = arith.mulf %119, %129 : vector<1x128xf32>
    %131 = arith.addf %128, %130 : vector<1x128xf32>
    %132 = math.tanh %131 : vector<1x128xf32>
    %cst_46 = arith.constant 1.000000e+00 : f32
    %133 = vector.broadcast %cst_46 : f32 to vector<1x128xf32>
    %134 = arith.subf %133, %127 : vector<1x128xf32>
    %135 = arith.mulf %134, %132 : vector<1x128xf32>
    %136 = arith.mulf %127, %103 : vector<1x128xf32>
    %137 = arith.addf %135, %136 : vector<1x128xf32>
    %138 = arith.index_cast %c2_i32_37 : i32 to index
    %c0_47 = arith.constant 0 : index
    %139 = vector.load %arg15[%138, %c0_47] : memref<8x128xf32, #tpu.memory_space<vmem>>, vector<1x128xf32>
    tpu.vector_store %arg15[%138, %c0_47], %137 {strides = array<i32>} : memref<8x128xf32, #tpu.memory_space<vmem>>, vector<1x128xf32>,
    %c3_i32 = arith.constant 3 : i32
    %140 = arith.index_cast %c3_i32 : i32 to index
    %c0_48 = arith.constant 0 : index
    %141 = vector.load %arg16[%140, %c0_48] : memref<8x384xf32, #tpu.memory_space<vmem>>, vector<1x384xf32>
    %c0_49 = arith.constant 0 : index
    %c0_50 = arith.constant 0 : index
    %142 = vector.load %arg3[%c0_49, %c0_50] : memref<128x384xf32, #tpu.memory_space<vmem>>, vector<128x384xf32>
    %cst_51 = arith.constant dense<0.000000e+00> : vector<1x384xf32>
    %143 = tpu.matmul %137, %142, %cst_51 {dimension_numbers = #tpu.dot_dimension_numbers<[1], [0], [0], [1], [0, 0, 1, 1], [], []>} : vector<1x128xf32>, vector<128x384xf32>, vector<1x384xf32> -> vector<1x384xf32>
    %c0_52 = arith.constant 0 : index
    %c0_53 = arith.constant 0 : index
    %144 = vector.load %arg5[%c0_52, %c0_53] : memref<1x384xf32, #tpu.memory_space<vmem>>, vector<1x384xf32>
    %145 = arith.addf %143, %144 : vector<1x384xf32>
    %146 = vector.extract_strided_slice %141 {offsets = [0, 0], sizes = [1, 128], strides = [1, 1]} : vector<1x384xf32> to vector<1x128xf32>
    %147 = vector.extract_strided_slice %145 {offsets = [0, 0], sizes = [1, 128], strides = [1, 1]} : vector<1x384xf32> to vector<1x128xf32>
    %148 = arith.addf %146, %147 : vector<1x128xf32>
    %149 = arith.negf %148 : vector<1x128xf32>
    %150 = math.exp %149 : vector<1x128xf32>
    %cst_54 = arith.constant 1.000000e+00 : f32
    %151 = vector.broadcast %cst_54 : f32 to vector<1x128xf32>
    %152 = arith.addf %151, %150 : vector<1x128xf32>
    %153 = arith.divf %151, %152 : vector<1x128xf32>
    %154 = vector.extract_strided_slice %141 {offsets = [0, 128], sizes = [1, 128], strides = [1, 1]} : vector<1x384xf32> to vector<1x128xf32>
    %155 = vector.extract_strided_slice %145 {offsets = [0, 128], sizes = [1, 128], strides = [1, 1]} : vector<1x384xf32> to vector<1x128xf32>
    %156 = arith.addf %154, %155 : vector<1x128xf32>
    %157 = arith.negf %156 : vector<1x128xf32>
    %158 = math.exp %157 : vector<1x128xf32>
    %cst_55 = arith.constant 1.000000e+00 : f32
    %159 = vector.broadcast %cst_55 : f32 to vector<1x128xf32>
    %160 = arith.addf %159, %158 : vector<1x128xf32>
    %161 = arith.divf %159, %160 : vector<1x128xf32>
    %162 = vector.extract_strided_slice %141 {offsets = [0, 256], sizes = [1, 128], strides = [1, 1]} : vector<1x384xf32> to vector<1x128xf32>
    %163 = vector.extract_strided_slice %145 {offsets = [0, 256], sizes = [1, 128], strides = [1, 1]} : vector<1x384xf32> to vector<1x128xf32>
    %164 = arith.mulf %153, %163 : vector<1x128xf32>
    %165 = arith.addf %162, %164 : vector<1x128xf32>
    %166 = math.tanh %165 : vector<1x128xf32>
    %cst_56 = arith.constant 1.000000e+00 : f32
    %167 = vector.broadcast %cst_56 : f32 to vector<1x128xf32>
    %168 = arith.subf %167, %161 : vector<1x128xf32>
    %169 = arith.mulf %168, %166 : vector<1x128xf32>
    %170 = arith.mulf %161, %137 : vector<1x128xf32>
    %171 = arith.addf %169, %170 : vector<1x128xf32>
    %172 = arith.index_cast %c3_i32 : i32 to index
    %c0_57 = arith.constant 0 : index
    %173 = vector.load %arg15[%172, %c0_57] : memref<8x128xf32, #tpu.memory_space<vmem>>, vector<1x128xf32>
    tpu.vector_store %arg15[%172, %c0_57], %171 {strides = array<i32>} : memref<8x128xf32, #tpu.memory_space<vmem>>, vector<1x128xf32>,
    %c4_i32 = arith.constant 4 : i32
    %174 = arith.index_cast %c4_i32 : i32 to index
    %c0_58 = arith.constant 0 : index
    %175 = vector.load %arg16[%174, %c0_58] : memref<8x384xf32, #tpu.memory_space<vmem>>, vector<1x384xf32>
    %c0_59 = arith.constant 0 : index
    %c0_60 = arith.constant 0 : index
    %176 = vector.load %arg3[%c0_59, %c0_60] : memref<128x384xf32, #tpu.memory_space<vmem>>, vector<128x384xf32>
    %cst_61 = arith.constant dense<0.000000e+00> : vector<1x384xf32>
    %177 = tpu.matmul %171, %176, %cst_61 {dimension_numbers = #tpu.dot_dimension_numbers<[1], [0], [0], [1], [0, 0, 1, 1], [], []>} : vector<1x128xf32>, vector<128x384xf32>, vector<1x384xf32> -> vector<1x384xf32>
    %c0_62 = arith.constant 0 : index
    %c0_63 = arith.constant 0 : index
    %178 = vector.load %arg5[%c0_62, %c0_63] : memref<1x384xf32, #tpu.memory_space<vmem>>, vector<1x384xf32>
    %179 = arith.addf %177, %178 : vector<1x384xf32>
    %180 = vector.extract_strided_slice %175 {offsets = [0, 0], sizes = [1, 128], strides = [1, 1]} : vector<1x384xf32> to vector<1x128xf32>
    %181 = vector.extract_strided_slice %179 {offsets = [0, 0], sizes = [1, 128], strides = [1, 1]} : vector<1x384xf32> to vector<1x128xf32>
    %182 = arith.addf %180, %181 : vector<1x128xf32>
    %183 = arith.negf %182 : vector<1x128xf32>
    %184 = math.exp %183 : vector<1x128xf32>
    %cst_64 = arith.constant 1.000000e+00 : f32
    %185 = vector.broadcast %cst_64 : f32 to vector<1x128xf32>
    %186 = arith.addf %185, %184 : vector<1x128xf32>
    %187 = arith.divf %185, %186 : vector<1x128xf32>
    %188 = vector.extract_strided_slice %175 {offsets = [0, 128], sizes = [1, 128], strides = [1, 1]} : vector<1x384xf32> to vector<1x128xf32>
    %189 = vector.extract_strided_slice %179 {offsets = [0, 128], sizes = [1, 128], strides = [1, 1]} : vector<1x384xf32> to vector<1x128xf32>
    %190 = arith.addf %188, %189 : vector<1x128xf32>
    %191 = arith.negf %190 : vector<1x128xf32>
    %192 = math.exp %191 : vector<1x128xf32>
    %cst_65 = arith.constant 1.000000e+00 : f32
    %193 = vector.broadcast %cst_65 : f32 to vector<1x128xf32>
    %194 = arith.addf %193, %192 : vector<1x128xf32>
    %195 = arith.divf %193, %194 : vector<1x128xf32>
    %196 = vector.extract_strided_slice %175 {offsets = [0, 256], sizes = [1, 128], strides = [1, 1]} : vector<1x384xf32> to vector<1x128xf32>
    %197 = vector.extract_strided_slice %179 {offsets = [0, 256], sizes = [1, 128], strides = [1, 1]} : vector<1x384xf32> to vector<1x128xf32>
    %198 = arith.mulf %187, %197 : vector<1x128xf32>
    %199 = arith.addf %196, %198 : vector<1x128xf32>
    %200 = math.tanh %199 : vector<1x128xf32>
    %cst_66 = arith.constant 1.000000e+00 : f32
    %201 = vector.broadcast %cst_66 : f32 to vector<1x128xf32>
    %202 = arith.subf %201, %195 : vector<1x128xf32>
    %203 = arith.mulf %202, %200 : vector<1x128xf32>
    %204 = arith.mulf %195, %171 : vector<1x128xf32>
    %205 = arith.addf %203, %204 : vector<1x128xf32>
    %206 = arith.index_cast %c4_i32 : i32 to index
    %c0_67 = arith.constant 0 : index
    %207 = vector.load %arg15[%206, %c0_67] : memref<8x128xf32, #tpu.memory_space<vmem>>, vector<1x128xf32>
    tpu.vector_store %arg15[%206, %c0_67], %205 {strides = array<i32>} : memref<8x128xf32, #tpu.memory_space<vmem>>, vector<1x128xf32>,
    %c5_i32 = arith.constant 5 : i32
    %208 = arith.index_cast %c5_i32 : i32 to index
    %c0_68 = arith.constant 0 : index
    %209 = vector.load %arg16[%208, %c0_68] : memref<8x384xf32, #tpu.memory_space<vmem>>, vector<1x384xf32>
    %c0_69 = arith.constant 0 : index
    %c0_70 = arith.constant 0 : index
    %210 = vector.load %arg3[%c0_69, %c0_70] : memref<128x384xf32, #tpu.memory_space<vmem>>, vector<128x384xf32>
    %cst_71 = arith.constant dense<0.000000e+00> : vector<1x384xf32>
    %211 = tpu.matmul %205, %210, %cst_71 {dimension_numbers = #tpu.dot_dimension_numbers<[1], [0], [0], [1], [0, 0, 1, 1], [], []>} : vector<1x128xf32>, vector<128x384xf32>, vector<1x384xf32> -> vector<1x384xf32>
    %c0_72 = arith.constant 0 : index
    %c0_73 = arith.constant 0 : index
    %212 = vector.load %arg5[%c0_72, %c0_73] : memref<1x384xf32, #tpu.memory_space<vmem>>, vector<1x384xf32>
    %213 = arith.addf %211, %212 : vector<1x384xf32>
    %214 = vector.extract_strided_slice %209 {offsets = [0, 0], sizes = [1, 128], strides = [1, 1]} : vector<1x384xf32> to vector<1x128xf32>
    %215 = vector.extract_strided_slice %213 {offsets = [0, 0], sizes = [1, 128], strides = [1, 1]} : vector<1x384xf32> to vector<1x128xf32>
    %216 = arith.addf %214, %215 : vector<1x128xf32>
    %217 = arith.negf %216 : vector<1x128xf32>
    %218 = math.exp %217 : vector<1x128xf32>
    %cst_74 = arith.constant 1.000000e+00 : f32
    %219 = vector.broadcast %cst_74 : f32 to vector<1x128xf32>
    %220 = arith.addf %219, %218 : vector<1x128xf32>
    %221 = arith.divf %219, %220 : vector<1x128xf32>
    %222 = vector.extract_strided_slice %209 {offsets = [0, 128], sizes = [1, 128], strides = [1, 1]} : vector<1x384xf32> to vector<1x128xf32>
    %223 = vector.extract_strided_slice %213 {offsets = [0, 128], sizes = [1, 128], strides = [1, 1]} : vector<1x384xf32> to vector<1x128xf32>
    %224 = arith.addf %222, %223 : vector<1x128xf32>
    %225 = arith.negf %224 : vector<1x128xf32>
    %226 = math.exp %225 : vector<1x128xf32>
    %cst_75 = arith.constant 1.000000e+00 : f32
    %227 = vector.broadcast %cst_75 : f32 to vector<1x128xf32>
    %228 = arith.addf %227, %226 : vector<1x128xf32>
    %229 = arith.divf %227, %228 : vector<1x128xf32>
    %230 = vector.extract_strided_slice %209 {offsets = [0, 256], sizes = [1, 128], strides = [1, 1]} : vector<1x384xf32> to vector<1x128xf32>
    %231 = vector.extract_strided_slice %213 {offsets = [0, 256], sizes = [1, 128], strides = [1, 1]} : vector<1x384xf32> to vector<1x128xf32>
    %232 = arith.mulf %221, %231 : vector<1x128xf32>
    %233 = arith.addf %230, %232 : vector<1x128xf32>
    %234 = math.tanh %233 : vector<1x128xf32>
    %cst_76 = arith.constant 1.000000e+00 : f32
    %235 = vector.broadcast %cst_76 : f32 to vector<1x128xf32>
    %236 = arith.subf %235, %229 : vector<1x128xf32>
    %237 = arith.mulf %236, %234 : vector<1x128xf32>
    %238 = arith.mulf %229, %205 : vector<1x128xf32>
    %239 = arith.addf %237, %238 : vector<1x128xf32>
    %240 = arith.index_cast %c5_i32 : i32 to index
    %c0_77 = arith.constant 0 : index
    %241 = vector.load %arg15[%240, %c0_77] : memref<8x128xf32, #tpu.memory_space<vmem>>, vector<1x128xf32>
    tpu.vector_store %arg15[%240, %c0_77], %239 {strides = array<i32>} : memref<8x128xf32, #tpu.memory_space<vmem>>, vector<1x128xf32>,
    %c6_i32 = arith.constant 6 : i32
    %242 = arith.index_cast %c6_i32 : i32 to index
    %c0_78 = arith.constant 0 : index
    %243 = vector.load %arg16[%242, %c0_78] : memref<8x384xf32, #tpu.memory_space<vmem>>, vector<1x384xf32>
    %c0_79 = arith.constant 0 : index
    %c0_80 = arith.constant 0 : index
    %244 = vector.load %arg3[%c0_79, %c0_80] : memref<128x384xf32, #tpu.memory_space<vmem>>, vector<128x384xf32>
    %cst_81 = arith.constant dense<0.000000e+00> : vector<1x384xf32>
    %245 = tpu.matmul %239, %244, %cst_81 {dimension_numbers = #tpu.dot_dimension_numbers<[1], [0], [0], [1], [0, 0, 1, 1], [], []>} : vector<1x128xf32>, vector<128x384xf32>, vector<1x384xf32> -> vector<1x384xf32>
    %c0_82 = arith.constant 0 : index
    %c0_83 = arith.constant 0 : index
    %246 = vector.load %arg5[%c0_82, %c0_83] : memref<1x384xf32, #tpu.memory_space<vmem>>, vector<1x384xf32>
    %247 = arith.addf %245, %246 : vector<1x384xf32>
    %248 = vector.extract_strided_slice %243 {offsets = [0, 0], sizes = [1, 128], strides = [1, 1]} : vector<1x384xf32> to vector<1x128xf32>
    %249 = vector.extract_strided_slice %247 {offsets = [0, 0], sizes = [1, 128], strides = [1, 1]} : vector<1x384xf32> to vector<1x128xf32>
    %250 = arith.addf %248, %249 : vector<1x128xf32>
    %251 = arith.negf %250 : vector<1x128xf32>
    %252 = math.exp %251 : vector<1x128xf32>
    %cst_84 = arith.constant 1.000000e+00 : f32
    %253 = vector.broadcast %cst_84 : f32 to vector<1x128xf32>
    %254 = arith.addf %253, %252 : vector<1x128xf32>
    %255 = arith.divf %253, %254 : vector<1x128xf32>
    %256 = vector.extract_strided_slice %243 {offsets = [0, 128], sizes = [1, 128], strides = [1, 1]} : vector<1x384xf32> to vector<1x128xf32>
    %257 = vector.extract_strided_slice %247 {offsets = [0, 128], sizes = [1, 128], strides = [1, 1]} : vector<1x384xf32> to vector<1x128xf32>
    %258 = arith.addf %256, %257 : vector<1x128xf32>
    %259 = arith.negf %258 : vector<1x128xf32>
    %260 = math.exp %259 : vector<1x128xf32>
    %cst_85 = arith.constant 1.000000e+00 : f32
    %261 = vector.broadcast %cst_85 : f32 to vector<1x128xf32>
    %262 = arith.addf %261, %260 : vector<1x128xf32>
    %263 = arith.divf %261, %262 : vector<1x128xf32>
    %264 = vector.extract_strided_slice %243 {offsets = [0, 256], sizes = [1, 128], strides = [1, 1]} : vector<1x384xf32> to vector<1x128xf32>
    %265 = vector.extract_strided_slice %247 {offsets = [0, 256], sizes = [1, 128], strides = [1, 1]} : vector<1x384xf32> to vector<1x128xf32>
    %266 = arith.mulf %255, %265 : vector<1x128xf32>
    %267 = arith.addf %264, %266 : vector<1x128xf32>
    %268 = math.tanh %267 : vector<1x128xf32>
    %cst_86 = arith.constant 1.000000e+00 : f32
    %269 = vector.broadcast %cst_86 : f32 to vector<1x128xf32>
    %270 = arith.subf %269, %263 : vector<1x128xf32>
    %271 = arith.mulf %270, %268 : vector<1x128xf32>
    %272 = arith.mulf %263, %239 : vector<1x128xf32>
    %273 = arith.addf %271, %272 : vector<1x128xf32>
    %274 = arith.index_cast %c6_i32 : i32 to index
    %c0_87 = arith.constant 0 : index
    %275 = vector.load %arg15[%274, %c0_87] : memref<8x128xf32, #tpu.memory_space<vmem>>, vector<1x128xf32>
    tpu.vector_store %arg15[%274, %c0_87], %273 {strides = array<i32>} : memref<8x128xf32, #tpu.memory_space<vmem>>, vector<1x128xf32>,
    %c7_i32 = arith.constant 7 : i32
    %276 = arith.index_cast %c7_i32 : i32 to index
    %c0_88 = arith.constant 0 : index
    %277 = vector.load %arg16[%276, %c0_88] : memref<8x384xf32, #tpu.memory_space<vmem>>, vector<1x384xf32>
    %c0_89 = arith.constant 0 : index
    %c0_90 = arith.constant 0 : index
    %278 = vector.load %arg3[%c0_89, %c0_90] : memref<128x384xf32, #tpu.memory_space<vmem>>, vector<128x384xf32>
    %cst_91 = arith.constant dense<0.000000e+00> : vector<1x384xf32>
    %279 = tpu.matmul %273, %278, %cst_91 {dimension_numbers = #tpu.dot_dimension_numbers<[1], [0], [0], [1], [0, 0, 1, 1], [], []>} : vector<1x128xf32>, vector<128x384xf32>, vector<1x384xf32> -> vector<1x384xf32>
    %c0_92 = arith.constant 0 : index
    %c0_93 = arith.constant 0 : index
    %280 = vector.load %arg5[%c0_92, %c0_93] : memref<1x384xf32, #tpu.memory_space<vmem>>, vector<1x384xf32>
    %281 = arith.addf %279, %280 : vector<1x384xf32>
    %282 = vector.extract_strided_slice %277 {offsets = [0, 0], sizes = [1, 128], strides = [1, 1]} : vector<1x384xf32> to vector<1x128xf32>
    %283 = vector.extract_strided_slice %281 {offsets = [0, 0], sizes = [1, 128], strides = [1, 1]} : vector<1x384xf32> to vector<1x128xf32>
    %284 = arith.addf %282, %283 : vector<1x128xf32>
    %285 = arith.negf %284 : vector<1x128xf32>
    %286 = math.exp %285 : vector<1x128xf32>
    %cst_94 = arith.constant 1.000000e+00 : f32
    %287 = vector.broadcast %cst_94 : f32 to vector<1x128xf32>
    %288 = arith.addf %287, %286 : vector<1x128xf32>
    %289 = arith.divf %287, %288 : vector<1x128xf32>
    %290 = vector.extract_strided_slice %277 {offsets = [0, 128], sizes = [1, 128], strides = [1, 1]} : vector<1x384xf32> to vector<1x128xf32>
    %291 = vector.extract_strided_slice %281 {offsets = [0, 128], sizes = [1, 128], strides = [1, 1]} : vector<1x384xf32> to vector<1x128xf32>
    %292 = arith.addf %290, %291 : vector<1x128xf32>
    %293 = arith.negf %292 : vector<1x128xf32>
    %294 = math.exp %293 : vector<1x128xf32>
    %cst_95 = arith.constant 1.000000e+00 : f32
    %295 = vector.broadcast %cst_95 : f32 to vector<1x128xf32>
    %296 = arith.addf %295, %294 : vector<1x128xf32>
    %297 = arith.divf %295, %296 : vector<1x128xf32>
    %298 = vector.extract_strided_slice %277 {offsets = [0, 256], sizes = [1, 128], strides = [1, 1]} : vector<1x384xf32> to vector<1x128xf32>
    %299 = vector.extract_strided_slice %281 {offsets = [0, 256], sizes = [1, 128], strides = [1, 1]} : vector<1x384xf32> to vector<1x128xf32>
    %300 = arith.mulf %289, %299 : vector<1x128xf32>
    %301 = arith.addf %298, %300 : vector<1x128xf32>
    %302 = math.tanh %301 : vector<1x128xf32>
    %cst_96 = arith.constant 1.000000e+00 : f32
    %303 = vector.broadcast %cst_96 : f32 to vector<1x128xf32>
    %304 = arith.subf %303, %297 : vector<1x128xf32>
    %305 = arith.mulf %304, %302 : vector<1x128xf32>
    %306 = arith.mulf %297, %273 : vector<1x128xf32>
    %307 = arith.addf %305, %306 : vector<1x128xf32>
    %308 = arith.index_cast %c7_i32 : i32 to index
    %c0_97 = arith.constant 0 : index
    %309 = vector.load %arg15[%308, %c0_97] : memref<8x128xf32, #tpu.memory_space<vmem>>, vector<1x128xf32>
    tpu.vector_store %arg15[%308, %c0_97], %307 {strides = array<i32>} : memref<8x128xf32, #tpu.memory_space<vmem>>, vector<1x128xf32>,
    %c8_i32 = arith.constant 8 : i32
    %c0_i32_98 = arith.constant 0 : i32
    %310 = tpu.memref_slice %arg20[%c0_i32_98] : memref<3x!tpu.dma_semaphore, #tpu.memory_space<semaphore_mem>> -> memref<1x!tpu.dma_semaphore, #tpu.memory_space<semaphore_mem>>
    %311 = tpu.memref_squeeze %310 : memref<1x!tpu.dma_semaphore, #tpu.memory_space<semaphore_mem>> -> memref<!tpu.dma_semaphore, #tpu.memory_space<semaphore_mem>>
    tpu.wait_dma2 semaphore(%311 : memref<!tpu.dma_semaphore, #tpu.memory_space<semaphore_mem>>) src(%arg10 : memref<128x384xf32, #tpu.memory_space<any>>) dst(%arg17 : memref<128x384xf32, #tpu.memory_space<vmem>>)
    %c1_i32_99 = arith.constant 1 : i32
    %312 = tpu.memref_slice %arg20[%c1_i32_99] : memref<3x!tpu.dma_semaphore, #tpu.memory_space<semaphore_mem>> -> memref<1x!tpu.dma_semaphore, #tpu.memory_space<semaphore_mem>>
    %313 = tpu.memref_squeeze %312 : memref<1x!tpu.dma_semaphore, #tpu.memory_space<semaphore_mem>> -> memref<!tpu.dma_semaphore, #tpu.memory_space<semaphore_mem>>
    tpu.wait_dma2 semaphore(%313 : memref<!tpu.dma_semaphore, #tpu.memory_space<semaphore_mem>>) src(%arg11 : memref<128x128xf32, #tpu.memory_space<any>>) dst(%arg18 : memref<128x128xf32, #tpu.memory_space<vmem>>)
    %c2_i32_100 = arith.constant 2 : i32
    %314 = tpu.memref_slice %arg20[%c2_i32_100] : memref<3x!tpu.dma_semaphore, #tpu.memory_space<semaphore_mem>> -> memref<1x!tpu.dma_semaphore, #tpu.memory_space<semaphore_mem>>
    %315 = tpu.memref_squeeze %314 : memref<1x!tpu.dma_semaphore, #tpu.memory_space<semaphore_mem>> -> memref<!tpu.dma_semaphore, #tpu.memory_space<semaphore_mem>>
    tpu.wait_dma2 semaphore(%315 : memref<!tpu.dma_semaphore, #tpu.memory_space<semaphore_mem>>) src(%arg12 : memref<1x128xf32, #tpu.memory_space<any>>) dst(%arg19 : memref<1x128xf32, #tpu.memory_space<vmem>>)
    %c0_101 = arith.constant 0 : index
    %c0_102 = arith.constant 0 : index
    %316 = vector.load %arg15[%c0_101, %c0_102] : memref<8x128xf32, #tpu.memory_space<vmem>>, vector<8x128xf32>
    %317 = tpu.transpose %316, [1, 0] : vector<8x128xf32> -> vector<128x8xf32>
    %318 = tpu.iota {dimensions = array<i32: 1>} : vector<1x128xi32>
    %c1_i32_103 = arith.constant 1 : i32
    %c0_104 = arith.constant 0 : index
    %319 = memref.load %arg21[%c0_104] : memref<9xi32, #tpu.memory_space<smem>>
    memref.store %c1_i32_103, %arg21[%c0_104] : memref<9xi32, #tpu.memory_space<smem>>
    %c0_i32_105 = arith.constant 0 : i32
    %320 = arith.index_cast %c0_i32_105 : i32 to index
    %321 = memref.load %arg21[%320] : memref<9xi32, #tpu.memory_space<smem>>
    %322 = arith.index_cast %321 : i32 to index
    %c0_106 = arith.constant 0 : index
    %323 = vector.load %arg17[%322, %c0_106] : memref<128x384xf32, #tpu.memory_space<vmem>>, vector<1x384xf32>
    %c0_107 = arith.constant 0 : index
    %c0_108 = arith.constant 0 : index
    %324 = vector.load %arg6[%c0_107, %c0_108] : memref<128x384xf32, #tpu.memory_space<vmem>>, vector<128x384xf32>
    %cst_109 = arith.constant dense<0.000000e+00> : vector<1x384xf32>
    %325 = tpu.matmul %307, %324, %cst_109 {dimension_numbers = #tpu.dot_dimension_numbers<[1], [0], [0], [1], [0, 0, 1, 1], [], []>} : vector<1x128xf32>, vector<128x384xf32>, vector<1x384xf32> -> vector<1x384xf32>
    %c0_110 = arith.constant 0 : index
    %c0_111 = arith.constant 0 : index
    %326 = vector.load %arg7[%c0_110, %c0_111] : memref<1x384xf32, #tpu.memory_space<vmem>>, vector<1x384xf32>
    %327 = arith.addf %325, %326 : vector<1x384xf32>
    %328 = vector.extract_strided_slice %323 {offsets = [0, 0], sizes = [1, 128], strides = [1, 1]} : vector<1x384xf32> to vector<1x128xf32>
    %329 = vector.extract_strided_slice %327 {offsets = [0, 0], sizes = [1, 128], strides = [1, 1]} : vector<1x384xf32> to vector<1x128xf32>
    %330 = arith.addf %328, %329 : vector<1x128xf32>
    %331 = arith.negf %330 : vector<1x128xf32>
    %332 = math.exp %331 : vector<1x128xf32>
    %cst_112 = arith.constant 1.000000e+00 : f32
    %333 = vector.broadcast %cst_112 : f32 to vector<1x128xf32>
    %334 = arith.addf %333, %332 : vector<1x128xf32>
    %335 = arith.divf %333, %334 : vector<1x128xf32>
    %336 = vector.extract_strided_slice %323 {offsets = [0, 128], sizes = [1, 128], strides = [1, 1]} : vector<1x384xf32> to vector<1x128xf32>
    %337 = vector.extract_strided_slice %327 {offsets = [0, 128], sizes = [1, 128], strides = [1, 1]} : vector<1x384xf32> to vector<1x128xf32>
    %338 = arith.addf %336, %337 : vector<1x128xf32>
    %339 = arith.negf %338 : vector<1x128xf32>
    %340 = math.exp %339 : vector<1x128xf32>
    %cst_113 = arith.constant 1.000000e+00 : f32
    %341 = vector.broadcast %cst_113 : f32 to vector<1x128xf32>
    %342 = arith.addf %341, %340 : vector<1x128xf32>
    %343 = arith.divf %341, %342 : vector<1x128xf32>
    %344 = vector.extract_strided_slice %323 {offsets = [0, 256], sizes = [1, 128], strides = [1, 1]} : vector<1x384xf32> to vector<1x128xf32>
    %345 = vector.extract_strided_slice %327 {offsets = [0, 256], sizes = [1, 128], strides = [1, 1]} : vector<1x384xf32> to vector<1x128xf32>
    %346 = arith.mulf %335, %345 : vector<1x128xf32>
    %347 = arith.addf %344, %346 : vector<1x128xf32>
    %348 = math.tanh %347 : vector<1x128xf32>
    %cst_114 = arith.constant 1.000000e+00 : f32
    %349 = vector.broadcast %cst_114 : f32 to vector<1x128xf32>
    %350 = arith.subf %349, %343 : vector<1x128xf32>
    %351 = arith.mulf %350, %348 : vector<1x128xf32>
    %352 = arith.mulf %343, %307 : vector<1x128xf32>
    %353 = arith.addf %351, %352 : vector<1x128xf32>
    %cst_115 = arith.constant dense<0.000000e+00> : vector<1x8xf32>
    %354 = tpu.matmul %353, %317, %cst_115 {dimension_numbers = #tpu.dot_dimension_numbers<[1], [0], [0], [1], [0, 0, 1, 1], [], []>} : vector<1x128xf32>, vector<128x8xf32>, vector<1x8xf32> -> vector<1x8xf32>
    %cst_116 = arith.constant dense<0xFF800000> : vector<1xf32>
    %355 = vector.multi_reduction <maximumf>, %354, %cst_116 [1] : vector<1x8xf32> to vector<1xf32>
    %cst_117 = arith.constant 0xFF800000 : f32
    %356 = vector.broadcast %cst_117 : f32 to vector<1xf32>
    %357 = arith.maximumf %356, %355 : vector<1xf32>
    %358 = vector.shape_cast %357 : vector<1xf32> to vector<1x1xf32>
    %359 = vector.broadcast %358 : vector<1x1xf32> to vector<1x8xf32>
    %360 = arith.subf %354, %359 : vector<1x8xf32>
    %361 = math.exp %360 : vector<1x8xf32>
    %cst_118 = arith.constant dense<0.000000e+00> : vector<1xf32>
    %362 = vector.multi_reduction <add>, %361, %cst_118 [1] : vector<1x8xf32> to vector<1xf32>
    %363 = vector.shape_cast %362 : vector<1xf32> to vector<1x1xf32>
    %364 = vector.broadcast %363 : vector<1x1xf32> to vector<1x8xf32>
    %365 = arith.divf %361, %364 : vector<1x8xf32>
    %cst_119 = arith.constant dense<0.000000e+00> : vector<1x128xf32>
    %366 = tpu.matmul %365, %316, %cst_119 {dimension_numbers = #tpu.dot_dimension_numbers<[1], [0], [0], [1], [0, 0, 1, 1], [], []>} : vector<1x8xf32>, vector<8x128xf32>, vector<1x128xf32> -> vector<1x128xf32>
    %367 = tpu.concatenate %353, %366 in 1 : vector<1x128xf32>, vector<1x128xf32> -> vector<1x256xf32>
    %c0_120 = arith.constant 0 : index
    %c0_121 = arith.constant 0 : index
    %368 = vector.load %arg8[%c0_120, %c0_121] : memref<256x128xf32, #tpu.memory_space<vmem>>, vector<256x128xf32>
    %cst_122 = arith.constant dense<0.000000e+00> : vector<1x128xf32>
    %369 = tpu.matmul %367, %368, %cst_122 {dimension_numbers = #tpu.dot_dimension_numbers<[1], [0], [0], [1], [0, 0, 1, 1], [], []>} : vector<1x256xf32>, vector<256x128xf32>, vector<1x128xf32> -> vector<1x128xf32>
    %c0_123 = arith.constant 0 : index
    %c0_124 = arith.constant 0 : index
    %370 = vector.load %arg9[%c0_123, %c0_124] : memref<1x128xf32, #tpu.memory_space<vmem>>, vector<1x128xf32>
    %371 = arith.addf %369, %370 : vector<1x128xf32>
    %372 = math.tanh %371 : vector<1x128xf32>
    %cst_125 = arith.constant -1.000000e+30 : f32
    %373 = vector.broadcast %cst_125 : f32 to vector<1x1xf32>
    %cst_126 = arith.constant 0.000000e+00 : f32
    %374 = vector.broadcast %cst_126 : f32 to vector<1x1xf32>
    %c0_127 = arith.constant 0 : index
    %c0_128 = arith.constant 0 : index
    %375 = vector.load %arg18[%c0_127, %c0_128] : memref<128x128xf32, #tpu.memory_space<vmem>>, vector<128x128xf32>
    %cst_129 = arith.constant dense<0.000000e+00> : vector<1x128xf32>
    %376 = tpu.matmul %372, %375, %cst_129 {dimension_numbers = #tpu.dot_dimension_numbers<[1], [0], [0], [1], [0, 0, 1, 1], [], []>} : vector<1x128xf32>, vector<128x128xf32>, vector<1x128xf32> -> vector<1x128xf32>
    %c0_130 = arith.constant 0 : index
    %c0_131 = arith.constant 0 : index
    %377 = vector.load %arg19[%c0_130, %c0_131] : memref<1x128xf32, #tpu.memory_space<vmem>>, vector<1x128xf32>
    %378 = arith.addf %376, %377 : vector<1x128xf32>
    %cst_132 = arith.constant dense<0xFF800000> : vector<1xf32>
    %379 = vector.multi_reduction <maximumf>, %378, %cst_132 [1] : vector<1x128xf32> to vector<1xf32>
    %380 = vector.shape_cast %379 : vector<1xf32> to vector<1x1xf32>
    %381 = arith.maximumf %373, %380 : vector<1x1xf32>
    %382 = arith.subf %373, %381 : vector<1x1xf32>
    %383 = math.exp %382 : vector<1x1xf32>
    %384 = arith.mulf %374, %383 : vector<1x1xf32>
    %385 = vector.broadcast %381 : vector<1x1xf32> to vector<1x128xf32>
    %386 = arith.subf %378, %385 : vector<1x128xf32>
    %387 = math.exp %386 : vector<1x128xf32>
    %cst_133 = arith.constant dense<0.000000e+00> : vector<1xf32>
    %388 = vector.multi_reduction <add>, %387, %cst_133 [1] : vector<1x128xf32> to vector<1xf32>
    %389 = vector.shape_cast %388 : vector<1xf32> to vector<1x1xf32>
    %390 = arith.addf %384, %389 : vector<1x1xf32>
    %391 = vector.broadcast %380 : vector<1x1xf32> to vector<1x128xf32>
    %392 = arith.cmpf oeq, %378, %391 : vector<1x128xf32>
    %c128_i32 = arith.constant 128 : i32
    %393 = vector.broadcast %c128_i32 : i32 to vector<1x128xi32>
    %394 = arith.select %392, %318, %393 : vector<1x128xi1>, vector<1x128xi32>
    %395 = vector.shape_cast %394 : vector<1x128xi32> to vector<1x1x128xi32>
    %cst_134 = arith.constant dense<2147483647> : vector<1xi32>
    %396 = vector.multi_reduction <minsi>, %395, %cst_134 [1, 2] : vector<1x1x128xi32> to vector<1xi32>
    %397 = vector.shape_cast %396 : vector<1xi32> to vector<1x1x1xi32>
    %398 = vector.extract %397[0, 0, 0] : i32 from vector<1x1x1xi32>
    %c0_i32_135 = arith.constant 0 : i32
    %399 = arith.addi %398, %c0_i32_135 : i32
    %400 = vector.extract %380[0, 0] : f32 from vector<1x1xf32>
    %cst_136 = arith.constant -1.000000e+30 : f32
    %401 = arith.cmpf ogt, %400, %cst_136 : f32
    %c0_i32_137 = arith.constant 0 : i32
    %402 = arith.select %401, %399, %c0_i32_137 : i32
    %403 = tpu.reciprocal %390 {approx = true} : vector<1x1xf32> -> vector<1x1xf32>
    %404 = vector.extract %403[0, 0] : f32 from vector<1x1xf32>
    %405 = arith.index_cast %c0_i32_105 : i32 to index
    %406 = memref.load %arg13[%405] : memref<8xi32, #tpu.memory_space<smem>>
    memref.store %402, %arg13[%405] : memref<8xi32, #tpu.memory_space<smem>>
    %407 = arith.index_cast %c0_i32_105 : i32 to index
    %408 = memref.load %arg14[%407] : memref<8xf32, #tpu.memory_space<smem>>
    memref.store %404, %arg14[%407] : memref<8xf32, #tpu.memory_space<smem>>
    %c1_i32_138 = arith.constant 1 : i32
    %409 = arith.addi %c0_i32_105, %c1_i32_138 : i32
    %410 = arith.index_cast %409 : i32 to index
    %411 = memref.load %arg21[%410] : memref<9xi32, #tpu.memory_space<smem>>
    memref.store %402, %arg21[%410] : memref<9xi32, #tpu.memory_space<smem>>
    %c1_i32_139 = arith.constant 1 : i32
    %412 = arith.index_cast %c1_i32_139 : i32 to index
    %413 = memref.load %arg21[%412] : memref<9xi32, #tpu.memory_space<smem>>
    %414 = arith.index_cast %413 : i32 to index
    %c0_140 = arith.constant 0 : index
    %415 = vector.load %arg17[%414, %c0_140] : memref<128x384xf32, #tpu.memory_space<vmem>>, vector<1x384xf32>
    %c0_141 = arith.constant 0 : index
    %c0_142 = arith.constant 0 : index
    %416 = vector.load %arg6[%c0_141, %c0_142] : memref<128x384xf32, #tpu.memory_space<vmem>>, vector<128x384xf32>
    %cst_143 = arith.constant dense<0.000000e+00> : vector<1x384xf32>
    %417 = tpu.matmul %353, %416, %cst_143 {dimension_numbers = #tpu.dot_dimension_numbers<[1], [0], [0], [1], [0, 0, 1, 1], [], []>} : vector<1x128xf32>, vector<128x384xf32>, vector<1x384xf32> -> vector<1x384xf32>
    %c0_144 = arith.constant 0 : index
    %c0_145 = arith.constant 0 : index
    %418 = vector.load %arg7[%c0_144, %c0_145] : memref<1x384xf32, #tpu.memory_space<vmem>>, vector<1x384xf32>
    %419 = arith.addf %417, %418 : vector<1x384xf32>
    %420 = vector.extract_strided_slice %415 {offsets = [0, 0], sizes = [1, 128], strides = [1, 1]} : vector<1x384xf32> to vector<1x128xf32>
    %421 = vector.extract_strided_slice %419 {offsets = [0, 0], sizes = [1, 128], strides = [1, 1]} : vector<1x384xf32> to vector<1x128xf32>
    %422 = arith.addf %420, %421 : vector<1x128xf32>
    %423 = arith.negf %422 : vector<1x128xf32>
    %424 = math.exp %423 : vector<1x128xf32>
    %cst_146 = arith.constant 1.000000e+00 : f32
    %425 = vector.broadcast %cst_146 : f32 to vector<1x128xf32>
    %426 = arith.addf %425, %424 : vector<1x128xf32>
    %427 = arith.divf %425, %426 : vector<1x128xf32>
    %428 = vector.extract_strided_slice %415 {offsets = [0, 128], sizes = [1, 128], strides = [1, 1]} : vector<1x384xf32> to vector<1x128xf32>
    %429 = vector.extract_strided_slice %419 {offsets = [0, 128], sizes = [1, 128], strides = [1, 1]} : vector<1x384xf32> to vector<1x128xf32>
    %430 = arith.addf %428, %429 : vector<1x128xf32>
    %431 = arith.negf %430 : vector<1x128xf32>
    %432 = math.exp %431 : vector<1x128xf32>
    %cst_147 = arith.constant 1.000000e+00 : f32
    %433 = vector.broadcast %cst_147 : f32 to vector<1x128xf32>
    %434 = arith.addf %433, %432 : vector<1x128xf32>
    %435 = arith.divf %433, %434 : vector<1x128xf32>
    %436 = vector.extract_strided_slice %415 {offsets = [0, 256], sizes = [1, 128], strides = [1, 1]} : vector<1x384xf32> to vector<1x128xf32>
    %437 = vector.extract_strided_slice %419 {offsets = [0, 256], sizes = [1, 128], strides = [1, 1]} : vector<1x384xf32> to vector<1x128xf32>
    %438 = arith.mulf %427, %437 : vector<1x128xf32>
    %439 = arith.addf %436, %438 : vector<1x128xf32>
    %440 = math.tanh %439 : vector<1x128xf32>
    %cst_148 = arith.constant 1.000000e+00 : f32
    %441 = vector.broadcast %cst_148 : f32 to vector<1x128xf32>
    %442 = arith.subf %441, %435 : vector<1x128xf32>
    %443 = arith.mulf %442, %440 : vector<1x128xf32>
    %444 = arith.mulf %435, %353 : vector<1x128xf32>
    %445 = arith.addf %443, %444 : vector<1x128xf32>
    %cst_149 = arith.constant dense<0.000000e+00> : vector<1x8xf32>
    %446 = tpu.matmul %445, %317, %cst_149 {dimension_numbers = #tpu.dot_dimension_numbers<[1], [0], [0], [1], [0, 0, 1, 1], [], []>} : vector<1x128xf32>, vector<128x8xf32>, vector<1x8xf32> -> vector<1x8xf32>
    %cst_150 = arith.constant dense<0xFF800000> : vector<1xf32>
    %447 = vector.multi_reduction <maximumf>, %446, %cst_150 [1] : vector<1x8xf32> to vector<1xf32>
    %cst_151 = arith.constant 0xFF800000 : f32
    %448 = vector.broadcast %cst_151 : f32 to vector<1xf32>
    %449 = arith.maximumf %448, %447 : vector<1xf32>
    %450 = vector.shape_cast %449 : vector<1xf32> to vector<1x1xf32>
    %451 = vector.broadcast %450 : vector<1x1xf32> to vector<1x8xf32>
    %452 = arith.subf %446, %451 : vector<1x8xf32>
    %453 = math.exp %452 : vector<1x8xf32>
    %cst_152 = arith.constant dense<0.000000e+00> : vector<1xf32>
    %454 = vector.multi_reduction <add>, %453, %cst_152 [1] : vector<1x8xf32> to vector<1xf32>
    %455 = vector.shape_cast %454 : vector<1xf32> to vector<1x1xf32>
    %456 = vector.broadcast %455 : vector<1x1xf32> to vector<1x8xf32>
    %457 = arith.divf %453, %456 : vector<1x8xf32>
    %cst_153 = arith.constant dense<0.000000e+00> : vector<1x128xf32>
    %458 = tpu.matmul %457, %316, %cst_153 {dimension_numbers = #tpu.dot_dimension_numbers<[1], [0], [0], [1], [0, 0, 1, 1], [], []>} : vector<1x8xf32>, vector<8x128xf32>, vector<1x128xf32> -> vector<1x128xf32>
    %459 = tpu.concatenate %445, %458 in 1 : vector<1x128xf32>, vector<1x128xf32> -> vector<1x256xf32>
    %c0_154 = arith.constant 0 : index
    %c0_155 = arith.constant 0 : index
    %460 = vector.load %arg8[%c0_154, %c0_155] : memref<256x128xf32, #tpu.memory_space<vmem>>, vector<256x128xf32>
    %cst_156 = arith.constant dense<0.000000e+00> : vector<1x128xf32>
    %461 = tpu.matmul %459, %460, %cst_156 {dimension_numbers = #tpu.dot_dimension_numbers<[1], [0], [0], [1], [0, 0, 1, 1], [], []>} : vector<1x256xf32>, vector<256x128xf32>, vector<1x128xf32> -> vector<1x128xf32>
    %c0_157 = arith.constant 0 : index
    %c0_158 = arith.constant 0 : index
    %462 = vector.load %arg9[%c0_157, %c0_158] : memref<1x128xf32, #tpu.memory_space<vmem>>, vector<1x128xf32>
    %463 = arith.addf %461, %462 : vector<1x128xf32>
    %464 = math.tanh %463 : vector<1x128xf32>
    %cst_159 = arith.constant -1.000000e+30 : f32
    %465 = vector.broadcast %cst_159 : f32 to vector<1x1xf32>
    %cst_160 = arith.constant 0.000000e+00 : f32
    %466 = vector.broadcast %cst_160 : f32 to vector<1x1xf32>
    %c0_161 = arith.constant 0 : index
    %c0_162 = arith.constant 0 : index
    %467 = vector.load %arg18[%c0_161, %c0_162] : memref<128x128xf32, #tpu.memory_space<vmem>>, vector<128x128xf32>
    %cst_163 = arith.constant dense<0.000000e+00> : vector<1x128xf32>
    %468 = tpu.matmul %464, %467, %cst_163 {dimension_numbers = #tpu.dot_dimension_numbers<[1], [0], [0], [1], [0, 0, 1, 1], [], []>} : vector<1x128xf32>, vector<128x128xf32>, vector<1x128xf32> -> vector<1x128xf32>
    %c0_164 = arith.constant 0 : index
    %c0_165 = arith.constant 0 : index
    %469 = vector.load %arg19[%c0_164, %c0_165] : memref<1x128xf32, #tpu.memory_space<vmem>>, vector<1x128xf32>
    %470 = arith.addf %468, %469 : vector<1x128xf32>
    %cst_166 = arith.constant dense<0xFF800000> : vector<1xf32>
    %471 = vector.multi_reduction <maximumf>, %470, %cst_166 [1] : vector<1x128xf32> to vector<1xf32>
    %472 = vector.shape_cast %471 : vector<1xf32> to vector<1x1xf32>
    %473 = arith.maximumf %465, %472 : vector<1x1xf32>
    %474 = arith.subf %465, %473 : vector<1x1xf32>
    %475 = math.exp %474 : vector<1x1xf32>
    %476 = arith.mulf %466, %475 : vector<1x1xf32>
    %477 = vector.broadcast %473 : vector<1x1xf32> to vector<1x128xf32>
    %478 = arith.subf %470, %477 : vector<1x128xf32>
    %479 = math.exp %478 : vector<1x128xf32>
    %cst_167 = arith.constant dense<0.000000e+00> : vector<1xf32>
    %480 = vector.multi_reduction <add>, %479, %cst_167 [1] : vector<1x128xf32> to vector<1xf32>
    %481 = vector.shape_cast %480 : vector<1xf32> to vector<1x1xf32>
    %482 = arith.addf %476, %481 : vector<1x1xf32>
    %483 = vector.broadcast %472 : vector<1x1xf32> to vector<1x128xf32>
    %484 = arith.cmpf oeq, %470, %483 : vector<1x128xf32>
    %c128_i32_168 = arith.constant 128 : i32
    %485 = vector.broadcast %c128_i32_168 : i32 to vector<1x128xi32>
    %486 = arith.select %484, %318, %485 : vector<1x128xi1>, vector<1x128xi32>
    %487 = vector.shape_cast %486 : vector<1x128xi32> to vector<1x1x128xi32>
    %cst_169 = arith.constant dense<2147483647> : vector<1xi32>
    %488 = vector.multi_reduction <minsi>, %487, %cst_169 [1, 2] : vector<1x1x128xi32> to vector<1xi32>
    %489 = vector.shape_cast %488 : vector<1xi32> to vector<1x1x1xi32>
    %490 = vector.extract %489[0, 0, 0] : i32 from vector<1x1x1xi32>
    %c0_i32_170 = arith.constant 0 : i32
    %491 = arith.addi %490, %c0_i32_170 : i32
    %492 = vector.extract %472[0, 0] : f32 from vector<1x1xf32>
    %cst_171 = arith.constant -1.000000e+30 : f32
    %493 = arith.cmpf ogt, %492, %cst_171 : f32
    %c0_i32_172 = arith.constant 0 : i32
    %494 = arith.select %493, %491, %c0_i32_172 : i32
    %495 = tpu.reciprocal %482 {approx = true} : vector<1x1xf32> -> vector<1x1xf32>
    %496 = vector.extract %495[0, 0] : f32 from vector<1x1xf32>
    %497 = arith.index_cast %c1_i32_139 : i32 to index
    %498 = memref.load %arg13[%497] : memref<8xi32, #tpu.memory_space<smem>>
    memref.store %494, %arg13[%497] : memref<8xi32, #tpu.memory_space<smem>>
    %499 = arith.index_cast %c1_i32_139 : i32 to index
    %500 = memref.load %arg14[%499] : memref<8xf32, #tpu.memory_space<smem>>
    memref.store %496, %arg14[%499] : memref<8xf32, #tpu.memory_space<smem>>
    %c1_i32_173 = arith.constant 1 : i32
    %501 = arith.addi %c1_i32_139, %c1_i32_173 : i32
    %502 = arith.index_cast %501 : i32 to index
    %503 = memref.load %arg21[%502] : memref<9xi32, #tpu.memory_space<smem>>
    memref.store %494, %arg21[%502] : memref<9xi32, #tpu.memory_space<smem>>
    %c2_i32_174 = arith.constant 2 : i32
    %504 = arith.index_cast %c2_i32_174 : i32 to index
    %505 = memref.load %arg21[%504] : memref<9xi32, #tpu.memory_space<smem>>
    %506 = arith.index_cast %505 : i32 to index
    %c0_175 = arith.constant 0 : index
    %507 = vector.load %arg17[%506, %c0_175] : memref<128x384xf32, #tpu.memory_space<vmem>>, vector<1x384xf32>
    %c0_176 = arith.constant 0 : index
    %c0_177 = arith.constant 0 : index
    %508 = vector.load %arg6[%c0_176, %c0_177] : memref<128x384xf32, #tpu.memory_space<vmem>>, vector<128x384xf32>
    %cst_178 = arith.constant dense<0.000000e+00> : vector<1x384xf32>
    %509 = tpu.matmul %445, %508, %cst_178 {dimension_numbers = #tpu.dot_dimension_numbers<[1], [0], [0], [1], [0, 0, 1, 1], [], []>} : vector<1x128xf32>, vector<128x384xf32>, vector<1x384xf32> -> vector<1x384xf32>
    %c0_179 = arith.constant 0 : index
    %c0_180 = arith.constant 0 : index
    %510 = vector.load %arg7[%c0_179, %c0_180] : memref<1x384xf32, #tpu.memory_space<vmem>>, vector<1x384xf32>
    %511 = arith.addf %509, %510 : vector<1x384xf32>
    %512 = vector.extract_strided_slice %507 {offsets = [0, 0], sizes = [1, 128], strides = [1, 1]} : vector<1x384xf32> to vector<1x128xf32>
    %513 = vector.extract_strided_slice %511 {offsets = [0, 0], sizes = [1, 128], strides = [1, 1]} : vector<1x384xf32> to vector<1x128xf32>
    %514 = arith.addf %512, %513 : vector<1x128xf32>
    %515 = arith.negf %514 : vector<1x128xf32>
    %516 = math.exp %515 : vector<1x128xf32>
    %cst_181 = arith.constant 1.000000e+00 : f32
    %517 = vector.broadcast %cst_181 : f32 to vector<1x128xf32>
    %518 = arith.addf %517, %516 : vector<1x128xf32>
    %519 = arith.divf %517, %518 : vector<1x128xf32>
    %520 = vector.extract_strided_slice %507 {offsets = [0, 128], sizes = [1, 128], strides = [1, 1]} : vector<1x384xf32> to vector<1x128xf32>
    %521 = vector.extract_strided_slice %511 {offsets = [0, 128], sizes = [1, 128], strides = [1, 1]} : vector<1x384xf32> to vector<1x128xf32>
    %522 = arith.addf %520, %521 : vector<1x128xf32>
    %523 = arith.negf %522 : vector<1x128xf32>
    %524 = math.exp %523 : vector<1x128xf32>
    %cst_182 = arith.constant 1.000000e+00 : f32
    %525 = vector.broadcast %cst_182 : f32 to vector<1x128xf32>
    %526 = arith.addf %525, %524 : vector<1x128xf32>
    %527 = arith.divf %525, %526 : vector<1x128xf32>
    %528 = vector.extract_strided_slice %507 {offsets = [0, 256], sizes = [1, 128], strides = [1, 1]} : vector<1x384xf32> to vector<1x128xf32>
    %529 = vector.extract_strided_slice %511 {offsets = [0, 256], sizes = [1, 128], strides = [1, 1]} : vector<1x384xf32> to vector<1x128xf32>
    %530 = arith.mulf %519, %529 : vector<1x128xf32>
    %531 = arith.addf %528, %530 : vector<1x128xf32>
    %532 = math.tanh %531 : vector<1x128xf32>
    %cst_183 = arith.constant 1.000000e+00 : f32
    %533 = vector.broadcast %cst_183 : f32 to vector<1x128xf32>
    %534 = arith.subf %533, %527 : vector<1x128xf32>
    %535 = arith.mulf %534, %532 : vector<1x128xf32>
    %536 = arith.mulf %527, %445 : vector<1x128xf32>
    %537 = arith.addf %535, %536 : vector<1x128xf32>
    %cst_184 = arith.constant dense<0.000000e+00> : vector<1x8xf32>
    %538 = tpu.matmul %537, %317, %cst_184 {dimension_numbers = #tpu.dot_dimension_numbers<[1], [0], [0], [1], [0, 0, 1, 1], [], []>} : vector<1x128xf32>, vector<128x8xf32>, vector<1x8xf32> -> vector<1x8xf32>
    %cst_185 = arith.constant dense<0xFF800000> : vector<1xf32>
    %539 = vector.multi_reduction <maximumf>, %538, %cst_185 [1] : vector<1x8xf32> to vector<1xf32>
    %cst_186 = arith.constant 0xFF800000 : f32
    %540 = vector.broadcast %cst_186 : f32 to vector<1xf32>
    %541 = arith.maximumf %540, %539 : vector<1xf32>
    %542 = vector.shape_cast %541 : vector<1xf32> to vector<1x1xf32>
    %543 = vector.broadcast %542 : vector<1x1xf32> to vector<1x8xf32>
    %544 = arith.subf %538, %543 : vector<1x8xf32>
    %545 = math.exp %544 : vector<1x8xf32>
    %cst_187 = arith.constant dense<0.000000e+00> : vector<1xf32>
    %546 = vector.multi_reduction <add>, %545, %cst_187 [1] : vector<1x8xf32> to vector<1xf32>
    %547 = vector.shape_cast %546 : vector<1xf32> to vector<1x1xf32>
    %548 = vector.broadcast %547 : vector<1x1xf32> to vector<1x8xf32>
    %549 = arith.divf %545, %548 : vector<1x8xf32>
    %cst_188 = arith.constant dense<0.000000e+00> : vector<1x128xf32>
    %550 = tpu.matmul %549, %316, %cst_188 {dimension_numbers = #tpu.dot_dimension_numbers<[1], [0], [0], [1], [0, 0, 1, 1], [], []>} : vector<1x8xf32>, vector<8x128xf32>, vector<1x128xf32> -> vector<1x128xf32>
    %551 = tpu.concatenate %537, %550 in 1 : vector<1x128xf32>, vector<1x128xf32> -> vector<1x256xf32>
    %c0_189 = arith.constant 0 : index
    %c0_190 = arith.constant 0 : index
    %552 = vector.load %arg8[%c0_189, %c0_190] : memref<256x128xf32, #tpu.memory_space<vmem>>, vector<256x128xf32>
    %cst_191 = arith.constant dense<0.000000e+00> : vector<1x128xf32>
    %553 = tpu.matmul %551, %552, %cst_191 {dimension_numbers = #tpu.dot_dimension_numbers<[1], [0], [0], [1], [0, 0, 1, 1], [], []>} : vector<1x256xf32>, vector<256x128xf32>, vector<1x128xf32> -> vector<1x128xf32>
    %c0_192 = arith.constant 0 : index
    %c0_193 = arith.constant 0 : index
    %554 = vector.load %arg9[%c0_192, %c0_193] : memref<1x128xf32, #tpu.memory_space<vmem>>, vector<1x128xf32>
    %555 = arith.addf %553, %554 : vector<1x128xf32>
    %556 = math.tanh %555 : vector<1x128xf32>
    %cst_194 = arith.constant -1.000000e+30 : f32
    %557 = vector.broadcast %cst_194 : f32 to vector<1x1xf32>
    %cst_195 = arith.constant 0.000000e+00 : f32
    %558 = vector.broadcast %cst_195 : f32 to vector<1x1xf32>
    %c0_196 = arith.constant 0 : index
    %c0_197 = arith.constant 0 : index
    %559 = vector.load %arg18[%c0_196, %c0_197] : memref<128x128xf32, #tpu.memory_space<vmem>>, vector<128x128xf32>
    %cst_198 = arith.constant dense<0.000000e+00> : vector<1x128xf32>
    %560 = tpu.matmul %556, %559, %cst_198 {dimension_numbers = #tpu.dot_dimension_numbers<[1], [0], [0], [1], [0, 0, 1, 1], [], []>} : vector<1x128xf32>, vector<128x128xf32>, vector<1x128xf32> -> vector<1x128xf32>
    %c0_199 = arith.constant 0 : index
    %c0_200 = arith.constant 0 : index
    %561 = vector.load %arg19[%c0_199, %c0_200] : memref<1x128xf32, #tpu.memory_space<vmem>>, vector<1x128xf32>
    %562 = arith.addf %560, %561 : vector<1x128xf32>
    %cst_201 = arith.constant dense<0xFF800000> : vector<1xf32>
    %563 = vector.multi_reduction <maximumf>, %562, %cst_201 [1] : vector<1x128xf32> to vector<1xf32>
    %564 = vector.shape_cast %563 : vector<1xf32> to vector<1x1xf32>
    %565 = arith.maximumf %557, %564 : vector<1x1xf32>
    %566 = arith.subf %557, %565 : vector<1x1xf32>
    %567 = math.exp %566 : vector<1x1xf32>
    %568 = arith.mulf %558, %567 : vector<1x1xf32>
    %569 = vector.broadcast %565 : vector<1x1xf32> to vector<1x128xf32>
    %570 = arith.subf %562, %569 : vector<1x128xf32>
    %571 = math.exp %570 : vector<1x128xf32>
    %cst_202 = arith.constant dense<0.000000e+00> : vector<1xf32>
    %572 = vector.multi_reduction <add>, %571, %cst_202 [1] : vector<1x128xf32> to vector<1xf32>
    %573 = vector.shape_cast %572 : vector<1xf32> to vector<1x1xf32>
    %574 = arith.addf %568, %573 : vector<1x1xf32>
    %575 = vector.broadcast %564 : vector<1x1xf32> to vector<1x128xf32>
    %576 = arith.cmpf oeq, %562, %575 : vector<1x128xf32>
    %c128_i32_203 = arith.constant 128 : i32
    %577 = vector.broadcast %c128_i32_203 : i32 to vector<1x128xi32>
    %578 = arith.select %576, %318, %577 : vector<1x128xi1>, vector<1x128xi32>
    %579 = vector.shape_cast %578 : vector<1x128xi32> to vector<1x1x128xi32>
    %cst_204 = arith.constant dense<2147483647> : vector<1xi32>
    %580 = vector.multi_reduction <minsi>, %579, %cst_204 [1, 2] : vector<1x1x128xi32> to vector<1xi32>
    %581 = vector.shape_cast %580 : vector<1xi32> to vector<1x1x1xi32>
    %582 = vector.extract %581[0, 0, 0] : i32 from vector<1x1x1xi32>
    %c0_i32_205 = arith.constant 0 : i32
    %583 = arith.addi %582, %c0_i32_205 : i32
    %584 = vector.extract %564[0, 0] : f32 from vector<1x1xf32>
    %cst_206 = arith.constant -1.000000e+30 : f32
    %585 = arith.cmpf ogt, %584, %cst_206 : f32
    %c0_i32_207 = arith.constant 0 : i32
    %586 = arith.select %585, %583, %c0_i32_207 : i32
    %587 = tpu.reciprocal %574 {approx = true} : vector<1x1xf32> -> vector<1x1xf32>
    %588 = vector.extract %587[0, 0] : f32 from vector<1x1xf32>
    %589 = arith.index_cast %c2_i32_174 : i32 to index
    %590 = memref.load %arg13[%589] : memref<8xi32, #tpu.memory_space<smem>>
    memref.store %586, %arg13[%589] : memref<8xi32, #tpu.memory_space<smem>>
    %591 = arith.index_cast %c2_i32_174 : i32 to index
    %592 = memref.load %arg14[%591] : memref<8xf32, #tpu.memory_space<smem>>
    memref.store %588, %arg14[%591] : memref<8xf32, #tpu.memory_space<smem>>
    %c1_i32_208 = arith.constant 1 : i32
    %593 = arith.addi %c2_i32_174, %c1_i32_208 : i32
    %594 = arith.index_cast %593 : i32 to index
    %595 = memref.load %arg21[%594] : memref<9xi32, #tpu.memory_space<smem>>
    memref.store %586, %arg21[%594] : memref<9xi32, #tpu.memory_space<smem>>
    %c3_i32_209 = arith.constant 3 : i32
    %596 = arith.index_cast %c3_i32_209 : i32 to index
    %597 = memref.load %arg21[%596] : memref<9xi32, #tpu.memory_space<smem>>
    %598 = arith.index_cast %597 : i32 to index
    %c0_210 = arith.constant 0 : index
    %599 = vector.load %arg17[%598, %c0_210] : memref<128x384xf32, #tpu.memory_space<vmem>>, vector<1x384xf32>
    %c0_211 = arith.constant 0 : index
    %c0_212 = arith.constant 0 : index
    %600 = vector.load %arg6[%c0_211, %c0_212] : memref<128x384xf32, #tpu.memory_space<vmem>>, vector<128x384xf32>
    %cst_213 = arith.constant dense<0.000000e+00> : vector<1x384xf32>
    %601 = tpu.matmul %537, %600, %cst_213 {dimension_numbers = #tpu.dot_dimension_numbers<[1], [0], [0], [1], [0, 0, 1, 1], [], []>} : vector<1x128xf32>, vector<128x384xf32>, vector<1x384xf32> -> vector<1x384xf32>
    %c0_214 = arith.constant 0 : index
    %c0_215 = arith.constant 0 : index
    %602 = vector.load %arg7[%c0_214, %c0_215] : memref<1x384xf32, #tpu.memory_space<vmem>>, vector<1x384xf32>
    %603 = arith.addf %601, %602 : vector<1x384xf32>
    %604 = vector.extract_strided_slice %599 {offsets = [0, 0], sizes = [1, 128], strides = [1, 1]} : vector<1x384xf32> to vector<1x128xf32>
    %605 = vector.extract_strided_slice %603 {offsets = [0, 0], sizes = [1, 128], strides = [1, 1]} : vector<1x384xf32> to vector<1x128xf32>
    %606 = arith.addf %604, %605 : vector<1x128xf32>
    %607 = arith.negf %606 : vector<1x128xf32>
    %608 = math.exp %607 : vector<1x128xf32>
    %cst_216 = arith.constant 1.000000e+00 : f32
    %609 = vector.broadcast %cst_216 : f32 to vector<1x128xf32>
    %610 = arith.addf %609, %608 : vector<1x128xf32>
    %611 = arith.divf %609, %610 : vector<1x128xf32>
    %612 = vector.extract_strided_slice %599 {offsets = [0, 128], sizes = [1, 128], strides = [1, 1]} : vector<1x384xf32> to vector<1x128xf32>
    %613 = vector.extract_strided_slice %603 {offsets = [0, 128], sizes = [1, 128], strides = [1, 1]} : vector<1x384xf32> to vector<1x128xf32>
    %614 = arith.addf %612, %613 : vector<1x128xf32>
    %615 = arith.negf %614 : vector<1x128xf32>
    %616 = math.exp %615 : vector<1x128xf32>
    %cst_217 = arith.constant 1.000000e+00 : f32
    %617 = vector.broadcast %cst_217 : f32 to vector<1x128xf32>
    %618 = arith.addf %617, %616 : vector<1x128xf32>
    %619 = arith.divf %617, %618 : vector<1x128xf32>
    %620 = vector.extract_strided_slice %599 {offsets = [0, 256], sizes = [1, 128], strides = [1, 1]} : vector<1x384xf32> to vector<1x128xf32>
    %621 = vector.extract_strided_slice %603 {offsets = [0, 256], sizes = [1, 128], strides = [1, 1]} : vector<1x384xf32> to vector<1x128xf32>
    %622 = arith.mulf %611, %621 : vector<1x128xf32>
    %623 = arith.addf %620, %622 : vector<1x128xf32>
    %624 = math.tanh %623 : vector<1x128xf32>
    %cst_218 = arith.constant 1.000000e+00 : f32
    %625 = vector.broadcast %cst_218 : f32 to vector<1x128xf32>
    %626 = arith.subf %625, %619 : vector<1x128xf32>
    %627 = arith.mulf %626, %624 : vector<1x128xf32>
    %628 = arith.mulf %619, %537 : vector<1x128xf32>
    %629 = arith.addf %627, %628 : vector<1x128xf32>
    %cst_219 = arith.constant dense<0.000000e+00> : vector<1x8xf32>
    %630 = tpu.matmul %629, %317, %cst_219 {dimension_numbers = #tpu.dot_dimension_numbers<[1], [0], [0], [1], [0, 0, 1, 1], [], []>} : vector<1x128xf32>, vector<128x8xf32>, vector<1x8xf32> -> vector<1x8xf32>
    %cst_220 = arith.constant dense<0xFF800000> : vector<1xf32>
    %631 = vector.multi_reduction <maximumf>, %630, %cst_220 [1] : vector<1x8xf32> to vector<1xf32>
    %cst_221 = arith.constant 0xFF800000 : f32
    %632 = vector.broadcast %cst_221 : f32 to vector<1xf32>
    %633 = arith.maximumf %632, %631 : vector<1xf32>
    %634 = vector.shape_cast %633 : vector<1xf32> to vector<1x1xf32>
    %635 = vector.broadcast %634 : vector<1x1xf32> to vector<1x8xf32>
    %636 = arith.subf %630, %635 : vector<1x8xf32>
    %637 = math.exp %636 : vector<1x8xf32>
    %cst_222 = arith.constant dense<0.000000e+00> : vector<1xf32>
    %638 = vector.multi_reduction <add>, %637, %cst_222 [1] : vector<1x8xf32> to vector<1xf32>
    %639 = vector.shape_cast %638 : vector<1xf32> to vector<1x1xf32>
    %640 = vector.broadcast %639 : vector<1x1xf32> to vector<1x8xf32>
    %641 = arith.divf %637, %640 : vector<1x8xf32>
    %cst_223 = arith.constant dense<0.000000e+00> : vector<1x128xf32>
    %642 = tpu.matmul %641, %316, %cst_223 {dimension_numbers = #tpu.dot_dimension_numbers<[1], [0], [0], [1], [0, 0, 1, 1], [], []>} : vector<1x8xf32>, vector<8x128xf32>, vector<1x128xf32> -> vector<1x128xf32>
    %643 = tpu.concatenate %629, %642 in 1 : vector<1x128xf32>, vector<1x128xf32> -> vector<1x256xf32>
    %c0_224 = arith.constant 0 : index
    %c0_225 = arith.constant 0 : index
    %644 = vector.load %arg8[%c0_224, %c0_225] : memref<256x128xf32, #tpu.memory_space<vmem>>, vector<256x128xf32>
    %cst_226 = arith.constant dense<0.000000e+00> : vector<1x128xf32>
    %645 = tpu.matmul %643, %644, %cst_226 {dimension_numbers = #tpu.dot_dimension_numbers<[1], [0], [0], [1], [0, 0, 1, 1], [], []>} : vector<1x256xf32>, vector<256x128xf32>, vector<1x128xf32> -> vector<1x128xf32>
    %c0_227 = arith.constant 0 : index
    %c0_228 = arith.constant 0 : index
    %646 = vector.load %arg9[%c0_227, %c0_228] : memref<1x128xf32, #tpu.memory_space<vmem>>, vector<1x128xf32>
    %647 = arith.addf %645, %646 : vector<1x128xf32>
    %648 = math.tanh %647 : vector<1x128xf32>
    %cst_229 = arith.constant -1.000000e+30 : f32
    %649 = vector.broadcast %cst_229 : f32 to vector<1x1xf32>
    %cst_230 = arith.constant 0.000000e+00 : f32
    %650 = vector.broadcast %cst_230 : f32 to vector<1x1xf32>
    %c0_231 = arith.constant 0 : index
    %c0_232 = arith.constant 0 : index
    %651 = vector.load %arg18[%c0_231, %c0_232] : memref<128x128xf32, #tpu.memory_space<vmem>>, vector<128x128xf32>
    %cst_233 = arith.constant dense<0.000000e+00> : vector<1x128xf32>
    %652 = tpu.matmul %648, %651, %cst_233 {dimension_numbers = #tpu.dot_dimension_numbers<[1], [0], [0], [1], [0, 0, 1, 1], [], []>} : vector<1x128xf32>, vector<128x128xf32>, vector<1x128xf32> -> vector<1x128xf32>
    %c0_234 = arith.constant 0 : index
    %c0_235 = arith.constant 0 : index
    %653 = vector.load %arg19[%c0_234, %c0_235] : memref<1x128xf32, #tpu.memory_space<vmem>>, vector<1x128xf32>
    %654 = arith.addf %652, %653 : vector<1x128xf32>
    %cst_236 = arith.constant dense<0xFF800000> : vector<1xf32>
    %655 = vector.multi_reduction <maximumf>, %654, %cst_236 [1] : vector<1x128xf32> to vector<1xf32>
    %656 = vector.shape_cast %655 : vector<1xf32> to vector<1x1xf32>
    %657 = arith.maximumf %649, %656 : vector<1x1xf32>
    %658 = arith.subf %649, %657 : vector<1x1xf32>
    %659 = math.exp %658 : vector<1x1xf32>
    %660 = arith.mulf %650, %659 : vector<1x1xf32>
    %661 = vector.broadcast %657 : vector<1x1xf32> to vector<1x128xf32>
    %662 = arith.subf %654, %661 : vector<1x128xf32>
    %663 = math.exp %662 : vector<1x128xf32>
    %cst_237 = arith.constant dense<0.000000e+00> : vector<1xf32>
    %664 = vector.multi_reduction <add>, %663, %cst_237 [1] : vector<1x128xf32> to vector<1xf32>
    %665 = vector.shape_cast %664 : vector<1xf32> to vector<1x1xf32>
    %666 = arith.addf %660, %665 : vector<1x1xf32>
    %667 = vector.broadcast %656 : vector<1x1xf32> to vector<1x128xf32>
    %668 = arith.cmpf oeq, %654, %667 : vector<1x128xf32>
    %c128_i32_238 = arith.constant 128 : i32
    %669 = vector.broadcast %c128_i32_238 : i32 to vector<1x128xi32>
    %670 = arith.select %668, %318, %669 : vector<1x128xi1>, vector<1x128xi32>
    %671 = vector.shape_cast %670 : vector<1x128xi32> to vector<1x1x128xi32>
    %cst_239 = arith.constant dense<2147483647> : vector<1xi32>
    %672 = vector.multi_reduction <minsi>, %671, %cst_239 [1, 2] : vector<1x1x128xi32> to vector<1xi32>
    %673 = vector.shape_cast %672 : vector<1xi32> to vector<1x1x1xi32>
    %674 = vector.extract %673[0, 0, 0] : i32 from vector<1x1x1xi32>
    %c0_i32_240 = arith.constant 0 : i32
    %675 = arith.addi %674, %c0_i32_240 : i32
    %676 = vector.extract %656[0, 0] : f32 from vector<1x1xf32>
    %cst_241 = arith.constant -1.000000e+30 : f32
    %677 = arith.cmpf ogt, %676, %cst_241 : f32
    %c0_i32_242 = arith.constant 0 : i32
    %678 = arith.select %677, %675, %c0_i32_242 : i32
    %679 = tpu.reciprocal %666 {approx = true} : vector<1x1xf32> -> vector<1x1xf32>
    %680 = vector.extract %679[0, 0] : f32 from vector<1x1xf32>
    %681 = arith.index_cast %c3_i32_209 : i32 to index
    %682 = memref.load %arg13[%681] : memref<8xi32, #tpu.memory_space<smem>>
    memref.store %678, %arg13[%681] : memref<8xi32, #tpu.memory_space<smem>>
    %683 = arith.index_cast %c3_i32_209 : i32 to index
    %684 = memref.load %arg14[%683] : memref<8xf32, #tpu.memory_space<smem>>
    memref.store %680, %arg14[%683] : memref<8xf32, #tpu.memory_space<smem>>
    %c1_i32_243 = arith.constant 1 : i32
    %685 = arith.addi %c3_i32_209, %c1_i32_243 : i32
    %686 = arith.index_cast %685 : i32 to index
    %687 = memref.load %arg21[%686] : memref<9xi32, #tpu.memory_space<smem>>
    memref.store %678, %arg21[%686] : memref<9xi32, #tpu.memory_space<smem>>
    %c4_i32_244 = arith.constant 4 : i32
    %688 = arith.index_cast %c4_i32_244 : i32 to index
    %689 = memref.load %arg21[%688] : memref<9xi32, #tpu.memory_space<smem>>
    %690 = arith.index_cast %689 : i32 to index
    %c0_245 = arith.constant 0 : index
    %691 = vector.load %arg17[%690, %c0_245] : memref<128x384xf32, #tpu.memory_space<vmem>>, vector<1x384xf32>
    %c0_246 = arith.constant 0 : index
    %c0_247 = arith.constant 0 : index
    %692 = vector.load %arg6[%c0_246, %c0_247] : memref<128x384xf32, #tpu.memory_space<vmem>>, vector<128x384xf32>
    %cst_248 = arith.constant dense<0.000000e+00> : vector<1x384xf32>
    %693 = tpu.matmul %629, %692, %cst_248 {dimension_numbers = #tpu.dot_dimension_numbers<[1], [0], [0], [1], [0, 0, 1, 1], [], []>} : vector<1x128xf32>, vector<128x384xf32>, vector<1x384xf32> -> vector<1x384xf32>
    %c0_249 = arith.constant 0 : index
    %c0_250 = arith.constant 0 : index
    %694 = vector.load %arg7[%c0_249, %c0_250] : memref<1x384xf32, #tpu.memory_space<vmem>>, vector<1x384xf32>
    %695 = arith.addf %693, %694 : vector<1x384xf32>
    %696 = vector.extract_strided_slice %691 {offsets = [0, 0], sizes = [1, 128], strides = [1, 1]} : vector<1x384xf32> to vector<1x128xf32>
    %697 = vector.extract_strided_slice %695 {offsets = [0, 0], sizes = [1, 128], strides = [1, 1]} : vector<1x384xf32> to vector<1x128xf32>
    %698 = arith.addf %696, %697 : vector<1x128xf32>
    %699 = arith.negf %698 : vector<1x128xf32>
    %700 = math.exp %699 : vector<1x128xf32>
    %cst_251 = arith.constant 1.000000e+00 : f32
    %701 = vector.broadcast %cst_251 : f32 to vector<1x128xf32>
    %702 = arith.addf %701, %700 : vector<1x128xf32>
    %703 = arith.divf %701, %702 : vector<1x128xf32>
    %704 = vector.extract_strided_slice %691 {offsets = [0, 128], sizes = [1, 128], strides = [1, 1]} : vector<1x384xf32> to vector<1x128xf32>
    %705 = vector.extract_strided_slice %695 {offsets = [0, 128], sizes = [1, 128], strides = [1, 1]} : vector<1x384xf32> to vector<1x128xf32>
    %706 = arith.addf %704, %705 : vector<1x128xf32>
    %707 = arith.negf %706 : vector<1x128xf32>
    %708 = math.exp %707 : vector<1x128xf32>
    %cst_252 = arith.constant 1.000000e+00 : f32
    %709 = vector.broadcast %cst_252 : f32 to vector<1x128xf32>
    %710 = arith.addf %709, %708 : vector<1x128xf32>
    %711 = arith.divf %709, %710 : vector<1x128xf32>
    %712 = vector.extract_strided_slice %691 {offsets = [0, 256], sizes = [1, 128], strides = [1, 1]} : vector<1x384xf32> to vector<1x128xf32>
    %713 = vector.extract_strided_slice %695 {offsets = [0, 256], sizes = [1, 128], strides = [1, 1]} : vector<1x384xf32> to vector<1x128xf32>
    %714 = arith.mulf %703, %713 : vector<1x128xf32>
    %715 = arith.addf %712, %714 : vector<1x128xf32>
    %716 = math.tanh %715 : vector<1x128xf32>
    %cst_253 = arith.constant 1.000000e+00 : f32
    %717 = vector.broadcast %cst_253 : f32 to vector<1x128xf32>
    %718 = arith.subf %717, %711 : vector<1x128xf32>
    %719 = arith.mulf %718, %716 : vector<1x128xf32>
    %720 = arith.mulf %711, %629 : vector<1x128xf32>
    %721 = arith.addf %719, %720 : vector<1x128xf32>
    %cst_254 = arith.constant dense<0.000000e+00> : vector<1x8xf32>
    %722 = tpu.matmul %721, %317, %cst_254 {dimension_numbers = #tpu.dot_dimension_numbers<[1], [0], [0], [1], [0, 0, 1, 1], [], []>} : vector<1x128xf32>, vector<128x8xf32>, vector<1x8xf32> -> vector<1x8xf32>
    %cst_255 = arith.constant dense<0xFF800000> : vector<1xf32>
    %723 = vector.multi_reduction <maximumf>, %722, %cst_255 [1] : vector<1x8xf32> to vector<1xf32>
    %cst_256 = arith.constant 0xFF800000 : f32
    %724 = vector.broadcast %cst_256 : f32 to vector<1xf32>
    %725 = arith.maximumf %724, %723 : vector<1xf32>
    %726 = vector.shape_cast %725 : vector<1xf32> to vector<1x1xf32>
    %727 = vector.broadcast %726 : vector<1x1xf32> to vector<1x8xf32>
    %728 = arith.subf %722, %727 : vector<1x8xf32>
    %729 = math.exp %728 : vector<1x8xf32>
    %cst_257 = arith.constant dense<0.000000e+00> : vector<1xf32>
    %730 = vector.multi_reduction <add>, %729, %cst_257 [1] : vector<1x8xf32> to vector<1xf32>
    %731 = vector.shape_cast %730 : vector<1xf32> to vector<1x1xf32>
    %732 = vector.broadcast %731 : vector<1x1xf32> to vector<1x8xf32>
    %733 = arith.divf %729, %732 : vector<1x8xf32>
    %cst_258 = arith.constant dense<0.000000e+00> : vector<1x128xf32>
    %734 = tpu.matmul %733, %316, %cst_258 {dimension_numbers = #tpu.dot_dimension_numbers<[1], [0], [0], [1], [0, 0, 1, 1], [], []>} : vector<1x8xf32>, vector<8x128xf32>, vector<1x128xf32> -> vector<1x128xf32>
    %735 = tpu.concatenate %721, %734 in 1 : vector<1x128xf32>, vector<1x128xf32> -> vector<1x256xf32>
    %c0_259 = arith.constant 0 : index
    %c0_260 = arith.constant 0 : index
    %736 = vector.load %arg8[%c0_259, %c0_260] : memref<256x128xf32, #tpu.memory_space<vmem>>, vector<256x128xf32>
    %cst_261 = arith.constant dense<0.000000e+00> : vector<1x128xf32>
    %737 = tpu.matmul %735, %736, %cst_261 {dimension_numbers = #tpu.dot_dimension_numbers<[1], [0], [0], [1], [0, 0, 1, 1], [], []>} : vector<1x256xf32>, vector<256x128xf32>, vector<1x128xf32> -> vector<1x128xf32>
    %c0_262 = arith.constant 0 : index
    %c0_263 = arith.constant 0 : index
    %738 = vector.load %arg9[%c0_262, %c0_263] : memref<1x128xf32, #tpu.memory_space<vmem>>, vector<1x128xf32>
    %739 = arith.addf %737, %738 : vector<1x128xf32>
    %740 = math.tanh %739 : vector<1x128xf32>
    %cst_264 = arith.constant -1.000000e+30 : f32
    %741 = vector.broadcast %cst_264 : f32 to vector<1x1xf32>
    %cst_265 = arith.constant 0.000000e+00 : f32
    %742 = vector.broadcast %cst_265 : f32 to vector<1x1xf32>
    %c0_266 = arith.constant 0 : index
    %c0_267 = arith.constant 0 : index
    %743 = vector.load %arg18[%c0_266, %c0_267] : memref<128x128xf32, #tpu.memory_space<vmem>>, vector<128x128xf32>
    %cst_268 = arith.constant dense<0.000000e+00> : vector<1x128xf32>
    %744 = tpu.matmul %740, %743, %cst_268 {dimension_numbers = #tpu.dot_dimension_numbers<[1], [0], [0], [1], [0, 0, 1, 1], [], []>} : vector<1x128xf32>, vector<128x128xf32>, vector<1x128xf32> -> vector<1x128xf32>
    %c0_269 = arith.constant 0 : index
    %c0_270 = arith.constant 0 : index
    %745 = vector.load %arg19[%c0_269, %c0_270] : memref<1x128xf32, #tpu.memory_space<vmem>>, vector<1x128xf32>
    %746 = arith.addf %744, %745 : vector<1x128xf32>
    %cst_271 = arith.constant dense<0xFF800000> : vector<1xf32>
    %747 = vector.multi_reduction <maximumf>, %746, %cst_271 [1] : vector<1x128xf32> to vector<1xf32>
    %748 = vector.shape_cast %747 : vector<1xf32> to vector<1x1xf32>
    %749 = arith.maximumf %741, %748 : vector<1x1xf32>
    %750 = arith.subf %741, %749 : vector<1x1xf32>
    %751 = math.exp %750 : vector<1x1xf32>
    %752 = arith.mulf %742, %751 : vector<1x1xf32>
    %753 = vector.broadcast %749 : vector<1x1xf32> to vector<1x128xf32>
    %754 = arith.subf %746, %753 : vector<1x128xf32>
    %755 = math.exp %754 : vector<1x128xf32>
    %cst_272 = arith.constant dense<0.000000e+00> : vector<1xf32>
    %756 = vector.multi_reduction <add>, %755, %cst_272 [1] : vector<1x128xf32> to vector<1xf32>
    %757 = vector.shape_cast %756 : vector<1xf32> to vector<1x1xf32>
    %758 = arith.addf %752, %757 : vector<1x1xf32>
    %759 = vector.broadcast %748 : vector<1x1xf32> to vector<1x128xf32>
    %760 = arith.cmpf oeq, %746, %759 : vector<1x128xf32>
    %c128_i32_273 = arith.constant 128 : i32
    %761 = vector.broadcast %c128_i32_273 : i32 to vector<1x128xi32>
    %762 = arith.select %760, %318, %761 : vector<1x128xi1>, vector<1x128xi32>
    %763 = vector.shape_cast %762 : vector<1x128xi32> to vector<1x1x128xi32>
    %cst_274 = arith.constant dense<2147483647> : vector<1xi32>
    %764 = vector.multi_reduction <minsi>, %763, %cst_274 [1, 2] : vector<1x1x128xi32> to vector<1xi32>
    %765 = vector.shape_cast %764 : vector<1xi32> to vector<1x1x1xi32>
    %766 = vector.extract %765[0, 0, 0] : i32 from vector<1x1x1xi32>
    %c0_i32_275 = arith.constant 0 : i32
    %767 = arith.addi %766, %c0_i32_275 : i32
    %768 = vector.extract %748[0, 0] : f32 from vector<1x1xf32>
    %cst_276 = arith.constant -1.000000e+30 : f32
    %769 = arith.cmpf ogt, %768, %cst_276 : f32
    %c0_i32_277 = arith.constant 0 : i32
    %770 = arith.select %769, %767, %c0_i32_277 : i32
    %771 = tpu.reciprocal %758 {approx = true} : vector<1x1xf32> -> vector<1x1xf32>
    %772 = vector.extract %771[0, 0] : f32 from vector<1x1xf32>
    %773 = arith.index_cast %c4_i32_244 : i32 to index
    %774 = memref.load %arg13[%773] : memref<8xi32, #tpu.memory_space<smem>>
    memref.store %770, %arg13[%773] : memref<8xi32, #tpu.memory_space<smem>>
    %775 = arith.index_cast %c4_i32_244 : i32 to index
    %776 = memref.load %arg14[%775] : memref<8xf32, #tpu.memory_space<smem>>
    memref.store %772, %arg14[%775] : memref<8xf32, #tpu.memory_space<smem>>
    %c1_i32_278 = arith.constant 1 : i32
    %777 = arith.addi %c4_i32_244, %c1_i32_278 : i32
    %778 = arith.index_cast %777 : i32 to index
    %779 = memref.load %arg21[%778] : memref<9xi32, #tpu.memory_space<smem>>
    memref.store %770, %arg21[%778] : memref<9xi32, #tpu.memory_space<smem>>
    %c5_i32_279 = arith.constant 5 : i32
    %780 = arith.index_cast %c5_i32_279 : i32 to index
    %781 = memref.load %arg21[%780] : memref<9xi32, #tpu.memory_space<smem>>
    %782 = arith.index_cast %781 : i32 to index
    %c0_280 = arith.constant 0 : index
    %783 = vector.load %arg17[%782, %c0_280] : memref<128x384xf32, #tpu.memory_space<vmem>>, vector<1x384xf32>
    %c0_281 = arith.constant 0 : index
    %c0_282 = arith.constant 0 : index
    %784 = vector.load %arg6[%c0_281, %c0_282] : memref<128x384xf32, #tpu.memory_space<vmem>>, vector<128x384xf32>
    %cst_283 = arith.constant dense<0.000000e+00> : vector<1x384xf32>
    %785 = tpu.matmul %721, %784, %cst_283 {dimension_numbers = #tpu.dot_dimension_numbers<[1], [0], [0], [1], [0, 0, 1, 1], [], []>} : vector<1x128xf32>, vector<128x384xf32>, vector<1x384xf32> -> vector<1x384xf32>
    %c0_284 = arith.constant 0 : index
    %c0_285 = arith.constant 0 : index
    %786 = vector.load %arg7[%c0_284, %c0_285] : memref<1x384xf32, #tpu.memory_space<vmem>>, vector<1x384xf32>
    %787 = arith.addf %785, %786 : vector<1x384xf32>
    %788 = vector.extract_strided_slice %783 {offsets = [0, 0], sizes = [1, 128], strides = [1, 1]} : vector<1x384xf32> to vector<1x128xf32>
    %789 = vector.extract_strided_slice %787 {offsets = [0, 0], sizes = [1, 128], strides = [1, 1]} : vector<1x384xf32> to vector<1x128xf32>
    %790 = arith.addf %788, %789 : vector<1x128xf32>
    %791 = arith.negf %790 : vector<1x128xf32>
    %792 = math.exp %791 : vector<1x128xf32>
    %cst_286 = arith.constant 1.000000e+00 : f32
    %793 = vector.broadcast %cst_286 : f32 to vector<1x128xf32>
    %794 = arith.addf %793, %792 : vector<1x128xf32>
    %795 = arith.divf %793, %794 : vector<1x128xf32>
    %796 = vector.extract_strided_slice %783 {offsets = [0, 128], sizes = [1, 128], strides = [1, 1]} : vector<1x384xf32> to vector<1x128xf32>
    %797 = vector.extract_strided_slice %787 {offsets = [0, 128], sizes = [1, 128], strides = [1, 1]} : vector<1x384xf32> to vector<1x128xf32>
    %798 = arith.addf %796, %797 : vector<1x128xf32>
    %799 = arith.negf %798 : vector<1x128xf32>
    %800 = math.exp %799 : vector<1x128xf32>
    %cst_287 = arith.constant 1.000000e+00 : f32
    %801 = vector.broadcast %cst_287 : f32 to vector<1x128xf32>
    %802 = arith.addf %801, %800 : vector<1x128xf32>
    %803 = arith.divf %801, %802 : vector<1x128xf32>
    %804 = vector.extract_strided_slice %783 {offsets = [0, 256], sizes = [1, 128], strides = [1, 1]} : vector<1x384xf32> to vector<1x128xf32>
    %805 = vector.extract_strided_slice %787 {offsets = [0, 256], sizes = [1, 128], strides = [1, 1]} : vector<1x384xf32> to vector<1x128xf32>
    %806 = arith.mulf %795, %805 : vector<1x128xf32>
    %807 = arith.addf %804, %806 : vector<1x128xf32>
    %808 = math.tanh %807 : vector<1x128xf32>
    %cst_288 = arith.constant 1.000000e+00 : f32
    %809 = vector.broadcast %cst_288 : f32 to vector<1x128xf32>
    %810 = arith.subf %809, %803 : vector<1x128xf32>
    %811 = arith.mulf %810, %808 : vector<1x128xf32>
    %812 = arith.mulf %803, %721 : vector<1x128xf32>
    %813 = arith.addf %811, %812 : vector<1x128xf32>
    %cst_289 = arith.constant dense<0.000000e+00> : vector<1x8xf32>
    %814 = tpu.matmul %813, %317, %cst_289 {dimension_numbers = #tpu.dot_dimension_numbers<[1], [0], [0], [1], [0, 0, 1, 1], [], []>} : vector<1x128xf32>, vector<128x8xf32>, vector<1x8xf32> -> vector<1x8xf32>
    %cst_290 = arith.constant dense<0xFF800000> : vector<1xf32>
    %815 = vector.multi_reduction <maximumf>, %814, %cst_290 [1] : vector<1x8xf32> to vector<1xf32>
    %cst_291 = arith.constant 0xFF800000 : f32
    %816 = vector.broadcast %cst_291 : f32 to vector<1xf32>
    %817 = arith.maximumf %816, %815 : vector<1xf32>
    %818 = vector.shape_cast %817 : vector<1xf32> to vector<1x1xf32>
    %819 = vector.broadcast %818 : vector<1x1xf32> to vector<1x8xf32>
    %820 = arith.subf %814, %819 : vector<1x8xf32>
    %821 = math.exp %820 : vector<1x8xf32>
    %cst_292 = arith.constant dense<0.000000e+00> : vector<1xf32>
    %822 = vector.multi_reduction <add>, %821, %cst_292 [1] : vector<1x8xf32> to vector<1xf32>
    %823 = vector.shape_cast %822 : vector<1xf32> to vector<1x1xf32>
    %824 = vector.broadcast %823 : vector<1x1xf32> to vector<1x8xf32>
    %825 = arith.divf %821, %824 : vector<1x8xf32>
    %cst_293 = arith.constant dense<0.000000e+00> : vector<1x128xf32>
    %826 = tpu.matmul %825, %316, %cst_293 {dimension_numbers = #tpu.dot_dimension_numbers<[1], [0], [0], [1], [0, 0, 1, 1], [], []>} : vector<1x8xf32>, vector<8x128xf32>, vector<1x128xf32> -> vector<1x128xf32>
    %827 = tpu.concatenate %813, %826 in 1 : vector<1x128xf32>, vector<1x128xf32> -> vector<1x256xf32>
    %c0_294 = arith.constant 0 : index
    %c0_295 = arith.constant 0 : index
    %828 = vector.load %arg8[%c0_294, %c0_295] : memref<256x128xf32, #tpu.memory_space<vmem>>, vector<256x128xf32>
    %cst_296 = arith.constant dense<0.000000e+00> : vector<1x128xf32>
    %829 = tpu.matmul %827, %828, %cst_296 {dimension_numbers = #tpu.dot_dimension_numbers<[1], [0], [0], [1], [0, 0, 1, 1], [], []>} : vector<1x256xf32>, vector<256x128xf32>, vector<1x128xf32> -> vector<1x128xf32>
    %c0_297 = arith.constant 0 : index
    %c0_298 = arith.constant 0 : index
    %830 = vector.load %arg9[%c0_297, %c0_298] : memref<1x128xf32, #tpu.memory_space<vmem>>, vector<1x128xf32>
    %831 = arith.addf %829, %830 : vector<1x128xf32>
    %832 = math.tanh %831 : vector<1x128xf32>
    %cst_299 = arith.constant -1.000000e+30 : f32
    %833 = vector.broadcast %cst_299 : f32 to vector<1x1xf32>
    %cst_300 = arith.constant 0.000000e+00 : f32
    %834 = vector.broadcast %cst_300 : f32 to vector<1x1xf32>
    %c0_301 = arith.constant 0 : index
    %c0_302 = arith.constant 0 : index
    %835 = vector.load %arg18[%c0_301, %c0_302] : memref<128x128xf32, #tpu.memory_space<vmem>>, vector<128x128xf32>
    %cst_303 = arith.constant dense<0.000000e+00> : vector<1x128xf32>
    %836 = tpu.matmul %832, %835, %cst_303 {dimension_numbers = #tpu.dot_dimension_numbers<[1], [0], [0], [1], [0, 0, 1, 1], [], []>} : vector<1x128xf32>, vector<128x128xf32>, vector<1x128xf32> -> vector<1x128xf32>
    %c0_304 = arith.constant 0 : index
    %c0_305 = arith.constant 0 : index
    %837 = vector.load %arg19[%c0_304, %c0_305] : memref<1x128xf32, #tpu.memory_space<vmem>>, vector<1x128xf32>
    %838 = arith.addf %836, %837 : vector<1x128xf32>
    %cst_306 = arith.constant dense<0xFF800000> : vector<1xf32>
    %839 = vector.multi_reduction <maximumf>, %838, %cst_306 [1] : vector<1x128xf32> to vector<1xf32>
    %840 = vector.shape_cast %839 : vector<1xf32> to vector<1x1xf32>
    %841 = arith.maximumf %833, %840 : vector<1x1xf32>
    %842 = arith.subf %833, %841 : vector<1x1xf32>
    %843 = math.exp %842 : vector<1x1xf32>
    %844 = arith.mulf %834, %843 : vector<1x1xf32>
    %845 = vector.broadcast %841 : vector<1x1xf32> to vector<1x128xf32>
    %846 = arith.subf %838, %845 : vector<1x128xf32>
    %847 = math.exp %846 : vector<1x128xf32>
    %cst_307 = arith.constant dense<0.000000e+00> : vector<1xf32>
    %848 = vector.multi_reduction <add>, %847, %cst_307 [1] : vector<1x128xf32> to vector<1xf32>
    %849 = vector.shape_cast %848 : vector<1xf32> to vector<1x1xf32>
    %850 = arith.addf %844, %849 : vector<1x1xf32>
    %851 = vector.broadcast %840 : vector<1x1xf32> to vector<1x128xf32>
    %852 = arith.cmpf oeq, %838, %851 : vector<1x128xf32>
    %c128_i32_308 = arith.constant 128 : i32
    %853 = vector.broadcast %c128_i32_308 : i32 to vector<1x128xi32>
    %854 = arith.select %852, %318, %853 : vector<1x128xi1>, vector<1x128xi32>
    %855 = vector.shape_cast %854 : vector<1x128xi32> to vector<1x1x128xi32>
    %cst_309 = arith.constant dense<2147483647> : vector<1xi32>
    %856 = vector.multi_reduction <minsi>, %855, %cst_309 [1, 2] : vector<1x1x128xi32> to vector<1xi32>
    %857 = vector.shape_cast %856 : vector<1xi32> to vector<1x1x1xi32>
    %858 = vector.extract %857[0, 0, 0] : i32 from vector<1x1x1xi32>
    %c0_i32_310 = arith.constant 0 : i32
    %859 = arith.addi %858, %c0_i32_310 : i32
    %860 = vector.extract %840[0, 0] : f32 from vector<1x1xf32>
    %cst_311 = arith.constant -1.000000e+30 : f32
    %861 = arith.cmpf ogt, %860, %cst_311 : f32
    %c0_i32_312 = arith.constant 0 : i32
    %862 = arith.select %861, %859, %c0_i32_312 : i32
    %863 = tpu.reciprocal %850 {approx = true} : vector<1x1xf32> -> vector<1x1xf32>
    %864 = vector.extract %863[0, 0] : f32 from vector<1x1xf32>
    %865 = arith.index_cast %c5_i32_279 : i32 to index
    %866 = memref.load %arg13[%865] : memref<8xi32, #tpu.memory_space<smem>>
    memref.store %862, %arg13[%865] : memref<8xi32, #tpu.memory_space<smem>>
    %867 = arith.index_cast %c5_i32_279 : i32 to index
    %868 = memref.load %arg14[%867] : memref<8xf32, #tpu.memory_space<smem>>
    memref.store %864, %arg14[%867] : memref<8xf32, #tpu.memory_space<smem>>
    %c1_i32_313 = arith.constant 1 : i32
    %869 = arith.addi %c5_i32_279, %c1_i32_313 : i32
    %870 = arith.index_cast %869 : i32 to index
    %871 = memref.load %arg21[%870] : memref<9xi32, #tpu.memory_space<smem>>
    memref.store %862, %arg21[%870] : memref<9xi32, #tpu.memory_space<smem>>
    %c6_i32_314 = arith.constant 6 : i32
    %872 = arith.index_cast %c6_i32_314 : i32 to index
    %873 = memref.load %arg21[%872] : memref<9xi32, #tpu.memory_space<smem>>
    %874 = arith.index_cast %873 : i32 to index
    %c0_315 = arith.constant 0 : index
    %875 = vector.load %arg17[%874, %c0_315] : memref<128x384xf32, #tpu.memory_space<vmem>>, vector<1x384xf32>
    %c0_316 = arith.constant 0 : index
    %c0_317 = arith.constant 0 : index
    %876 = vector.load %arg6[%c0_316, %c0_317] : memref<128x384xf32, #tpu.memory_space<vmem>>, vector<128x384xf32>
    %cst_318 = arith.constant dense<0.000000e+00> : vector<1x384xf32>
    %877 = tpu.matmul %813, %876, %cst_318 {dimension_numbers = #tpu.dot_dimension_numbers<[1], [0], [0], [1], [0, 0, 1, 1], [], []>} : vector<1x128xf32>, vector<128x384xf32>, vector<1x384xf32> -> vector<1x384xf32>
    %c0_319 = arith.constant 0 : index
    %c0_320 = arith.constant 0 : index
    %878 = vector.load %arg7[%c0_319, %c0_320] : memref<1x384xf32, #tpu.memory_space<vmem>>, vector<1x384xf32>
    %879 = arith.addf %877, %878 : vector<1x384xf32>
    %880 = vector.extract_strided_slice %875 {offsets = [0, 0], sizes = [1, 128], strides = [1, 1]} : vector<1x384xf32> to vector<1x128xf32>
    %881 = vector.extract_strided_slice %879 {offsets = [0, 0], sizes = [1, 128], strides = [1, 1]} : vector<1x384xf32> to vector<1x128xf32>
    %882 = arith.addf %880, %881 : vector<1x128xf32>
    %883 = arith.negf %882 : vector<1x128xf32>
    %884 = math.exp %883 : vector<1x128xf32>
    %cst_321 = arith.constant 1.000000e+00 : f32
    %885 = vector.broadcast %cst_321 : f32 to vector<1x128xf32>
    %886 = arith.addf %885, %884 : vector<1x128xf32>
    %887 = arith.divf %885, %886 : vector<1x128xf32>
    %888 = vector.extract_strided_slice %875 {offsets = [0, 128], sizes = [1, 128], strides = [1, 1]} : vector<1x384xf32> to vector<1x128xf32>
    %889 = vector.extract_strided_slice %879 {offsets = [0, 128], sizes = [1, 128], strides = [1, 1]} : vector<1x384xf32> to vector<1x128xf32>
    %890 = arith.addf %888, %889 : vector<1x128xf32>
    %891 = arith.negf %890 : vector<1x128xf32>
    %892 = math.exp %891 : vector<1x128xf32>
    %cst_322 = arith.constant 1.000000e+00 : f32
    %893 = vector.broadcast %cst_322 : f32 to vector<1x128xf32>
    %894 = arith.addf %893, %892 : vector<1x128xf32>
    %895 = arith.divf %893, %894 : vector<1x128xf32>
    %896 = vector.extract_strided_slice %875 {offsets = [0, 256], sizes = [1, 128], strides = [1, 1]} : vector<1x384xf32> to vector<1x128xf32>
    %897 = vector.extract_strided_slice %879 {offsets = [0, 256], sizes = [1, 128], strides = [1, 1]} : vector<1x384xf32> to vector<1x128xf32>
    %898 = arith.mulf %887, %897 : vector<1x128xf32>
    %899 = arith.addf %896, %898 : vector<1x128xf32>
    %900 = math.tanh %899 : vector<1x128xf32>
    %cst_323 = arith.constant 1.000000e+00 : f32
    %901 = vector.broadcast %cst_323 : f32 to vector<1x128xf32>
    %902 = arith.subf %901, %895 : vector<1x128xf32>
    %903 = arith.mulf %902, %900 : vector<1x128xf32>
    %904 = arith.mulf %895, %813 : vector<1x128xf32>
    %905 = arith.addf %903, %904 : vector<1x128xf32>
    %cst_324 = arith.constant dense<0.000000e+00> : vector<1x8xf32>
    %906 = tpu.matmul %905, %317, %cst_324 {dimension_numbers = #tpu.dot_dimension_numbers<[1], [0], [0], [1], [0, 0, 1, 1], [], []>} : vector<1x128xf32>, vector<128x8xf32>, vector<1x8xf32> -> vector<1x8xf32>
    %cst_325 = arith.constant dense<0xFF800000> : vector<1xf32>
    %907 = vector.multi_reduction <maximumf>, %906, %cst_325 [1] : vector<1x8xf32> to vector<1xf32>
    %cst_326 = arith.constant 0xFF800000 : f32
    %908 = vector.broadcast %cst_326 : f32 to vector<1xf32>
    %909 = arith.maximumf %908, %907 : vector<1xf32>
    %910 = vector.shape_cast %909 : vector<1xf32> to vector<1x1xf32>
    %911 = vector.broadcast %910 : vector<1x1xf32> to vector<1x8xf32>
    %912 = arith.subf %906, %911 : vector<1x8xf32>
    %913 = math.exp %912 : vector<1x8xf32>
    %cst_327 = arith.constant dense<0.000000e+00> : vector<1xf32>
    %914 = vector.multi_reduction <add>, %913, %cst_327 [1] : vector<1x8xf32> to vector<1xf32>
    %915 = vector.shape_cast %914 : vector<1xf32> to vector<1x1xf32>
    %916 = vector.broadcast %915 : vector<1x1xf32> to vector<1x8xf32>
    %917 = arith.divf %913, %916 : vector<1x8xf32>
    %cst_328 = arith.constant dense<0.000000e+00> : vector<1x128xf32>
    %918 = tpu.matmul %917, %316, %cst_328 {dimension_numbers = #tpu.dot_dimension_numbers<[1], [0], [0], [1], [0, 0, 1, 1], [], []>} : vector<1x8xf32>, vector<8x128xf32>, vector<1x128xf32> -> vector<1x128xf32>
    %919 = tpu.concatenate %905, %918 in 1 : vector<1x128xf32>, vector<1x128xf32> -> vector<1x256xf32>
    %c0_329 = arith.constant 0 : index
    %c0_330 = arith.constant 0 : index
    %920 = vector.load %arg8[%c0_329, %c0_330] : memref<256x128xf32, #tpu.memory_space<vmem>>, vector<256x128xf32>
    %cst_331 = arith.constant dense<0.000000e+00> : vector<1x128xf32>
    %921 = tpu.matmul %919, %920, %cst_331 {dimension_numbers = #tpu.dot_dimension_numbers<[1], [0], [0], [1], [0, 0, 1, 1], [], []>} : vector<1x256xf32>, vector<256x128xf32>, vector<1x128xf32> -> vector<1x128xf32>
    %c0_332 = arith.constant 0 : index
    %c0_333 = arith.constant 0 : index
    %922 = vector.load %arg9[%c0_332, %c0_333] : memref<1x128xf32, #tpu.memory_space<vmem>>, vector<1x128xf32>
    %923 = arith.addf %921, %922 : vector<1x128xf32>
    %924 = math.tanh %923 : vector<1x128xf32>
    %cst_334 = arith.constant -1.000000e+30 : f32
    %925 = vector.broadcast %cst_334 : f32 to vector<1x1xf32>
    %cst_335 = arith.constant 0.000000e+00 : f32
    %926 = vector.broadcast %cst_335 : f32 to vector<1x1xf32>
    %c0_336 = arith.constant 0 : index
    %c0_337 = arith.constant 0 : index
    %927 = vector.load %arg18[%c0_336, %c0_337] : memref<128x128xf32, #tpu.memory_space<vmem>>, vector<128x128xf32>
    %cst_338 = arith.constant dense<0.000000e+00> : vector<1x128xf32>
    %928 = tpu.matmul %924, %927, %cst_338 {dimension_numbers = #tpu.dot_dimension_numbers<[1], [0], [0], [1], [0, 0, 1, 1], [], []>} : vector<1x128xf32>, vector<128x128xf32>, vector<1x128xf32> -> vector<1x128xf32>
    %c0_339 = arith.constant 0 : index
    %c0_340 = arith.constant 0 : index
    %929 = vector.load %arg19[%c0_339, %c0_340] : memref<1x128xf32, #tpu.memory_space<vmem>>, vector<1x128xf32>
    %930 = arith.addf %928, %929 : vector<1x128xf32>
    %cst_341 = arith.constant dense<0xFF800000> : vector<1xf32>
    %931 = vector.multi_reduction <maximumf>, %930, %cst_341 [1] : vector<1x128xf32> to vector<1xf32>
    %932 = vector.shape_cast %931 : vector<1xf32> to vector<1x1xf32>
    %933 = arith.maximumf %925, %932 : vector<1x1xf32>
    %934 = arith.subf %925, %933 : vector<1x1xf32>
    %935 = math.exp %934 : vector<1x1xf32>
    %936 = arith.mulf %926, %935 : vector<1x1xf32>
    %937 = vector.broadcast %933 : vector<1x1xf32> to vector<1x128xf32>
    %938 = arith.subf %930, %937 : vector<1x128xf32>
    %939 = math.exp %938 : vector<1x128xf32>
    %cst_342 = arith.constant dense<0.000000e+00> : vector<1xf32>
    %940 = vector.multi_reduction <add>, %939, %cst_342 [1] : vector<1x128xf32> to vector<1xf32>
    %941 = vector.shape_cast %940 : vector<1xf32> to vector<1x1xf32>
    %942 = arith.addf %936, %941 : vector<1x1xf32>
    %943 = vector.broadcast %932 : vector<1x1xf32> to vector<1x128xf32>
    %944 = arith.cmpf oeq, %930, %943 : vector<1x128xf32>
    %c128_i32_343 = arith.constant 128 : i32
    %945 = vector.broadcast %c128_i32_343 : i32 to vector<1x128xi32>
    %946 = arith.select %944, %318, %945 : vector<1x128xi1>, vector<1x128xi32>
    %947 = vector.shape_cast %946 : vector<1x128xi32> to vector<1x1x128xi32>
    %cst_344 = arith.constant dense<2147483647> : vector<1xi32>
    %948 = vector.multi_reduction <minsi>, %947, %cst_344 [1, 2] : vector<1x1x128xi32> to vector<1xi32>
    %949 = vector.shape_cast %948 : vector<1xi32> to vector<1x1x1xi32>
    %950 = vector.extract %949[0, 0, 0] : i32 from vector<1x1x1xi32>
    %c0_i32_345 = arith.constant 0 : i32
    %951 = arith.addi %950, %c0_i32_345 : i32
    %952 = vector.extract %932[0, 0] : f32 from vector<1x1xf32>
    %cst_346 = arith.constant -1.000000e+30 : f32
    %953 = arith.cmpf ogt, %952, %cst_346 : f32
    %c0_i32_347 = arith.constant 0 : i32
    %954 = arith.select %953, %951, %c0_i32_347 : i32
    %955 = tpu.reciprocal %942 {approx = true} : vector<1x1xf32> -> vector<1x1xf32>
    %956 = vector.extract %955[0, 0] : f32 from vector<1x1xf32>
    %957 = arith.index_cast %c6_i32_314 : i32 to index
    %958 = memref.load %arg13[%957] : memref<8xi32, #tpu.memory_space<smem>>
    memref.store %954, %arg13[%957] : memref<8xi32, #tpu.memory_space<smem>>
    %959 = arith.index_cast %c6_i32_314 : i32 to index
    %960 = memref.load %arg14[%959] : memref<8xf32, #tpu.memory_space<smem>>
    memref.store %956, %arg14[%959] : memref<8xf32, #tpu.memory_space<smem>>
    %c1_i32_348 = arith.constant 1 : i32
    %961 = arith.addi %c6_i32_314, %c1_i32_348 : i32
    %962 = arith.index_cast %961 : i32 to index
    %963 = memref.load %arg21[%962] : memref<9xi32, #tpu.memory_space<smem>>
    memref.store %954, %arg21[%962] : memref<9xi32, #tpu.memory_space<smem>>
    %c7_i32_349 = arith.constant 7 : i32
    %964 = arith.index_cast %c7_i32_349 : i32 to index
    %965 = memref.load %arg21[%964] : memref<9xi32, #tpu.memory_space<smem>>
    %966 = arith.index_cast %965 : i32 to index
    %c0_350 = arith.constant 0 : index
    %967 = vector.load %arg17[%966, %c0_350] : memref<128x384xf32, #tpu.memory_space<vmem>>, vector<1x384xf32>
    %c0_351 = arith.constant 0 : index
    %c0_352 = arith.constant 0 : index
    %968 = vector.load %arg6[%c0_351, %c0_352] : memref<128x384xf32, #tpu.memory_space<vmem>>, vector<128x384xf32>
    %cst_353 = arith.constant dense<0.000000e+00> : vector<1x384xf32>
    %969 = tpu.matmul %905, %968, %cst_353 {dimension_numbers = #tpu.dot_dimension_numbers<[1], [0], [0], [1], [0, 0, 1, 1], [], []>} : vector<1x128xf32>, vector<128x384xf32>, vector<1x384xf32> -> vector<1x384xf32>
    %c0_354 = arith.constant 0 : index
    %c0_355 = arith.constant 0 : index
    %970 = vector.load %arg7[%c0_354, %c0_355] : memref<1x384xf32, #tpu.memory_space<vmem>>, vector<1x384xf32>
    %971 = arith.addf %969, %970 : vector<1x384xf32>
    %972 = vector.extract_strided_slice %967 {offsets = [0, 0], sizes = [1, 128], strides = [1, 1]} : vector<1x384xf32> to vector<1x128xf32>
    %973 = vector.extract_strided_slice %971 {offsets = [0, 0], sizes = [1, 128], strides = [1, 1]} : vector<1x384xf32> to vector<1x128xf32>
    %974 = arith.addf %972, %973 : vector<1x128xf32>
    %975 = arith.negf %974 : vector<1x128xf32>
    %976 = math.exp %975 : vector<1x128xf32>
    %cst_356 = arith.constant 1.000000e+00 : f32
    %977 = vector.broadcast %cst_356 : f32 to vector<1x128xf32>
    %978 = arith.addf %977, %976 : vector<1x128xf32>
    %979 = arith.divf %977, %978 : vector<1x128xf32>
    %980 = vector.extract_strided_slice %967 {offsets = [0, 128], sizes = [1, 128], strides = [1, 1]} : vector<1x384xf32> to vector<1x128xf32>
    %981 = vector.extract_strided_slice %971 {offsets = [0, 128], sizes = [1, 128], strides = [1, 1]} : vector<1x384xf32> to vector<1x128xf32>
    %982 = arith.addf %980, %981 : vector<1x128xf32>
    %983 = arith.negf %982 : vector<1x128xf32>
    %984 = math.exp %983 : vector<1x128xf32>
    %cst_357 = arith.constant 1.000000e+00 : f32
    %985 = vector.broadcast %cst_357 : f32 to vector<1x128xf32>
    %986 = arith.addf %985, %984 : vector<1x128xf32>
    %987 = arith.divf %985, %986 : vector<1x128xf32>
    %988 = vector.extract_strided_slice %967 {offsets = [0, 256], sizes = [1, 128], strides = [1, 1]} : vector<1x384xf32> to vector<1x128xf32>
    %989 = vector.extract_strided_slice %971 {offsets = [0, 256], sizes = [1, 128], strides = [1, 1]} : vector<1x384xf32> to vector<1x128xf32>
    %990 = arith.mulf %979, %989 : vector<1x128xf32>
    %991 = arith.addf %988, %990 : vector<1x128xf32>
    %992 = math.tanh %991 : vector<1x128xf32>
    %cst_358 = arith.constant 1.000000e+00 : f32
    %993 = vector.broadcast %cst_358 : f32 to vector<1x128xf32>
    %994 = arith.subf %993, %987 : vector<1x128xf32>
    %995 = arith.mulf %994, %992 : vector<1x128xf32>
    %996 = arith.mulf %987, %905 : vector<1x128xf32>
    %997 = arith.addf %995, %996 : vector<1x128xf32>
    %cst_359 = arith.constant dense<0.000000e+00> : vector<1x8xf32>
    %998 = tpu.matmul %997, %317, %cst_359 {dimension_numbers = #tpu.dot_dimension_numbers<[1], [0], [0], [1], [0, 0, 1, 1], [], []>} : vector<1x128xf32>, vector<128x8xf32>, vector<1x8xf32> -> vector<1x8xf32>
    %cst_360 = arith.constant dense<0xFF800000> : vector<1xf32>
    %999 = vector.multi_reduction <maximumf>, %998, %cst_360 [1] : vector<1x8xf32> to vector<1xf32>
    %cst_361 = arith.constant 0xFF800000 : f32
    %1000 = vector.broadcast %cst_361 : f32 to vector<1xf32>
    %1001 = arith.maximumf %1000, %999 : vector<1xf32>
    %1002 = vector.shape_cast %1001 : vector<1xf32> to vector<1x1xf32>
    %1003 = vector.broadcast %1002 : vector<1x1xf32> to vector<1x8xf32>
    %1004 = arith.subf %998, %1003 : vector<1x8xf32>
    %1005 = math.exp %1004 : vector<1x8xf32>
    %cst_362 = arith.constant dense<0.000000e+00> : vector<1xf32>
    %1006 = vector.multi_reduction <add>, %1005, %cst_362 [1] : vector<1x8xf32> to vector<1xf32>
    %1007 = vector.shape_cast %1006 : vector<1xf32> to vector<1x1xf32>
    %1008 = vector.broadcast %1007 : vector<1x1xf32> to vector<1x8xf32>
    %1009 = arith.divf %1005, %1008 : vector<1x8xf32>
    %cst_363 = arith.constant dense<0.000000e+00> : vector<1x128xf32>
    %1010 = tpu.matmul %1009, %316, %cst_363 {dimension_numbers = #tpu.dot_dimension_numbers<[1], [0], [0], [1], [0, 0, 1, 1], [], []>} : vector<1x8xf32>, vector<8x128xf32>, vector<1x128xf32> -> vector<1x128xf32>
    %1011 = tpu.concatenate %997, %1010 in 1 : vector<1x128xf32>, vector<1x128xf32> -> vector<1x256xf32>
    %c0_364 = arith.constant 0 : index
    %c0_365 = arith.constant 0 : index
    %1012 = vector.load %arg8[%c0_364, %c0_365] : memref<256x128xf32, #tpu.memory_space<vmem>>, vector<256x128xf32>
    %cst_366 = arith.constant dense<0.000000e+00> : vector<1x128xf32>
    %1013 = tpu.matmul %1011, %1012, %cst_366 {dimension_numbers = #tpu.dot_dimension_numbers<[1], [0], [0], [1], [0, 0, 1, 1], [], []>} : vector<1x256xf32>, vector<256x128xf32>, vector<1x128xf32> -> vector<1x128xf32>
    %c0_367 = arith.constant 0 : index
    %c0_368 = arith.constant 0 : index
    %1014 = vector.load %arg9[%c0_367, %c0_368] : memref<1x128xf32, #tpu.memory_space<vmem>>, vector<1x128xf32>
    %1015 = arith.addf %1013, %1014 : vector<1x128xf32>
    %1016 = math.tanh %1015 : vector<1x128xf32>
    %cst_369 = arith.constant -1.000000e+30 : f32
    %1017 = vector.broadcast %cst_369 : f32 to vector<1x1xf32>
    %cst_370 = arith.constant 0.000000e+00 : f32
    %1018 = vector.broadcast %cst_370 : f32 to vector<1x1xf32>
    %c0_371 = arith.constant 0 : index
    %c0_372 = arith.constant 0 : index
    %1019 = vector.load %arg18[%c0_371, %c0_372] : memref<128x128xf32, #tpu.memory_space<vmem>>, vector<128x128xf32>
    %cst_373 = arith.constant dense<0.000000e+00> : vector<1x128xf32>
    %1020 = tpu.matmul %1016, %1019, %cst_373 {dimension_numbers = #tpu.dot_dimension_numbers<[1], [0], [0], [1], [0, 0, 1, 1], [], []>} : vector<1x128xf32>, vector<128x128xf32>, vector<1x128xf32> -> vector<1x128xf32>
    %c0_374 = arith.constant 0 : index
    %c0_375 = arith.constant 0 : index
    %1021 = vector.load %arg19[%c0_374, %c0_375] : memref<1x128xf32, #tpu.memory_space<vmem>>, vector<1x128xf32>
    %1022 = arith.addf %1020, %1021 : vector<1x128xf32>
    %cst_376 = arith.constant dense<0xFF800000> : vector<1xf32>
    %1023 = vector.multi_reduction <maximumf>, %1022, %cst_376 [1] : vector<1x128xf32> to vector<1xf32>
    %1024 = vector.shape_cast %1023 : vector<1xf32> to vector<1x1xf32>
    %1025 = arith.maximumf %1017, %1024 : vector<1x1xf32>
    %1026 = arith.subf %1017, %1025 : vector<1x1xf32>
    %1027 = math.exp %1026 : vector<1x1xf32>
    %1028 = arith.mulf %1018, %1027 : vector<1x1xf32>
    %1029 = vector.broadcast %1025 : vector<1x1xf32> to vector<1x128xf32>
    %1030 = arith.subf %1022, %1029 : vector<1x128xf32>
    %1031 = math.exp %1030 : vector<1x128xf32>
    %cst_377 = arith.constant dense<0.000000e+00> : vector<1xf32>
    %1032 = vector.multi_reduction <add>, %1031, %cst_377 [1] : vector<1x128xf32> to vector<1xf32>
    %1033 = vector.shape_cast %1032 : vector<1xf32> to vector<1x1xf32>
    %1034 = arith.addf %1028, %1033 : vector<1x1xf32>
    %1035 = vector.broadcast %1024 : vector<1x1xf32> to vector<1x128xf32>
    %1036 = arith.cmpf oeq, %1022, %1035 : vector<1x128xf32>
    %c128_i32_378 = arith.constant 128 : i32
    %1037 = vector.broadcast %c128_i32_378 : i32 to vector<1x128xi32>
    %1038 = arith.select %1036, %318, %1037 : vector<1x128xi1>, vector<1x128xi32>
    %1039 = vector.shape_cast %1038 : vector<1x128xi32> to vector<1x1x128xi32>
    %cst_379 = arith.constant dense<2147483647> : vector<1xi32>
    %1040 = vector.multi_reduction <minsi>, %1039, %cst_379 [1, 2] : vector<1x1x128xi32> to vector<1xi32>
    %1041 = vector.shape_cast %1040 : vector<1xi32> to vector<1x1x1xi32>
    %1042 = vector.extract %1041[0, 0, 0] : i32 from vector<1x1x1xi32>
    %c0_i32_380 = arith.constant 0 : i32
    %1043 = arith.addi %1042, %c0_i32_380 : i32
    %1044 = vector.extract %1024[0, 0] : f32 from vector<1x1xf32>
    %cst_381 = arith.constant -1.000000e+30 : f32
    %1045 = arith.cmpf ogt, %1044, %cst_381 : f32
    %c0_i32_382 = arith.constant 0 : i32
    %1046 = arith.select %1045, %1043, %c0_i32_382 : i32
    %1047 = tpu.reciprocal %1034 {approx = true} : vector<1x1xf32> -> vector<1x1xf32>
    %1048 = vector.extract %1047[0, 0] : f32 from vector<1x1xf32>
    %1049 = arith.index_cast %c7_i32_349 : i32 to index
    %1050 = memref.load %arg13[%1049] : memref<8xi32, #tpu.memory_space<smem>>
    memref.store %1046, %arg13[%1049] : memref<8xi32, #tpu.memory_space<smem>>
    %1051 = arith.index_cast %c7_i32_349 : i32 to index
    %1052 = memref.load %arg14[%1051] : memref<8xf32, #tpu.memory_space<smem>>
    memref.store %1048, %arg14[%1051] : memref<8xf32, #tpu.memory_space<smem>>
    %c1_i32_383 = arith.constant 1 : i32
    %1053 = arith.addi %c7_i32_349, %c1_i32_383 : i32
    %1054 = arith.index_cast %1053 : i32 to index
    %1055 = memref.load %arg21[%1054] : memref<9xi32, #tpu.memory_space<smem>>
    memref.store %1046, %arg21[%1054] : memref<9xi32, #tpu.memory_space<smem>>
    %c8_i32_384 = arith.constant 8 : i32
    return
  }
}

</mosaic_0001>

<bundles_post_ra>
// kernel: tpu_custom_call.1
= control target key start
LH: loop header
LB: loop body
LE: loop exit
PB: predicated region body
PF: predicated region fallthrough
CT: control target
= control target key end

     0   :  { %20 = vsyncpa [#allocation11], 0  ;;  %s13335_s0 = inlined_call_operand.hbm [shape: s32[8], index: 0, kind: input, shape index: {}]   ;;  %s13336_s1 = inlined_call_operand.hbm [shape: f32[128,128], index: 1, kind: input, shape index: {}]   ;;  %s13337_s2 = inlined_call_operand.hbm [shape: f32[128,384], index: 2, kind: input, shape index: {}]   ;;  %s13338_s3 = inlined_call_operand.hbm [shape: f32[128,384], index: 3, kind: input, shape index: {}]   ;;  %s13339_s4 = inlined_call_operand.vmem [shape: f32[1,384], index: 4, kind: input, shape index: {}]   ;;  %s13340_s5 = inlined_call_operand.vmem [shape: f32[1,384], index: 5, kind: input, shape index: {}]   ;;  %s13341_s6 = inlined_call_operand.hbm [shape: f32[128,384], index: 6, kind: input, shape index: {}]   ;;  %s13342_s7 = inlined_call_operand.vmem [shape: f32[1,384], index: 7, kind: input, shape index: {}]   ;;  %s13343_s8 = inlined_call_operand.hbm [shape: f32[256,128], index: 8, kind: input, shape index: {}]   ;;  %s13344_s9 = inlined_call_operand.vmem [shape: f32[1,128], index: 9, kind: input, shape index: {}]   ;;  %s13345_s10 = inlined_call_operand.hbm [shape: f32[128,384], index: 10, kind: input, shape index: {}]   ;;  %s13346_s11 = inlined_call_operand.hbm [shape: f32[128,128], index: 11, kind: input, shape index: {}]   ;;  %s13347_s12 = inlined_call_operand.vmem [shape: f32[1,128], index: 12, kind: input, shape index: {}]   ;;  %s13348_s13 = inlined_call_operand.hbm [shape: s32[8], index: 13, kind: output, shape index: {0}]   ;;  %s13349_s14 = inlined_call_operand.hbm [shape: f32[8], index: 14, kind: output, shape index: {1}]  }
   0x1   :  { %21 = vsyncpa [#allocation10], 0 }
   0x2   :  { %22 = vsyncpa [#allocation15], 0 }
   0x3   :  { %23 = vsyncpa [#allocation18], 0 }
   0x4   :  { %24 = vsyncpa [#allocation12], 0 }
   0x5   :  { %25 = vsyncpa [#allocation22], 0  ;;  %s11248_s29 = smov [#allocation14]   ;;  %s11046_s17 = scalar_lea.hbm %s13337_s2, 6144 }
   0x6   :  { %s51_s30 = sshll.u32 %s11248_s29, 4  ;;  %p11047_p0 = scmp.ne.s32.totalorder %s13337_s2, %s11046_s17  ;;  %s52_s30 = int_to_ptr.vmem [resolvable:$true] %s51_s30 }
   0x7   :  { %p11050_p1 = scmp.lt.u32.totalorder %s11046_s17, %s13337_s2 }
   0x9   :  { %p11052_p2 = pnand %p11050_p1, %p11047_p0 }
   0xb   :  { %11055 = shalt.err (!%p11052_p2)
}
   0xc   :  { %s11056_s22 = scalar_lea.vmem %s52_s30, 6144  ;;  %p11061_p4 = scmp.lt.s32.totalorder %s52_s30, %s52_s30 }
   0xd   :  { %p11057_p3 = scmp.ne.s32.totalorder %s52_s30, %s11056_s22  ;;  %p11062_p5 = scmp.lt.s32.totalorder %s11056_s22, %s11056_s22 }
   0xf   :  { %p11063_p6 = por %p11062_p5, %p11061_p4 }
  0x11   :  { %p11064_p7 = pnand %p11063_p6, %p11057_p3 }
  0x13   :  { %11067 = shalt.err (!%p11064_p7)
}
  0x14   :  { %s11249_s23 = smov 384   ;;  %s11250_s24 = smov 24  }
  0x15   :  { %57 = dma.hbm_to_vmem [thread:$0]  %s13337_s2, 6144, %s52_s30, [#allocation15], %s11249_s23, %s11249_s23, %s11250_s24  }
  0x16   :  { %s11251_s27 = smov [#allocation17]   ;;  %s11068_s16 = scalar_lea.hbm %s13341_s6, 6144 }
  0x17   :  { %s79_s28 = sshll.u32 %s11251_s27, 4  ;;  %p11069_p8 = scmp.ne.s32.totalorder %s13341_s6, %s11068_s16  ;;  %s80_s28 = int_to_ptr.vmem [resolvable:$true] %s79_s28 }
  0x18   :  { %p11072_p9 = scmp.lt.u32.totalorder %s11068_s16, %s13341_s6 }
  0x1a   :  { %p11074_p10 = pnand %p11072_p9, %p11069_p8 }
  0x1c   :  { %11077 = shalt.err (!%p11074_p10)
}
  0x1d   :  { %s11078_s21 = scalar_lea.vmem %s80_s28, 6144  ;;  %p11083_p12 = scmp.lt.s32.totalorder %s80_s28, %s80_s28 }
  0x1e   :  { %p11079_p11 = scmp.ne.s32.totalorder %s80_s28, %s11078_s21  ;;  %p11084_p13 = scmp.lt.s32.totalorder %s11078_s21, %s11078_s21 }
  0x20   :  { %p11085_p0 = por %p11084_p13, %p11083_p12 }
  0x22   :  { %p11086_p1 = pnand %p11085_p0, %p11079_p11 }
  0x24   :  { %11089 = shalt.err (!%p11086_p1)
}
  0x25   :  { %85 = dma.hbm_to_vmem [thread:$0]  %s13341_s6, 6144, %s80_s28, [#allocation18], %s11249_s23, %s11249_s23, %s11250_s24  }
  0x26   :  { %s11090_s26 = scalar_lea.hbm %s13335_s0, 16 }
  0x27   :  { %p11091_p2 = scmp.ne.s32.totalorder %s13335_s0, %s11090_s26  ;;  %p11094_p3 = scmp.lt.u32.totalorder %s11090_s26, %s13335_s0 }
  0x29   :  { %p11096_p4 = pnand %p11094_p3, %p11091_p2 }
  0x2b   :  { %11099 = shalt.err (!%p11096_p4)
}
  0x2c   :  { %s11252_s17 = smov [#allocation9]   ;;  %s11253_s6 = smov [#allocation13]  }
  0x2d   :  { %33 = dma.hbm_to_smem %s13335_s0, 16, %s11252_s17, [#allocation11]  }
  0x2e   :  { %s39_s28 = sshll.u32 %s11253_s6, 4  ;;  %s11100_s2 = scalar_lea.hbm %s13336_s1, 2048  ;;  %s40_s28 = int_to_ptr.vmem [resolvable:$true] %s39_s28 }
  0x2f   :  { %p11101_p5 = scmp.ne.s32.totalorder %s13336_s1, %s11100_s2  ;;  %p11104_p6 = scmp.lt.u32.totalorder %s11100_s2, %s13336_s1 }
  0x31   :  { %p11106_p7 = pnand %p11104_p6, %p11101_p5 }
  0x33   :  { %11109 = shalt.err (!%p11106_p7)
}
  0x34   :  { %s11110_s27 = scalar_lea.vmem %s40_s28, 2048  ;;  %p11115_p9 = scmp.lt.s32.totalorder %s40_s28, %s40_s28 }
  0x35   :  { %p11111_p8 = scmp.ne.s32.totalorder %s40_s28, %s11110_s27  ;;  %p11116_p10 = scmp.lt.s32.totalorder %s11110_s27, %s11110_s27 }
  0x37   :  { %p11117_p11 = por %p11116_p10, %p11115_p9 }
  0x39   :  { %p11118_p12 = pnand %p11117_p11, %p11111_p8 }
  0x3b   :  { %11121 = shalt.err (!%p11118_p12)
}
  0x3c   :  { %s11254_s0 = smov 128   ;;  %s11255_s29 = smov 8  }
  0x3d   :  { %45 = dma.hbm_to_vmem [thread:$0]  %s13336_s1, 2048, %s40_s28, [#allocation10], %s11254_s0, %s11254_s0, %s11255_s29  }
  0x3e   :  { %s11256_s17 = smov [#allocation16]   ;;  %s11257_s19 = smov [#allocation19]  }
  0x3f   :  { %s63_s18 = sshll.u32 %s11256_s17, 4  ;;  %s93_s6 = sshll.u32 %s11257_s19, 4  ;;  %s64_s18 = int_to_ptr.vmem [resolvable:$true] %s63_s18  ;;  %s11397_s6 = int_to_ptr.vmem [resolvable:$true] %s93_s6 }
  0x40   :  { %s11122_s2 = scalar_lea.hbm %s13338_s3, 6144 }
  0x41   :  { %p11123_p13 = scmp.ne.s32.totalorder %s13338_s3, %s11122_s2  ;;  %p11126_p0 = scmp.lt.u32.totalorder %s11122_s2, %s13338_s3 }
  0x43   :  { %p11128_p1 = pnand %p11126_p0, %p11123_p13 }
  0x45   :  { %11131 = shalt.err (!%p11128_p1)
}
  0x46   :  { %s11132_s1 = scalar_lea.vmem %s64_s18, 6144  ;;  %p11137_p3 = scmp.lt.s32.totalorder %s64_s18, %s64_s18 }
  0x47   :  { %p11133_p2 = scmp.ne.s32.totalorder %s64_s18, %s11132_s1  ;;  %p11138_p4 = scmp.lt.s32.totalorder %s11132_s1, %s11132_s1 }
  0x49   :  { %p11139_p5 = por %p11138_p4, %p11137_p3 }
  0x4b   :  { %p11140_p6 = pnand %p11139_p5, %p11133_p2 }
  0x4d   :  { %11143 = shalt.err (!%p11140_p6)
}
  0x4e   :  { %69 = dma.hbm_to_vmem [thread:$0]  %s13338_s3, 6144, %s64_s18, [#allocation15], %s11249_s23, %s11249_s23, %s11250_s24  }
  0x4f   :  { %s11144_s17 = scalar_lea.hbm %s13343_s8, 4096 }
  0x50   :  { %p11145_p7 = scmp.ne.s32.totalorder %s13343_s8, %s11144_s17  ;;  %p11148_p8 = scmp.lt.u32.totalorder %s11144_s17, %s13343_s8 }
  0x52   :  { %p11150_p9 = pnand %p11148_p8, %p11145_p7 }
  0x54   :  { %11153 = shalt.err (!%p11150_p9)
}
  0x55   :  { %s11154_s30 = scalar_lea.vmem %s11397_s6, 4096  ;;  %p11159_p11 = scmp.lt.s32.totalorder %s11397_s6, %s11397_s6 }
  0x56   :  { %p11155_p10 = scmp.ne.s32.totalorder %s11397_s6, %s11154_s30  ;;  %p11160_p12 = scmp.lt.s32.totalorder %s11154_s30, %s11154_s30 }
  0x58   :  { %p11161_p13 = por %p11160_p12, %p11159_p11 }
  0x5a   :  { %p11162_p0 = pnand %p11161_p13, %p11155_p10 }
  0x5c   :  { %11165 = shalt.err (!%p11162_p0)
}
  0x5d   :  { %99 = dma.hbm_to_vmem [thread:$0]  %s13343_s8, 4096, %s11397_s6, [#allocation18], %s11254_s0, %s11254_s0, %s11255_s29  }
  0x5e   :  { %11230 = dma.done.wait [#allocation11], 16  }
  0x5f   :  { %11231 = vsyncadd [#allocation11], 4294967280 }
  0x60   :  { %11232 = dma.done.wait [#allocation10], 2048  }
  0x61   :  { %11233 = vsyncadd [#allocation10], 4294965248 }
  0x62   :  { %11234 = dma.done.wait [#allocation15], 12288  }
  0x63   :  { %11235 = vsyncadd [#allocation15], 4294955008 }
  0x64   :  { %11236 = dma.done.wait [#allocation18], 10240  }
  0x65   :  { %11237 = vsyncadd [#allocation18], 4294957056 }
  0x66   :  { %120 = sfence }
  0x67   :  { %v162_v0 = vld [vmem:[%s13347_s12] sm:$0x1]  ;;  %s11258_s22 = smov [#allocation4]   ;;  %s11259_s26 = smov [#allocation5]  }
  0x68   :  { %s128_s25 = sshll.u32 %s11258_s22, 4  ;;  %s140_s1 = sshll.u32 %s11259_s26, 4  ;;  %163 = vst [vmem:[#allocation6] sm:$0x1] %v162_v0  ;;  %s129_s25 = int_to_ptr.vmem [resolvable:$true] %s128_s25  ;;  %s141_s1 = int_to_ptr.vmem [resolvable:$true] %s140_s1 }
  0x69   :  { %s11166_s29 = scalar_lea.hbm %s13345_s10, 6144 }
  0x6a   :  { %p11167_p1 = scmp.ne.s32.totalorder %s13345_s10, %s11166_s29  ;;  %p11170_p2 = scmp.lt.u32.totalorder %s11166_s29, %s13345_s10 }
  0x6c   :  { %p11172_p3 = pnand %p11170_p2, %p11167_p1 }
  0x6e   :  { %11175 = shalt.err (!%p11172_p3)  }
  0x6f   :  { %s11176_s12 = scalar_lea.vmem %s129_s25, 6144  ;;  %p11181_p5 = scmp.lt.s32.totalorder %s129_s25, %s129_s25 }
  0x70   :  { %p11177_p4 = scmp.ne.s32.totalorder %s129_s25, %s11176_s12  ;;  %p11182_p6 = scmp.lt.s32.totalorder %s11176_s12, %s11176_s12 }
  0x72   :  { %p11183_p7 = por %p11182_p6, %p11181_p5 }
  0x74   :  { %p11184_p8 = pnand %p11183_p7, %p11177_p4 }
  0x76   :  { %11187 = shalt.err (!%p11184_p8)  }
  0x77   :  { %131 = dma.hbm_to_vmem [thread:$0]  %s13345_s10, 6144, %s129_s25, [#allocation7] }
  0x78   :  { %s11188_s21 = scalar_lea.hbm %s13346_s11, 2048 }
  0x79   :  { %p11189_p9 = scmp.ne.s32.totalorder %s13346_s11, %s11188_s21  ;;  %p11192_p10 = scmp.lt.u32.totalorder %s11188_s21, %s13346_s11 }
  0x7b   :  { %p11194_p11 = pnand %p11192_p10, %p11189_p9 }
  0x7d   :  { %11197 = shalt.err (!%p11194_p11)  }
  0x7e   :  { %s11198_s24 = scalar_lea.vmem %s141_s1, 2048  ;;  %p11203_p13 = scmp.lt.s32.totalorder %s141_s1, %s141_s1 }
  0x7f   :  { %p11199_p12 = scmp.ne.s32.totalorder %s141_s1, %s11198_s24  ;;  %p11204_p0 = scmp.lt.s32.totalorder %s11198_s24, %s11198_s24 }
  0x81   :  { %p11205_p1 = por %p11204_p0, %p11203_p13 }
  0x83   :  { %p11206_p2 = pnand %p11205_p1, %p11199_p12 }
  0x85   :  { %11209 = shalt.err (!%p11206_p2)  }
  0x86   :  { %143 = dma.hbm_to_vmem [thread:$0]  %s13346_s11, 2048, %s141_s1, [#allocation7 + $0x1] }
  0x87   :  { %188 = vsyncadd [#allocation7 + $0x2], 16  ;;  %v249_v1 = vld [vmem:[#allocation14 + $0x8] sm:$0xff]  ;;  %v252_v2 = vld [vmem:[#allocation14 + $0x20] sm:$0xff]  ;;  %v11260_v6 = vmov 0.0|0.0   ;;  %v11261_v8 = vmov 0.0  }
  0x88   :  { %v9322_v3 = vpack.c.bf16 %v252_v2, %v249_v1  ;;  %v248_v4 = vld [vmem:[#allocation14] sm:$0xff]  ;;  %v251_v5 = vld [vmem:[#allocation14 + $0x18] sm:$0xff]  ;;  %9354 = vmatprep.subr.bf16.mxu1 %v11260_v6  ;;  %v250_v7 = vld [vmem:[#allocation14 + $0x10] sm:$0xff]  ;;  %377 = vmatprep.mubr.f32.mxu0 %v11261_v8  ;;  %s11463_s11 = sld [smem:[#allocation9 + $0x1]]  ;;  %s11465_s22 = sld [smem:[#allocation9 + $0x2]]  ;;  %vm11262_vm0 = vmmov 0  }
  0x89   :  { %v9324_v9 = vpack.c.bf16 %v251_v5, %v248_v4  ;;  %v253_v10 = vld [vmem:[#allocation14 + $0x28] sm:$0xff]  ;;  %v255_v11 = vld [vmem:[#allocation14 + $0x38] sm:$0xff]  ;;  %v258_v12 = vld [vmem:[#allocation14 + $0x50] sm:$0xff]  ;;  %s11467_s25 = sld [smem:[#allocation9 + $0x3]]  ;;  %s11470_s26 = sld [smem:[#allocation9 + $0x4]]  ;;  %8399 = vmatprep.mubr.msk.f32.mxu1 %vm11262_vm0, %v11261_v8  ;;  %vm234_vm1 = vcmask 1040384  }
  0x8a   :  { %9323 = vmatprep.subr.bf16.mxu0 %v9322_v3  ;;  %v9355_v13 = vpack.c.bf16 %v253_v10, %v250_v7  ;;  %v9326_v14 = vpack.c.bf16 %v258_v12, %v255_v11  ;;  %v254_v15 = vld [vmem:[#allocation14 + $0x30] sm:$0xff]  ;;  %v257_v16 = vld [vmem:[#allocation14 + $0x48] sm:$0xff]  ;;  %v256_v17 = vld [vmem:[#allocation14 + $0x40] sm:$0xff]  ;;  %s11472_s1 = sld [smem:[#allocation9]]  ;;  %s11474_s8 = sld [smem:[#allocation9 + $0x5]]  ;;  %vm236_vm2 = vcmask 1041408  }
  0x8b   :  { %9325 = vmatpush1.bf16.msra.mxu0 %v9324_v9  ;;  %v9328_v18 = vpack.c.bf16 %v257_v16, %v254_v15  ;;  %v259_v19 = vld [vmem:[#allocation14 + $0x58] sm:$0xff]  ;;  %v261_v20 = vld [vmem:[#allocation14 + $0x68] sm:$0xff]  ;;  %v264_v21 = vld [vmem:[#allocation14 + $0x80] sm:$0xff]  ;;  %s11479_s0 = sld [smem:[#allocation9 + $0x6]]  ;;  %s11481_s29 = sld [smem:[#allocation9 + $0x7]]  ;;  %vm238_vm3 = vcmask 1042432  }
  0x8c   :  { %9356 = vmatpush3.bf16.msra.mxu1 %v9355_v13  ;;  %9327 = vmatprep.subr.bf16.mxu0 %v9326_v14  ;;  %v9358_v22 = vpack.c.bf16 %v259_v19, %v256_v17  ;;  %v9330_v23 = vpack.c.bf16 %v264_v21, %v261_v20  ;;  %v260_v24 = vld [vmem:[#allocation14 + $0x60] sm:$0xff]  ;;  %v263_v25 = vld [vmem:[#allocation14 + $0x78] sm:$0xff]  ;;  %v262_v26 = vld [vmem:[#allocation14 + $0x70] sm:$0xff]  ;;  %vm240_vm4 = vcmask 1043456   ;;  %vm242_vm5 = vcmask 1044480  }
  0x8d   :  { %9357 = vmatprep.subr.bf16.mxu1 %v11260_v6  ;;  %v265_v27 = vld [vmem:[#allocation14 + $0x88] sm:$0xff]  ;;  %v267_v28 = vld [vmem:[#allocation14 + $0x98] sm:$0xff]  ;;  %v270_v29 = vld [vmem:[#allocation14 + $0xb0] sm:$0xff]  ;;  %v9332_v30 = vpack.c.bf16 %v263_v25, %v260_v24  ;;  %vm244_vm6 = vcmask 1045504   ;;  %vm246_vm7 = vcmask 1046528  }
  0x8e   :  { %v9361_v31 = vpack.c.bf16 %v265_v27, %v262_v26  ;;  %v9334_v32 = vpack.c.bf16 %v270_v29, %v267_v28  ;;  %v266_v33 = vld [vmem:[#allocation14 + $0x90] sm:$0xff]  ;;  %v269_v34 = vld [vmem:[#allocation14 + $0xa8] sm:$0xff]  ;;  %v268_v35 = vld [vmem:[#allocation14 + $0xa0] sm:$0xff]  ;;  %s193_s6 = scalar_lea.vmem [#allocation13], %s11463_s11  ;;  %s196_s28 = scalar_lea.vmem [#allocation13], %s11465_s22 }
  0x8f   :  { %9329 = vmatpush1.bf16.msra.mxu0 %v9328_v18  ;;  %v271_v36 = vld [vmem:[#allocation14 + $0xb8] sm:$0xff]  ;;  %v273_v37 = vld [vmem:[#allocation14 + $0xc8] sm:$0xff]  ;;  %v276_v38 = vld [vmem:[#allocation14 + $0xe0] sm:$0xff]  ;;  %v9336_v39 = vpack.c.bf16 %v269_v34, %v266_v33  ;;  %s199_s27 = scalar_lea.vmem [#allocation13], %s11467_s25  ;;  %s202_s15 = scalar_lea.vmem [#allocation13], %s11470_s26 }
  0x90   :  { %9359 = vmatpush3.bf16.msra.mxu1 %v9358_v22  ;;  %9331 = vmatprep.subr.bf16.mxu0 %v9330_v23  ;;  %v9364_v40 = vpack.c.bf16 %v271_v36, %v268_v35  ;;  %v9338_v41 = vpack.c.bf16 %v276_v38, %v273_v37  ;;  %v272_v42 = vld [vmem:[#allocation14 + $0xc0] sm:$0xff]  ;;  %v275_v43 = vld [vmem:[#allocation14 + $0xd8] sm:$0xff]  ;;  %v274_v44 = vld [vmem:[#allocation14 + $0xd0] sm:$0xff]  ;;  %s190_s12 = scalar_lea.vmem [#allocation13], %s11472_s1  ;;  %s205_s16 = scalar_lea.vmem [#allocation13], %s11474_s8 }
  0x91   :  { %9360 = vmatprep.subr.bf16.mxu1 %v11260_v6  ;;  %v277_v45 = vld [vmem:[#allocation14 + $0xe8] sm:$0xff]  ;;  %v279_v46 = vld [vmem:[#allocation14 + $0xf8] sm:$0xff]  ;;  %v282_v47 = vld [vmem:[#allocation14 + $0x110] sm:$0xff]  ;;  %v9340_v50 = vpack.c.bf16 %v275_v43, %v272_v42  ;;  %s208_s17 = scalar_lea.vmem [#allocation13], %s11479_s0  ;;  %s211_s19 = scalar_lea.vmem [#allocation13], %s11481_s29 }
  0x92   :  { %v278_v48 = vld [vmem:[#allocation14 + $0xf0] sm:$0xff]  ;;  %v281_v49 = vld [vmem:[#allocation14 + $0x108] sm:$0xff]  ;;  %v280_v51 = vld [vmem:[#allocation14 + $0x100] sm:$0xff]  ;;  %v9367_v54 = vpack.c.bf16 %v277_v45, %v274_v44  ;;  %v9342_v55 = vpack.c.bf16 %v282_v47, %v279_v46 }
  0x93   :  { %9333 = vmatpush1.bf16.msra.mxu0 %v9332_v30  ;;  %v283_v52 = vld [vmem:[#allocation14 + $0x118] sm:$0xff]  ;;  %v194_v53 = vld [vmem:[%s193_s6] sm:$0x1]  ;;  %v285_v59 = vld [vmem:[#allocation14 + $0x128] sm:$0xff]  ;;  %v9344_v2 = vpack.c.bf16 %v281_v49, %v278_v48 }
  0x94   :  { %9362 = vmatpush3.bf16.msra.mxu1 %v9361_v31  ;;  %9335 = vmatprep.subr.bf16.mxu0 %v9334_v32  ;;  %v197_v56 = vld [vmem:[%s196_s28] sm:$0x1]  ;;  %v214_v63 = vrot.slane %v194_v53, 7  ;;  %v9370_v5 = vpack.c.bf16 %v283_v52, %v280_v51  ;;  %v287_v9 = vld [vmem:[#allocation14 + $0x138] sm:$0xff]  ;;  %v286_v10 = vld [vmem:[#allocation14 + $0x130] sm:$0xff] }
  0x95   :  { %9363 = vmatprep.subr.bf16.mxu1 %v11260_v6  ;;  %v200_v57 = vld [vmem:[%s199_s27] sm:$0x1]  ;;  %v217_v0 = vrot.slane %v197_v56, 6  ;;  %v289_v11 = vld [vmem:[#allocation14 + $0x148] sm:$0xff]  ;;  %v291_v13 = vld [vmem:[#allocation14 + $0x158] sm:$0xff] }
  0x96   :  { %v203_v58 = vld [vmem:[%s202_s15] sm:$0x1]  ;;  %v220_v1 = vrot.slane %v200_v57, 5  ;;  %v294_v14 = vld [vmem:[#allocation14 + $0x170] sm:$0xff]  ;;  %v9373_v22 = vpack.c.bf16 %v289_v11, %v286_v10  ;;  %v293_v24 = vld [vmem:[#allocation14 + $0x168] sm:$0xff] }
  0x97   :  { %9337 = vmatpush1.bf16.msra.mxu0 %v9336_v39  ;;  %v288_v60 = vld [vmem:[#allocation14 + $0x140] sm:$0xff]  ;;  %v223_v4 = vrot.slane %v203_v58, 4  ;;  %v290_v20 = vld [vmem:[#allocation14 + $0x150] sm:$0xff]  ;;  %v9350_v23 = vpack.c.bf16 %v294_v14, %v291_v13  ;;  %v295_v28 = vld [vmem:[#allocation14 + $0x178] sm:$0xff] }
  0x98   :  { %9365 = vmatpush3.bf16.msra.mxu1 %v9364_v40  ;;  %9339 = vmatprep.subr.bf16.mxu0 %v9338_v41  ;;  %v191_v61 = vld [vmem:[%s190_s12] sm:$0x1]  ;;  %v9346_v7 = vpack.c.bf16 %v288_v60, %v285_v59  ;;  %v459_v30 = vld [vmem:[#allocation16 + $0x8] sm:$0xff]  ;;  %v9352_v32 = vpack.c.bf16 %v293_v24, %v290_v20  ;;  %v461_v38 = vld [vmem:[#allocation16 + $0x18] sm:$0xff] }
  0x99   :  { %9366 = vmatprep.subr.bf16.mxu1 %v11260_v6  ;;  %v206_v62 = vld [vmem:[%s205_s16] sm:$0x1]  ;;  %v235_v12 = vsel %vm234_vm1, %v191_v61, %v214_v63  ;;  %v465_v39 = vld [vmem:[#allocation16 + $0x38] sm:$0xff]  ;;  %v468_v40 = vld [vmem:[#allocation16 + $0x50] sm:$0xff] }
  0x9a   :  { %v284_v3 = vld [vmem:[#allocation14 + $0x120] sm:$0xff]  ;;  %v226_v16 = vrot.slane %v206_v62, 3  ;;  %v237_v17 = vsel %vm236_vm2, %v235_v12, %v217_v0  ;;  %v460_v41 = vld [vmem:[#allocation16 + $0x10] sm:$0xff]  ;;  %v463_v42 = vld [vmem:[#allocation16 + $0x28] sm:$0xff]  ;;  %v11505_v45 = vpack.c.bf16 %v468_v40, %v465_v39 }
  0x9b   :  { %9341 = vmatpush1.bf16.msra.mxu0 %v9340_v50  ;;  %v209_v15 = vld [vmem:[%s208_s17] sm:$0x1]  ;;  %v239_v18 = vsel %vm238_vm3, %v237_v17, %v220_v1  ;;  %v9348_v19 = vpack.c.bf16 %v287_v9, %v284_v3  ;;  %v464_v46 = vld [vmem:[#allocation16 + $0x30] sm:$0xff]  ;;  %v467_v47 = vld [vmem:[#allocation16 + $0x48] sm:$0xff]  ;;  %v11507_v49 = vpack.c.bf16 %v463_v42, %v460_v41 }
  0x9c   :  { %9368 = vmatpush3.bf16.msra.mxu1 %v9367_v54  ;;  %9343 = vmatprep.subr.bf16.mxu0 %v9342_v55  ;;  %v241_v21 = vsel %vm240_vm4, %v239_v18, %v223_v4  ;;  %v292_v25 = vld [vmem:[#allocation14 + $0x160] sm:$0xff]  ;;  %v229_v27 = vrot.slane %v209_v15, 2  ;;  %v471_v48 = vld [vmem:[#allocation16 + $0x68] sm:$0xff]  ;;  %v469_v52 = vld [vmem:[#allocation16 + $0x58] sm:$0xff]  ;;  %v11511_v53 = vpack.c.bf16 %v467_v47, %v464_v46 }
  0x9d   :  { %9369 = vmatprep.subr.bf16.mxu1 %v11260_v6  ;;  %v212_v26 = vld [vmem:[%s211_s19] sm:$0x1]  ;;  %v243_v29 = vsel %vm242_vm5, %v241_v21, %v226_v16  ;;  %v9376_v34 = vpack.c.bf16 %v295_v28, %v292_v25  ;;  %v473_v56 = vld [vmem:[#allocation16 + $0x78] sm:$0xff]  ;;  %v480_v59 = vld [vmem:[#allocation16 + $0xb0] sm:$0xff] }
  0x9e   :  { %v462_v31 = vld [vmem:[#allocation16 + $0x20] sm:$0xff]  ;;  %v232_v33 = vrot.slane %v212_v26, 1  ;;  %v245_v35 = vsel %vm244_vm6, %v243_v29, %v229_v27  ;;  %v477_v57 = vld [vmem:[#allocation16 + $0x98] sm:$0xff]  ;;  %v472_v60 = vld [vmem:[#allocation16 + $0x70] sm:$0xff] }
  0x9f   :  { %9345 = vmatpush1.bf16.msra.mxu0 %v9344_v2  ;;  %v11499_v36 = vpack.c.bf16 %v462_v31, %v459_v30  ;;  %v458_v37 = vld [vmem:[#allocation16] sm:$0xff]  ;;  %v475_v61 = vld [vmem:[#allocation16 + $0x88] sm:$0xff]  ;;  %v11527_v63 = vpack.c.bf16 %v480_v59, %v477_v57  ;;  %v476_v0 = vld [vmem:[#allocation16 + $0x90] sm:$0xff] }
  0xa0   :  { %9371 = vmatpush3.bf16.msra.mxu1 %v9370_v5  ;;  %9347 = vmatprep.subr.bf16.mxu0 %v9346_v7  ;;  %v247_v43 = vsel %vm246_vm7, %v245_v35, %v232_v33  ;;  %v11502_v44 = vpack.c.bf16 %v461_v38, %v458_v37  ;;  %v474_v50 = vld [vmem:[#allocation16 + $0x80] sm:$0xff]  ;;  %v479_v1 = vld [vmem:[#allocation16 + $0xa8] sm:$0xff]  ;;  %v11530_v3 = vpack.c.bf16 %v475_v61, %v472_v60  ;;  %v481_v7 = vld [vmem:[#allocation16 + $0xb8] sm:$0xff] }
  0xa1   :  { %9372 = vmatprep.subr.bf16.mxu1 %v11260_v6  ;;  %v466_v51 = vld [vmem:[#allocation16 + $0x40] sm:$0xff]  ;;  %v11514_v54 = vpack.c.bf16 %v474_v50, %v471_v48  ;;  %v483_v2 = vld [vmem:[#allocation16 + $0xc8] sm:$0xff]  ;;  %v11534_v9 = vpack.c.bf16 %v479_v1, %v476_v0  ;;  %v485_v12 = vld [vmem:[#allocation16 + $0xd8] sm:$0xff]  ;;  %v298_v48 = vlaneseq }
  0xa2   :  { %v470_v55 = vld [vmem:[#allocation16 + $0x60] sm:$0xff]  ;;  %v11517_v58 = vpack.c.bf16 %v469_v52, %v466_v51  ;;  %v489_v13 = vld [vmem:[#allocation16 + $0xf8] sm:$0xff]  ;;  %v492_v15 = vld [vmem:[#allocation16 + $0x110] sm:$0xff] }
  0xa3   :  { %9349 = vmatpush1.bf16.msra.mxu0 %v9348_v19  ;;  %v11524_v62 = vpack.c.bf16 %v473_v56, %v470_v55  ;;  %v486_v4 = vld [vmem:[#allocation16 + $0xe0] sm:$0xff]  ;;  %v484_v16 = vld [vmem:[#allocation16 + $0xd0] sm:$0xff]  ;;  %v487_v17 = vld [vmem:[#allocation16 + $0xe8] sm:$0xff]  ;;  %v11547_v19 = vpack.c.bf16 %v492_v15, %v489_v13  ;;  %v299_v50 = vshrl.u32 %v298_v48, 7 }
  0xa4   :  { %9374 = vmatpush3.bf16.msra.mxu1 %v9373_v22  ;;  %9351 = vmatprep.subr.bf16.mxu0 %v9350_v23  ;;  %v478_v5 = vld [vmem:[#allocation16 + $0xa0] sm:$0xff]  ;;  %v11537_v10 = vpack.c.bf16 %v486_v4, %v483_v2  ;;  %v488_v20 = vld [vmem:[#allocation16 + $0xf0] sm:$0xff]  ;;  %v491_v21 = vld [vmem:[#allocation16 + $0x108] sm:$0xff]  ;;  %v11550_v23 = vpack.c.bf16 %v487_v17, %v484_v16 }
  0xa5   :  { %9375 = vmatprep.subr.bf16.mxu1 %v11260_v6  ;;  %v482_v11 = vld [vmem:[#allocation16 + $0xc0] sm:$0xff]  ;;  %v11540_v14 = vpack.c.bf16 %v481_v7, %v478_v5  ;;  %v495_v22 = vld [vmem:[#allocation16 + $0x128] sm:$0xff]  ;;  %v493_v26 = vld [vmem:[#allocation16 + $0x118] sm:$0xff]  ;;  %v11554_v27 = vpack.c.bf16 %v491_v21, %v488_v20  ;;  %v11623_v51 = vsub.s32 0, %v299_v50  ;;  %v11628_v55 = vsub.s32 1, %v299_v50 }
  0xa6   :  { %v11544_v18 = vpack.c.bf16 %v485_v12, %v482_v11  ;;  %v498_v24 = vld [vmem:[#allocation16 + $0x140] sm:$0xff]  ;;  %v497_v30 = vld [vmem:[#allocation16 + $0x138] sm:$0xff]  ;;  %v504_v33 = vld [vmem:[#allocation16 + $0x170] sm:$0xff]  ;;  %v11630_v56 = vsub.s32 2, %v299_v50 }
  0xa7   :  { %9353 = vmatpush1.bf16.msra.mxu0 %v9352_v32  ;;  %v490_v25 = vld [vmem:[#allocation16 + $0x100] sm:$0xff]  ;;  %v11557_v28 = vpack.c.bf16 %v498_v24, %v495_v22  ;;  %v501_v31 = vld [vmem:[#allocation16 + $0x158] sm:$0xff]  ;;  %v499_v35 = vld [vmem:[#allocation16 + $0x148] sm:$0xff] }
  0xa8   :  { %9377 = vmatpush3.bf16.msra.mxu1 %v9376_v34  ;;  %9379 = vmatprep.subr.bf16.mxu0 %v11499_v36  ;;  %v494_v29 = vld [vmem:[#allocation16 + $0x120] sm:$0xff]  ;;  %v11560_v32 = vpack.c.bf16 %v493_v26, %v490_v25  ;;  %v496_v34 = vld [vmem:[#allocation16 + $0x130] sm:$0xff]  ;;  %v11567_v38 = vpack.c.bf16 %v504_v33, %v501_v31  ;;  %v503_v40 = vld [vmem:[#allocation16 + $0x168] sm:$0xff] }
  0xa9   :  { %9410 = vmatprep.subr.bf16.mxu1 %v11260_v6  ;;  %v11564_v37 = vpack.c.bf16 %v497_v30, %v494_v29  ;;  %v500_v39 = vld [vmem:[#allocation16 + $0x150] sm:$0xff]  ;;  %v11570_v41 = vpack.c.bf16 %v499_v35, %v496_v34  ;;  %v502_v42 = vld [vmem:[#allocation16 + $0x160] sm:$0xff] }
  0xaa   :  { %378 = vmatmul.mubr.f32.vlgmr.msra.gmra.mrb[0].mxu0 %v247_v43  ;;  %v11574_v46 = vpack.c.bf16 %v503_v40, %v500_v39  ;;  %v296_v52 = vld [vmem:[%s13339_s4] sm:$0x7] }
  0xab   :  { %8400 = vmatmul.mubr.f32.vlgmr.msra.gmra.mrb[0].mxu1 %v247_v43  ;;  %9381 = vmatpush1.bf16.msra.mxu0 %v11502_v44  ;;  %v505_v43 = vld [vmem:[#allocation16 + $0x178] sm:$0xff]  ;;  %v301_v57 = vrot.slane %v296_v52, %v11623_v51  ;;  %v305_v59 = vrot.slane %v296_v52, %v11628_v55  ;;  %v309_v60 = vrot.slane %v296_v52, %v11630_v56  ;;  %v506_v11 = vld [vmem:[%s13340_s5] sm:$0x7] }
  0xac   :  { %9383 = vmatprep.subr.bf16.mxu0 %v11505_v45  ;;  %9412 = vmatpush3.bf16.msra.mxu1 %v11507_v49  ;;  %v11578_v47 = vpack.c.bf16 %v505_v43, %v502_v42  ;;  %v511_v12 = vrot.slane %v506_v11, %v11623_v51  ;;  %v515_v13 = vrot.slane %v506_v11, %v11628_v55 }
  0xad   :  { %587 = vmatprep.mubr.f32.mxu0 %v11261_v8  ;;  %9413 = vmatprep.subr.bf16.mxu1 %v11260_v6  ;;  %v519_v35 = vrot.slane %v506_v11, %v11630_v56 }
  0xae   :  { %8434 = vmatprep.mubr.msk.f32.mxu1 %vm11262_vm0, %v11261_v8 }
  0xaf   :  { %9385 = vmatpush1.bf16.msra.mxu0 %v11511_v53 }
  0xb0   :  { %9387 = vmatprep.subr.bf16.mxu0 %v11514_v54  ;;  %9415 = vmatpush3.bf16.msra.mxu1 %v11517_v58 }
  0xb1   :  { %9416 = vmatprep.subr.bf16.mxu1 %v11260_v6 }
  0xb3   :  { %9389 = vmatpush1.bf16.msra.mxu0 %v11524_v62 }
  0xb4   :  { %9391 = vmatprep.subr.bf16.mxu0 %v11527_v63  ;;  %9418 = vmatpush3.bf16.msra.mxu1 %v11530_v3 }
  0xb5   :  { %9419 = vmatprep.subr.bf16.mxu1 %v11260_v6 }
  0xb7   :  { %9393 = vmatpush1.bf16.msra.mxu0 %v11534_v9 }
  0xb8   :  { %9395 = vmatprep.subr.bf16.mxu0 %v11537_v10  ;;  %9421 = vmatpush3.bf16.msra.mxu1 %v11540_v14 }
  0xb9   :  { %9422 = vmatprep.subr.bf16.mxu1 %v11260_v6 }
  0xbb   :  { %9397 = vmatpush1.bf16.msra.mxu0 %v11544_v18 }
  0xbc   :  { %9399 = vmatprep.subr.bf16.mxu0 %v11547_v19  ;;  %9424 = vmatpush3.bf16.msra.mxu1 %v11550_v23 }
  0xbd   :  { %9425 = vmatprep.subr.bf16.mxu1 %v11260_v6 }
  0xbf   :  { %9401 = vmatpush1.bf16.msra.mxu0 %v11554_v27 }
  0xc0   :  { %9403 = vmatprep.subr.bf16.mxu0 %v11557_v28  ;;  %9427 = vmatpush3.bf16.msra.mxu1 %v11560_v32 }
  0xc1   :  { %9428 = vmatprep.subr.bf16.mxu1 %v11260_v6 }
  0xc3   :  { %9405 = vmatpush1.bf16.msra.mxu0 %v11564_v37 }
  0xc4   :  { %9407 = vmatprep.subr.bf16.mxu0 %v11567_v38  ;;  %9430 = vmatpush3.bf16.msra.mxu1 %v11570_v41 }
  0xc5   :  { %9431 = vmatprep.subr.bf16.mxu1 %v11260_v6 }
  0xc7   :  { %9409 = vmatpush1.bf16.msra.mxu0 %v11574_v46 }
  0xc8   :  { %9433 = vmatpush3.bf16.msra.mxu1 %v11578_v47  ;;  %9435 = vmatprep.subr.bf16.mxu0 %v11499_v36 }
  0xc9   :  { %9466 = vmatprep.subr.bf16.mxu1 %v11260_v6 }
  0xca   :  { %588 = vmatmul.mubr.f32.vlgmr.msra.gmra.mrb[2].mxu0 %v11261_v8 }
  0xcb   :  { %8435 = vmatmul.mubr.f32.vlgmr.msra.gmra.mrb[2].mxu1 %v11261_v8  ;;  %9437 = vmatpush1.bf16.msra.mxu0 %v11502_v44 }
  0xcc   :  { %9468 = vmatpush3.bf16.msra.mxu1 %v11507_v49  ;;  %9439 = vmatprep.subr.bf16.mxu0 %v11505_v45 }
  0xcd   :  { %9469 = vmatprep.subr.bf16.mxu1 %v11260_v6  ;;  %822 = vmatprep.mubr.f32.mxu0 %v11261_v8 }
  0xce   :  { %8469 = vmatprep.mubr.msk.f32.mxu1 %vm11262_vm0, %v11261_v8 }
  0xcf   :  { %9441 = vmatpush1.bf16.msra.mxu0 %v11511_v53 }
  0xd0   :  { %9471 = vmatpush3.bf16.msra.mxu1 %v11517_v58  ;;  %9443 = vmatprep.subr.bf16.mxu0 %v11514_v54 }
  0xd1   :  { %9472 = vmatprep.subr.bf16.mxu1 %v11260_v6 }
  0xd3   :  { %9445 = vmatpush1.bf16.msra.mxu0 %v11524_v62 }
  0xd4   :  { %9474 = vmatpush3.bf16.msra.mxu1 %v11530_v3  ;;  %9447 = vmatprep.subr.bf16.mxu0 %v11527_v63 }
  0xd5   :  { %9475 = vmatprep.subr.bf16.mxu1 %v11260_v6 }
  0xd7   :  { %9449 = vmatpush1.bf16.msra.mxu0 %v11534_v9 }
  0xd8   :  { %9477 = vmatpush3.bf16.msra.mxu1 %v11540_v14  ;;  %9451 = vmatprep.subr.bf16.mxu0 %v11537_v10 }
  0xd9   :  { %9478 = vmatprep.subr.bf16.mxu1 %v11260_v6 }
  0xdb   :  { %9453 = vmatpush1.bf16.msra.mxu0 %v11544_v18 }
  0xdc   :  { %9480 = vmatpush3.bf16.msra.mxu1 %v11550_v23  ;;  %9455 = vmatprep.subr.bf16.mxu0 %v11547_v19 }
  0xdd   :  { %9481 = vmatprep.subr.bf16.mxu1 %v11260_v6 }
  0xdf   :  { %9457 = vmatpush1.bf16.msra.mxu0 %v11554_v27 }
  0xe0   :  { %9483 = vmatpush3.bf16.msra.mxu1 %v11560_v32  ;;  %9459 = vmatprep.subr.bf16.mxu0 %v11557_v28 }
  0xe1   :  { %9484 = vmatprep.subr.bf16.mxu1 %v11260_v6 }
  0xe3   :  { %9461 = vmatpush1.bf16.msra.mxu0 %v11564_v37 }
  0xe4   :  { %9486 = vmatpush3.bf16.msra.mxu1 %v11570_v41  ;;  %9463 = vmatprep.subr.bf16.mxu0 %v11567_v38 }
  0xe5   :  { %9487 = vmatprep.subr.bf16.mxu1 %v11260_v6 }
  0xe7   :  { %9465 = vmatpush1.bf16.msra.mxu0 %v11574_v46 }
  0xe8   :  { %9489 = vmatpush3.bf16.msra.mxu1 %v11578_v47  ;;  %9491 = vmatprep.subr.bf16.mxu0 %v11499_v36 }
  0xe9   :  { %9522 = vmatprep.subr.bf16.mxu1 %v11260_v6 }
 0x17d   :  { %v379_v61 = vpop.f32.mrb[0].mxu0 }
 0x17e   :  { %v380_v0 = vadd.f32 %v379_v61, %v301_v57  ;;  %v381_v1 = vpop.f32.mrb[1].mxu0  ;;  %v450_v2 = vpop.f32.mrb[0].mxu1 }
 0x17f   :  { %v382_v4 = vadd.f32 %v381_v1, %v305_v59  ;;  %v451_v5 = vadd.f32 %v450_v2, %v309_v60  ;;  %v8401_v7 = vpop.f32.mrb[1].mxu1 }
 0x180   :  { %454 = vst [vmem:[#allocation3] sm:$0xff] %v380_v0 }
 0x181   :  { %455 = vst [vmem:[#allocation3 + $0x8] sm:$0xff] %v382_v4  ;;  %456 = vst [vmem:[#allocation3 + $0x10] sm:$0xff] %v451_v5  ;;  %v741_v4 = vld [vmem:[%s13340_s5] sm:$0x7] }
 0x182   :  { %v746_v5 = vrot.slane %v741_v4, %v11623_v51  ;;  %v750_v7 = vrot.slane %v741_v4, %v11628_v55 }
 0x188   :  { %v457_v16 = vld [vmem:[#allocation3] ss:$8 sm:$0x7] }
 0x189   :  { %v672_v26 = vrot.slane %v457_v16, 1  ;;  %v682_v52 = vrot.slane %v457_v16, 2 }
 0x19d   :  { %v589_v15 = vpop.f32.mrb[2].mxu0 }
 0x19e   :  { %v590_v17 = vadd.f32 %v589_v15, %v511_v12  ;;  %v591_v20 = vpop.f32.mrb[3].mxu0  ;;  %v660_v21 = vpop.f32.mrb[2].mxu1 }
 0x19f   :  { %v592_v22 = vadd.f32 %v591_v20, %v515_v13  ;;  %v8436_v24 = vpop.f32.mrb[3].mxu1  ;;  %v661_v42 = vadd.f32 %v660_v21, %v519_v35  ;;  %v692_v13 = vld [vmem:[#allocation3 + $0x1] ss:$8 sm:$0x7] }
 0x1a0   :  { %v664_v25 = vadd.f32 %v590_v17, %v457_v16 }
 0x1a1   :  { %v674_v30 = vadd.f32 %v672_v26, %v592_v22  ;;  %v907_v22 = vrot.slane %v692_v13, 1 }
 0x1a2   :  { %v7571_v29 = vmul.f32 -1.442695, %v664_v25 }
 0x1a3   :  { %v7572_v31 = vmul.f32 -1.442695, %v674_v30 }
 0x1a4   :  { %10787 = vpow2.f32 %v7571_v29 }
 0x1a5   :  { %10789 = vpow2.f32 %v7572_v31  ;;  %v754_v31 = vrot.slane %v741_v4, %v11630_v56 }
 0x1ae   :  { %v10788_v33 = vpop.eup %10787 }
 0x1af   :  { %v668_v34 = vadd.f32 1.0, %v10788_v33  ;;  %v10790_v39 = vpop.eup %10789 }
 0x1b0   :  { %v678_v40 = vadd.f32 1.0, %v10790_v39 }
 0x1b1   :  { %10791 = vrcp.f32 %v668_v34 }
 0x1b2   :  { %10793 = vrcp.f32 %v678_v40  ;;  %v917_v40 = vrot.slane %v692_v13, 2 }
 0x1bb   :  { %v10792_v43 = vpop.eup %10791 }
 0x1bc   :  { %v681_v50 = vmul.f32 %v10792_v43, %v661_v42  ;;  %v10794_v59 = vpop.eup %10793 }
 0x1bd   :  { %v686_v60 = vsub.f32 1.0, %v10794_v59  ;;  %v688_v1 = vmul.f32 0.0, %v10794_v59 }
 0x1be   :  { %v684_v57 = vadd.f32 %v682_v52, %v681_v50 }
 0x1c0   :  { %10795 = vtanh.f32 %v684_v57 }
 0x1ca   :  { %v10796_v61 = vpop.eup %10795 }
 0x1cb   :  { %v687_v0 = vmul.f32 %v10796_v61, %v686_v60 }
 0x1cd   :  { %v11641_v2 = vadd.f32 %v688_v1, %v687_v0 }
 0x1cf   :  { %690 = vst [vmem:[#allocation2] sm:$0x1] %v11641_v2  ;;  %823 = vmatmul.mubr.f32.vlgmr.msra.gmra.mrb[4].mxu0 %v11641_v2  ;;  %8470 = vmatmul.mubr.f32.vlgmr.msra.gmra.mrb[4].mxu1 %v11641_v2 }
 0x1d0   :  { %9493 = vmatpush1.bf16.msra.mxu0 %v11502_v44  ;;  %9524 = vmatpush3.bf16.msra.mxu1 %v11507_v49 }
 0x1d1   :  { %9495 = vmatprep.subr.bf16.mxu0 %v11505_v45  ;;  %9525 = vmatprep.subr.bf16.mxu1 %v11260_v6 }
 0x1d2   :  { %1057 = vmatprep.mubr.f32.mxu0 %v11261_v8  ;;  %8504 = vmatprep.mubr.msk.f32.mxu1 %vm11262_vm0, %v11261_v8 }
 0x1d4   :  { %9497 = vmatpush1.bf16.msra.mxu0 %v11511_v53  ;;  %9527 = vmatpush3.bf16.msra.mxu1 %v11517_v58 }
 0x1d5   :  { %9499 = vmatprep.subr.bf16.mxu0 %v11514_v54  ;;  %9528 = vmatprep.subr.bf16.mxu1 %v11260_v6 }
 0x1d8   :  { %9501 = vmatpush1.bf16.msra.mxu0 %v11524_v62  ;;  %9530 = vmatpush3.bf16.msra.mxu1 %v11530_v3 }
 0x1d9   :  { %9503 = vmatprep.subr.bf16.mxu0 %v11527_v63  ;;  %9531 = vmatprep.subr.bf16.mxu1 %v11260_v6 }
 0x1dc   :  { %9505 = vmatpush1.bf16.msra.mxu0 %v11534_v9  ;;  %9533 = vmatpush3.bf16.msra.mxu1 %v11540_v14 }
 0x1dd   :  { %9507 = vmatprep.subr.bf16.mxu0 %v11537_v10  ;;  %9534 = vmatprep.subr.bf16.mxu1 %v11260_v6 }
 0x1e0   :  { %9509 = vmatpush1.bf16.msra.mxu0 %v11544_v18  ;;  %9536 = vmatpush3.bf16.msra.mxu1 %v11550_v23 }
 0x1e1   :  { %9511 = vmatprep.subr.bf16.mxu0 %v11547_v19  ;;  %9537 = vmatprep.subr.bf16.mxu1 %v11260_v6 }
 0x1e4   :  { %9513 = vmatpush1.bf16.msra.mxu0 %v11554_v27  ;;  %9539 = vmatpush3.bf16.msra.mxu1 %v11560_v32 }
 0x1e5   :  { %9515 = vmatprep.subr.bf16.mxu0 %v11557_v28  ;;  %9540 = vmatprep.subr.bf16.mxu1 %v11260_v6 }
 0x1e8   :  { %9517 = vmatpush1.bf16.msra.mxu0 %v11564_v37  ;;  %9542 = vmatpush3.bf16.msra.mxu1 %v11570_v41 }
 0x1e9   :  { %9519 = vmatprep.subr.bf16.mxu0 %v11567_v38  ;;  %9543 = vmatprep.subr.bf16.mxu1 %v11260_v6 }
 0x1ec   :  { %9521 = vmatpush1.bf16.msra.mxu0 %v11574_v46  ;;  %9545 = vmatpush3.bf16.msra.mxu1 %v11578_v47 }
 0x1ed   :  { %9547 = vmatprep.subr.bf16.mxu0 %v11499_v36  ;;  %9578 = vmatprep.subr.bf16.mxu1 %v11260_v6 }
 0x2a2   :  { %v824_v11 = vpop.f32.mrb[4].mxu0  ;;  %v895_v12 = vpop.f32.mrb[4].mxu1 }
 0x2a3   :  { %v825_v15 = vadd.f32 %v824_v11, %v746_v5  ;;  %v826_v16 = vpop.f32.mrb[5].mxu0  ;;  %v8471_v17 = vpop.f32.mrb[5].mxu1  ;;  %v896_v34 = vadd.f32 %v895_v12, %v754_v31  ;;  %v1399_v12 = vld [vmem:[#allocation16 + $0x8] sm:$0xff]  ;;  %v1406_v31 = vld [vmem:[#allocation16 + $0x40] sm:$0xff] }
 0x2a4   :  { %v827_v20 = vadd.f32 %v826_v16, %v750_v7  ;;  %v1398_v16 = vld [vmem:[#allocation16] sm:$0xff]  ;;  %v1401_v17 = vld [vmem:[#allocation16 + $0x18] sm:$0xff] }
 0x2a5   :  { %v899_v21 = vadd.f32 %v825_v15, %v692_v13  ;;  %v1402_v13 = vld [vmem:[#allocation16 + $0x20] sm:$0xff] }
 0x2a6   :  { %v909_v24 = vadd.f32 %v907_v22, %v827_v20  ;;  %v11742_v15 = vpack.c.bf16 %v1402_v13, %v1399_v12  ;;  %v1400_v20 = vld [vmem:[#allocation16 + $0x10] sm:$0xff]  ;;  %v1403_v22 = vld [vmem:[#allocation16 + $0x28] sm:$0xff]  ;;  %v1434_v12 = vld [vmem:[#allocation16 + $0x120] sm:$0xff] }
 0x2a7   :  { %v7573_v36 = vmul.f32 -1.442695, %v899_v21  ;;  %v11744_v21 = vpack.c.bf16 %v1401_v17, %v1398_v16  ;;  %v1437_v13 = vld [vmem:[#allocation16 + $0x138] sm:$0xff]  ;;  %v1436_v16 = vld [vmem:[#allocation16 + $0x130] sm:$0xff]  ;;  %v1439_v17 = vld [vmem:[#allocation16 + $0x148] sm:$0xff] }
 0x2a8   :  { %v7574_v25 = vmul.f32 -1.442695, %v909_v24  ;;  %v1405_v24 = vld [vmem:[#allocation16 + $0x38] sm:$0xff] }
 0x2a9   :  { %10797 = vpow2.f32 %v7573_v36  ;;  %v11747_v36 = vpack.c.bf16 %v1403_v22, %v1400_v20  ;;  %v1441_v20 = vld [vmem:[#allocation16 + $0x158] sm:$0xff]  ;;  %v1444_v22 = vld [vmem:[#allocation16 + $0x170] sm:$0xff] }
 0x2aa   :  { %10799 = vpow2.f32 %v7574_v25  ;;  %v1408_v25 = vld [vmem:[#allocation16 + $0x50] sm:$0xff] }
 0x2b3   :  { %v10798_v26 = vpop.eup %10797 }
 0x2b4   :  { %v903_v29 = vadd.f32 1.0, %v10798_v26  ;;  %v10800_v30 = vpop.eup %10799  ;;  %v11751_v26 = vpack.c.bf16 %v1408_v25, %v1405_v24  ;;  %v11802_v24 = vpack.c.bf16 %v1437_v13, %v1434_v12  ;;  %v11806_v25 = vpack.c.bf16 %v1439_v17, %v1436_v16 }
 0x2b5   :  { %v913_v33 = vadd.f32 1.0, %v10800_v30  ;;  %v1407_v30 = vld [vmem:[#allocation16 + $0x48] sm:$0xff] }
 0x2b6   :  { %10801 = vrcp.f32 %v903_v29  ;;  %v1404_v29 = vld [vmem:[#allocation16 + $0x30] sm:$0xff] }
 0x2b7   :  { %10803 = vrcp.f32 %v913_v33  ;;  %v11754_v33 = vpack.c.bf16 %v1407_v30, %v1404_v29  ;;  %v11808_v29 = vpack.c.bf16 %v1444_v22, %v1441_v20  ;;  %v1440_v30 = vld [vmem:[#allocation16 + $0x150] sm:$0xff] }
 0x2c0   :  { %v10802_v35 = vpop.eup %10801 }
 0x2c1   :  { %v916_v39 = vmul.f32 %v10802_v35, %v896_v34  ;;  %v10804_v43 = vpop.eup %10803  ;;  %v1409_v34 = vld [vmem:[#allocation16 + $0x58] sm:$0xff] }
 0x2c2   :  { %v921_v50 = vsub.f32 1.0, %v10804_v43  ;;  %v923_v59 = vmul.f32 %v10804_v43, %v11641_v2  ;;  %v11757_v35 = vpack.c.bf16 %v1409_v34, %v1406_v31  ;;  %v1410_v43 = vld [vmem:[#allocation16 + $0x60] sm:$0xff]  ;;  %v1443_v31 = vld [vmem:[#allocation16 + $0x168] sm:$0xff] }
 0x2c3   :  { %v919_v42 = vadd.f32 %v917_v40, %v916_v39  ;;  %v1411_v39 = vld [vmem:[#allocation16 + $0x68] sm:$0xff]  ;;  %v1414_v40 = vld [vmem:[#allocation16 + $0x80] sm:$0xff] }
 0x2c4   :  { %v1442_v34 = vld [vmem:[#allocation16 + $0x160] sm:$0xff] }
 0x2c5   :  { %10805 = vtanh.f32 %v919_v42  ;;  %v11761_v42 = vpack.c.bf16 %v1414_v40, %v1411_v39  ;;  %v1445_v39 = vld [vmem:[#allocation16 + $0x178] sm:$0xff]  ;;  %v11812_v40 = vpack.c.bf16 %v1443_v31, %v1440_v30 }
 0x2cf   :  { %v10806_v52 = vpop.eup %10805 }
 0x2d0   :  { %v922_v57 = vmul.f32 %v10806_v52, %v921_v50  ;;  %v1413_v50 = vld [vmem:[#allocation16 + $0x78] sm:$0xff]  ;;  %v1412_v52 = vld [vmem:[#allocation16 + $0x70] sm:$0xff] }
 0x2d2   :  { %v11688_v60 = vadd.f32 %v923_v59, %v922_v57  ;;  %v11764_v57 = vpack.c.bf16 %v1413_v50, %v1410_v43  ;;  %v1415_v59 = vld [vmem:[#allocation16 + $0x88] sm:$0xff]  ;;  %v11816_v43 = vpack.c.bf16 %v1445_v39, %v1442_v34 }
 0x2d3   :  { %v1211_v50 = vld [vmem:[%s13340_s5] sm:$0x7] }
 0x2d4   :  { %925 = vst [vmem:[#allocation2 + $0x1] sm:$0x1] %v11688_v60  ;;  %1058 = vmatmul.mubr.f32.vlgmr.msra.gmra.mrb[6].mxu0 %v11688_v60  ;;  %8505 = vmatmul.mubr.f32.vlgmr.msra.gmra.mrb[6].mxu1 %v11688_v60 }
 0x2d5   :  { %9549 = vmatpush1.bf16.msra.mxu0 %v11502_v44  ;;  %9580 = vmatpush3.bf16.msra.mxu1 %v11507_v49  ;;  %v976_v44 = vld [vmem:[%s13340_s5] sm:$0x7] }
 0x2d6   :  { %9551 = vmatprep.subr.bf16.mxu0 %v11505_v45  ;;  %9581 = vmatprep.subr.bf16.mxu1 %v11260_v6  ;;  %v981_v45 = vrot.slane %v976_v44, %v11623_v51  ;;  %v985_v49 = vrot.slane %v976_v44, %v11628_v55 }
 0x2d7   :  { %1292 = vmatprep.mubr.f32.mxu0 %v11261_v8  ;;  %8539 = vmatprep.mubr.msk.f32.mxu1 %vm11262_vm0, %v11261_v8 }
 0x2d9   :  { %9553 = vmatpush1.bf16.msra.mxu0 %v11511_v53  ;;  %9583 = vmatpush3.bf16.msra.mxu1 %v11517_v58  ;;  %v927_v58 = vld [vmem:[#allocation3 + $0x2] ss:$8 sm:$0x7] }
 0x2da   :  { %9555 = vmatprep.subr.bf16.mxu0 %v11514_v54  ;;  %9584 = vmatprep.subr.bf16.mxu1 %v11260_v6  ;;  %v1152_v61 = vrot.slane %v927_v58, 2 }
 0x2dd   :  { %9557 = vmatpush1.bf16.msra.mxu0 %v11524_v62  ;;  %9586 = vmatpush3.bf16.msra.mxu1 %v11530_v3 }
 0x2de   :  { %9559 = vmatprep.subr.bf16.mxu0 %v11527_v63  ;;  %9587 = vmatprep.subr.bf16.mxu1 %v11260_v6 }
 0x2e1   :  { %9561 = vmatpush1.bf16.msra.mxu0 %v11534_v9  ;;  %9589 = vmatpush3.bf16.msra.mxu1 %v11540_v14  ;;  %v1142_v14 = vrot.slane %v927_v58, 1 }
 0x2e2   :  { %9563 = vmatprep.subr.bf16.mxu0 %v11537_v10  ;;  %9590 = vmatprep.subr.bf16.mxu1 %v11260_v6 }
 0x2e5   :  { %9565 = vmatpush1.bf16.msra.mxu0 %v11544_v18  ;;  %9592 = vmatpush3.bf16.msra.mxu1 %v11550_v23 }
 0x2e6   :  { %9567 = vmatprep.subr.bf16.mxu0 %v11547_v19  ;;  %9593 = vmatprep.subr.bf16.mxu1 %v11260_v6 }
 0x2e9   :  { %9569 = vmatpush1.bf16.msra.mxu0 %v11554_v27  ;;  %9595 = vmatpush3.bf16.msra.mxu1 %v11560_v32 }
 0x2ea   :  { %9571 = vmatprep.subr.bf16.mxu0 %v11557_v28  ;;  %9596 = vmatprep.subr.bf16.mxu1 %v11260_v6 }
 0x2ed   :  { %9573 = vmatpush1.bf16.msra.mxu0 %v11564_v37  ;;  %9598 = vmatpush3.bf16.msra.mxu1 %v11570_v41  ;;  %v989_v37 = vrot.slane %v976_v44, %v11630_v56  ;;  %v1417_v44 = vld [vmem:[#allocation16 + $0x98] sm:$0xff] }
 0x2ee   :  { %9575 = vmatprep.subr.bf16.mxu0 %v11567_v38  ;;  %9599 = vmatprep.subr.bf16.mxu1 %v11260_v6 }
 0x2f1   :  { %9577 = vmatpush1.bf16.msra.mxu0 %v11574_v46  ;;  %9601 = vmatpush3.bf16.msra.mxu1 %v11578_v47 }
 0x2f2   :  { %9634 = vmatprep.subr.bf16.mxu1 %v11260_v6  ;;  %9603 = vmatprep.subr.bf16.mxu0 %v11742_v15 }
 0x3a7   :  { %v1059_v53 = vpop.f32.mrb[6].mxu0  ;;  %v1130_v54 = vpop.f32.mrb[6].mxu1 }
 0x3a8   :  { %v1060_v62 = vadd.f32 %v1059_v53, %v981_v45  ;;  %v1061_v63 = vpop.f32.mrb[7].mxu0  ;;  %v8506_v3 = vpop.f32.mrb[7].mxu1  ;;  %v1131_v41 = vadd.f32 %v1130_v54, %v989_v37  ;;  %v1420_v45 = vld [vmem:[#allocation16 + $0xb0] sm:$0xff]  ;;  %v1419_v54 = vld [vmem:[#allocation16 + $0xa8] sm:$0xff] }
 0x3a9   :  { %v1062_v9 = vadd.f32 %v1061_v63, %v985_v49  ;;  %v11771_v49 = vpack.c.bf16 %v1420_v45, %v1417_v44  ;;  %v1416_v53 = vld [vmem:[#allocation16 + $0x90] sm:$0xff]  ;;  %v1421_v63 = vld [vmem:[#allocation16 + $0xb8] sm:$0xff] }
 0x3aa   :  { %v1134_v10 = vadd.f32 %v1060_v62, %v927_v58  ;;  %v1418_v58 = vld [vmem:[#allocation16 + $0xa0] sm:$0xff]  ;;  %v11774_v62 = vpack.c.bf16 %v1419_v54, %v1416_v53  ;;  %v1432_v37 = vld [vmem:[#allocation16 + $0x110] sm:$0xff] }
 0x3ab   :  { %v1144_v19 = vadd.f32 %v1142_v14, %v1062_v9  ;;  %v11777_v3 = vpack.c.bf16 %v1421_v63, %v1418_v58  ;;  %v1423_v9 = vld [vmem:[#allocation16 + $0xc8] sm:$0xff] }
 0x3ac   :  { %v7575_v18 = vmul.f32 -1.442695, %v1134_v10  ;;  %v1426_v10 = vld [vmem:[#allocation16 + $0xe0] sm:$0xff]  ;;  %v1162_v53 = vld [vmem:[#allocation3 + $0x3] ss:$8 sm:$0x7] }
 0x3ad   :  { %v7576_v23 = vmul.f32 -1.442695, %v1144_v19  ;;  %v11781_v14 = vpack.c.bf16 %v1426_v10, %v1423_v9  ;;  %v1425_v19 = vld [vmem:[#allocation16 + $0xd8] sm:$0xff]  ;;  %v1387_v12 = vrot.slane %v1162_v53, 2 }
 0x3ae   :  { %10807 = vpow2.f32 %v7575_v18  ;;  %v1422_v18 = vld [vmem:[#allocation16 + $0xc0] sm:$0xff] }
 0x3af   :  { %10809 = vpow2.f32 %v7576_v23  ;;  %v1424_v23 = vld [vmem:[#allocation16 + $0xd0] sm:$0xff] }
 0x3b8   :  { %v10808_v27 = vpop.eup %10807 }
 0x3b9   :  { %v1138_v28 = vadd.f32 1.0, %v10808_v27  ;;  %v10810_v32 = vpop.eup %10809  ;;  %v11784_v27 = vpack.c.bf16 %v1425_v19, %v1422_v18  ;;  %v1377_v18 = vrot.slane %v1162_v53, 1 }
 0x3ba   :  { %v1148_v38 = vadd.f32 1.0, %v10810_v32  ;;  %v1429_v32 = vld [vmem:[#allocation16 + $0xf8] sm:$0xff] }
 0x3bb   :  { %10811 = vrcp.f32 %v1138_v28  ;;  %v1427_v28 = vld [vmem:[#allocation16 + $0xe8] sm:$0xff] }
 0x3bc   :  { %10813 = vrcp.f32 %v1148_v38  ;;  %v11787_v38 = vpack.c.bf16 %v1427_v28, %v1424_v23 }
 0x3c5   :  { %v10812_v46 = vpop.eup %10811 }
 0x3c6   :  { %v1151_v47 = vmul.f32 %v10812_v46, %v1131_v41  ;;  %v10814_v1 = vpop.eup %10813  ;;  %v11789_v41 = vpack.c.bf16 %v1432_v37, %v1429_v32  ;;  %v1428_v46 = vld [vmem:[#allocation16 + $0xf0] sm:$0xff] }
 0x3c7   :  { %v1156_v2 = vsub.f32 1.0, %v10814_v1  ;;  %v1158_v7 = vmul.f32 %v10814_v1, %v11688_v60  ;;  %v11767_v60 = vpack.c.bf16 %v1415_v59, %v1412_v52  ;;  %v1433_v1 = vld [vmem:[#allocation16 + $0x118] sm:$0xff]  ;;  %v1216_v52 = vrot.slane %v1211_v50, %v11623_v51 }
 0x3c8   :  { %v1154_v0 = vadd.f32 %v1152_v61, %v1151_v47  ;;  %v1431_v47 = vld [vmem:[#allocation16 + $0x108] sm:$0xff]  ;;  %v1430_v61 = vld [vmem:[#allocation16 + $0x100] sm:$0xff]  ;;  %v1220_v59 = vrot.slane %v1211_v50, %v11628_v55 }
 0x3ca   :  { %10815 = vtanh.f32 %v1154_v0  ;;  %v11792_v0 = vpack.c.bf16 %v1431_v47, %v1428_v46  ;;  %v1224_v47 = vrot.slane %v1211_v50, %v11630_v56 }
 0x3d4   :  { %v10816_v4 = vpop.eup %10815 }
 0x3d5   :  { %v1157_v5 = vmul.f32 %v10816_v4, %v1156_v2  ;;  %v1435_v2 = vld [vmem:[#allocation16 + $0x128] sm:$0xff]  ;;  %v1438_v4 = vld [vmem:[#allocation16 + $0x140] sm:$0xff] }
 0x3d7   :  { %v11734_v11 = vadd.f32 %v1158_v7, %v1157_v5  ;;  %v11796_v5 = vpack.c.bf16 %v1433_v1, %v1430_v61  ;;  %v11798_v7 = vpack.c.bf16 %v1438_v4, %v1435_v2 }
 0x3d9   :  { %1160 = vst [vmem:[#allocation2 + $0x2] sm:$0x1] %v11734_v11  ;;  %1293 = vmatmul.mubr.f32.vlgmr.msra.gmra.mrb[8].mxu0 %v11734_v11  ;;  %8540 = vmatmul.mubr.f32.vlgmr.msra.gmra.mrb[8].mxu1 %v11734_v11 }
 0x3da   :  { %1527 = vmatprep.mubr.f32.mxu0 %v11261_v8  ;;  %8574 = vmatprep.mubr.msk.f32.mxu1 %vm11262_vm0, %v11261_v8 }
 0x3db   :  { %9605 = vmatpush1.bf16.msra.mxu0 %v11744_v21  ;;  %9636 = vmatpush3.bf16.msra.mxu1 %v11747_v36 }
 0x3dc   :  { %9637 = vmatprep.subr.bf16.mxu1 %v11260_v6  ;;  %9607 = vmatprep.subr.bf16.mxu0 %v11751_v26 }
 0x3df   :  { %9609 = vmatpush1.bf16.msra.mxu0 %v11754_v33  ;;  %9639 = vmatpush3.bf16.msra.mxu1 %v11757_v35 }
 0x3e0   :  { %9640 = vmatprep.subr.bf16.mxu1 %v11260_v6  ;;  %9611 = vmatprep.subr.bf16.mxu0 %v11761_v42 }
 0x3e3   :  { %9613 = vmatpush1.bf16.msra.mxu0 %v11764_v57  ;;  %9642 = vmatpush3.bf16.msra.mxu1 %v11767_v60 }
 0x3e4   :  { %9643 = vmatprep.subr.bf16.mxu1 %v11260_v6  ;;  %9615 = vmatprep.subr.bf16.mxu0 %v11771_v49 }
 0x3e7   :  { %9617 = vmatpush1.bf16.msra.mxu0 %v11774_v62  ;;  %9645 = vmatpush3.bf16.msra.mxu1 %v11777_v3 }
 0x3e8   :  { %9646 = vmatprep.subr.bf16.mxu1 %v11260_v6  ;;  %9619 = vmatprep.subr.bf16.mxu0 %v11781_v14 }
 0x3eb   :  { %9621 = vmatpush1.bf16.msra.mxu0 %v11784_v27  ;;  %9648 = vmatpush3.bf16.msra.mxu1 %v11787_v38 }
 0x3ec   :  { %9623 = vmatprep.subr.bf16.mxu0 %v11789_v41  ;;  %9649 = vmatprep.subr.bf16.mxu1 %v11260_v6 }
 0x3ef   :  { %9625 = vmatpush1.bf16.msra.mxu0 %v11792_v0  ;;  %9651 = vmatpush3.bf16.msra.mxu1 %v11796_v5 }
 0x3f0   :  { %9627 = vmatprep.subr.bf16.mxu0 %v11798_v7  ;;  %9652 = vmatprep.subr.bf16.mxu1 %v11260_v6 }
 0x3f3   :  { %9629 = vmatpush1.bf16.msra.mxu0 %v11802_v24  ;;  %9654 = vmatpush3.bf16.msra.mxu1 %v11806_v25 }
 0x3f4   :  { %9631 = vmatprep.subr.bf16.mxu0 %v11808_v29  ;;  %9655 = vmatprep.subr.bf16.mxu1 %v11260_v6 }
 0x3f7   :  { %9633 = vmatpush1.bf16.msra.mxu0 %v11812_v40  ;;  %9657 = vmatpush3.bf16.msra.mxu1 %v11816_v43 }
 0x3f8   :  { %9659 = vmatprep.subr.bf16.mxu0 %v11742_v15  ;;  %9690 = vmatprep.subr.bf16.mxu1 %v11260_v6 }
 0x4ac   :  { %v1294_v44 = vpop.f32.mrb[8].mxu0  ;;  %v1365_v45 = vpop.f32.mrb[8].mxu1 }
 0x4ad   :  { %v1295_v54 = vadd.f32 %v1294_v44, %v1216_v52  ;;  %v1296_v58 = vpop.f32.mrb[9].mxu0  ;;  %v8541_v63 = vpop.f32.mrb[9].mxu1  ;;  %v1366_v1 = vadd.f32 %v1365_v45, %v1224_v47 }
 0x4ae   :  { %v1297_v9 = vadd.f32 %v1296_v58, %v1220_v59  ;;  %v1397_v59 = vld [vmem:[#allocation3 + $0x4] ss:$8 sm:$0x7] }
 0x4af   :  { %v1369_v10 = vadd.f32 %v1295_v54, %v1162_v53  ;;  %v1612_v63 = vrot.slane %v1397_v59, 1 }
 0x4b0   :  { %v1379_v23 = vadd.f32 %v1377_v18, %v1297_v9 }
 0x4b1   :  { %v7577_v19 = vmul.f32 -1.442695, %v1369_v10 }
 0x4b2   :  { %v7578_v28 = vmul.f32 -1.442695, %v1379_v23 }
 0x4b3   :  { %10817 = vpow2.f32 %v7577_v19 }
 0x4b4   :  { %10819 = vpow2.f32 %v7578_v28 }
 0x4bd   :  { %v10818_v32 = vpop.eup %10817 }
 0x4be   :  { %v1373_v37 = vadd.f32 1.0, %v10818_v32  ;;  %v10820_v46 = vpop.eup %10819 }
 0x4bf   :  { %v1383_v61 = vadd.f32 1.0, %v10820_v46 }
 0x4c0   :  { %10821 = vrcp.f32 %v1373_v37 }
 0x4c1   :  { %10823 = vrcp.f32 %v1383_v61 }
 0x4ca   :  { %v10822_v2 = vpop.eup %10821 }
 0x4cb   :  { %v1386_v4 = vmul.f32 %v10822_v2, %v1366_v1  ;;  %v10824_v16 = vpop.eup %10823  ;;  %v1622_v1 = vrot.slane %v1397_v59, 2 }
 0x4cc   :  { %v1391_v17 = vsub.f32 1.0, %v10824_v16  ;;  %v1393_v30 = vmul.f32 %v10824_v16, %v11734_v11  ;;  %v1446_v11 = vld [vmem:[%s13340_s5] sm:$0x7] }
 0x4cd   :  { %v1389_v13 = vadd.f32 %v1387_v12, %v1386_v4  ;;  %v1451_v34 = vrot.slane %v1446_v11, %v11623_v51  ;;  %v1455_v39 = vrot.slane %v1446_v11, %v11628_v55  ;;  %v1459_v32 = vrot.slane %v1446_v11, %v11630_v56 }
 0x4cf   :  { %10825 = vtanh.f32 %v1389_v13 }
 0x4d9   :  { %v10826_v20 = vpop.eup %10825 }
 0x4da   :  { %v1392_v22 = vmul.f32 %v10826_v20, %v1391_v17 }
 0x4dc   :  { %v11830_v31 = vadd.f32 %v1393_v30, %v1392_v22  ;;  %v1681_v22 = vld [vmem:[%s13340_s5] sm:$0x7] }
 0x4dd   :  { %v1686_v30 = vrot.slane %v1681_v22, %v11623_v51 }
 0x4de   :  { %1395 = vst [vmem:[#allocation2 + $0x3] sm:$0x1] %v11830_v31  ;;  %1528 = vmatmul.mubr.f32.vlgmr.msra.gmra.mrb[10].mxu0 %v11830_v31  ;;  %8575 = vmatmul.mubr.f32.vlgmr.msra.gmra.mrb[10].mxu1 %v11830_v31 }
 0x4df   :  { %9661 = vmatpush1.bf16.msra.mxu0 %v11744_v21  ;;  %9692 = vmatpush3.bf16.msra.mxu1 %v11747_v36 }
 0x4e0   :  { %9663 = vmatprep.subr.bf16.mxu0 %v11751_v26  ;;  %9693 = vmatprep.subr.bf16.mxu1 %v11260_v6 }
 0x4e1   :  { %1762 = vmatprep.mubr.f32.mxu0 %v11261_v8  ;;  %8609 = vmatprep.mubr.msk.f32.mxu1 %vm11262_vm0, %v11261_v8 }
 0x4e3   :  { %9665 = vmatpush1.bf16.msra.mxu0 %v11754_v33  ;;  %9695 = vmatpush3.bf16.msra.mxu1 %v11757_v35 }
 0x4e4   :  { %9667 = vmatprep.subr.bf16.mxu0 %v11761_v42  ;;  %9696 = vmatprep.subr.bf16.mxu1 %v11260_v6 }
 0x4e7   :  { %9669 = vmatpush1.bf16.msra.mxu0 %v11764_v57  ;;  %9698 = vmatpush3.bf16.msra.mxu1 %v11767_v60 }
 0x4e8   :  { %9671 = vmatprep.subr.bf16.mxu0 %v11771_v49  ;;  %9699 = vmatprep.subr.bf16.mxu1 %v11260_v6 }
 0x4eb   :  { %9673 = vmatpush1.bf16.msra.mxu0 %v11774_v62  ;;  %9701 = vmatpush3.bf16.msra.mxu1 %v11777_v3 }
 0x4ec   :  { %9675 = vmatprep.subr.bf16.mxu0 %v11781_v14  ;;  %9702 = vmatprep.subr.bf16.mxu1 %v11260_v6 }
 0x4ef   :  { %9677 = vmatpush1.bf16.msra.mxu0 %v11784_v27  ;;  %9704 = vmatpush3.bf16.msra.mxu1 %v11787_v38 }
 0x4f0   :  { %9679 = vmatprep.subr.bf16.mxu0 %v11789_v41  ;;  %9705 = vmatprep.subr.bf16.mxu1 %v11260_v6 }
 0x4f3   :  { %9681 = vmatpush1.bf16.msra.mxu0 %v11792_v0  ;;  %9707 = vmatpush3.bf16.msra.mxu1 %v11796_v5 }
 0x4f4   :  { %9683 = vmatprep.subr.bf16.mxu0 %v11798_v7  ;;  %9708 = vmatprep.subr.bf16.mxu1 %v11260_v6 }
 0x4f7   :  { %9685 = vmatpush1.bf16.msra.mxu0 %v11802_v24  ;;  %9710 = vmatpush3.bf16.msra.mxu1 %v11806_v25 }
 0x4f8   :  { %9687 = vmatprep.subr.bf16.mxu0 %v11808_v29  ;;  %9711 = vmatprep.subr.bf16.mxu1 %v11260_v6 }
 0x4fb   :  { %9689 = vmatpush1.bf16.msra.mxu0 %v11812_v40  ;;  %9713 = vmatpush3.bf16.msra.mxu1 %v11816_v43 }
 0x4fc   :  { %9715 = vmatprep.subr.bf16.mxu0 %v11742_v15  ;;  %9746 = vmatprep.subr.bf16.mxu1 %v11260_v6 }
 0x5b1   :  { %v1529_v50 = vpop.f32.mrb[10].mxu0  ;;  %v1600_v52 = vpop.f32.mrb[10].mxu1 }
 0x5b2   :  { %v1530_v44 = vadd.f32 %v1529_v50, %v1451_v34  ;;  %v1531_v45 = vpop.f32.mrb[11].mxu0  ;;  %v8576_v53 = vpop.f32.mrb[11].mxu1  ;;  %v1601_v46 = vadd.f32 %v1600_v52, %v1459_v32 }
 0x5b3   :  { %v1532_v54 = vadd.f32 %v1531_v45, %v1455_v39  ;;  %v1632_v39 = vld [vmem:[#allocation3 + $0x5] ss:$8 sm:$0x7] }
 0x5b4   :  { %v1604_v58 = vadd.f32 %v1530_v44, %v1397_v59  ;;  %v1847_v53 = vrot.slane %v1632_v39, 1 }
 0x5b5   :  { %v1614_v10 = vadd.f32 %v1612_v63, %v1532_v54 }
 0x5b6   :  { %v7579_v9 = vmul.f32 -1.442695, %v1604_v58 }
 0x5b7   :  { %v7580_v18 = vmul.f32 -1.442695, %v1614_v10 }
 0x5b8   :  { %10827 = vpow2.f32 %v7579_v9 }
 0x5b9   :  { %10829 = vpow2.f32 %v7580_v18  ;;  %v1694_v18 = vrot.slane %v1681_v22, %v11630_v56 }
 0x5c2   :  { %v10828_v19 = vpop.eup %10827 }
 0x5c3   :  { %v1608_v23 = vadd.f32 1.0, %v10828_v19  ;;  %v10830_v28 = vpop.eup %10829 }
 0x5c4   :  { %v1618_v37 = vadd.f32 1.0, %v10830_v28 }
 0x5c5   :  { %10831 = vrcp.f32 %v1608_v23 }
 0x5c6   :  { %10833 = vrcp.f32 %v1618_v37  ;;  %v1857_v37 = vrot.slane %v1632_v39, 2 }
 0x5cf   :  { %v10832_v47 = vpop.eup %10831 }
 0x5d0   :  { %v1621_v61 = vmul.f32 %v10832_v47, %v1601_v46  ;;  %v10834_v4 = vpop.eup %10833 }
 0x5d1   :  { %v1626_v12 = vsub.f32 1.0, %v10834_v4  ;;  %v1628_v17 = vmul.f32 %v10834_v4, %v11830_v31  ;;  %v1690_v31 = vrot.slane %v1681_v22, %v11628_v55 }
 0x5d2   :  { %v1624_v2 = vadd.f32 %v1622_v1, %v1621_v61 }
 0x5d4   :  { %10835 = vtanh.f32 %v1624_v2 }
 0x5de   :  { %v10836_v13 = vpop.eup %10835 }
 0x5df   :  { %v1627_v16 = vmul.f32 %v10836_v13, %v1626_v12 }
 0x5e1   :  { %v11877_v20 = vadd.f32 %v1628_v17, %v1627_v16 }
 0x5e3   :  { %1630 = vst [vmem:[#allocation2 + $0x4] sm:$0x1] %v11877_v20  ;;  %1763 = vmatmul.mubr.f32.vlgmr.msra.gmra.mrb[12].mxu0 %v11877_v20  ;;  %8610 = vmatmul.mubr.f32.vlgmr.msra.gmra.mrb[12].mxu1 %v11877_v20 }
 0x5e4   :  { %9717 = vmatpush1.bf16.msra.mxu0 %v11744_v21  ;;  %9748 = vmatpush3.bf16.msra.mxu1 %v11747_v36 }
 0x5e5   :  { %9719 = vmatprep.subr.bf16.mxu0 %v11751_v26  ;;  %9749 = vmatprep.subr.bf16.mxu1 %v11260_v6 }
 0x5e6   :  { %1997 = vmatprep.mubr.f32.mxu0 %v11261_v8  ;;  %8644 = vmatprep.mubr.msk.f32.mxu1 %vm11262_vm0, %v11261_v8 }
 0x5e8   :  { %9721 = vmatpush1.bf16.msra.mxu0 %v11754_v33  ;;  %9751 = vmatpush3.bf16.msra.mxu1 %v11757_v35 }
 0x5e9   :  { %9723 = vmatprep.subr.bf16.mxu0 %v11761_v42  ;;  %9752 = vmatprep.subr.bf16.mxu1 %v11260_v6 }
 0x5ec   :  { %9725 = vmatpush1.bf16.msra.mxu0 %v11764_v57  ;;  %9754 = vmatpush3.bf16.msra.mxu1 %v11767_v60 }
 0x5ed   :  { %9727 = vmatprep.subr.bf16.mxu0 %v11771_v49  ;;  %9755 = vmatprep.subr.bf16.mxu1 %v11260_v6 }
 0x5f0   :  { %9729 = vmatpush1.bf16.msra.mxu0 %v11774_v62  ;;  %9757 = vmatpush3.bf16.msra.mxu1 %v11777_v3 }
 0x5f1   :  { %9731 = vmatprep.subr.bf16.mxu0 %v11781_v14  ;;  %9758 = vmatprep.subr.bf16.mxu1 %v11260_v6 }
 0x5f4   :  { %9733 = vmatpush1.bf16.msra.mxu0 %v11784_v27  ;;  %9760 = vmatpush3.bf16.msra.mxu1 %v11787_v38 }
 0x5f5   :  { %9735 = vmatprep.subr.bf16.mxu0 %v11789_v41  ;;  %9761 = vmatprep.subr.bf16.mxu1 %v11260_v6 }
 0x5f8   :  { %9737 = vmatpush1.bf16.msra.mxu0 %v11792_v0  ;;  %9763 = vmatpush3.bf16.msra.mxu1 %v11796_v5 }
 0x5f9   :  { %9739 = vmatprep.subr.bf16.mxu0 %v11798_v7  ;;  %9764 = vmatprep.subr.bf16.mxu1 %v11260_v6 }
 0x5fc   :  { %9741 = vmatpush1.bf16.msra.mxu0 %v11802_v24  ;;  %9766 = vmatpush3.bf16.msra.mxu1 %v11806_v25 }
 0x5fd   :  { %9743 = vmatprep.subr.bf16.mxu0 %v11808_v29  ;;  %9767 = vmatprep.subr.bf16.mxu1 %v11260_v6 }
 0x600   :  { %9745 = vmatpush1.bf16.msra.mxu0 %v11812_v40  ;;  %9769 = vmatpush3.bf16.msra.mxu1 %v11816_v43 }
 0x601   :  { %9771 = vmatprep.subr.bf16.mxu0 %v11742_v15  ;;  %9802 = vmatprep.subr.bf16.mxu1 %v11260_v6 }
 0x6b6   :  { %v1764_v11 = vpop.f32.mrb[12].mxu0  ;;  %v1835_v34 = vpop.f32.mrb[12].mxu1 }
 0x6b7   :  { %v1765_v50 = vadd.f32 %v1764_v11, %v1686_v30  ;;  %v1766_v52 = vpop.f32.mrb[13].mxu0  ;;  %v8611_v59 = vpop.f32.mrb[13].mxu1  ;;  %v1836_v23 = vadd.f32 %v1835_v34, %v1694_v18  ;;  %v2151_v34 = vld [vmem:[%s13340_s5] sm:$0x7] }
 0x6b8   :  { %v1767_v44 = vadd.f32 %v1766_v52, %v1690_v31 }
 0x6b9   :  { %v1839_v45 = vadd.f32 %v1765_v50, %v1632_v39  ;;  %v2156_v39 = vrot.slane %v2151_v34, %v11623_v51  ;;  %v2160_v50 = vrot.slane %v2151_v34, %v11628_v55 }
 0x6ba   :  { %v1849_v54 = vadd.f32 %v1847_v53, %v1767_v44  ;;  %v2102_v44 = vld [vmem:[#allocation3 + $0x7] ss:$8 sm:$0x7] }
 0x6bb   :  { %v7581_v15 = vmul.f32 -1.442695, %v1839_v45 }
 0x6bc   :  { %v7582_v58 = vmul.f32 -1.442695, %v1849_v54 }
 0x6bd   :  { %10837 = vpow2.f32 %v7581_v15 }
 0x6be   :  { %10839 = vpow2.f32 %v7582_v58 }
 0x6c7   :  { %v10838_v63 = vpop.eup %10837 }
 0x6c8   :  { %v1843_v9 = vadd.f32 1.0, %v10838_v63  ;;  %v10840_v10 = vpop.eup %10839  ;;  %v2317_v63 = vrot.slane %v2102_v44, 1 }
 0x6c9   :  { %v1853_v19 = vadd.f32 1.0, %v10840_v10 }
 0x6ca   :  { %10841 = vrcp.f32 %v1843_v9 }
 0x6cb   :  { %10843 = vrcp.f32 %v1853_v19 }
 0x6d4   :  { %v10842_v28 = vpop.eup %10841 }
 0x6d5   :  { %v1856_v32 = vmul.f32 %v10842_v28, %v1836_v23  ;;  %v10844_v47 = vpop.eup %10843 }
 0x6d6   :  { %v1861_v61 = vsub.f32 1.0, %v10844_v47  ;;  %v1863_v4 = vmul.f32 %v10844_v47, %v11877_v20 }
 0x6d7   :  { %v1859_v46 = vadd.f32 %v1857_v37, %v1856_v32  ;;  %v2164_v32 = vrot.slane %v2151_v34, %v11630_v56 }
 0x6d9   :  { %10845 = vtanh.f32 %v1859_v46 }
 0x6e3   :  { %v10846_v1 = vpop.eup %10845 }
 0x6e4   :  { %v1862_v2 = vmul.f32 %v10846_v1, %v1861_v61  ;;  %v2327_v1 = vrot.slane %v2102_v44, 2 }
 0x6e6   :  { %v11924_v12 = vadd.f32 %v1863_v4, %v1862_v2 }
 0x6e8   :  { %1865 = vst [vmem:[#allocation2 + $0x5] sm:$0x1] %v11924_v12  ;;  %1998 = vmatmul.mubr.f32.vlgmr.msra.gmra.mrb[14].mxu0 %v11924_v12  ;;  %8645 = vmatmul.mubr.f32.vlgmr.msra.gmra.mrb[14].mxu1 %v11924_v12 }
 0x6e9   :  { %9773 = vmatpush1.bf16.msra.mxu0 %v11744_v21  ;;  %9804 = vmatpush3.bf16.msra.mxu1 %v11747_v36  ;;  %v1916_v21 = vld [vmem:[%s13340_s5] sm:$0x7] }
 0x6ea   :  { %9775 = vmatprep.subr.bf16.mxu0 %v11751_v26  ;;  %9805 = vmatprep.subr.bf16.mxu1 %v11260_v6  ;;  %v1921_v36 = vrot.slane %v1916_v21, %v11623_v51  ;;  %v1925_v26 = vrot.slane %v1916_v21, %v11628_v55 }
 0x6eb   :  { %2232 = vmatprep.mubr.f32.mxu0 %v11261_v8  ;;  %8679 = vmatprep.mubr.msk.f32.mxu1 %vm11262_vm0, %v11261_v8 }
 0x6ed   :  { %9777 = vmatpush1.bf16.msra.mxu0 %v11754_v33  ;;  %9807 = vmatpush3.bf16.msra.mxu1 %v11757_v35 }
 0x6ee   :  { %9779 = vmatprep.subr.bf16.mxu0 %v11761_v42  ;;  %9808 = vmatprep.subr.bf16.mxu1 %v11260_v6  ;;  %v1867_v42 = vld [vmem:[#allocation3 + $0x6] ss:$8 sm:$0x7] }
 0x6ef   :  { %v2092_v13 = vrot.slane %v1867_v42, 2 }
 0x6f1   :  { %9781 = vmatpush1.bf16.msra.mxu0 %v11764_v57  ;;  %9810 = vmatpush3.bf16.msra.mxu1 %v11767_v60 }
 0x6f2   :  { %9783 = vmatprep.subr.bf16.mxu0 %v11771_v49  ;;  %9811 = vmatprep.subr.bf16.mxu1 %v11260_v6 }
 0x6f5   :  { %9785 = vmatpush1.bf16.msra.mxu0 %v11774_v62  ;;  %9813 = vmatpush3.bf16.msra.mxu1 %v11777_v3 }
 0x6f6   :  { %9787 = vmatprep.subr.bf16.mxu0 %v11781_v14  ;;  %9814 = vmatprep.subr.bf16.mxu1 %v11260_v6  ;;  %v2082_v14 = vrot.slane %v1867_v42, 1 }
 0x6f9   :  { %9789 = vmatpush1.bf16.msra.mxu0 %v11784_v27  ;;  %9816 = vmatpush3.bf16.msra.mxu1 %v11787_v38 }
 0x6fa   :  { %9791 = vmatprep.subr.bf16.mxu0 %v11789_v41  ;;  %9817 = vmatprep.subr.bf16.mxu1 %v11260_v6 }
 0x6fd   :  { %9793 = vmatpush1.bf16.msra.mxu0 %v11792_v0  ;;  %9819 = vmatpush3.bf16.msra.mxu1 %v11796_v5 }
 0x6fe   :  { %9795 = vmatprep.subr.bf16.mxu0 %v11798_v7  ;;  %9820 = vmatprep.subr.bf16.mxu1 %v11260_v6 }
 0x701   :  { %9797 = vmatpush1.bf16.msra.mxu0 %v11802_v24  ;;  %9822 = vmatpush3.bf16.msra.mxu1 %v11806_v25  ;;  %v1929_v24 = vrot.slane %v1916_v21, %v11630_v56 }
 0x702   :  { %9799 = vmatprep.subr.bf16.mxu0 %v11808_v29  ;;  %9823 = vmatprep.subr.bf16.mxu1 %v11260_v6 }
 0x705   :  { %9801 = vmatpush1.bf16.msra.mxu0 %v11812_v40  ;;  %9825 = vmatpush3.bf16.msra.mxu1 %v11816_v43 }
 0x7bb   :  { %v1999_v33 = vpop.f32.mrb[14].mxu0  ;;  %v2070_v35 = vpop.f32.mrb[14].mxu1 }
 0x7bc   :  { %v2000_v57 = vadd.f32 %v1999_v33, %v1921_v36  ;;  %v2001_v60 = vpop.f32.mrb[15].mxu0  ;;  %v8646_v49 = vpop.f32.mrb[15].mxu1  ;;  %v2071_v29 = vadd.f32 %v2070_v35, %v1929_v24 }
 0x7bd   :  { %v2002_v62 = vadd.f32 %v2001_v60, %v1925_v26 }
 0x7be   :  { %v2074_v3 = vadd.f32 %v2000_v57, %v1867_v42 }
 0x7bf   :  { %v2084_v38 = vadd.f32 %v2082_v14, %v2002_v62 }
 0x7c0   :  { %v7583_v27 = vmul.f32 -1.442695, %v2074_v3 }
 0x7c1   :  { %v7584_v41 = vmul.f32 -1.442695, %v2084_v38 }
 0x7c2   :  { %10847 = vpow2.f32 %v7583_v27 }
 0x7c3   :  { %10849 = vpow2.f32 %v7584_v41 }
 0x7cc   :  { %v10848_v0 = vpop.eup %10847 }
 0x7cd   :  { %v2078_v5 = vadd.f32 1.0, %v10848_v0  ;;  %v10850_v7 = vpop.eup %10849 }
 0x7ce   :  { %v2088_v25 = vadd.f32 1.0, %v10850_v7 }
 0x7cf   :  { %10851 = vrcp.f32 %v2078_v5 }
 0x7d0   :  { %10853 = vrcp.f32 %v2088_v25 }
 0x7d9   :  { %v10852_v40 = vpop.eup %10851 }
 0x7da   :  { %v2091_v43 = vmul.f32 %v10852_v40, %v2071_v29  ;;  %v10854_v17 = vpop.eup %10853 }
 0x7db   :  { %v2096_v20 = vsub.f32 1.0, %v10854_v17  ;;  %v2098_v31 = vmul.f32 %v10854_v17, %v11924_v12 }
 0x7dc   :  { %v2094_v16 = vadd.f32 %v2092_v13, %v2091_v43 }
 0x7de   :  { %10855 = vtanh.f32 %v2094_v16 }
 0x7e8   :  { %v10856_v22 = vpop.eup %10855 }
 0x7e9   :  { %v2097_v30 = vmul.f32 %v10856_v22, %v2096_v20 }
 0x7eb   :  { %v2099_v11 = vadd.f32 %v2098_v31, %v2097_v30 }
 0x7ed   :  { %2100 = vst [vmem:[#allocation2 + $0x6] sm:$0x1] %v2099_v11  ;;  %2233 = vmatmul.mubr.f32.vlgmr.msra.gmra.mrb[16].mxu0 %v2099_v11  ;;  %8680 = vmatmul.mubr.f32.vlgmr.msra.gmra.mrb[16].mxu1 %v2099_v11 }
 0x8c0   :  { %v2234_v52 = vpop.f32.mrb[16].mxu0  ;;  %v2305_v59 = vpop.f32.mrb[16].mxu1 }
 0x8c1   :  { %v2235_v45 = vadd.f32 %v2234_v52, %v2156_v39  ;;  %v2236_v53 = vpop.f32.mrb[17].mxu0  ;;  %v8681_v15 = vpop.f32.mrb[17].mxu1  ;;  %v2306_v46 = vadd.f32 %v2305_v59, %v2164_v32 }
 0x8c2   :  { %v2237_v54 = vadd.f32 %v2236_v53, %v2160_v50 }
 0x8c3   :  { %v2309_v58 = vadd.f32 %v2235_v45, %v2102_v44 }
 0x8c4   :  { %v2319_v10 = vadd.f32 %v2317_v63, %v2237_v54 }
 0x8c5   :  { %v7585_v9 = vmul.f32 -1.442695, %v2309_v58 }
 0x8c6   :  { %v7586_v18 = vmul.f32 -1.442695, %v2319_v10 }
 0x8c7   :  { %10857 = vpow2.f32 %v7585_v9 }
 0x8c8   :  { %10859 = vpow2.f32 %v7586_v18 }
 0x8d1   :  { %v10858_v19 = vpop.eup %10857 }
 0x8d2   :  { %v2313_v23 = vadd.f32 1.0, %v10858_v19  ;;  %v10860_v28 = vpop.eup %10859 }
 0x8d3   :  { %v2323_v37 = vadd.f32 1.0, %v10860_v28 }
 0x8d4   :  { %10861 = vrcp.f32 %v2313_v23 }
 0x8d5   :  { %10863 = vrcp.f32 %v2323_v37 }
 0x8de   :  { %v10862_v47 = vpop.eup %10861 }
 0x8df   :  { %v2326_v61 = vmul.f32 %v10862_v47, %v2306_v46  ;;  %v10864_v4 = vpop.eup %10863 }
 0x8e0   :  { %v2331_v12 = vsub.f32 1.0, %v10864_v4  ;;  %v2333_v26 = vmul.f32 %v10864_v4, %v2099_v11 }
 0x8e1   :  { %v2329_v2 = vadd.f32 %v2327_v1, %v2326_v61 }
 0x8e3   :  { %10865 = vtanh.f32 %v2329_v2 }
 0x8ed   :  { %v10866_v21 = vpop.eup %10865 }
 0x8ee   :  { %v2332_v36 = vmul.f32 %v10866_v21, %v2331_v12 }
 0x8f0   :  { %v11975_v33 = vadd.f32 %v2333_v26, %v2332_v36 }
 0x8f2   :  { %2335 = vst [vmem:[#allocation2 + $0x7] sm:$0x1] %v11975_v33 }
 0x8f3   :  { %11238 = dma.done.wait [#allocation7], 6144 }
 0x8f4   :  { %11239 = vsyncadd [#allocation7], 4294961152 }
 0x8f5   :  { %11240 = dma.done.wait [#allocation7 + $0x1], 2048 }
 0x8f6   :  { %11241 = vsyncadd [#allocation7 + $0x1], 4294965248 }
 0x8f7   :  { %11242 = dma.done.wait [#allocation7 + $0x2], 16 }
 0x8f8   :  { %11243 = vsyncadd [#allocation7 + $0x2], 4294967280  ;;  %9858 = vmatprep.subr.bf16.mxu1 %v11260_v6  ;;  %2490 = vmatprep.mubr.f32.mxu0 %v11261_v8  ;;  %v2362_v35 = vld [vmem:[#allocation17 + $0x8] sm:$0xff]  ;;  %v2365_v42 = vld [vmem:[#allocation17 + $0x20] sm:$0xff]  ;;  %vm2663_vm8 = vcmask 57344   ;;  %vm2675_vm9 = vcmask 64512  }
 0x8f9   :  { %8714 = vmatprep.mubr.msk.f32.mxu1 %vm11262_vm0, %v11261_v8  ;;  %v2361_v57 = vld [vmem:[#allocation17] sm:$0xff]  ;;  %v11982_v60 = vpack.c.bf16 %v2365_v42, %v2362_v35  ;;  %v2364_v49 = vld [vmem:[#allocation17 + $0x18] sm:$0xff]  ;;  %v2371_v3 = vld [vmem:[#allocation17 + $0x50] sm:$0xff] }
 0x8fa   :  { %v2368_v62 = vld [vmem:[#allocation17 + $0x38] sm:$0xff]  ;;  %v11984_v14 = vpack.c.bf16 %v2364_v49, %v2361_v57  ;;  %v2367_v38 = vld [vmem:[#allocation17 + $0x30] sm:$0xff]  ;;  %v2370_v41 = vld [vmem:[#allocation17 + $0x48] sm:$0xff] }
 0x8fb   :  { %v11986_v27 = vpack.c.bf16 %v2371_v3, %v2368_v62  ;;  %v2374_v0 = vld [vmem:[#allocation17 + $0x68] sm:$0xff]  ;;  %9827 = vmatprep.subr.bf16.mxu0 %v11982_v60  ;;  %v2377_v5 = vld [vmem:[#allocation17 + $0x80] sm:$0xff]  ;;  %v11990_v7 = vpack.c.bf16 %v2370_v41, %v2367_v38  ;;  %v2376_v29 = vld [vmem:[#allocation17 + $0x78] sm:$0xff] }
 0x8fc   :  { %9829 = vmatpush1.bf16.msra.mxu0 %v11984_v14  ;;  %v11993_v24 = vpack.c.bf16 %v2377_v5, %v2374_v0  ;;  %v2373_v25 = vld [vmem:[#allocation17 + $0x60] sm:$0xff]  ;;  %v2380_v40 = vld [vmem:[#allocation17 + $0x98] sm:$0xff]  ;;  %v2383_v43 = vld [vmem:[#allocation17 + $0xb0] sm:$0xff] }
 0x8fd   :  { %9831 = vmatprep.subr.bf16.mxu0 %v11986_v27  ;;  %v11996_v13 = vpack.c.bf16 %v2376_v29, %v2373_v25  ;;  %v11999_v16 = vpack.c.bf16 %v2383_v43, %v2380_v40  ;;  %v2379_v17 = vld [vmem:[#allocation17 + $0x90] sm:$0xff]  ;;  %v2382_v20 = vld [vmem:[#allocation17 + $0xa8] sm:$0xff]  ;;  %v2389_v30 = vld [vmem:[#allocation17 + $0xe0] sm:$0xff] }
 0x8fe   :  { %v2386_v22 = vld [vmem:[#allocation17 + $0xc8] sm:$0xff]  ;;  %v2363_v31 = vld [vmem:[#allocation17 + $0x10] sm:$0xff]  ;;  %v2369_v39 = vld [vmem:[#allocation17 + $0x40] sm:$0xff]  ;;  %v12004_v52 = vpack.c.bf16 %v2382_v20, %v2379_v17 }
 0x8ff   :  { %v2366_v11 = vld [vmem:[#allocation17 + $0x28] sm:$0xff]  ;;  %v2372_v50 = vld [vmem:[#allocation17 + $0x58] sm:$0xff]  ;;  %v12007_v59 = vpack.c.bf16 %v2389_v30, %v2386_v22  ;;  %v2385_v44 = vld [vmem:[#allocation17 + $0xc0] sm:$0xff] }
 0x900   :  { %9833 = vmatpush1.bf16.msra.mxu0 %v11990_v7  ;;  %v12001_v34 = vpack.c.bf16 %v2366_v11, %v2363_v31  ;;  %v2388_v45 = vld [vmem:[#allocation17 + $0xd8] sm:$0xff]  ;;  %v12010_v15 = vpack.c.bf16 %v2372_v50, %v2369_v39  ;;  %v2395_v54 = vld [vmem:[#allocation17 + $0x110] sm:$0xff]  ;;  %v2378_v63 = vld [vmem:[#allocation17 + $0x88] sm:$0xff] }
 0x901   :  { %9835 = vmatprep.subr.bf16.mxu0 %v11993_v24  ;;  %v2392_v53 = vld [vmem:[#allocation17 + $0xf8] sm:$0xff]  ;;  %v2375_v58 = vld [vmem:[#allocation17 + $0x70] sm:$0xff]  ;;  %v12014_v9 = vpack.c.bf16 %v2388_v45, %v2385_v44  ;;  %v2394_v19 = vld [vmem:[#allocation17 + $0x108] sm:$0xff] }
 0x902   :  { %9860 = vmatpush3.bf16.msra.mxu1 %v12001_v34  ;;  %v12017_v10 = vpack.c.bf16 %v2395_v54, %v2392_v53  ;;  %v2391_v18 = vld [vmem:[#allocation17 + $0xf0] sm:$0xff]  ;;  %v2398_v23 = vld [vmem:[#allocation17 + $0x128] sm:$0xff]  ;;  %v12020_v28 = vpack.c.bf16 %v2378_v63, %v2375_v58  ;;  %v2401_v32 = vld [vmem:[#allocation17 + $0x140] sm:$0xff] }
 0x903   :  { %9861 = vmatprep.subr.bf16.mxu1 %v11260_v6  ;;  %v2381_v37 = vld [vmem:[#allocation17 + $0xa0] sm:$0xff]  ;;  %v2384_v46 = vld [vmem:[#allocation17 + $0xb8] sm:$0xff]  ;;  %v12024_v47 = vpack.c.bf16 %v2394_v19, %v2391_v18  ;;  %v12027_v61 = vpack.c.bf16 %v2401_v32, %v2398_v23  ;;  %v2407_v21 = vld [vmem:[#allocation17 + $0x170] sm:$0xff] }
 0x904   :  { %9837 = vmatpush1.bf16.msra.mxu0 %v11996_v13  ;;  %v2397_v1 = vld [vmem:[#allocation17 + $0x120] sm:$0xff]  ;;  %v2400_v2 = vld [vmem:[#allocation17 + $0x138] sm:$0xff]  ;;  %v12030_v12 = vpack.c.bf16 %v2384_v46, %v2381_v37  ;;  %v2387_v36 = vld [vmem:[#allocation17 + $0xd0] sm:$0xff] }
 0x905   :  { %9839 = vmatprep.subr.bf16.mxu0 %v11999_v16  ;;  %v2404_v4 = vld [vmem:[#allocation17 + $0x158] sm:$0xff]  ;;  %v2390_v26 = vld [vmem:[#allocation17 + $0xe8] sm:$0xff]  ;;  %v12034_v35 = vpack.c.bf16 %v2400_v2, %v2397_v1  ;;  %v2403_v57 = vld [vmem:[#allocation17 + $0x150] sm:$0xff] }
 0x906   :  { %9863 = vmatpush3.bf16.msra.mxu1 %v12010_v15  ;;  %v12037_v42 = vpack.c.bf16 %v2407_v21, %v2404_v4  ;;  %v2406_v49 = vld [vmem:[#allocation17 + $0x168] sm:$0xff]  ;;  %v12040_v62 = vpack.c.bf16 %v2390_v26, %v2387_v36  ;;  %v2393_v3 = vld [vmem:[#allocation17 + $0x100] sm:$0xff]  ;;  %v2396_v38 = vld [vmem:[#allocation17 + $0x118] sm:$0xff] }
 0x907   :  { %9864 = vmatprep.subr.bf16.mxu1 %v11260_v6  ;;  %v12044_v41 = vpack.c.bf16 %v2406_v49, %v2403_v57  ;;  %v12048_v0 = vpack.c.bf16 %v2396_v38, %v2393_v3  ;;  %v2399_v5 = vld [vmem:[#allocation17 + $0x130] sm:$0xff]  ;;  %v2402_v25 = vld [vmem:[#allocation17 + $0x148] sm:$0xff]  ;;  %v2405_v40 = vld [vmem:[#allocation17 + $0x160] sm:$0xff] }
 0x908   :  { %9841 = vmatpush1.bf16.msra.mxu0 %v12004_v52  ;;  %v12053_v29 = vpack.c.bf16 %v2402_v25, %v2399_v5  ;;  %v2408_v43 = vld [vmem:[#allocation17 + $0x178] sm:$0xff]  ;;  %v2409_v22 = vld [vmem:[%s13342_s7] sm:$0x7] }
 0x909   :  { %9843 = vmatprep.subr.bf16.mxu0 %v12007_v59  ;;  %v12061_v17 = vpack.c.bf16 %v2408_v43, %v2405_v40  ;;  %v12069_v20 = vld [vmem:[#allocation2] sm:$0xff]  ;;  %v2414_v30 = vrot.slane %v2409_v22, %v11623_v51  ;;  %v2418_v31 = vrot.slane %v2409_v22, %v11628_v55  ;;  %v2422_v46 = vrot.slane %v2409_v22, %v11630_v56 }
 0x90a   :  { %9866 = vmatpush3.bf16.msra.mxu1 %v12020_v28  ;;  %v7629_v11 = vld [vmem:[#allocation4 + $0x1] ss:$8 sm:$0x7] }
 0x90b   :  { %9867 = vmatprep.subr.bf16.mxu1 %v11260_v6  ;;  %v2575_v53 = vrot.slane %v7629_v11, 1  ;;  %v2585_v21 = vrot.slane %v7629_v11, 2 }
 0x90c   :  { %9845 = vmatpush1.bf16.msra.mxu0 %v12014_v9 }
 0x90d   :  { %9847 = vmatprep.subr.bf16.mxu0 %v12017_v10 }
 0x90e   :  { %9869 = vmatpush3.bf16.msra.mxu1 %v12030_v12 }
 0x90f   :  { %9870 = vmatprep.subr.bf16.mxu1 %v11260_v6 }
 0x910   :  { %9849 = vmatpush1.bf16.msra.mxu0 %v12024_v47 }
 0x911   :  { %9851 = vmatprep.subr.bf16.mxu0 %v12027_v61 }
 0x912   :  { %9872 = vmatpush3.bf16.msra.mxu1 %v12040_v62 }
 0x913   :  { %9873 = vmatprep.subr.bf16.mxu1 %v11260_v6 }
 0x914   :  { %9853 = vmatpush1.bf16.msra.mxu0 %v12034_v35 }
 0x915   :  { %9855 = vmatprep.subr.bf16.mxu0 %v12037_v42 }
 0x916   :  { %9875 = vmatpush3.bf16.msra.mxu1 %v12048_v0 }
 0x917   :  { %9876 = vmatprep.subr.bf16.mxu1 %v11260_v6 }
 0x918   :  { %9857 = vmatpush1.bf16.msra.mxu0 %v12044_v41 }
 0x919   :  { %8717 = vmatprep.subr.mxu0 %v11261_v8 }
 0x91a   :  { %9878 = vmatpush3.bf16.msra.mxu1 %v12053_v29 }
 0x91b   :  { %2491 = vmatmul.mubr.f32.vlgmr.msra.gmra.mrb[18].mxu0 %v11975_v33  ;;  %9879 = vmatprep.subr.bf16.mxu1 %v11260_v6 }
 0x91c   :  { %8719 = vmatprep.mubr.msk.f32.mxu0 %vm11262_vm0, %v11261_v8 }
 0x91e   :  { %9881 = vmatpush3.bf16.msra.mxu1 %v12061_v17 }
 0x91f   :  { %8722 = vmatprep.subr.mxu1 %v11261_v8 }
 0x921   :  { %8715 = vmatmul.mubr.f32.vlgmr.msra.gmra.mrb[18].mxu1 %v11975_v33  ;;  %8718 = vmatpush3.xpose.msra.mxu0 %v12069_v20 }
 0x922   :  { %8724 = vmatprep.mubr.msk.f32.mxu1 %vm11262_vm0, %v11261_v8  ;;  %8723 = vmatpush3.msra.mxu1 %v12069_v20 }
 0x923   :  { %9914 = vmatprep.subr.bf16.mxu1 %v11260_v6 }
 0x9ee   :  { %v2492_v39 = vpop.f32.mrb[18].mxu0 }
 0x9ef   :  { %v2493_v50 = vadd.f32 %v2492_v39, %v2414_v30  ;;  %v2494_v44 = vpop.f32.mrb[19].mxu0 }
 0x9f0   :  { %v2495_v45 = vadd.f32 %v2494_v44, %v2418_v31 }
 0x9f1   :  { %v2567_v54 = vadd.f32 %v7629_v11, %v2493_v50 }
 0x9f2   :  { %v2577_v63 = vadd.f32 %v2575_v53, %v2495_v45  ;;  %v2766_v45 = vld [vmem:[#allocation19 + $0x88] sm:$0xff]  ;;  %v2749_v53 = vld [vmem:[#allocation19] sm:$0xff] }
 0x9f3   :  { %v7588_v58 = vmul.f32 -1.442695, %v2567_v54 }
 0x9f4   :  { %v2563_v18 = vpop.f32.mrb[18].mxu1  ;;  %v7589_v19 = vmul.f32 -1.442695, %v2577_v63  ;;  %v2767_v63 = vld [vmem:[#allocation19 + $0x90] sm:$0xff] }
 0x9f5   :  { %10867 = vpow2.f32 %v7588_v58  ;;  %v8716_v23 = vpop.f32.mrb[19].mxu1  ;;  %v2564_v4 = vadd.f32 %v2563_v18, %v2422_v46  ;;  %v2750_v58 = vld [vmem:[#allocation19 + $0x8] sm:$0xff]  ;;  %v2768_v18 = vld [vmem:[#allocation19 + $0x98] sm:$0xff]  ;;  %v2769_v46 = vld [vmem:[#allocation19 + $0xa0] sm:$0xff] }
 0x9f6   :  { %10869 = vpow2.f32 %v7589_v19  ;;  %v12091_v19 = vpack.c.bf16 %v2750_v58, %v2749_v53  ;;  %v12093_v23 = vpack.c.bf16 %v2768_v18, %v2767_v63  ;;  %v2759_v53 = vld [vmem:[#allocation19 + $0x50] sm:$0xff]  ;;  %v2760_v58 = vld [vmem:[#allocation19 + $0x58] sm:$0xff]  ;;  %v2777_v63 = vld [vmem:[#allocation19 + $0xe0] sm:$0xff] }
 0x9f7   :  { %v2778_v18 = vld [vmem:[#allocation19 + $0xe8] sm:$0xff] }
 0x9ff   :  { %v10868_v32 = vpop.eup %10867 }
 0xa00   :  { %v2571_v37 = vadd.f32 1.0, %v10868_v32  ;;  %v10870_v1 = vpop.eup %10869  ;;  %v2751_v32 = vld [vmem:[#allocation19 + $0x10] sm:$0xff] }
 0xa01   :  { %v2581_v2 = vadd.f32 1.0, %v10870_v1  ;;  %v2770_v1 = vld [vmem:[#allocation19 + $0xa8] sm:$0xff] }
 0xa02   :  { %10871 = vrcp.f32 %v2571_v37  ;;  %v2752_v37 = vld [vmem:[#allocation19 + $0x18] sm:$0xff] }
 0xa03   :  { %10873 = vrcp.f32 %v2581_v2  ;;  %v12097_v2 = vpack.c.bf16 %v2752_v37, %v2751_v32  ;;  %v12121_v32 = vpack.c.bf16 %v2760_v58, %v2759_v53  ;;  %v12124_v37 = vpack.c.bf16 %v2778_v18, %v2777_v63  ;;  %v2855_v53 = vld [vmem:[#allocation5 + $0x10] sm:$0xff]  ;;  %v2856_v63 = vld [vmem:[#allocation5 + $0x18] sm:$0xff]  ;;  %v2857_v18 = vld [vmem:[#allocation5 + $0x20] sm:$0xff] }
 0xa0c   :  { %v10872_v36 = vpop.eup %10871 }
 0xa0d   :  { %v2584_v26 = vmul.f32 %v10872_v36, %v2564_v4  ;;  %v10874_v49 = vpop.eup %10873  ;;  %v12100_v4 = vpack.c.bf16 %v2770_v1, %v2769_v46  ;;  %v2754_v36 = vld [vmem:[#allocation19 + $0x28] sm:$0xff]  ;;  %v2761_v46 = vld [vmem:[#allocation19 + $0x60] sm:$0xff] }
 0xa0e   :  { %v2589_v3 = vsub.f32 1.0, %v10874_v49  ;;  %v2591_v25 = vmul.f32 %v10874_v49, %v11975_v33  ;;  %v2765_v33 = vld [vmem:[#allocation19 + $0x80] sm:$0xff]  ;;  %v2762_v1 = vld [vmem:[#allocation19 + $0x68] sm:$0xff] }
 0xa0f   :  { %v2587_v57 = vadd.f32 %v2585_v21, %v2584_v26  ;;  %v12089_v54 = vpack.c.bf16 %v2766_v45, %v2765_v33  ;;  %v2753_v21 = vld [vmem:[#allocation19 + $0x20] sm:$0xff]  ;;  %v2771_v26 = vld [vmem:[#allocation19 + $0xb0] sm:$0xff] }
 0xa10   :  { %v12103_v49 = vpack.c.bf16 %v2754_v36, %v2753_v21  ;;  %v2779_v21 = vld [vmem:[#allocation19 + $0xf0] sm:$0xff]  ;;  %v2780_v36 = vld [vmem:[#allocation19 + $0xf8] sm:$0xff] }
 0xa11   :  { %10875 = vtanh.f32 %v2587_v57  ;;  %9883 = vmatprep.subr.bf16.mxu0 %v12089_v54  ;;  %v2772_v57 = vld [vmem:[#allocation19 + $0xb8] sm:$0xff] }
 0xa1b   :  { %v10876_v38 = vpop.eup %10875 }
 0xa1c   :  { %v2590_v5 = vmul.f32 %v10876_v38, %v2589_v3  ;;  %v12106_v3 = vpack.c.bf16 %v2772_v57, %v2771_v26  ;;  %v2755_v38 = vld [vmem:[#allocation19 + $0x30] sm:$0xff]  ;;  %v12127_v26 = vpack.c.bf16 %v2762_v1, %v2761_v46  ;;  %v12130_v57 = vpack.c.bf16 %v2780_v36, %v2779_v21  ;;  %v2858_v46 = vld [vmem:[#allocation5 + $0x28] sm:$0xff] }
 0xa1d   :  { %v2859_v1 = vld [vmem:[#allocation5 + $0x30] sm:$0xff]  ;;  %v2860_v21 = vld [vmem:[#allocation5 + $0x38] sm:$0xff] }
 0xa1e   :  { %v12081_v40 = vadd.f32 %v2591_v25, %v2590_v5  ;;  %v2756_v5 = vld [vmem:[#allocation19 + $0x38] sm:$0xff]  ;;  %v2773_v25 = vld [vmem:[#allocation19 + $0xc0] sm:$0xff]  ;;  %v12153_v36 = vpack.c.bf16 %v2860_v21, %v2859_v1 }
 0xa20   :  { %8720 = vmatmul.mubr.f32.vlgmr.msra.gmra.mrb[20].mxu0 %v12081_v40 }
 0xa21   :  { %9885 = vmatpush3.bf16.msra.mxu0 %v12091_v19 }
 0xa22   :  { %9887 = vmatprep.subr.bf16.mxu0 %v12093_v23 }
 0xa25   :  { %9889 = vmatpush3.bf16.msra.mxu0 %v12097_v2 }
 0xa26   :  { %9891 = vmatprep.subr.bf16.mxu0 %v12100_v4 }
 0xa29   :  { %9893 = vmatpush3.bf16.msra.mxu0 %v12103_v49 }
 0xa2a   :  { %9895 = vmatprep.subr.bf16.mxu0 %v12106_v3 }
 0xaf3   :  { %v2659_v43 = vpop.f32.mrb[20].mxu0 }
 0xaf4   :  { %v8721_v22 = vpop.f32.mrb[21].mxu0  ;;  %v2664_v30 = vsel %vm2663_vm8, %v2659_v43, -inf }
 0xaf5   :  { %2665 = vmax.xlane.f32.xlu0 %v2664_v30  ;;  %v12109_v22 = vpack.c.bf16 %v2756_v5, %v2755_v38  ;;  %v2763_v38 = vld [vmem:[#allocation19 + $0x70] sm:$0xff]  ;;  %v2764_v5 = vld [vmem:[#allocation19 + $0x78] sm:$0xff] }
 0xaf7   :  { %9897 = vmatpush3.bf16.msra.mxu0 %v12109_v22 }
 0xb82   :  { %v2666_v31 = vpop.xlane.xlu0 %2665 }
 0xb83   :  { %v2667_v11 = vsub.f32 %v2659_v43, %v2666_v31  ;;  %v2774_v43 = vld [vmem:[#allocation19 + $0xc8] sm:$0xff]  ;;  %v2757_v31 = vld [vmem:[#allocation19 + $0x40] sm:$0xff] }
 0xb84   :  { %v12112_v30 = vpack.c.bf16 %v2774_v43, %v2773_v25  ;;  %v12133_v25 = vpack.c.bf16 %v2764_v5, %v2763_v38 }
 0xb85   :  { %v2668_v39 = vmul.f32 1.442695, %v2667_v11  ;;  %v2758_v11 = vld [vmem:[#allocation19 + $0x48] sm:$0xff] }
 0xb86   :  { %v12115_v33 = vpack.c.bf16 %v2758_v11, %v2757_v31  ;;  %9899 = vmatprep.subr.bf16.mxu0 %v12112_v30 }
 0xb87   :  { %10877 = vpow2.f32 %v2668_v39  ;;  %v2775_v39 = vld [vmem:[#allocation19 + $0xd0] sm:$0xff] }
 0xb88   :  { %9901 = vmatpush3.bf16.msra.mxu0 %v12115_v33 }
 0xb91   :  { %v12085_v50 = vpop.eup %10877 }
 0xb92   :  { %v2670_v44 = vsel %vm2663_vm8, %v12085_v50, 0.0 }
 0xb93   :  { %2671 = vadd.xlane.f32.xlu0 %v2670_v44  ;;  %v2776_v44 = vld [vmem:[#allocation19 + $0xd8] sm:$0xff] }
 0xb94   :  { %v12118_v45 = vpack.c.bf16 %v2776_v44, %v2775_v39  ;;  %v2853_v39 = vld [vmem:[#allocation5] sm:$0xff]  ;;  %v2854_v44 = vld [vmem:[#allocation5 + $0x8] sm:$0xff] }
 0xb95   :  { %v12142_v58 = vpack.c.bf16 %v2854_v44, %v2853_v39  ;;  %v12232_v39 = vand.u32 127, %v298_v48 }
 0xb96   :  { %9903 = vmatprep.subr.bf16.mxu0 %v12118_v45 }
 0xb97   :  { %9905 = vmatpush3.bf16.msra.mxu0 %v12121_v32 }
 0xb98   :  { %9907 = vmatprep.subr.bf16.mxu0 %v12124_v37 }
 0xb9b   :  { %9909 = vmatpush3.bf16.msra.mxu0 %v12127_v26 }
 0xb9c   :  { %9911 = vmatprep.subr.bf16.mxu0 %v12130_v57 }
 0xb9f   :  { %9913 = vmatpush3.bf16.msra.mxu0 %v12133_v25 }
 0xba0   :  { %9939 = vmatprep.subr.bf16.mxu0 %v11982_v60  ;;  %v12145_v60 = vpack.c.bf16 %v2856_v63, %v2855_v53 }
 0xc20   :  { %v2672_v43 = vpop.xlane.xlu0 %2671 }
 0xc21   :  { %10879 = vrcp.f32 %v2672_v43 }
 0xc2b   :  { %v10880_v31 = vpop.eup %10879 }
 0xc2c   :  { %v2674_v11 = vmul.f32 %v10880_v31, %v12085_v50  ;;  %v12149_v50 = vpack.c.bf16 %v2858_v46, %v2857_v18 }
 0xc2e   :  { %8725 = vmatmul.mubr.msk.f32.vlgmr.msra.gmra.mrb[20].mxu1 %vm2675_vm9, %v2674_v11 }
 0xc2f   :  { %8759 = vmatprep.mubr.msk.f32.mxu1 %vm11262_vm0, %v11261_v8  ;;  %9916 = vmatpush3.bf16.msra.mxu1 %v12142_v58 }
 0xc30   :  { %9917 = vmatprep.subr.bf16.mxu1 %v11260_v6 }
 0xc33   :  { %9919 = vmatpush3.bf16.msra.mxu1 %v12145_v60 }
 0xc34   :  { %9920 = vmatprep.subr.bf16.mxu1 %v11260_v6 }
 0xc37   :  { %9922 = vmatpush3.bf16.msra.mxu1 %v12149_v50 }
 0xc38   :  { %9923 = vmatprep.subr.bf16.mxu1 %v11260_v6 }
 0xc3b   :  { %9925 = vmatpush3.bf16.msra.mxu1 %v12153_v36 }
 0xc3c   :  { %9926 = vmatprep.subr.bf16.mxu1 %v11260_v6 }
 0xd01   :  { %v2745_v38 = vpop.f32.mrb[20].mxu1 }
 0xd02   :  { %v8726_v5 = vpop.f32.mrb[21].mxu1  ;;  %2846 = vmatprep.mubr.f32.mxu0 %v2745_v38 }
 0xd03   :  { %2847 = vmatmul.mubr.f32.vlgmr.msra.gmra.mrb[22].mxu0 %v12081_v40 }
 0xd04   :  { %9941 = vmatpush1.bf16.msra.mxu0 %v11984_v14  ;;  %3132 = vmatprep.mubr.f32.mxu0 %v11261_v8  ;;  %v2861_v14 = vld [vmem:[#allocation5 + $0x40] sm:$0xff] }
 0xd05   :  { %9943 = vmatprep.subr.bf16.mxu0 %v11986_v27  ;;  %v2862_v27 = vld [vmem:[#allocation5 + $0x48] sm:$0xff] }
 0xd08   :  { %9945 = vmatpush1.bf16.msra.mxu0 %v11990_v7  ;;  %v12181_v7 = vpack.c.bf16 %v2862_v27, %v2861_v14 }
 0xd09   :  { %9947 = vmatprep.subr.bf16.mxu0 %v11993_v24  ;;  %v2863_v24 = vld [vmem:[#allocation5 + $0x50] sm:$0xff] }
 0xd0a   :  { %9928 = vmatpush3.bf16.msra.mxu1 %v12181_v7 }
 0xd0b   :  { %9929 = vmatprep.subr.bf16.mxu1 %v11260_v6 }
 0xd0c   :  { %9949 = vmatpush1.bf16.msra.mxu0 %v11996_v13  ;;  %v2864_v13 = vld [vmem:[#allocation5 + $0x58] sm:$0xff] }
 0xd0d   :  { %9951 = vmatprep.subr.bf16.mxu0 %v11999_v16  ;;  %v12185_v16 = vpack.c.bf16 %v2864_v13, %v2863_v24 }
 0xd0f   :  { %9931 = vmatpush3.bf16.msra.mxu1 %v12185_v16 }
 0xd10   :  { %9953 = vmatpush1.bf16.msra.mxu0 %v12004_v52  ;;  %v2865_v52 = vld [vmem:[#allocation5 + $0x60] sm:$0xff]  ;;  %9932 = vmatprep.subr.bf16.mxu1 %v11260_v6 }
 0xd11   :  { %9955 = vmatprep.subr.bf16.mxu0 %v12007_v59  ;;  %v2866_v59 = vld [vmem:[#allocation5 + $0x68] sm:$0xff] }
 0xd14   :  { %9957 = vmatpush1.bf16.msra.mxu0 %v12014_v9  ;;  %v12189_v9 = vpack.c.bf16 %v2866_v59, %v2865_v52 }
 0xd15   :  { %9959 = vmatprep.subr.bf16.mxu0 %v12017_v10  ;;  %v2867_v10 = vld [vmem:[#allocation5 + $0x70] sm:$0xff] }
 0xd16   :  { %9934 = vmatpush3.bf16.msra.mxu1 %v12189_v9 }
 0xd17   :  { %9935 = vmatprep.subr.bf16.mxu1 %v11260_v6 }
 0xd18   :  { %9961 = vmatpush1.bf16.msra.mxu0 %v12024_v47  ;;  %v2868_v47 = vld [vmem:[#allocation5 + $0x78] sm:$0xff] }
 0xd19   :  { %9963 = vmatprep.subr.bf16.mxu0 %v12027_v61  ;;  %v12192_v61 = vpack.c.bf16 %v2868_v47, %v2867_v10 }
 0xd1b   :  { %9937 = vmatpush3.bf16.msra.mxu1 %v12192_v61 }
 0xd1c   :  { %9965 = vmatpush1.bf16.msra.mxu0 %v12034_v35  ;;  %9970 = vmatprep.subr.bf16.mxu1 %v11260_v6 }
 0xd1d   :  { %9967 = vmatprep.subr.bf16.mxu0 %v12037_v42  ;;  %v2781_v42 = vld [vmem:[%s13344_s9] sm:$0x1] }
 0xd20   :  { %9969 = vmatpush1.bf16.msra.mxu0 %v12044_v41 }
 0xd21   :  { %8797 = vmatprep.subr.mxu0 %v11261_v8 }
 0xd23   :  { %3133 = vmatmul.mubr.f32.vlgmr.msra.gmra.mrb[24].mxu0 %v12081_v40 }
 0xd24   :  { %8799 = vmatprep.mubr.msk.f32.mxu0 %vm11262_vm0, %v11261_v8 }
 0xd29   :  { %8798 = vmatpush3.xpose.msra.mxu0 %v12069_v20 }
 0xd2a   :  { %9995 = vmatprep.subr.bf16.mxu0 %v12089_v54 }
 0xdd6   :  { %v7836_v35 = vpop.f32.mrb[22].mxu0 }
 0xdd7   :  { %v7837_v41 = vpop.f32.mrb[23].mxu0 }
 0xdd8   :  { %v7838_v54 = vadd.f32 %v7837_v41, %v7836_v35  ;;  %v3051_v41 = vld [vmem:[%s13342_s7] sm:$0x7] }
 0xdda   :  { %v2849_v43 = vadd.f32 %v7838_v54, %v2781_v42  ;;  %v3056_v54 = vrot.slane %v3051_v41, %v11623_v51 }
 0xddc   :  { %10881 = vtanh.f32 %v2849_v43  ;;  %v3060_v43 = vrot.slane %v3051_v41, %v11628_v55 }
 0xde6   :  { %v10882_v31 = vpop.eup %10881 }
 0xde7   :  { %8760 = vmatmul.mubr.f32.vlgmr.msra.gmra.mrb[22].mxu1 %v10882_v31 }
 0xde8   :  { %9972 = vmatpush3.bf16.msra.mxu1 %v12001_v34  ;;  %8794 = vmatprep.mubr.msk.f32.mxu1 %vm11262_vm0, %v11261_v8 }
 0xde9   :  { %9973 = vmatprep.subr.bf16.mxu1 %v11260_v6 }
 0xdec   :  { %9975 = vmatpush3.bf16.msra.mxu1 %v12010_v15  ;;  %v2869_v15 = vld [vmem:[#allocation6] sm:$0x1] }
 0xded   :  { %9976 = vmatprep.subr.bf16.mxu1 %v11260_v6 }
 0xdf0   :  { %9978 = vmatpush3.bf16.msra.mxu1 %v12020_v28 }
 0xdf1   :  { %9979 = vmatprep.subr.bf16.mxu1 %v11260_v6 }
 0xdf4   :  { %9981 = vmatpush3.bf16.msra.mxu1 %v12030_v12 }
 0xdf5   :  { %9982 = vmatprep.subr.bf16.mxu1 %v11260_v6 }
 0xdf6   :  { %v12210_v11 = vpop.f32.mrb[24].mxu0 }
 0xdf7   :  { %v12212_v34 = vpop.f32.mrb[25].mxu0  ;;  %v3135_v31 = vadd.f32 %v12210_v11, %v3056_v54  ;;  %v3658_v54 = vld [vmem:[#allocation17 + $0x78] sm:$0xff] }
 0xdf8   :  { %9984 = vmatpush3.bf16.msra.mxu1 %v12040_v62 }
 0xdf9   :  { %9985 = vmatprep.subr.bf16.mxu1 %v11260_v6 }
 0xdfc   :  { %9987 = vmatpush3.bf16.msra.mxu1 %v12048_v0 }
 0xdfd   :  { %9988 = vmatprep.subr.bf16.mxu1 %v11260_v6 }
 0xe00   :  { %9990 = vmatpush3.bf16.msra.mxu1 %v12053_v29 }
 0xe01   :  { %9991 = vmatprep.subr.bf16.mxu1 %v11260_v6 }
 0xe04   :  { %9993 = vmatpush3.bf16.msra.mxu1 %v12061_v17 }
 0xe05   :  { %8802 = vmatprep.subr.mxu1 %v11261_v8 }
 0xe07   :  { %8795 = vmatmul.mubr.f32.vlgmr.msra.gmra.mrb[24].mxu1 %v12081_v40 }
 0xe08   :  { %8803 = vmatpush3.msra.mxu1 %v12069_v20  ;;  %8804 = vmatprep.mubr.msk.f32.mxu1 %vm11262_vm0, %v11261_v8 }
 0xe09   :  { %10026 = vmatprep.subr.bf16.mxu1 %v11260_v6 }
 0xeba   :  { %v2936_v28 = vpop.f32.mrb[22].mxu1 }
 0xebb   :  { %v12227_v12 = vadd.f32 %v2936_v28, %v2869_v15  ;;  %v8761_v62 = vpop.f32.mrb[23].mxu1 }
 0xebd   :  { %v2940_v0 = vsel %vm234_vm1, %v12227_v12, -inf }
 0xebe   :  { %2941 = vmax.xlane.f32.xlu1 %v2940_v0  ;;  %v3137_v0 = vadd.f32 %v12212_v34, %v3060_v43  ;;  %v3662_v43 = vld [vmem:[#allocation17 + $0x98] sm:$0xff] }
 0xeda   :  { %v3205_v29 = vpop.f32.mrb[24].mxu1 }
 0xedb   :  { %v8796_v17 = vpop.f32.mrb[25].mxu1 }
 0xf4b   :  { %v12234_v44 = vpop.xlane.xlu1 %2941 }
 0xf4c   :  { %vm2955_vm10 = vcmp.eq.f32.partialorder %v12227_v12, %v12234_v44 }
 0xf4d   :  { %v2956_v53 = vsel %vm2955_vm10, %v12232_v39, 128 }
 0xf4e   :  { %v2957_v63 = vsel %vm234_vm1, %v2956_v53, 2147483647 }
 0xf4f   :  { %v2959_v18 = vshra.s32 %v2957_v63, 16  ;;  %v2958_v1 = vand.u32 65535, %v2957_v63 }
 0xf51   :  { %v2961_v46 = vcvt.s32.f32 %v2959_v18  ;;  %v2960_v38 = vcvt.s32.f32 %v2958_v1 }
 0xf53   :  { %2962 = vmin.xlane.f32.xlu1 %v2961_v46 }
 0xfe0   :  { %v2963_v21 = vpop.xlane.xlu1 %2962 }
 0xfe1   :  { %vm2964_vm11 = vcmp.eq.f32.partialorder %v2961_v46, %v2963_v21  ;;  %v2969_v48 = vcvt.f32.s32 %v2963_v21  ;;  %v3064_v21 = vrot.slane %v3051_v41, %v11630_v56  ;;  %v3655_v41 = vld [vmem:[#allocation17 + $0x60] sm:$0xff] }
 0xfe2   :  { %v2965_v5 = vsel %vm2964_vm11, %v2960_v38, inf }
 0xfe3   :  { %2966 = vmin.xlane.f32.xlu0 %v2965_v5  ;;  %v2970_v27 = vshll.u32 %v2969_v48, 16  ;;  %v3206_v5 = vadd.f32 %v3205_v29, %v3064_v21  ;;  %v3656_v29 = vld [vmem:[#allocation17 + $0x68] sm:$0xff]  ;;  %v3674_v21 = vld [vmem:[#allocation17 + $0xf8] sm:$0xff] }
0x1070   :  { %v2967_v14 = vpop.xlane.xlu0 %2966 }
0x1071   :  { %v2968_v24 = vcvt.f32.s32 %v2967_v14 }
0x1073   :  { %v2971_v13 = vadd.s32 %v2970_v27, %v2968_v24 }
0x1075   :  { %v2972_v52 = vrot.slane %v2971_v13, 4 }
0x1077   :  { %vm2973_vm12 = vcmp.lt.s32.totalorder %v2971_v13, %v2972_v52 }
0x1078   :  { %v2974_v59 = vsel %vm2973_vm12, %v2971_v13, %v2972_v52 }
0x1079   :  { %v2975_v10 = vrot.slane %v2974_v59, 2 }
0x107b   :  { %vm2976_vm13 = vcmp.lt.s32.totalorder %v2974_v59, %v2975_v10 }
0x107c   :  { %v2977_v47 = vsel %vm2976_vm13, %v2974_v59, %v2975_v10 }
0x107d   :  { %v2978_v35 = vrot.slane %v2977_v47, 1 }
0x107f   :  { %vm2979_vm14 = vcmp.lt.s32.totalorder %v2977_v47, %v2978_v35 }
0x1080   :  { %v2980_v42 = vsel %vm2979_vm14, %v2977_v47, %v2978_v35  ;;  %v3659_v47 = vld [vmem:[#allocation17 + $0x80] sm:$0xff] }
0x1081   :  { %10722 = vpush %v2980_v42  ;;  %v12302_v42 = vpack.c.bf16 %v3659_v47, %v3656_v29  ;;  %v3663_v47 = vld [vmem:[#allocation17 + $0xa0] sm:$0xff] }
0x1082   :  { %10724 = vpush %v12234_v44 }
0x10b2   :  { %s10723_s15 = spop %10722 }
0x10b3   :  { %s10725_s12 = spop %10724 }
0x10b4   :  { %p2983_p3 = scmp.gt.f32.partialorder %s10725_s12, -1e+30 }
0x10b6   :  { %s13351_s15 = smov (!%p2983_p3, %s10723_s15), 0 }
0x10b7   :  { %2988 = sst [smem:[#allocation20]] %s13351_s15  ;;  %s2994_s19 = sshra.s32 %s13351_s15, 3 }
0x10b8   :  { %s7592_s20 = smul.u32 24, %s2994_s19  ;;  %s2997_s21 = sand.u32 7, %s13351_s15 }
0x10ba   :  { %s3000_s4 = sadd.s32 %s7592_s20, %s2997_s21 }
0x10bb   :  { %s3001_s2 = scalar_lea.vmem [#allocation4], %s3000_s4 }
0x10bc   :  { %v3002_v15 = vld [vmem:[%s3001_s2] ss:$8 sm:$0x7] }
0x10bd   :  { %v3209_v28 = vadd.f32 %v3135_v31, %v3002_v15  ;;  %v3217_v62 = vrot.slane %v3002_v15, 1  ;;  %v3227_v14 = vrot.slane %v3002_v15, 2  ;;  %v3665_v31 = vld [vmem:[#allocation17 + $0xb0] sm:$0xff]  ;;  %v12305_v15 = vpack.c.bf16 %v3658_v54, %v3655_v41  ;;  %v3666_v41 = vld [vmem:[#allocation17 + $0xb8] sm:$0xff] }
0x10be   :  { %v12360_v54 = vpack.c.bf16 %v3666_v41, %v3663_v47 }
0x10bf   :  { %v7593_v17 = vmul.f32 -1.442695, %v3209_v28  ;;  %v3219_v53 = vadd.f32 %v3217_v62, %v3137_v0  ;;  %v12308_v28 = vpack.c.bf16 %v3665_v31, %v3662_v43  ;;  %v3661_v62 = vld [vmem:[#allocation17 + $0x90] sm:$0xff]  ;;  %v3664_v0 = vld [vmem:[#allocation17 + $0xa8] sm:$0xff] }
0x10c0   :  { %v3669_v43 = vld [vmem:[#allocation17 + $0xd0] sm:$0xff]  ;;  %v3672_v31 = vld [vmem:[#allocation17 + $0xe8] sm:$0xff] }
0x10c1   :  { %10883 = vpow2.f32 %v7593_v17  ;;  %v7594_v63 = vmul.f32 -1.442695, %v3219_v53  ;;  %v3668_v17 = vld [vmem:[#allocation17 + $0xc8] sm:$0xff]  ;;  %v3671_v53 = vld [vmem:[#allocation17 + $0xe0] sm:$0xff] }
0x10c3   :  { %10885 = vpow2.f32 %v7594_v63  ;;  %v12311_v63 = vpack.c.bf16 %v3664_v0, %v3661_v62  ;;  %v12364_v62 = vpack.c.bf16 %v3672_v31, %v3669_v43  ;;  %v3675_v0 = vld [vmem:[#allocation17 + $0x100] sm:$0xff] }
0x10cb   :  { %v10884_v18 = vpop.eup %10883 }
0x10cc   :  { %v3213_v46 = vadd.f32 1.0, %v10884_v18  ;;  %v12314_v18 = vpack.c.bf16 %v3671_v53, %v3668_v17  ;;  %v3678_v17 = vld [vmem:[#allocation17 + $0x118] sm:$0xff] }
0x10cd   :  { %v10886_v1 = vpop.eup %10885 }
0x10ce   :  { %10887 = vrcp.f32 %v3213_v46  ;;  %v3223_v38 = vadd.f32 1.0, %v10886_v1  ;;  %v3667_v46 = vld [vmem:[#allocation17 + $0xc0] sm:$0xff]  ;;  %v3670_v1 = vld [vmem:[#allocation17 + $0xd8] sm:$0xff] }
0x10d0   :  { %10889 = vrcp.f32 %v3223_v38  ;;  %v3677_v38 = vld [vmem:[#allocation17 + $0x110] sm:$0xff] }
0x10d8   :  { %v10888_v11 = vpop.eup %10887 }
0x10d9   :  { %v3226_v48 = vmul.f32 %v10888_v11, %v3206_v5  ;;  %v12317_v5 = vpack.c.bf16 %v3670_v1, %v3667_v46  ;;  %v12320_v11 = vpack.c.bf16 %v3677_v38, %v3674_v21  ;;  %v12372_v1 = vpack.c.bf16 %v3678_v17, %v3675_v0  ;;  %v3681_v21 = vld [vmem:[#allocation17 + $0x130] sm:$0xff]  ;;  %v3684_v38 = vld [vmem:[#allocation17 + $0x148] sm:$0xff] }
0x10da   :  { %v10890_v34 = vpop.eup %10889 }
0x10db   :  { %v3229_v27 = vadd.f32 %v3227_v14, %v3226_v48  ;;  %v3231_v24 = vsub.f32 1.0, %v10890_v34  ;;  %v3233_v59 = vmul.f32 %v10890_v34, %v12081_v40  ;;  %v3673_v48 = vld [vmem:[#allocation17 + $0xf0] sm:$0xff]  ;;  %v3676_v14 = vld [vmem:[#allocation17 + $0x108] sm:$0xff]  ;;  %v3683_v34 = vld [vmem:[#allocation17 + $0x140] sm:$0xff] }
0x10dd   :  { %10891 = vtanh.f32 %v3229_v27  ;;  %v3680_v27 = vld [vmem:[#allocation17 + $0x128] sm:$0xff] }
0x10e7   :  { %v10892_v13 = vpop.eup %10891 }
0x10e8   :  { %v3232_v52 = vmul.f32 %v10892_v13, %v3231_v24  ;;  %v12323_v24 = vpack.c.bf16 %v3676_v14, %v3673_v48  ;;  %v12326_v13 = vpack.c.bf16 %v3683_v34, %v3680_v27  ;;  %v12376_v48 = vpack.c.bf16 %v3684_v38, %v3681_v21  ;;  %v3687_v14 = vld [vmem:[#allocation17 + $0x160] sm:$0xff]  ;;  %v3690_v27 = vld [vmem:[#allocation17 + $0x178] sm:$0xff] }
0x10e9   :  { %v12380_v34 = vpack.c.bf16 %v3690_v27, %v3687_v14 }
0x10ea   :  { %v12250_v10 = vadd.f32 %v3233_v59, %v3232_v52  ;;  %v3679_v52 = vld [vmem:[#allocation17 + $0x120] sm:$0xff]  ;;  %v3682_v59 = vld [vmem:[#allocation17 + $0x138] sm:$0xff] }
0x10ec   :  { %8800 = vmatmul.mubr.f32.vlgmr.msra.gmra.mrb[26].mxu0 %v12250_v10 }
0x10ed   :  { %9997 = vmatpush3.bf16.msra.mxu0 %v12091_v19 }
0x10ee   :  { %9999 = vmatprep.subr.bf16.mxu0 %v12093_v23 }
0x10f1   :  { %10001 = vmatpush3.bf16.msra.mxu0 %v12097_v2 }
0x10f2   :  { %10003 = vmatprep.subr.bf16.mxu0 %v12100_v4 }
0x10f5   :  { %10005 = vmatpush3.bf16.msra.mxu0 %v12103_v49 }
0x10f6   :  { %10007 = vmatprep.subr.bf16.mxu0 %v12106_v3 }
0x10f9   :  { %10009 = vmatpush3.bf16.msra.mxu0 %v12109_v22 }
0x10fa   :  { %10011 = vmatprep.subr.bf16.mxu0 %v12112_v30 }
0x10fd   :  { %10013 = vmatpush3.bf16.msra.mxu0 %v12115_v33 }
0x10fe   :  { %10015 = vmatprep.subr.bf16.mxu0 %v12118_v45 }
0x1101   :  { %10017 = vmatpush3.bf16.msra.mxu0 %v12121_v32  ;;  %v3644_v32 = vld [vmem:[#allocation17 + $0x8] sm:$0xff] }
0x1102   :  { %10019 = vmatprep.subr.bf16.mxu0 %v12124_v37  ;;  %v3647_v37 = vld [vmem:[#allocation17 + $0x20] sm:$0xff] }
0x1105   :  { %10021 = vmatpush3.bf16.msra.mxu0 %v12127_v26  ;;  %v12289_v26 = vpack.c.bf16 %v3647_v37, %v3644_v32  ;;  %v3645_v37 = vld [vmem:[#allocation17 + $0x10] sm:$0xff] }
0x1106   :  { %10023 = vmatprep.subr.bf16.mxu0 %v12130_v57  ;;  %v3643_v57 = vld [vmem:[#allocation17] sm:$0xff] }
0x1109   :  { %10025 = vmatpush3.bf16.msra.mxu0 %v12133_v25  ;;  %v3646_v25 = vld [vmem:[#allocation17 + $0x18] sm:$0xff] }
0x110a   :  { %10051 = vmatprep.subr.bf16.mxu0 %v12289_v26 }
0x11bf   :  { %v3301_v40 = vpop.f32.mrb[26].mxu0 }
0x11c0   :  { %v8801_v19 = vpop.f32.mrb[27].mxu0  ;;  %v3305_v23 = vsel %vm2663_vm8, %v3301_v40, -inf }
0x11c1   :  { %3306 = vmax.xlane.f32.xlu1 %v3305_v23  ;;  %v3689_v19 = vld [vmem:[#allocation17 + $0x170] sm:$0xff]  ;;  %v12329_v23 = vpack.c.bf16 %v3682_v59, %v3679_v52  ;;  %v3509_v52 = vld [vmem:[#allocation6] sm:$0x1] }
0x124e   :  { %v3307_v2 = vpop.xlane.xlu1 %3306 }
0x124f   :  { %v3308_v4 = vsub.f32 %v3301_v40, %v3307_v2  ;;  %v3686_v40 = vld [vmem:[#allocation17 + $0x158] sm:$0xff] }
0x1250   :  { %v12332_v2 = vpack.c.bf16 %v3689_v19, %v3686_v40 }
0x1251   :  { %v3309_v49 = vmul.f32 1.442695, %v3308_v4  ;;  %v3685_v4 = vld [vmem:[#allocation17 + $0x150] sm:$0xff] }
0x1253   :  { %10893 = vpow2.f32 %v3309_v49  ;;  %v3688_v49 = vld [vmem:[#allocation17 + $0x168] sm:$0xff] }
0x125d   :  { %v10894_v3 = vpop.eup %10893 }
0x125e   :  { %v3311_v22 = vsel %vm2663_vm8, %v10894_v3, 0.0 }
0x125f   :  { %3312 = vadd.xlane.f32.xlu0 %v3311_v22 }
0x12ec   :  { %v3313_v30 = vpop.xlane.xlu0 %3312 }
0x12ed   :  { %10895 = vrcp.f32 %v3313_v30  ;;  %v3421_v30 = vld [vmem:[%s13344_s9] sm:$0x1] }
0x12f7   :  { %v10896_v33 = vpop.eup %10895 }
0x12f8   :  { %v3315_v45 = vmul.f32 %v10896_v33, %v10894_v3  ;;  %v12335_v3 = vpack.c.bf16 %v3688_v49, %v3685_v4 }
0x12fa   :  { %8805 = vmatmul.mubr.msk.f32.vlgmr.msra.gmra.mrb[26].mxu1 %vm2675_vm9, %v3315_v45 }
0x12fb   :  { %10028 = vmatpush3.bf16.msra.mxu1 %v12142_v58  ;;  %8839 = vmatprep.mubr.msk.f32.mxu1 %vm11262_vm0, %v11261_v8  ;;  %v3650_v58 = vld [vmem:[#allocation17 + $0x38] sm:$0xff] }
0x12fc   :  { %10029 = vmatprep.subr.bf16.mxu1 %v11260_v6 }
0x12ff   :  { %10031 = vmatpush3.bf16.msra.mxu1 %v12145_v60  ;;  %v3653_v60 = vld [vmem:[#allocation17 + $0x50] sm:$0xff] }
0x1300   :  { %10032 = vmatprep.subr.bf16.mxu1 %v11260_v6 }
0x1303   :  { %10034 = vmatpush3.bf16.msra.mxu1 %v12149_v50  ;;  %v12292_v50 = vpack.c.bf16 %v3646_v25, %v3643_v57  ;;  %v3648_v57 = vld [vmem:[#allocation17 + $0x28] sm:$0xff] }
0x1304   :  { %10035 = vmatprep.subr.bf16.mxu1 %v11260_v6  ;;  %v12347_v25 = vpack.c.bf16 %v3648_v57, %v3645_v37 }
0x1307   :  { %10037 = vmatpush3.bf16.msra.mxu1 %v12153_v36 }
0x1308   :  { %10038 = vmatprep.subr.bf16.mxu1 %v11260_v6 }
0x130b   :  { %10040 = vmatpush3.bf16.msra.mxu1 %v12181_v7  ;;  %v12294_v7 = vpack.c.bf16 %v3653_v60, %v3650_v58  ;;  %v3651_v58 = vld [vmem:[#allocation17 + $0x40] sm:$0xff]  ;;  %v3654_v60 = vld [vmem:[#allocation17 + $0x58] sm:$0xff] }
0x130c   :  { %10041 = vmatprep.subr.bf16.mxu1 %v11260_v6 }
0x130f   :  { %10043 = vmatpush3.bf16.msra.mxu1 %v12185_v16  ;;  %v3649_v16 = vld [vmem:[#allocation17 + $0x30] sm:$0xff] }
0x1310   :  { %10044 = vmatprep.subr.bf16.mxu1 %v11260_v6 }
0x1313   :  { %10046 = vmatpush3.bf16.msra.mxu1 %v12189_v9  ;;  %v3652_v9 = vld [vmem:[#allocation17 + $0x48] sm:$0xff] }
0x1314   :  { %10047 = vmatprep.subr.bf16.mxu1 %v11260_v6  ;;  %v12298_v35 = vpack.c.bf16 %v3652_v9, %v3649_v16  ;;  %v12350_v16 = vpack.c.bf16 %v3654_v60, %v3651_v58  ;;  %v3657_v9 = vld [vmem:[#allocation17 + $0x70] sm:$0xff] }
0x1317   :  { %10049 = vmatpush3.bf16.msra.mxu1 %v12192_v61 }
0x1318   :  { %10082 = vmatprep.subr.bf16.mxu1 %v11260_v6 }
0x13cd   :  { %v3385_v36 = vpop.f32.mrb[26].mxu1 }
0x13ce   :  { %v8806_v61 = vpop.f32.mrb[27].mxu1  ;;  %3486 = vmatprep.mubr.f32.mxu0 %v3385_v36 }
0x13cf   :  { %3487 = vmatmul.mubr.f32.vlgmr.msra.gmra.mrb[28].mxu0 %v12250_v10  ;;  %v3660_v61 = vld [vmem:[#allocation17 + $0x88] sm:$0xff] }
0x13d0   :  { %10053 = vmatpush1.bf16.msra.mxu0 %v12292_v50  ;;  %3772 = vmatprep.mubr.f32.mxu0 %v11261_v8  ;;  %v12356_v29 = vpack.c.bf16 %v3660_v61, %v3657_v9 }
0x13d1   :  { %10055 = vmatprep.subr.bf16.mxu0 %v12294_v7 }
0x13d4   :  { %10057 = vmatpush1.bf16.msra.mxu0 %v12298_v35 }
0x13d5   :  { %10059 = vmatprep.subr.bf16.mxu0 %v12302_v42 }
0x13d8   :  { %10061 = vmatpush1.bf16.msra.mxu0 %v12305_v15 }
0x13d9   :  { %10063 = vmatprep.subr.bf16.mxu0 %v12308_v28 }
0x13dc   :  { %10065 = vmatpush1.bf16.msra.mxu0 %v12311_v63 }
0x13dd   :  { %10067 = vmatprep.subr.bf16.mxu0 %v12314_v18 }
0x13e0   :  { %10069 = vmatpush1.bf16.msra.mxu0 %v12317_v5 }
0x13e1   :  { %10071 = vmatprep.subr.bf16.mxu0 %v12320_v11 }
0x13e4   :  { %10073 = vmatpush1.bf16.msra.mxu0 %v12323_v24 }
0x13e5   :  { %10075 = vmatprep.subr.bf16.mxu0 %v12326_v13 }
0x13e8   :  { %10077 = vmatpush1.bf16.msra.mxu0 %v12329_v23 }
0x13e9   :  { %10079 = vmatprep.subr.bf16.mxu0 %v12332_v2 }
0x13ec   :  { %10081 = vmatpush1.bf16.msra.mxu0 %v12335_v3 }
0x13ed   :  { %8877 = vmatprep.subr.mxu0 %v11261_v8 }
0x13ef   :  { %3773 = vmatmul.mubr.f32.vlgmr.msra.gmra.mrb[30].mxu0 %v12250_v10 }
0x13f0   :  { %8879 = vmatprep.mubr.msk.f32.mxu0 %vm11262_vm0, %v11261_v8 }
0x13f5   :  { %8878 = vmatpush3.xpose.msra.mxu0 %v12069_v20 }
0x14a2   :  { %v7909_v22 = vpop.f32.mrb[28].mxu0 }
0x14a3   :  { %v7910_v33 = vpop.f32.mrb[29].mxu0 }
0x14a4   :  { %v7911_v45 = vadd.f32 %v7910_v33, %v7909_v22 }
0x14a6   :  { %v3489_v32 = vadd.f32 %v7911_v45, %v3421_v30  ;;  %v2943_v30 = vmax.f32 %v12234_v44, -1e+30 }
0x14a8   :  { %10897 = vtanh.f32 %v3489_v32  ;;  %v2944_v44 = vsub.f32 -1e+30, %v2943_v30 }
0x14b2   :  { %v10898_v36 = vpop.eup %10897 }
0x14b3   :  { %8840 = vmatmul.mubr.f32.vlgmr.msra.gmra.mrb[28].mxu1 %v10898_v36 }
0x14b4   :  { %10084 = vmatpush3.bf16.msra.mxu1 %v12347_v25  ;;  %8874 = vmatprep.mubr.msk.f32.mxu1 %vm11262_vm0, %v11261_v8 }
0x14b5   :  { %10085 = vmatprep.subr.bf16.mxu1 %v11260_v6 }
0x14b8   :  { %10087 = vmatpush3.bf16.msra.mxu1 %v12350_v16 }
0x14b9   :  { %10088 = vmatprep.subr.bf16.mxu1 %v11260_v6 }
0x14bc   :  { %10090 = vmatpush3.bf16.msra.mxu1 %v12356_v29 }
0x14bd   :  { %10091 = vmatprep.subr.bf16.mxu1 %v11260_v6 }
0x14c0   :  { %10093 = vmatpush3.bf16.msra.mxu1 %v12360_v54 }
0x14c1   :  { %10094 = vmatprep.subr.bf16.mxu1 %v11260_v6 }
0x14c2   :  { %v12367_v53 = vpop.f32.mrb[30].mxu0 }
0x14c3   :  { %v12369_v46 = vpop.f32.mrb[31].mxu0 }
0x14c4   :  { %10096 = vmatpush3.bf16.msra.mxu1 %v12364_v62 }
0x14c5   :  { %10097 = vmatprep.subr.bf16.mxu1 %v11260_v6 }
0x14c8   :  { %10099 = vmatpush3.bf16.msra.mxu1 %v12372_v1 }
0x14c9   :  { %10100 = vmatprep.subr.bf16.mxu1 %v11260_v6 }
0x14cc   :  { %10102 = vmatpush3.bf16.msra.mxu1 %v12376_v48 }
0x14cd   :  { %10103 = vmatprep.subr.bf16.mxu1 %v11260_v6 }
0x14d0   :  { %10105 = vmatpush3.bf16.msra.mxu1 %v12380_v34 }
0x14d1   :  { %8882 = vmatprep.subr.mxu1 %v11261_v8 }
0x14d3   :  { %8875 = vmatmul.mubr.f32.vlgmr.msra.gmra.mrb[30].mxu1 %v12250_v10 }
0x14d4   :  { %8883 = vmatpush3.msra.mxu1 %v12069_v20  ;;  %8884 = vmatprep.mubr.msk.f32.mxu1 %vm11262_vm0, %v11261_v8  ;;  %v2948_v20 = vsub.f32 %v12227_v12, %v2943_v30  ;;  %v2945_v12 = vmul.f32 1.442695, %v2944_v44 }
0x14d5   :  { %10138 = vmatprep.subr.bf16.mxu1 %v11260_v6 }
0x14d6   :  { %v2949_v33 = vmul.f32 1.442695, %v2948_v20 }
0x14d8   :  { %10899 = vpow2.f32 %v2949_v33 }
0x14d9   :  { %10901 = vpow2.f32 %v2945_v12 }
0x14e2   :  { %v10900_v60 = vpop.eup %10899 }
0x14e3   :  { %v2951_v36 = vsel %vm234_vm1, %v10900_v60, 0.0  ;;  %v10902_v61 = vpop.eup %10901 }
0x14e4   :  { %v2947_v31 = vmul.f32 0.0, %v10902_v61 }
0x1586   :  { %v3576_v59 = vpop.f32.mrb[28].mxu1 }
0x1587   :  { %v12390_v40 = vadd.f32 %v3576_v59, %v3509_v52  ;;  %v8841_v19 = vpop.f32.mrb[29].mxu1 }
0x1589   :  { %v3580_v4 = vsel %vm234_vm1, %v12390_v40, -inf }
0x158a   :  { %3581 = vmax.xlane.f32.xlu1 %v3580_v4 }
0x15a6   :  { %v12394_v49 = vpop.f32.mrb[30].mxu1 }
0x15a7   :  { %v8876_v22 = vpop.f32.mrb[31].mxu1 }
0x1617   :  { %v12398_v45 = vpop.xlane.xlu1 %3581 }
0x1618   :  { %vm3595_vm15 = vcmp.eq.f32.partialorder %v12390_v40, %v12398_v45 }
0x1619   :  { %v3596_v32 = vsel %vm3595_vm15, %v12232_v39, 128 }
0x161a   :  { %v3597_v37 = vsel %vm234_vm1, %v3596_v32, 2147483647  ;;  %v3691_v32 = vld [vmem:[%s13342_s7] sm:$0x7] }
0x161b   :  { %v3599_v57 = vshra.s32 %v3597_v37, 16  ;;  %v3598_v9 = vand.u32 65535, %v3597_v37  ;;  %v3696_v37 = vrot.slane %v3691_v32, %v11623_v51 }
0x161d   :  { %v3601_v58 = vcvt.s32.f32 %v3599_v57  ;;  %v3600_v41 = vcvt.s32.f32 %v3598_v9  ;;  %v3700_v57 = vrot.slane %v3691_v32, %v11628_v55 }
0x161f   :  { %3602 = vmin.xlane.f32.xlu0 %v3601_v58  ;;  %v3777_v12 = vadd.f32 %v12369_v46, %v3700_v57 }
0x1623   :  { %2952 = vadd.xlane.f32.xlu0 %v2951_v36 }
0x16ac   :  { %v3603_v47 = vpop.xlane.xlu0 %3602 }
0x16ad   :  { %vm3604_vm2 = vcmp.eq.f32.partialorder %v3601_v58, %v3603_v47  ;;  %v3609_v38 = vcvt.f32.s32 %v3603_v47  ;;  %v3775_v58 = vadd.f32 %v12367_v53, %v3696_v37 }
0x16ae   :  { %v3605_v43 = vsel %vm3604_vm2, %v3600_v41, inf }
0x16af   :  { %3606 = vmin.xlane.f32.xlu1 %v3605_v43  ;;  %v3610_v27 = vshll.u32 %v3609_v38, 16 }
0x16b0   :  { %v2953_v0 = vpop.xlane.xlu0 %2952 }
0x16b1   :  { %v2954_v17 = vadd.f32 %v2953_v0, %v2947_v31  ;;  %v3704_v0 = vrot.slane %v3691_v32, %v11630_v56 }
0x16b3   :  { %10903 = vrcp.f32 %v2954_v17  ;;  %v3846_v53 = vadd.f32 %v12394_v49, %v3704_v0  ;;  %v4049_v0 = vld [vmem:[#allocation19 + $0xa0] sm:$0xff] }
0x16bd   :  { %v10904_v21 = vpop.eup %10903 }
0x16be   :  { %10726 = vpush %v10904_v21 }
0x16ef   :  { %s10727_s23 = spop %10726 }
0x16f0   :  { %2990 = sst [smem:[#allocation21]] %s10727_s23 }
0x173c   :  { %v3607_v14 = vpop.xlane.xlu1 %3606 }
0x173d   :  { %v3608_v52 = vcvt.f32.s32 %v3607_v14 }
0x173f   :  { %v3611_v59 = vadd.s32 %v3610_v27, %v3608_v52 }
0x1741   :  { %v3612_v19 = vrot.slane %v3611_v59, 4 }
0x1743   :  { %vm3613_vm3 = vcmp.lt.s32.totalorder %v3611_v59, %v3612_v19 }
0x1744   :  { %v3614_v4 = vsel %vm3613_vm3, %v3611_v59, %v3612_v19 }
0x1745   :  { %v3615_v22 = vrot.slane %v3614_v4, 2 }
0x1747   :  { %vm3616_vm4 = vcmp.lt.s32.totalorder %v3614_v4, %v3615_v22 }
0x1748   :  { %v3617_v30 = vsel %vm3616_vm4, %v3614_v4, %v3615_v22 }
0x1749   :  { %v3618_v20 = vrot.slane %v3617_v30, 1 }
0x174b   :  { %vm3619_vm5 = vcmp.lt.s32.totalorder %v3617_v30, %v3618_v20 }
0x174c   :  { %v3620_v33 = vsel %vm3619_vm5, %v3617_v30, %v3618_v20 }
0x174d   :  { %10728 = vpush %v3620_v33 }
0x174e   :  { %10730 = vpush %v12398_v45 }
0x177e   :  { %s10729_s24 = spop %10728 }
0x177f   :  { %s10731_s10 = spop %10730 }
0x1780   :  { %p3623_p4 = scmp.gt.f32.partialorder %s10731_s10, -1e+30 }
0x1782   :  { %s13353_s24 = smov (!%p3623_p4, %s10729_s24), 0 }
0x1783   :  { %3628 = sst [smem:[#allocation20 + $0x1]] %s13353_s24  ;;  %s3634_s22 = sshra.s32 %s13353_s24, 3 }
0x1784   :  { %s7597_s25 = smul.u32 24, %s3634_s22  ;;  %s3637_s26 = sand.u32 7, %s13353_s24 }
0x1786   :  { %s3640_s1 = sadd.s32 %s7597_s25, %s3637_s26 }
0x1787   :  { %s3641_s8 = scalar_lea.vmem [#allocation4], %s3640_s1 }
0x1788   :  { %v3642_v60 = vld [vmem:[%s3641_s8] ss:$8 sm:$0x7] }
0x1789   :  { %v3849_v36 = vadd.f32 %v3775_v58, %v3642_v60  ;;  %v3857_v44 = vrot.slane %v3642_v60, 1  ;;  %v3867_v14 = vrot.slane %v3642_v60, 2  ;;  %v4046_v60 = vld [vmem:[#allocation19 + $0x88] sm:$0xff] }
0x178b   :  { %v7598_v9 = vmul.f32 -1.442695, %v3849_v36  ;;  %v3859_v61 = vadd.f32 %v3857_v44, %v3777_v12  ;;  %v4029_v36 = vld [vmem:[#allocation19] sm:$0xff]  ;;  %v4030_v12 = vld [vmem:[#allocation19 + $0x8] sm:$0xff] }
0x178d   :  { %10905 = vpow2.f32 %v7598_v9  ;;  %v7599_v47 = vmul.f32 -1.442695, %v3859_v61  ;;  %v4047_v9 = vld [vmem:[#allocation19 + $0x90] sm:$0xff]  ;;  %v4048_v61 = vld [vmem:[#allocation19 + $0x98] sm:$0xff] }
0x178f   :  { %10907 = vpow2.f32 %v7599_v47  ;;  %v12426_v47 = vpack.c.bf16 %v4030_v12, %v4029_v36  ;;  %v4039_v12 = vld [vmem:[#allocation19 + $0x50] sm:$0xff] }
0x1797   :  { %v10906_v41 = vpop.eup %10905 }
0x1798   :  { %v3853_v43 = vadd.f32 1.0, %v10906_v41  ;;  %v12428_v41 = vpack.c.bf16 %v4048_v61, %v4047_v9  ;;  %v4040_v9 = vld [vmem:[#allocation19 + $0x58] sm:$0xff]  ;;  %v4057_v61 = vld [vmem:[#allocation19 + $0xe0] sm:$0xff] }
0x1799   :  { %v10908_v31 = vpop.eup %10907 }
0x179a   :  { %10909 = vrcp.f32 %v3853_v43  ;;  %v3863_v17 = vadd.f32 1.0, %v10908_v31  ;;  %v4031_v43 = vld [vmem:[#allocation19 + $0x10] sm:$0xff]  ;;  %v4032_v31 = vld [vmem:[#allocation19 + $0x18] sm:$0xff] }
0x179c   :  { %10911 = vrcp.f32 %v3863_v17  ;;  %v4050_v17 = vld [vmem:[#allocation19 + $0xa8] sm:$0xff] }
0x17a4   :  { %v10910_v21 = vpop.eup %10909 }
0x17a5   :  { %v3866_v38 = vmul.f32 %v10910_v21, %v3846_v53  ;;  %v12432_v53 = vpack.c.bf16 %v4032_v31, %v4031_v43  ;;  %v12435_v21 = vpack.c.bf16 %v4050_v17, %v4049_v0  ;;  %v4058_v43 = vld [vmem:[#allocation19 + $0xe8] sm:$0xff]  ;;  %v12456_v31 = vpack.c.bf16 %v4040_v9, %v4039_v12  ;;  %v4041_v17 = vld [vmem:[#allocation19 + $0x60] sm:$0xff] }
0x17a6   :  { %v10912_v46 = vpop.eup %10911  ;;  %v12459_v0 = vpack.c.bf16 %v4058_v43, %v4057_v61  ;;  %v4134_v12 = vld [vmem:[#allocation5 + $0x8] sm:$0xff]  ;;  %v4135_v9 = vld [vmem:[#allocation5 + $0x10] sm:$0xff]  ;;  %v4136_v43 = vld [vmem:[#allocation5 + $0x18] sm:$0xff] }
0x17a7   :  { %v3869_v27 = vadd.f32 %v3867_v14, %v3866_v38  ;;  %v3871_v52 = vsub.f32 1.0, %v10912_v46  ;;  %v3873_v4 = vmul.f32 %v10912_v46, %v12250_v10  ;;  %v4045_v10 = vld [vmem:[#allocation19 + $0x80] sm:$0xff]  ;;  %v4034_v14 = vld [vmem:[#allocation19 + $0x28] sm:$0xff]  ;;  %v4052_v46 = vld [vmem:[#allocation19 + $0xb8] sm:$0xff] }
0x17a8   :  { %v12424_v44 = vpack.c.bf16 %v4046_v60, %v4045_v10  ;;  %v4033_v38 = vld [vmem:[#allocation19 + $0x20] sm:$0xff]  ;;  %v4056_v10 = vld [vmem:[#allocation19 + $0xd8] sm:$0xff] }
0x17a9   :  { %10913 = vtanh.f32 %v3869_v27  ;;  %v4051_v27 = vld [vmem:[#allocation19 + $0xb0] sm:$0xff] }
0x17aa   :  { %10107 = vmatprep.subr.bf16.mxu0 %v12424_v44 }
0x17b3   :  { %v10914_v59 = vpop.eup %10913 }
0x17b4   :  { %v3872_v19 = vmul.f32 %v10914_v59, %v3871_v52  ;;  %v12438_v52 = vpack.c.bf16 %v4034_v14, %v4033_v38  ;;  %v12441_v59 = vpack.c.bf16 %v4052_v46, %v4051_v27  ;;  %v4042_v38 = vld [vmem:[#allocation19 + $0x68] sm:$0xff]  ;;  %v4059_v14 = vld [vmem:[#allocation19 + $0xf0] sm:$0xff]  ;;  %v4060_v27 = vld [vmem:[#allocation19 + $0xf8] sm:$0xff] }
0x17b5   :  { %v12462_v46 = vpack.c.bf16 %v4042_v38, %v4041_v17  ;;  %v12480_v17 = vpack.c.bf16 %v4136_v43, %v4135_v9  ;;  %v4138_v38 = vld [vmem:[#allocation5 + $0x28] sm:$0xff]  ;;  %v3583_v9 = vmax.f32 %v12398_v45, -1e+30 }
0x17b6   :  { %v12416_v22 = vadd.f32 %v3873_v4, %v3872_v19  ;;  %v4035_v19 = vld [vmem:[#allocation19 + $0x30] sm:$0xff]  ;;  %v4036_v4 = vld [vmem:[#allocation19 + $0x38] sm:$0xff] }
0x17b7   :  { %v3588_v43 = vsub.f32 %v12390_v40, %v3583_v9  ;;  %v3584_v45 = vsub.f32 -1e+30, %v3583_v9 }
0x17b8   :  { %8880 = vmatmul.mubr.f32.vlgmr.msra.gmra.mrb[32].mxu0 %v12416_v22 }
0x17b9   :  { %10109 = vmatpush3.bf16.msra.mxu0 %v12426_v47  ;;  %v3585_v40 = vmul.f32 1.442695, %v3584_v45 }
0x17ba   :  { %10111 = vmatprep.subr.bf16.mxu0 %v12428_v41 }
0x17bd   :  { %10113 = vmatpush3.bf16.msra.mxu0 %v12432_v53 }
0x17be   :  { %10115 = vmatprep.subr.bf16.mxu0 %v12435_v21 }
0x17c1   :  { %10117 = vmatpush3.bf16.msra.mxu0 %v12438_v52 }
0x17c2   :  { %10119 = vmatprep.subr.bf16.mxu0 %v12441_v59 }
0x188b   :  { %v3941_v30 = vpop.f32.mrb[32].mxu0 }
0x188c   :  { %v8881_v20 = vpop.f32.mrb[33].mxu0  ;;  %v3945_v49 = vsel %vm2663_vm8, %v3941_v30, -inf }
0x188d   :  { %3946 = vmax.xlane.f32.xlu1 %v3945_v49  ;;  %v4054_v20 = vld [vmem:[#allocation19 + $0xc8] sm:$0xff]  ;;  %v12444_v49 = vpack.c.bf16 %v4036_v4, %v4035_v19  ;;  %v12465_v19 = vpack.c.bf16 %v4060_v27, %v4059_v14  ;;  %v4043_v4 = vld [vmem:[#allocation19 + $0x70] sm:$0xff] }
0x188e   :  { %v4139_v14 = vld [vmem:[#allocation5 + $0x30] sm:$0xff]  ;;  %v4140_v27 = vld [vmem:[#allocation5 + $0x38] sm:$0xff] }
0x188f   :  { %10121 = vmatpush3.bf16.msra.mxu0 %v12444_v49 }
0x191a   :  { %v3947_v33 = vpop.xlane.xlu1 %3946 }
0x191b   :  { %v3948_v32 = vsub.f32 %v3941_v30, %v3947_v33  ;;  %v4053_v30 = vld [vmem:[#allocation19 + $0xc0] sm:$0xff] }
0x191c   :  { %v12447_v33 = vpack.c.bf16 %v4054_v20, %v4053_v30  ;;  %v4044_v30 = vld [vmem:[#allocation19 + $0x78] sm:$0xff] }
0x191d   :  { %v3949_v37 = vmul.f32 1.442695, %v3948_v32  ;;  %v4037_v32 = vld [vmem:[#allocation19 + $0x40] sm:$0xff]  ;;  %v12468_v20 = vpack.c.bf16 %v4044_v30, %v4043_v4  ;;  %v12488_v4 = vpack.c.bf16 %v4140_v27, %v4139_v14 }
0x191e   :  { %10123 = vmatprep.subr.bf16.mxu0 %v12447_v33 }
0x191f   :  { %10915 = vpow2.f32 %v3949_v37  ;;  %v4038_v37 = vld [vmem:[#allocation19 + $0x48] sm:$0xff] }
0x1920   :  { %v12450_v60 = vpack.c.bf16 %v4038_v37, %v4037_v32 }
0x1922   :  { %10125 = vmatpush3.bf16.msra.mxu0 %v12450_v60 }
0x1929   :  { %v12420_v57 = vpop.eup %10915 }
0x192a   :  { %v3951_v58 = vsel %vm2663_vm8, %v12420_v57, 0.0 }
0x192b   :  { %3952 = vadd.xlane.f32.xlu0 %v3951_v58  ;;  %v4055_v58 = vld [vmem:[#allocation19 + $0xd0] sm:$0xff] }
0x192c   :  { %v12453_v36 = vpack.c.bf16 %v4056_v10, %v4055_v58  ;;  %v4133_v10 = vld [vmem:[#allocation5] sm:$0xff] }
0x192d   :  { %v12477_v61 = vpack.c.bf16 %v4134_v12, %v4133_v10 }
0x192e   :  { %10127 = vmatprep.subr.bf16.mxu0 %v12453_v36 }
0x192f   :  { %10129 = vmatpush3.bf16.msra.mxu0 %v12456_v31 }
0x1930   :  { %10131 = vmatprep.subr.bf16.mxu0 %v12459_v0 }
0x1933   :  { %10133 = vmatpush3.bf16.msra.mxu0 %v12462_v46 }
0x1934   :  { %10135 = vmatprep.subr.bf16.mxu0 %v12465_v19 }
0x1937   :  { %10137 = vmatpush3.bf16.msra.mxu0 %v12468_v20 }
0x1938   :  { %10163 = vmatprep.subr.bf16.mxu0 %v12289_v26  ;;  %v4137_v26 = vld [vmem:[#allocation5 + $0x20] sm:$0xff] }
0x19b8   :  { %v3953_v32 = vpop.xlane.xlu0 %3952 }
0x19b9   :  { %10917 = vrcp.f32 %v3953_v32 }
0x19c3   :  { %v10918_v37 = vpop.eup %10917 }
0x19c4   :  { %v3955_v58 = vmul.f32 %v10918_v37, %v12420_v57  ;;  %v12484_v57 = vpack.c.bf16 %v4138_v38, %v4137_v26  ;;  %v3589_v26 = vmul.f32 1.442695, %v3588_v43 }
0x19c6   :  { %8885 = vmatmul.mubr.msk.f32.vlgmr.msra.gmra.mrb[32].mxu1 %vm2675_vm9, %v3955_v58 }
0x19c7   :  { %8919 = vmatprep.mubr.msk.f32.mxu1 %vm11262_vm0, %v11261_v8  ;;  %10140 = vmatpush3.bf16.msra.mxu1 %v12477_v61 }
0x19c8   :  { %10141 = vmatprep.subr.bf16.mxu1 %v11260_v6 }
0x19cb   :  { %10143 = vmatpush3.bf16.msra.mxu1 %v12480_v17 }
0x19cc   :  { %10144 = vmatprep.subr.bf16.mxu1 %v11260_v6 }
0x19cf   :  { %10146 = vmatpush3.bf16.msra.mxu1 %v12484_v57 }
0x19d0   :  { %10147 = vmatprep.subr.bf16.mxu1 %v11260_v6 }
0x19d3   :  { %10149 = vmatpush3.bf16.msra.mxu1 %v12488_v4 }
0x19d4   :  { %10150 = vmatprep.subr.bf16.mxu1 %v11260_v6 }
0x1a99   :  { %v4025_v30 = vpop.f32.mrb[32].mxu1 }
0x1a9a   :  { %v8886_v32 = vpop.f32.mrb[33].mxu1  ;;  %4126 = vmatprep.mubr.f32.mxu0 %v4025_v30 }
0x1a9b   :  { %4127 = vmatmul.mubr.f32.vlgmr.msra.gmra.mrb[34].mxu0 %v12416_v22 }
0x1a9c   :  { %10165 = vmatpush1.bf16.msra.mxu0 %v12292_v50  ;;  %4412 = vmatprep.mubr.f32.mxu0 %v11261_v8  ;;  %v12514_v50 = vld [vmem:[#allocation2] sm:$0xff] }
0x1a9d   :  { %10167 = vmatprep.subr.bf16.mxu0 %v12294_v7  ;;  %v4141_v7 = vld [vmem:[#allocation5 + $0x40] sm:$0xff] }
0x1aa0   :  { %10169 = vmatpush1.bf16.msra.mxu0 %v12298_v35  ;;  %v4142_v35 = vld [vmem:[#allocation5 + $0x48] sm:$0xff] }
0x1aa1   :  { %10171 = vmatprep.subr.bf16.mxu0 %v12302_v42  ;;  %v12518_v42 = vpack.c.bf16 %v4142_v35, %v4141_v7 }
0x1aa3   :  { %10152 = vmatpush3.bf16.msra.mxu1 %v12518_v42 }
0x1aa4   :  { %10173 = vmatpush1.bf16.msra.mxu0 %v12305_v15  ;;  %10153 = vmatprep.subr.bf16.mxu1 %v11260_v6  ;;  %v4143_v15 = vld [vmem:[#allocation5 + $0x50] sm:$0xff] }
0x1aa5   :  { %10175 = vmatprep.subr.bf16.mxu0 %v12308_v28  ;;  %v4144_v28 = vld [vmem:[#allocation5 + $0x58] sm:$0xff] }
0x1aa8   :  { %10177 = vmatpush1.bf16.msra.mxu0 %v12311_v63  ;;  %v12522_v63 = vpack.c.bf16 %v4144_v28, %v4143_v15 }
0x1aa9   :  { %10179 = vmatprep.subr.bf16.mxu0 %v12314_v18  ;;  %v4145_v18 = vld [vmem:[#allocation5 + $0x60] sm:$0xff] }
0x1aaa   :  { %10155 = vmatpush3.bf16.msra.mxu1 %v12522_v63 }
0x1aab   :  { %10156 = vmatprep.subr.bf16.mxu1 %v11260_v6 }
0x1aac   :  { %10181 = vmatpush1.bf16.msra.mxu0 %v12317_v5  ;;  %v4146_v5 = vld [vmem:[#allocation5 + $0x68] sm:$0xff] }
0x1aad   :  { %10183 = vmatprep.subr.bf16.mxu0 %v12320_v11  ;;  %v12526_v11 = vpack.c.bf16 %v4146_v5, %v4145_v18 }
0x1aaf   :  { %10158 = vmatpush3.bf16.msra.mxu1 %v12526_v11 }
0x1ab0   :  { %10185 = vmatpush1.bf16.msra.mxu0 %v12323_v24  ;;  %v4147_v24 = vld [vmem:[#allocation5 + $0x70] sm:$0xff]  ;;  %10159 = vmatprep.subr.bf16.mxu1 %v11260_v6 }
0x1ab1   :  { %10187 = vmatprep.subr.bf16.mxu0 %v12326_v13  ;;  %v4148_v13 = vld [vmem:[#allocation5 + $0x78] sm:$0xff] }
0x1ab4   :  { %10189 = vmatpush1.bf16.msra.mxu0 %v12329_v23  ;;  %v12529_v23 = vpack.c.bf16 %v4148_v13, %v4147_v24 }
0x1ab5   :  { %10191 = vmatprep.subr.bf16.mxu0 %v12332_v2 }
0x1ab6   :  { %10161 = vmatpush3.bf16.msra.mxu1 %v12529_v23 }
0x1ab7   :  { %10194 = vmatprep.subr.bf16.mxu1 %v11260_v6 }
0x1ab8   :  { %10193 = vmatpush1.bf16.msra.mxu0 %v12335_v3  ;;  %v4061_v3 = vld [vmem:[%s13344_s9] sm:$0x1] }
0x1ab9   :  { %8957 = vmatprep.subr.mxu0 %v11261_v8 }
0x1abb   :  { %4413 = vmatmul.mubr.f32.vlgmr.msra.gmra.mrb[36].mxu0 %v12416_v22 }
0x1abc   :  { %8959 = vmatprep.mubr.msk.f32.mxu0 %vm11262_vm0, %v11261_v8 }
0x1ac1   :  { %8958 = vmatpush3.xpose.msra.mxu0 %v12514_v50 }
0x1ac2   :  { %10219 = vmatprep.subr.bf16.mxu0 %v12424_v44 }
0x1b6e   :  { %v7982_v2 = vpop.f32.mrb[34].mxu0 }
0x1b6f   :  { %v7983_v44 = vpop.f32.mrb[35].mxu0 }
0x1b70   :  { %v7984_v37 = vadd.f32 %v7983_v44, %v7982_v2 }
0x1b72   :  { %v4129_v58 = vadd.f32 %v7984_v37, %v4061_v3 }
0x1b74   :  { %10919 = vtanh.f32 %v4129_v58 }
0x1b75   :  { %10921 = vpow2.f32 %v3589_v26 }
0x1b76   :  { %10923 = vpow2.f32 %v3585_v40 }
0x1b7e   :  { %v10920_v10 = vpop.eup %10919 }
0x1b7f   :  { %8920 = vmatmul.mubr.f32.vlgmr.msra.gmra.mrb[34].mxu1 %v10920_v10  ;;  %v10922_v7 = vpop.eup %10921 }
0x1b80   :  { %10196 = vmatpush3.bf16.msra.mxu1 %v12347_v25  ;;  %8954 = vmatprep.mubr.msk.f32.mxu1 %vm11262_vm0, %v11261_v8  ;;  %v3591_v35 = vsel %vm234_vm1, %v10922_v7, 0.0  ;;  %v10924_v28 = vpop.eup %10923 }
0x1b81   :  { %10197 = vmatprep.subr.bf16.mxu1 %v11260_v6  ;;  %v3587_v13 = vmul.f32 0.0, %v10924_v28 }
0x1b84   :  { %10199 = vmatpush3.bf16.msra.mxu1 %v12350_v16  ;;  %v4149_v16 = vld [vmem:[#allocation6] sm:$0x1] }
0x1b85   :  { %10200 = vmatprep.subr.bf16.mxu1 %v11260_v6 }
0x1b88   :  { %10202 = vmatpush3.bf16.msra.mxu1 %v12356_v29 }
0x1b89   :  { %10203 = vmatprep.subr.bf16.mxu1 %v11260_v6 }
0x1b8c   :  { %10205 = vmatpush3.bf16.msra.mxu1 %v12360_v54 }
0x1b8d   :  { %10206 = vmatprep.subr.bf16.mxu1 %v11260_v6 }
0x1b8e   :  { %v12547_v12 = vpop.f32.mrb[36].mxu0 }
0x1b8f   :  { %v12549_v25 = vpop.f32.mrb[37].mxu0 }
0x1b90   :  { %10208 = vmatpush3.bf16.msra.mxu1 %v12364_v62 }
0x1b91   :  { %10209 = vmatprep.subr.bf16.mxu1 %v11260_v6 }
0x1b94   :  { %10211 = vmatpush3.bf16.msra.mxu1 %v12372_v1 }
0x1b95   :  { %10212 = vmatprep.subr.bf16.mxu1 %v11260_v6 }
0x1b98   :  { %10214 = vmatpush3.bf16.msra.mxu1 %v12376_v48 }
0x1b99   :  { %10215 = vmatprep.subr.bf16.mxu1 %v11260_v6 }
0x1b9c   :  { %10217 = vmatpush3.bf16.msra.mxu1 %v12380_v34 }
0x1b9d   :  { %8962 = vmatprep.subr.mxu1 %v11261_v8 }
0x1b9f   :  { %8955 = vmatmul.mubr.f32.vlgmr.msra.gmra.mrb[36].mxu1 %v12416_v22 }
0x1ba0   :  { %8963 = vmatpush3.msra.mxu1 %v12514_v50  ;;  %8964 = vmatprep.mubr.msk.f32.mxu1 %vm11262_vm0, %v11261_v8 }
0x1ba1   :  { %10250 = vmatprep.subr.bf16.mxu1 %v11260_v6 }
0x1c52   :  { %v4216_v29 = vpop.f32.mrb[34].mxu1 }
0x1c53   :  { %v12564_v54 = vadd.f32 %v4216_v29, %v4149_v16  ;;  %v8921_v62 = vpop.f32.mrb[35].mxu1 }
0x1c55   :  { %v4220_v1 = vsel %vm234_vm1, %v12564_v54, -inf }
0x1c56   :  { %4221 = vmax.xlane.f32.xlu1 %v4220_v1 }
0x1c72   :  { %v12568_v48 = vpop.f32.mrb[36].mxu1 }
0x1c73   :  { %v8956_v34 = vpop.f32.mrb[37].mxu1 }
0x1ce3   :  { %v12572_v38 = vpop.xlane.xlu1 %4221 }
0x1ce4   :  { %vm4235_vm6 = vcmp.eq.f32.partialorder %v12564_v54, %v12572_v38 }
0x1ce5   :  { %v4236_v14 = vsel %vm4235_vm6, %v12232_v39, 128 }
0x1ce6   :  { %v4237_v27 = vsel %vm234_vm1, %v4236_v14, 2147483647  ;;  %v4331_v14 = vld [vmem:[%s13342_s7] sm:$0x7] }
0x1ce7   :  { %v4239_v30 = vshra.s32 %v4237_v27, 16  ;;  %v4238_v15 = vand.u32 65535, %v4237_v27  ;;  %v4336_v27 = vrot.slane %v4331_v14, %v11623_v51 }
0x1ce9   :  { %v4241_v32 = vcvt.s32.f32 %v4239_v30  ;;  %v4240_v5 = vcvt.s32.f32 %v4238_v15  ;;  %v4340_v30 = vrot.slane %v4331_v14, %v11628_v55 }
0x1ceb   :  { %4242 = vmin.xlane.f32.xlu0 %v4241_v32  ;;  %v4417_v40 = vadd.f32 %v12549_v25, %v4340_v30  ;;  %v4942_v30 = vld [vmem:[#allocation17 + $0x98] sm:$0xff] }
0x1cef   :  { %3592 = vadd.xlane.f32.xlu0 %v3591_v35 }
0x1d78   :  { %v4243_v18 = vpop.xlane.xlu0 %4242 }
0x1d79   :  { %vm4244_vm7 = vcmp.eq.f32.partialorder %v4241_v32, %v4243_v18  ;;  %v4249_v37 = vcvt.f32.s32 %v4243_v18  ;;  %v4415_v32 = vadd.f32 %v12547_v12, %v4336_v27  ;;  %v4938_v27 = vld [vmem:[#allocation17 + $0x78] sm:$0xff] }
0x1d7a   :  { %v4245_v24 = vsel %vm4244_vm7, %v4240_v5, inf }
0x1d7b   :  { %4246 = vmin.xlane.f32.xlu1 %v4245_v24  ;;  %v4250_v10 = vshll.u32 %v4249_v37, 16 }
0x1d7c   :  { %v3593_v2 = vpop.xlane.xlu0 %3592 }
0x1d7d   :  { %v3594_v3 = vadd.f32 %v3593_v2, %v3587_v13  ;;  %v4344_v2 = vrot.slane %v4331_v14, %v11630_v56  ;;  %v4935_v14 = vld [vmem:[#allocation17 + $0x60] sm:$0xff] }
0x1d7f   :  { %10925 = vrcp.f32 %v3594_v3  ;;  %v4486_v12 = vadd.f32 %v12568_v48, %v4344_v2  ;;  %v4936_v48 = vld [vmem:[#allocation17 + $0x68] sm:$0xff]  ;;  %v4954_v2 = vld [vmem:[#allocation17 + $0xf8] sm:$0xff] }
0x1d89   :  { %v10926_v44 = vpop.eup %10925 }
0x1d8a   :  { %10732 = vpush %v10926_v44 }
0x1dbb   :  { %s10733_s5 = spop %10732 }
0x1dbc   :  { %3630 = sst [smem:[#allocation21 + $0x1]] %s10733_s5 }
0x1e08   :  { %v4247_v58 = vpop.xlane.xlu1 %4246 }
0x1e09   :  { %v4248_v16 = vcvt.f32.s32 %v4247_v58 }
0x1e0b   :  { %v4251_v29 = vadd.s32 %v4250_v10, %v4248_v16 }
0x1e0d   :  { %v4252_v62 = vrot.slane %v4251_v29, 4 }
0x1e0f   :  { %vm4253_vm10 = vcmp.lt.s32.totalorder %v4251_v29, %v4252_v62 }
0x1e10   :  { %v4254_v1 = vsel %vm4253_vm10, %v4251_v29, %v4252_v62 }
0x1e11   :  { %v4255_v34 = vrot.slane %v4254_v1, 2 }
0x1e13   :  { %vm4256_vm11 = vcmp.lt.s32.totalorder %v4254_v1, %v4255_v34 }
0x1e14   :  { %v4257_v9 = vsel %vm4256_vm11, %v4254_v1, %v4255_v34 }
0x1e15   :  { %v4258_v43 = vrot.slane %v4257_v9, 1 }
0x1e17   :  { %vm4259_vm12 = vcmp.lt.s32.totalorder %v4257_v9, %v4258_v43 }
0x1e18   :  { %v4260_v26 = vsel %vm4259_vm12, %v4257_v9, %v4258_v43  ;;  %v4939_v9 = vld [vmem:[#allocation17 + $0x80] sm:$0xff] }
0x1e19   :  { %10734 = vpush %v4260_v26  ;;  %v12642_v26 = vpack.c.bf16 %v4939_v9, %v4936_v48  ;;  %v4943_v9 = vld [vmem:[#allocation17 + $0xa0] sm:$0xff] }
0x1e1a   :  { %10736 = vpush %v12572_v38 }
0x1e4a   :  { %s10735_s6 = spop %10734 }
0x1e4b   :  { %s10737_s28 = spop %10736 }
0x1e4c   :  { %p4263_p5 = scmp.gt.f32.partialorder %s10737_s28, -1e+30 }
0x1e4e   :  { %s13355_s6 = smov (!%p4263_p5, %s10735_s6), 0 }
0x1e4f   :  { %4268 = sst [smem:[#allocation20 + $0x2]] %s13355_s6  ;;  %s4274_s12 = sshra.s32 %s13355_s6, 3 }
0x1e50   :  { %s7602_s16 = smul.u32 24, %s4274_s12  ;;  %s4277_s17 = sand.u32 7, %s13355_s6 }
0x1e52   :  { %s4280_s19 = sadd.s32 %s7602_s16, %s4277_s17 }
0x1e53   :  { %s4281_s20 = scalar_lea.vmem [#allocation4], %s4280_s19 }
0x1e54   :  { %v4282_v7 = vld [vmem:[%s4281_s20] ss:$8 sm:$0x7] }
0x1e55   :  { %v4489_v35 = vadd.f32 %v4415_v32, %v4282_v7  ;;  %v4497_v45 = vrot.slane %v4282_v7, 1  ;;  %v4507_v58 = vrot.slane %v4282_v7, 2  ;;  %v4945_v32 = vld [vmem:[#allocation17 + $0xb0] sm:$0xff]  ;;  %v12645_v7 = vpack.c.bf16 %v4938_v27, %v4935_v14  ;;  %v4946_v14 = vld [vmem:[#allocation17 + $0xb8] sm:$0xff] }
0x1e56   :  { %v12700_v27 = vpack.c.bf16 %v4946_v14, %v4943_v9 }
0x1e57   :  { %v7603_v15 = vmul.f32 -1.442695, %v4489_v35  ;;  %v4499_v28 = vadd.f32 %v4497_v45, %v4417_v40  ;;  %v12648_v35 = vpack.c.bf16 %v4945_v32, %v4942_v30  ;;  %v4941_v45 = vld [vmem:[#allocation17 + $0x90] sm:$0xff]  ;;  %v4944_v40 = vld [vmem:[#allocation17 + $0xa8] sm:$0xff] }
0x1e58   :  { %v4949_v30 = vld [vmem:[#allocation17 + $0xd0] sm:$0xff]  ;;  %v4952_v32 = vld [vmem:[#allocation17 + $0xe8] sm:$0xff] }
0x1e59   :  { %10927 = vpow2.f32 %v7603_v15  ;;  %v7604_v18 = vmul.f32 -1.442695, %v4499_v28  ;;  %v4948_v15 = vld [vmem:[#allocation17 + $0xc8] sm:$0xff]  ;;  %v4951_v28 = vld [vmem:[#allocation17 + $0xe0] sm:$0xff] }
0x1e5b   :  { %10929 = vpow2.f32 %v7604_v18  ;;  %v12651_v18 = vpack.c.bf16 %v4944_v40, %v4941_v45  ;;  %v12704_v45 = vpack.c.bf16 %v4952_v32, %v4949_v30  ;;  %v4955_v40 = vld [vmem:[#allocation17 + $0x100] sm:$0xff] }
0x1e63   :  { %v10928_v5 = vpop.eup %10927 }
0x1e64   :  { %v4493_v24 = vadd.f32 1.0, %v10928_v5  ;;  %v12654_v5 = vpack.c.bf16 %v4951_v28, %v4948_v15  ;;  %v4958_v15 = vld [vmem:[#allocation17 + $0x118] sm:$0xff] }
0x1e65   :  { %v10930_v13 = vpop.eup %10929 }
0x1e66   :  { %10931 = vrcp.f32 %v4493_v24  ;;  %v4503_v3 = vadd.f32 1.0, %v10930_v13  ;;  %v4947_v24 = vld [vmem:[#allocation17 + $0xc0] sm:$0xff]  ;;  %v4950_v13 = vld [vmem:[#allocation17 + $0xd8] sm:$0xff] }
0x1e68   :  { %10933 = vrcp.f32 %v4503_v3  ;;  %v4957_v3 = vld [vmem:[#allocation17 + $0x110] sm:$0xff] }
0x1e70   :  { %v10932_v44 = vpop.eup %10931 }
0x1e71   :  { %v4506_v37 = vmul.f32 %v10932_v44, %v4486_v12  ;;  %v12657_v12 = vpack.c.bf16 %v4950_v13, %v4947_v24  ;;  %v12660_v44 = vpack.c.bf16 %v4957_v3, %v4954_v2  ;;  %v12712_v13 = vpack.c.bf16 %v4958_v15, %v4955_v40  ;;  %v4961_v2 = vld [vmem:[#allocation17 + $0x130] sm:$0xff]  ;;  %v4964_v3 = vld [vmem:[#allocation17 + $0x148] sm:$0xff] }
0x1e72   :  { %v10934_v25 = vpop.eup %10933 }
0x1e73   :  { %v4509_v10 = vadd.f32 %v4507_v58, %v4506_v37  ;;  %v4511_v16 = vsub.f32 1.0, %v10934_v25  ;;  %v4513_v1 = vmul.f32 %v10934_v25, %v12416_v22  ;;  %v4953_v37 = vld [vmem:[#allocation17 + $0xf0] sm:$0xff]  ;;  %v4956_v58 = vld [vmem:[#allocation17 + $0x108] sm:$0xff]  ;;  %v4963_v25 = vld [vmem:[#allocation17 + $0x140] sm:$0xff] }
0x1e75   :  { %10935 = vtanh.f32 %v4509_v10  ;;  %v4960_v10 = vld [vmem:[#allocation17 + $0x128] sm:$0xff] }
0x1e7f   :  { %v10936_v29 = vpop.eup %10935 }
0x1e80   :  { %v4512_v62 = vmul.f32 %v10936_v29, %v4511_v16  ;;  %v12663_v16 = vpack.c.bf16 %v4956_v58, %v4953_v37  ;;  %v12666_v29 = vpack.c.bf16 %v4963_v25, %v4960_v10  ;;  %v12716_v37 = vpack.c.bf16 %v4964_v3, %v4961_v2  ;;  %v4967_v58 = vld [vmem:[#allocation17 + $0x160] sm:$0xff]  ;;  %v4970_v10 = vld [vmem:[#allocation17 + $0x178] sm:$0xff] }
0x1e81   :  { %v12720_v25 = vpack.c.bf16 %v4970_v10, %v4967_v58 }
0x1e82   :  { %v12590_v34 = vadd.f32 %v4513_v1, %v4512_v62  ;;  %v4959_v62 = vld [vmem:[#allocation17 + $0x120] sm:$0xff]  ;;  %v4962_v1 = vld [vmem:[#allocation17 + $0x138] sm:$0xff] }
0x1e84   :  { %8960 = vmatmul.mubr.f32.vlgmr.msra.gmra.mrb[38].mxu0 %v12590_v34 }
0x1e85   :  { %10221 = vmatpush3.bf16.msra.mxu0 %v12426_v47 }
0x1e86   :  { %10223 = vmatprep.subr.bf16.mxu0 %v12428_v41 }
0x1e89   :  { %10225 = vmatpush3.bf16.msra.mxu0 %v12432_v53 }
0x1e8a   :  { %10227 = vmatprep.subr.bf16.mxu0 %v12435_v21 }
0x1e8d   :  { %10229 = vmatpush3.bf16.msra.mxu0 %v12438_v52 }
0x1e8e   :  { %10231 = vmatprep.subr.bf16.mxu0 %v12441_v59 }
0x1e91   :  { %10233 = vmatpush3.bf16.msra.mxu0 %v12444_v49 }
0x1e92   :  { %10235 = vmatprep.subr.bf16.mxu0 %v12447_v33 }
0x1e95   :  { %10237 = vmatpush3.bf16.msra.mxu0 %v12450_v60 }
0x1e96   :  { %10239 = vmatprep.subr.bf16.mxu0 %v12453_v36 }
0x1e99   :  { %10241 = vmatpush3.bf16.msra.mxu0 %v12456_v31  ;;  %v4924_v31 = vld [vmem:[#allocation17 + $0x8] sm:$0xff] }
0x1e9a   :  { %10243 = vmatprep.subr.bf16.mxu0 %v12459_v0  ;;  %v4927_v0 = vld [vmem:[#allocation17 + $0x20] sm:$0xff] }
0x1e9d   :  { %10245 = vmatpush3.bf16.msra.mxu0 %v12462_v46  ;;  %v12629_v46 = vpack.c.bf16 %v4927_v0, %v4924_v31  ;;  %v4925_v0 = vld [vmem:[#allocation17 + $0x10] sm:$0xff] }
0x1e9e   :  { %10247 = vmatprep.subr.bf16.mxu0 %v12465_v19  ;;  %v4923_v19 = vld [vmem:[#allocation17] sm:$0xff] }
0x1ea1   :  { %10249 = vmatpush3.bf16.msra.mxu0 %v12468_v20  ;;  %v4926_v20 = vld [vmem:[#allocation17 + $0x18] sm:$0xff] }
0x1ea2   :  { %10275 = vmatprep.subr.bf16.mxu0 %v12629_v46 }
0x1f57   :  { %v4581_v22 = vpop.f32.mrb[38].mxu0 }
0x1f58   :  { %v8961_v47 = vpop.f32.mrb[39].mxu0  ;;  %v4585_v41 = vsel %vm2663_vm8, %v4581_v22, -inf }
0x1f59   :  { %4586 = vmax.xlane.f32.xlu1 %v4585_v41  ;;  %v4969_v47 = vld [vmem:[#allocation17 + $0x170] sm:$0xff]  ;;  %v12669_v41 = vpack.c.bf16 %v4962_v1, %v4959_v62  ;;  %v4789_v62 = vld [vmem:[#allocation6] sm:$0x1] }
0x1fe6   :  { %v4587_v53 = vpop.xlane.xlu1 %4586 }
0x1fe7   :  { %v4588_v21 = vsub.f32 %v4581_v22, %v4587_v53  ;;  %v4966_v22 = vld [vmem:[#allocation17 + $0x158] sm:$0xff] }
0x1fe8   :  { %v12672_v53 = vpack.c.bf16 %v4969_v47, %v4966_v22 }
0x1fe9   :  { %v4589_v52 = vmul.f32 1.442695, %v4588_v21  ;;  %v4965_v21 = vld [vmem:[#allocation17 + $0x150] sm:$0xff] }
0x1feb   :  { %10937 = vpow2.f32 %v4589_v52  ;;  %v4968_v52 = vld [vmem:[#allocation17 + $0x168] sm:$0xff] }
0x1ff5   :  { %v10938_v59 = vpop.eup %10937 }
0x1ff6   :  { %v4591_v49 = vsel %vm2663_vm8, %v10938_v59, 0.0 }
0x1ff7   :  { %4592 = vadd.xlane.f32.xlu0 %v4591_v49 }
0x2084   :  { %v4593_v33 = vpop.xlane.xlu0 %4592 }
0x2085   :  { %10939 = vrcp.f32 %v4593_v33  ;;  %v4701_v33 = vld [vmem:[%s13344_s9] sm:$0x1] }
0x208f   :  { %v10940_v60 = vpop.eup %10939 }
0x2090   :  { %v4595_v36 = vmul.f32 %v10940_v60, %v10938_v59  ;;  %v12675_v59 = vpack.c.bf16 %v4968_v52, %v4965_v21 }
0x2092   :  { %8965 = vmatmul.mubr.msk.f32.vlgmr.msra.gmra.mrb[38].mxu1 %vm2675_vm9, %v4595_v36 }
0x2093   :  { %10252 = vmatpush3.bf16.msra.mxu1 %v12477_v61  ;;  %8999 = vmatprep.mubr.msk.f32.mxu1 %vm11262_vm0, %v11261_v8  ;;  %v4930_v61 = vld [vmem:[#allocation17 + $0x38] sm:$0xff] }
0x2094   :  { %10253 = vmatprep.subr.bf16.mxu1 %v11260_v6 }
0x2097   :  { %10255 = vmatpush3.bf16.msra.mxu1 %v12480_v17  ;;  %v4933_v17 = vld [vmem:[#allocation17 + $0x50] sm:$0xff] }
0x2098   :  { %10256 = vmatprep.subr.bf16.mxu1 %v11260_v6 }
0x209b   :  { %10258 = vmatpush3.bf16.msra.mxu1 %v12484_v57  ;;  %v12632_v57 = vpack.c.bf16 %v4926_v20, %v4923_v19  ;;  %v4928_v19 = vld [vmem:[#allocation17 + $0x28] sm:$0xff] }
0x209c   :  { %10259 = vmatprep.subr.bf16.mxu1 %v11260_v6  ;;  %v12687_v20 = vpack.c.bf16 %v4928_v19, %v4925_v0 }
0x209f   :  { %10261 = vmatpush3.bf16.msra.mxu1 %v12488_v4 }
0x20a0   :  { %10262 = vmatprep.subr.bf16.mxu1 %v11260_v6 }
0x20a3   :  { %10264 = vmatpush3.bf16.msra.mxu1 %v12518_v42  ;;  %v12634_v42 = vpack.c.bf16 %v4933_v17, %v4930_v61  ;;  %v4931_v61 = vld [vmem:[#allocation17 + $0x40] sm:$0xff]  ;;  %v4934_v17 = vld [vmem:[#allocation17 + $0x58] sm:$0xff] }
0x20a4   :  { %10265 = vmatprep.subr.bf16.mxu1 %v11260_v6 }
0x20a7   :  { %10267 = vmatpush3.bf16.msra.mxu1 %v12522_v63  ;;  %v4929_v63 = vld [vmem:[#allocation17 + $0x30] sm:$0xff] }
0x20a8   :  { %10268 = vmatprep.subr.bf16.mxu1 %v11260_v6 }
0x20ab   :  { %10270 = vmatpush3.bf16.msra.mxu1 %v12526_v11  ;;  %v4932_v11 = vld [vmem:[#allocation17 + $0x48] sm:$0xff] }
0x20ac   :  { %10271 = vmatprep.subr.bf16.mxu1 %v11260_v6  ;;  %v12638_v43 = vpack.c.bf16 %v4932_v11, %v4929_v63  ;;  %v12690_v63 = vpack.c.bf16 %v4934_v17, %v4931_v61  ;;  %v4937_v11 = vld [vmem:[#allocation17 + $0x70] sm:$0xff] }
0x20af   :  { %10273 = vmatpush3.bf16.msra.mxu1 %v12529_v23 }
0x20b0   :  { %10306 = vmatprep.subr.bf16.mxu1 %v11260_v6 }
0x2165   :  { %v4665_v4 = vpop.f32.mrb[38].mxu1 }
0x2166   :  { %v8966_v23 = vpop.f32.mrb[39].mxu1  ;;  %4766 = vmatprep.mubr.f32.mxu0 %v4665_v4 }
0x2167   :  { %4767 = vmatmul.mubr.f32.vlgmr.msra.gmra.mrb[40].mxu0 %v12590_v34  ;;  %v4940_v23 = vld [vmem:[#allocation17 + $0x88] sm:$0xff] }
0x2168   :  { %10277 = vmatpush1.bf16.msra.mxu0 %v12632_v57  ;;  %5052 = vmatprep.mubr.f32.mxu0 %v11261_v8  ;;  %v12696_v48 = vpack.c.bf16 %v4940_v23, %v4937_v11 }
0x2169   :  { %10279 = vmatprep.subr.bf16.mxu0 %v12634_v42 }
0x216c   :  { %10281 = vmatpush1.bf16.msra.mxu0 %v12638_v43 }
0x216d   :  { %10283 = vmatprep.subr.bf16.mxu0 %v12642_v26 }
0x2170   :  { %10285 = vmatpush1.bf16.msra.mxu0 %v12645_v7 }
0x2171   :  { %10287 = vmatprep.subr.bf16.mxu0 %v12648_v35 }
0x2174   :  { %10289 = vmatpush1.bf16.msra.mxu0 %v12651_v18 }
0x2175   :  { %10291 = vmatprep.subr.bf16.mxu0 %v12654_v5 }
0x2178   :  { %10293 = vmatpush1.bf16.msra.mxu0 %v12657_v12 }
0x2179   :  { %10295 = vmatprep.subr.bf16.mxu0 %v12660_v44 }
0x217c   :  { %10297 = vmatpush1.bf16.msra.mxu0 %v12663_v16 }
0x217d   :  { %10299 = vmatprep.subr.bf16.mxu0 %v12666_v29 }
0x2180   :  { %10301 = vmatpush1.bf16.msra.mxu0 %v12669_v41 }
0x2181   :  { %10303 = vmatprep.subr.bf16.mxu0 %v12672_v53 }
0x2184   :  { %10305 = vmatpush1.bf16.msra.mxu0 %v12675_v59 }
0x2185   :  { %9037 = vmatprep.subr.mxu0 %v11261_v8 }
0x2187   :  { %5053 = vmatmul.mubr.f32.vlgmr.msra.gmra.mrb[42].mxu0 %v12590_v34 }
0x2188   :  { %9039 = vmatprep.mubr.msk.f32.mxu0 %vm11262_vm0, %v11261_v8 }
0x218d   :  { %9038 = vmatpush3.xpose.msra.mxu0 %v12514_v50 }
0x223a   :  { %v8055_v49 = vpop.f32.mrb[40].mxu0 }
0x223b   :  { %v8056_v60 = vpop.f32.mrb[41].mxu0 }
0x223c   :  { %v8057_v36 = vadd.f32 %v8056_v60, %v8055_v49 }
0x223e   :  { %v4769_v31 = vadd.f32 %v8057_v36, %v4701_v33  ;;  %v4223_v33 = vmax.f32 %v12572_v38, -1e+30 }
0x2240   :  { %10941 = vtanh.f32 %v4769_v31  ;;  %v4224_v38 = vsub.f32 -1e+30, %v4223_v33 }
0x224a   :  { %v10942_v4 = vpop.eup %10941 }
0x224b   :  { %9000 = vmatmul.mubr.f32.vlgmr.msra.gmra.mrb[40].mxu1 %v10942_v4 }
0x224c   :  { %10308 = vmatpush3.bf16.msra.mxu1 %v12687_v20  ;;  %9034 = vmatprep.mubr.msk.f32.mxu1 %vm11262_vm0, %v11261_v8 }
0x224d   :  { %10309 = vmatprep.subr.bf16.mxu1 %v11260_v6 }
0x2250   :  { %10311 = vmatpush3.bf16.msra.mxu1 %v12690_v63 }
0x2251   :  { %10312 = vmatprep.subr.bf16.mxu1 %v11260_v6 }
0x2254   :  { %10314 = vmatpush3.bf16.msra.mxu1 %v12696_v48 }
0x2255   :  { %10315 = vmatprep.subr.bf16.mxu1 %v11260_v6 }
0x2258   :  { %10317 = vmatpush3.bf16.msra.mxu1 %v12700_v27 }
0x2259   :  { %10318 = vmatprep.subr.bf16.mxu1 %v11260_v6 }
0x225a   :  { %v12707_v28 = vpop.f32.mrb[42].mxu0 }
0x225b   :  { %v12709_v24 = vpop.f32.mrb[43].mxu0 }
0x225c   :  { %10320 = vmatpush3.bf16.msra.mxu1 %v12704_v45 }
0x225d   :  { %10321 = vmatprep.subr.bf16.mxu1 %v11260_v6 }
0x2260   :  { %10323 = vmatpush3.bf16.msra.mxu1 %v12712_v13 }
0x2261   :  { %10324 = vmatprep.subr.bf16.mxu1 %v11260_v6 }
0x2264   :  { %10326 = vmatpush3.bf16.msra.mxu1 %v12716_v37 }
0x2265   :  { %10327 = vmatprep.subr.bf16.mxu1 %v11260_v6 }
0x2268   :  { %10329 = vmatpush3.bf16.msra.mxu1 %v12720_v25 }
0x2269   :  { %9042 = vmatprep.subr.mxu1 %v11261_v8 }
0x226b   :  { %9035 = vmatmul.mubr.f32.vlgmr.msra.gmra.mrb[42].mxu1 %v12590_v34 }
0x226c   :  { %9043 = vmatpush3.msra.mxu1 %v12514_v50  ;;  %9044 = vmatprep.mubr.msk.f32.mxu1 %vm11262_vm0, %v11261_v8  ;;  %v4228_v50 = vsub.f32 %v12564_v54, %v4223_v33  ;;  %v4225_v54 = vmul.f32 1.442695, %v4224_v38 }
0x226d   :  { %10362 = vmatprep.subr.bf16.mxu1 %v11260_v6 }
0x226e   :  { %v4229_v60 = vmul.f32 1.442695, %v4228_v50 }
0x2270   :  { %10943 = vpow2.f32 %v4229_v60 }
0x2271   :  { %10945 = vpow2.f32 %v4225_v54 }
0x227a   :  { %v10944_v17 = vpop.eup %10943 }
0x227b   :  { %v4231_v4 = vsel %vm234_vm1, %v10944_v17, 0.0  ;;  %v10946_v23 = vpop.eup %10945 }
0x227c   :  { %v4227_v32 = vmul.f32 0.0, %v10946_v23 }
0x231e   :  { %v4856_v1 = vpop.f32.mrb[40].mxu1 }
0x231f   :  { %v12730_v22 = vadd.f32 %v4856_v1, %v4789_v62  ;;  %v9001_v47 = vpop.f32.mrb[41].mxu1 }
0x2321   :  { %v4860_v21 = vsel %vm234_vm1, %v12730_v22, -inf }
0x2322   :  { %4861 = vmax.xlane.f32.xlu1 %v4860_v21 }
0x233e   :  { %v12734_v52 = vpop.f32.mrb[42].mxu1 }
0x233f   :  { %v9036_v49 = vpop.f32.mrb[43].mxu1 }
0x23af   :  { %v12738_v36 = vpop.xlane.xlu1 %4861 }
0x23b0   :  { %vm4875_vm13 = vcmp.eq.f32.partialorder %v12730_v22, %v12738_v36 }
0x23b1   :  { %v4876_v31 = vsel %vm4875_vm13, %v12232_v39, 128 }
0x23b2   :  { %v4877_v0 = vsel %vm234_vm1, %v4876_v31, 2147483647  ;;  %v4971_v31 = vld [vmem:[%s13342_s7] sm:$0x7] }
0x23b3   :  { %v4879_v19 = vshra.s32 %v4877_v0, 16  ;;  %v4878_v11 = vand.u32 65535, %v4877_v0  ;;  %v4976_v0 = vrot.slane %v4971_v31, %v11623_v51 }
0x23b5   :  { %v4881_v61 = vcvt.s32.f32 %v4879_v19  ;;  %v4880_v14 = vcvt.s32.f32 %v4878_v11  ;;  %v4980_v19 = vrot.slane %v4971_v31, %v11628_v55 }
0x23b7   :  { %4882 = vmin.xlane.f32.xlu0 %v4881_v61  ;;  %v5057_v54 = vadd.f32 %v12709_v24, %v4980_v19 }
0x23bb   :  { %4232 = vadd.xlane.f32.xlu0 %v4231_v4 }
0x2444   :  { %v4883_v9 = vpop.xlane.xlu0 %4882 }
0x2445   :  { %vm4884_vm14 = vcmp.eq.f32.partialorder %v4881_v61, %v4883_v9  ;;  %v4889_v3 = vcvt.f32.s32 %v4883_v9  ;;  %v5055_v61 = vadd.f32 %v12707_v28, %v4976_v0 }
0x2446   :  { %v4885_v30 = vsel %vm4884_vm14, %v4880_v14, inf }
0x2447   :  { %4886 = vmin.xlane.f32.xlu1 %v4885_v30  ;;  %v4890_v10 = vshll.u32 %v4889_v3, 16 }
0x2448   :  { %v4233_v40 = vpop.xlane.xlu0 %4232 }
0x2449   :  { %v4234_v15 = vadd.f32 %v4233_v40, %v4227_v32  ;;  %v4984_v40 = vrot.slane %v4971_v31, %v11630_v56 }
0x244b   :  { %10947 = vrcp.f32 %v4234_v15  ;;  %v5126_v28 = vadd.f32 %v12734_v52, %v4984_v40  ;;  %v5329_v40 = vld [vmem:[#allocation19 + $0xa0] sm:$0xff] }
0x2455   :  { %v10948_v2 = vpop.eup %10947 }
0x2456   :  { %10738 = vpush %v10948_v2 }
0x2487   :  { %s10739_s2 = spop %10738 }
0x2488   :  { %4270 = sst [smem:[#allocation21 + $0x2]] %s10739_s2 }
0x24d4   :  { %v4887_v58 = vpop.xlane.xlu1 %4886 }
0x24d5   :  { %v4888_v62 = vcvt.f32.s32 %v4887_v58 }
0x24d7   :  { %v4891_v1 = vadd.s32 %v4890_v10, %v4888_v62 }
0x24d9   :  { %v4892_v47 = vrot.slane %v4891_v1, 4 }
0x24db   :  { %vm4893_vm15 = vcmp.lt.s32.totalorder %v4891_v1, %v4892_v47 }
0x24dc   :  { %v4894_v21 = vsel %vm4893_vm15, %v4891_v1, %v4892_v47 }
0x24dd   :  { %v4895_v49 = vrot.slane %v4894_v21, 2 }
0x24df   :  { %vm4896_vm2 = vcmp.lt.s32.totalorder %v4894_v21, %v4895_v49 }
0x24e0   :  { %v4897_v33 = vsel %vm4896_vm2, %v4894_v21, %v4895_v49 }
0x24e1   :  { %v4898_v50 = vrot.slane %v4897_v33, 1 }
0x24e3   :  { %vm4899_vm3 = vcmp.lt.s32.totalorder %v4897_v33, %v4898_v50 }
0x24e4   :  { %v4900_v60 = vsel %vm4899_vm3, %v4897_v33, %v4898_v50 }
0x24e5   :  { %10740 = vpush %v4900_v60 }
0x24e6   :  { %10742 = vpush %v12738_v36 }
0x2516   :  { %s10741_s30 = spop %10740 }
0x2517   :  { %s10743_s3 = spop %10742 }
0x2518   :  { %p4903_p6 = scmp.gt.f32.partialorder %s10743_s3, -1e+30 }
0x251a   :  { %s13357_s30 = smov (!%p4903_p6, %s10741_s30), 0 }
0x251b   :  { %4908 = sst [smem:[#allocation20 + $0x3]] %s13357_s30  ;;  %s4914_s10 = sshra.s32 %s13357_s30, 3 }
0x251c   :  { %s7607_s18 = smul.u32 24, %s4914_s10  ;;  %s4917_s11 = sand.u32 7, %s13357_s30 }
0x251e   :  { %s4920_s22 = sadd.s32 %s7607_s18, %s4917_s11 }
0x251f   :  { %s4921_s25 = scalar_lea.vmem [#allocation4], %s4920_s22 }
0x2520   :  { %v4922_v17 = vld [vmem:[%s4921_s25] ss:$8 sm:$0x7] }
0x2521   :  { %v5129_v4 = vadd.f32 %v5055_v61, %v4922_v17  ;;  %v5137_v38 = vrot.slane %v4922_v17, 1  ;;  %v5147_v58 = vrot.slane %v4922_v17, 2  ;;  %v5326_v17 = vld [vmem:[#allocation19 + $0x88] sm:$0xff] }
0x2523   :  { %v7608_v11 = vmul.f32 -1.442695, %v5129_v4  ;;  %v5139_v23 = vadd.f32 %v5137_v38, %v5057_v54  ;;  %v5309_v4 = vld [vmem:[#allocation19] sm:$0xff]  ;;  %v5310_v54 = vld [vmem:[#allocation19 + $0x8] sm:$0xff] }
0x2525   :  { %10949 = vpow2.f32 %v7608_v11  ;;  %v7609_v9 = vmul.f32 -1.442695, %v5139_v23  ;;  %v5327_v11 = vld [vmem:[#allocation19 + $0x90] sm:$0xff]  ;;  %v5328_v23 = vld [vmem:[#allocation19 + $0x98] sm:$0xff] }
0x2527   :  { %10951 = vpow2.f32 %v7609_v9  ;;  %v12766_v9 = vpack.c.bf16 %v5310_v54, %v5309_v4  ;;  %v5319_v54 = vld [vmem:[#allocation19 + $0x50] sm:$0xff] }
0x252f   :  { %v10950_v14 = vpop.eup %10949 }
0x2530   :  { %v5133_v30 = vadd.f32 1.0, %v10950_v14  ;;  %v12768_v14 = vpack.c.bf16 %v5328_v23, %v5327_v11  ;;  %v5320_v11 = vld [vmem:[#allocation19 + $0x58] sm:$0xff]  ;;  %v5337_v23 = vld [vmem:[#allocation19 + $0xe0] sm:$0xff] }
0x2531   :  { %v10952_v32 = vpop.eup %10951 }
0x2532   :  { %10953 = vrcp.f32 %v5133_v30  ;;  %v5143_v15 = vadd.f32 1.0, %v10952_v32  ;;  %v5311_v30 = vld [vmem:[#allocation19 + $0x10] sm:$0xff]  ;;  %v5312_v32 = vld [vmem:[#allocation19 + $0x18] sm:$0xff] }
0x2534   :  { %10955 = vrcp.f32 %v5143_v15  ;;  %v5330_v15 = vld [vmem:[#allocation19 + $0xa8] sm:$0xff] }
0x253c   :  { %v10954_v2 = vpop.eup %10953 }
0x253d   :  { %v5146_v3 = vmul.f32 %v10954_v2, %v5126_v28  ;;  %v12772_v28 = vpack.c.bf16 %v5312_v32, %v5311_v30  ;;  %v12775_v2 = vpack.c.bf16 %v5330_v15, %v5329_v40  ;;  %v5338_v30 = vld [vmem:[#allocation19 + $0xe8] sm:$0xff]  ;;  %v12796_v32 = vpack.c.bf16 %v5320_v11, %v5319_v54  ;;  %v5321_v15 = vld [vmem:[#allocation19 + $0x60] sm:$0xff] }
0x253e   :  { %v10956_v24 = vpop.eup %10955  ;;  %v12799_v40 = vpack.c.bf16 %v5338_v30, %v5337_v23  ;;  %v5414_v54 = vld [vmem:[#allocation5 + $0x8] sm:$0xff]  ;;  %v5415_v11 = vld [vmem:[#allocation5 + $0x10] sm:$0xff]  ;;  %v5416_v30 = vld [vmem:[#allocation5 + $0x18] sm:$0xff] }
0x253f   :  { %v5149_v10 = vadd.f32 %v5147_v58, %v5146_v3  ;;  %v5151_v62 = vsub.f32 1.0, %v10956_v24  ;;  %v5153_v21 = vmul.f32 %v10956_v24, %v12590_v34  ;;  %v5325_v34 = vld [vmem:[#allocation19 + $0x80] sm:$0xff]  ;;  %v5314_v58 = vld [vmem:[#allocation19 + $0x28] sm:$0xff]  ;;  %v5332_v24 = vld [vmem:[#allocation19 + $0xb8] sm:$0xff] }
0x2540   :  { %v12764_v38 = vpack.c.bf16 %v5326_v17, %v5325_v34  ;;  %v5313_v3 = vld [vmem:[#allocation19 + $0x20] sm:$0xff]  ;;  %v5336_v34 = vld [vmem:[#allocation19 + $0xd8] sm:$0xff] }
0x2541   :  { %10957 = vtanh.f32 %v5149_v10  ;;  %v5331_v10 = vld [vmem:[#allocation19 + $0xb0] sm:$0xff] }
0x2542   :  { %10331 = vmatprep.subr.bf16.mxu0 %v12764_v38 }
0x254b   :  { %v10958_v1 = vpop.eup %10957 }
0x254c   :  { %v5152_v47 = vmul.f32 %v10958_v1, %v5151_v62  ;;  %v12778_v62 = vpack.c.bf16 %v5314_v58, %v5313_v3  ;;  %v12781_v1 = vpack.c.bf16 %v5332_v24, %v5331_v10  ;;  %v5322_v3 = vld [vmem:[#allocation19 + $0x68] sm:$0xff]  ;;  %v5339_v58 = vld [vmem:[#allocation19 + $0xf0] sm:$0xff]  ;;  %v5340_v10 = vld [vmem:[#allocation19 + $0xf8] sm:$0xff] }
0x254d   :  { %v12802_v24 = vpack.c.bf16 %v5322_v3, %v5321_v15  ;;  %v12820_v15 = vpack.c.bf16 %v5416_v30, %v5415_v11  ;;  %v5418_v3 = vld [vmem:[#allocation5 + $0x28] sm:$0xff]  ;;  %v4863_v11 = vmax.f32 %v12738_v36, -1e+30 }
0x254e   :  { %v12756_v49 = vadd.f32 %v5153_v21, %v5152_v47  ;;  %v5315_v47 = vld [vmem:[#allocation19 + $0x30] sm:$0xff]  ;;  %v5316_v21 = vld [vmem:[#allocation19 + $0x38] sm:$0xff] }
0x254f   :  { %v4868_v30 = vsub.f32 %v12730_v22, %v4863_v11  ;;  %v4864_v36 = vsub.f32 -1e+30, %v4863_v11 }
0x2550   :  { %9040 = vmatmul.mubr.f32.vlgmr.msra.gmra.mrb[44].mxu0 %v12756_v49 }
0x2551   :  { %10333 = vmatpush3.bf16.msra.mxu0 %v12766_v9  ;;  %v4865_v22 = vmul.f32 1.442695, %v4864_v36 }
0x2552   :  { %10335 = vmatprep.subr.bf16.mxu0 %v12768_v14 }
0x2555   :  { %10337 = vmatpush3.bf16.msra.mxu0 %v12772_v28 }
0x2556   :  { %10339 = vmatprep.subr.bf16.mxu0 %v12775_v2 }
0x2559   :  { %10341 = vmatpush3.bf16.msra.mxu0 %v12778_v62 }
0x255a   :  { %10343 = vmatprep.subr.bf16.mxu0 %v12781_v1 }
0x2623   :  { %v5221_v33 = vpop.f32.mrb[44].mxu0 }
0x2624   :  { %v9041_v50 = vpop.f32.mrb[45].mxu0  ;;  %v5225_v52 = vsel %vm2663_vm8, %v5221_v33, -inf }
0x2625   :  { %5226 = vmax.xlane.f32.xlu1 %v5225_v52  ;;  %v5334_v50 = vld [vmem:[#allocation19 + $0xc8] sm:$0xff]  ;;  %v12784_v52 = vpack.c.bf16 %v5316_v21, %v5315_v47  ;;  %v12805_v47 = vpack.c.bf16 %v5340_v10, %v5339_v58  ;;  %v5323_v21 = vld [vmem:[#allocation19 + $0x70] sm:$0xff] }
0x2626   :  { %v5419_v58 = vld [vmem:[#allocation5 + $0x30] sm:$0xff]  ;;  %v5420_v10 = vld [vmem:[#allocation5 + $0x38] sm:$0xff] }
0x2627   :  { %10345 = vmatpush3.bf16.msra.mxu0 %v12784_v52 }
0x26b2   :  { %v5227_v60 = vpop.xlane.xlu1 %5226 }
0x26b3   :  { %v5228_v31 = vsub.f32 %v5221_v33, %v5227_v60  ;;  %v5333_v33 = vld [vmem:[#allocation19 + $0xc0] sm:$0xff] }
0x26b4   :  { %v12787_v60 = vpack.c.bf16 %v5334_v50, %v5333_v33  ;;  %v5324_v33 = vld [vmem:[#allocation19 + $0x78] sm:$0xff] }
0x26b5   :  { %v5229_v0 = vmul.f32 1.442695, %v5228_v31  ;;  %v5317_v31 = vld [vmem:[#allocation19 + $0x40] sm:$0xff]  ;;  %v12808_v50 = vpack.c.bf16 %v5324_v33, %v5323_v21  ;;  %v12828_v21 = vpack.c.bf16 %v5420_v10, %v5419_v58 }
0x26b6   :  { %10347 = vmatprep.subr.bf16.mxu0 %v12787_v60 }
0x26b7   :  { %10959 = vpow2.f32 %v5229_v0  ;;  %v5318_v0 = vld [vmem:[#allocation19 + $0x48] sm:$0xff] }
0x26b8   :  { %v12790_v17 = vpack.c.bf16 %v5318_v0, %v5317_v31 }
0x26ba   :  { %10349 = vmatpush3.bf16.msra.mxu0 %v12790_v17 }
0x26c1   :  { %v12760_v19 = vpop.eup %10959 }
0x26c2   :  { %v5231_v61 = vsel %vm2663_vm8, %v12760_v19, 0.0 }
0x26c3   :  { %5232 = vadd.xlane.f32.xlu0 %v5231_v61  ;;  %v5335_v61 = vld [vmem:[#allocation19 + $0xd0] sm:$0xff] }
0x26c4   :  { %v12793_v4 = vpack.c.bf16 %v5336_v34, %v5335_v61  ;;  %v5413_v34 = vld [vmem:[#allocation5] sm:$0xff] }
0x26c5   :  { %v12817_v23 = vpack.c.bf16 %v5414_v54, %v5413_v34 }
0x26c6   :  { %10351 = vmatprep.subr.bf16.mxu0 %v12793_v4 }
0x26c7   :  { %10353 = vmatpush3.bf16.msra.mxu0 %v12796_v32 }
0x26c8   :  { %10355 = vmatprep.subr.bf16.mxu0 %v12799_v40 }
0x26cb   :  { %10357 = vmatpush3.bf16.msra.mxu0 %v12802_v24 }
0x26cc   :  { %10359 = vmatprep.subr.bf16.mxu0 %v12805_v47 }
0x26cf   :  { %10361 = vmatpush3.bf16.msra.mxu0 %v12808_v50 }
0x26d0   :  { %10387 = vmatprep.subr.bf16.mxu0 %v12629_v46  ;;  %v5417_v46 = vld [vmem:[#allocation5 + $0x20] sm:$0xff] }
0x2750   :  { %v5233_v31 = vpop.xlane.xlu0 %5232 }
0x2751   :  { %10961 = vrcp.f32 %v5233_v31 }
0x275b   :  { %v10962_v0 = vpop.eup %10961 }
0x275c   :  { %v5235_v61 = vmul.f32 %v10962_v0, %v12760_v19  ;;  %v12824_v19 = vpack.c.bf16 %v5418_v3, %v5417_v46  ;;  %v4869_v46 = vmul.f32 1.442695, %v4868_v30 }
0x275e   :  { %9045 = vmatmul.mubr.msk.f32.vlgmr.msra.gmra.mrb[44].mxu1 %vm2675_vm9, %v5235_v61 }
0x275f   :  { %9079 = vmatprep.mubr.msk.f32.mxu1 %vm11262_vm0, %v11261_v8  ;;  %10364 = vmatpush3.bf16.msra.mxu1 %v12817_v23 }
0x2760   :  { %10365 = vmatprep.subr.bf16.mxu1 %v11260_v6 }
0x2763   :  { %10367 = vmatpush3.bf16.msra.mxu1 %v12820_v15 }
0x2764   :  { %10368 = vmatprep.subr.bf16.mxu1 %v11260_v6 }
0x2767   :  { %10370 = vmatpush3.bf16.msra.mxu1 %v12824_v19 }
0x2768   :  { %10371 = vmatprep.subr.bf16.mxu1 %v11260_v6 }
0x276b   :  { %10373 = vmatpush3.bf16.msra.mxu1 %v12828_v21 }
0x276c   :  { %10374 = vmatprep.subr.bf16.mxu1 %v11260_v6 }
0x2831   :  { %v5305_v33 = vpop.f32.mrb[44].mxu1 }
0x2832   :  { %v9046_v31 = vpop.f32.mrb[45].mxu1  ;;  %5406 = vmatprep.mubr.f32.mxu0 %v5305_v33 }
0x2833   :  { %5407 = vmatmul.mubr.f32.vlgmr.msra.gmra.mrb[46].mxu0 %v12756_v49 }
0x2834   :  { %10389 = vmatpush1.bf16.msra.mxu0 %v12632_v57  ;;  %5692 = vmatprep.mubr.f32.mxu0 %v11261_v8  ;;  %v12854_v57 = vld [vmem:[#allocation2] sm:$0xff] }
0x2835   :  { %10391 = vmatprep.subr.bf16.mxu0 %v12634_v42  ;;  %v5421_v42 = vld [vmem:[#allocation5 + $0x40] sm:$0xff] }
0x2838   :  { %10393 = vmatpush1.bf16.msra.mxu0 %v12638_v43  ;;  %v5422_v43 = vld [vmem:[#allocation5 + $0x48] sm:$0xff] }
0x2839   :  { %10395 = vmatprep.subr.bf16.mxu0 %v12642_v26  ;;  %v12858_v26 = vpack.c.bf16 %v5422_v43, %v5421_v42 }
0x283b   :  { %10376 = vmatpush3.bf16.msra.mxu1 %v12858_v26 }
0x283c   :  { %10397 = vmatpush1.bf16.msra.mxu0 %v12645_v7  ;;  %10377 = vmatprep.subr.bf16.mxu1 %v11260_v6  ;;  %v5423_v7 = vld [vmem:[#allocation5 + $0x50] sm:$0xff] }
0x283d   :  { %10399 = vmatprep.subr.bf16.mxu0 %v12648_v35  ;;  %v5424_v35 = vld [vmem:[#allocation5 + $0x58] sm:$0xff] }
0x2840   :  { %10401 = vmatpush1.bf16.msra.mxu0 %v12651_v18  ;;  %v12862_v18 = vpack.c.bf16 %v5424_v35, %v5423_v7 }
0x2841   :  { %10403 = vmatprep.subr.bf16.mxu0 %v12654_v5  ;;  %v5425_v5 = vld [vmem:[#allocation5 + $0x60] sm:$0xff] }
0x2842   :  { %10379 = vmatpush3.bf16.msra.mxu1 %v12862_v18 }
0x2843   :  { %10380 = vmatprep.subr.bf16.mxu1 %v11260_v6 }
0x2844   :  { %10405 = vmatpush1.bf16.msra.mxu0 %v12657_v12  ;;  %v5426_v12 = vld [vmem:[#allocation5 + $0x68] sm:$0xff] }
0x2845   :  { %10407 = vmatprep.subr.bf16.mxu0 %v12660_v44  ;;  %v12866_v44 = vpack.c.bf16 %v5426_v12, %v5425_v5 }
0x2847   :  { %10382 = vmatpush3.bf16.msra.mxu1 %v12866_v44 }
0x2848   :  { %10409 = vmatpush1.bf16.msra.mxu0 %v12663_v16  ;;  %v5427_v16 = vld [vmem:[#allocation5 + $0x70] sm:$0xff]  ;;  %10383 = vmatprep.subr.bf16.mxu1 %v11260_v6 }
0x2849   :  { %10411 = vmatprep.subr.bf16.mxu0 %v12666_v29  ;;  %v5428_v29 = vld [vmem:[#allocation5 + $0x78] sm:$0xff] }
0x284c   :  { %10413 = vmatpush1.bf16.msra.mxu0 %v12669_v41  ;;  %v12869_v41 = vpack.c.bf16 %v5428_v29, %v5427_v16 }
0x284d   :  { %10415 = vmatprep.subr.bf16.mxu0 %v12672_v53 }
0x284e   :  { %10385 = vmatpush3.bf16.msra.mxu1 %v12869_v41 }
0x284f   :  { %10418 = vmatprep.subr.bf16.mxu1 %v11260_v6 }
0x2850   :  { %10417 = vmatpush1.bf16.msra.mxu0 %v12675_v59  ;;  %v5341_v59 = vld [vmem:[%s13344_s9] sm:$0x1] }
0x2851   :  { %9117 = vmatprep.subr.mxu0 %v11261_v8 }
0x2853   :  { %5693 = vmatmul.mubr.f32.vlgmr.msra.gmra.mrb[48].mxu0 %v12756_v49 }
0x2854   :  { %9119 = vmatprep.mubr.msk.f32.mxu0 %vm11262_vm0, %v11261_v8 }
0x2859   :  { %9118 = vmatpush3.xpose.msra.mxu0 %v12854_v57 }
0x285a   :  { %10443 = vmatprep.subr.bf16.mxu0 %v12764_v38 }
0x2906   :  { %v8128_v53 = vpop.f32.mrb[46].mxu0 }
0x2907   :  { %v8129_v38 = vpop.f32.mrb[47].mxu0 }
0x2908   :  { %v8130_v0 = vadd.f32 %v8129_v38, %v8128_v53 }
0x290a   :  { %v5409_v61 = vadd.f32 %v8130_v0, %v5341_v59 }
0x290c   :  { %10963 = vtanh.f32 %v5409_v61 }
0x290d   :  { %10965 = vpow2.f32 %v4869_v46 }
0x290e   :  { %10967 = vpow2.f32 %v4865_v22 }
0x2916   :  { %v10964_v34 = vpop.eup %10963 }
0x2917   :  { %9080 = vmatmul.mubr.f32.vlgmr.msra.gmra.mrb[46].mxu1 %v10964_v34  ;;  %v10966_v42 = vpop.eup %10965 }
0x2918   :  { %10420 = vmatpush3.bf16.msra.mxu1 %v12687_v20  ;;  %9114 = vmatprep.mubr.msk.f32.mxu1 %vm11262_vm0, %v11261_v8  ;;  %v4871_v43 = vsel %vm234_vm1, %v10966_v42, 0.0  ;;  %v10968_v35 = vpop.eup %10967 }
0x2919   :  { %10421 = vmatprep.subr.bf16.mxu1 %v11260_v6  ;;  %v4867_v29 = vmul.f32 0.0, %v10968_v35 }
0x291c   :  { %10423 = vmatpush3.bf16.msra.mxu1 %v12690_v63  ;;  %v5429_v63 = vld [vmem:[#allocation6] sm:$0x1] }
0x291d   :  { %10424 = vmatprep.subr.bf16.mxu1 %v11260_v6 }
0x2920   :  { %10426 = vmatpush3.bf16.msra.mxu1 %v12696_v48 }
0x2921   :  { %10427 = vmatprep.subr.bf16.mxu1 %v11260_v6 }
0x2924   :  { %10429 = vmatpush3.bf16.msra.mxu1 %v12700_v27 }
0x2925   :  { %10430 = vmatprep.subr.bf16.mxu1 %v11260_v6 }
0x2926   :  { %v12887_v54 = vpop.f32.mrb[48].mxu0 }
0x2927   :  { %v12889_v20 = vpop.f32.mrb[49].mxu0 }
0x2928   :  { %10432 = vmatpush3.bf16.msra.mxu1 %v12704_v45 }
0x2929   :  { %10433 = vmatprep.subr.bf16.mxu1 %v11260_v6 }
0x292c   :  { %10435 = vmatpush3.bf16.msra.mxu1 %v12712_v13 }
0x292d   :  { %10436 = vmatprep.subr.bf16.mxu1 %v11260_v6 }
0x2930   :  { %10438 = vmatpush3.bf16.msra.mxu1 %v12716_v37 }
0x2931   :  { %10439 = vmatprep.subr.bf16.mxu1 %v11260_v6 }
0x2934   :  { %10441 = vmatpush3.bf16.msra.mxu1 %v12720_v25 }
0x2935   :  { %9122 = vmatprep.subr.mxu1 %v11261_v8 }
0x2937   :  { %9115 = vmatmul.mubr.f32.vlgmr.msra.gmra.mrb[48].mxu1 %v12756_v49 }
0x2938   :  { %9123 = vmatpush3.msra.mxu1 %v12854_v57  ;;  %9124 = vmatprep.mubr.msk.f32.mxu1 %vm11262_vm0, %v11261_v8 }
0x2939   :  { %10474 = vmatprep.subr.bf16.mxu1 %v11260_v6 }
0x29ea   :  { %v5496_v48 = vpop.f32.mrb[46].mxu1 }
0x29eb   :  { %v12904_v27 = vadd.f32 %v5496_v48, %v5429_v63  ;;  %v9081_v45 = vpop.f32.mrb[47].mxu1 }
0x29ed   :  { %v5500_v13 = vsel %vm234_vm1, %v12904_v27, -inf }
0x29ee   :  { %5501 = vmax.xlane.f32.xlu1 %v5500_v13 }
0x2a0a   :  { %v12908_v37 = vpop.f32.mrb[48].mxu1 }
0x2a0b   :  { %v9116_v25 = vpop.f32.mrb[49].mxu1 }
0x2a7b   :  { %v12912_v3 = vpop.xlane.xlu1 %5501 }
0x2a7c   :  { %vm5515_vm4 = vcmp.eq.f32.partialorder %v12904_v27, %v12912_v3 }
0x2a7d   :  { %v5516_v58 = vsel %vm5515_vm4, %v12232_v39, 128 }
0x2a7e   :  { %v5517_v10 = vsel %vm234_vm1, %v5516_v58, 2147483647  ;;  %v5611_v58 = vld [vmem:[%s13342_s7] sm:$0x7] }
0x2a7f   :  { %v5519_v33 = vshra.s32 %v5517_v10, 16  ;;  %v5518_v7 = vand.u32 65535, %v5517_v10  ;;  %v5616_v10 = vrot.slane %v5611_v58, %v11623_v51 }
0x2a81   :  { %v5521_v31 = vcvt.s32.f32 %v5519_v33  ;;  %v5520_v12 = vcvt.s32.f32 %v5518_v7  ;;  %v5620_v33 = vrot.slane %v5611_v58, %v11628_v55 }
0x2a83   :  { %5522 = vmin.xlane.f32.xlu0 %v5521_v31  ;;  %v5697_v22 = vadd.f32 %v12889_v20, %v5620_v33  ;;  %v6222_v33 = vld [vmem:[#allocation17 + $0x98] sm:$0xff] }
0x2a87   :  { %4872 = vadd.xlane.f32.xlu0 %v4871_v43 }
0x2b10   :  { %v5523_v5 = vpop.xlane.xlu0 %5522 }
0x2b11   :  { %vm5524_vm5 = vcmp.eq.f32.partialorder %v5521_v31, %v5523_v5  ;;  %v5529_v0 = vcvt.f32.s32 %v5523_v5  ;;  %v5695_v31 = vadd.f32 %v12887_v54, %v5616_v10  ;;  %v6218_v10 = vld [vmem:[#allocation17 + $0x78] sm:$0xff] }
0x2b12   :  { %v5525_v16 = vsel %vm5524_vm5, %v5520_v12, inf }
0x2b13   :  { %5526 = vmin.xlane.f32.xlu1 %v5525_v16  ;;  %v5530_v34 = vshll.u32 %v5529_v0, 16 }
0x2b14   :  { %v4873_v53 = vpop.xlane.xlu0 %4872 }
0x2b15   :  { %v4874_v59 = vadd.f32 %v4873_v53, %v4867_v29  ;;  %v5624_v53 = vrot.slane %v5611_v58, %v11630_v56  ;;  %v6215_v58 = vld [vmem:[#allocation17 + $0x60] sm:$0xff] }
0x2b17   :  { %10969 = vrcp.f32 %v4874_v59  ;;  %v5766_v54 = vadd.f32 %v12908_v37, %v5624_v53  ;;  %v6216_v37 = vld [vmem:[#allocation17 + $0x68] sm:$0xff]  ;;  %v6234_v53 = vld [vmem:[#allocation17 + $0xf8] sm:$0xff] }
0x2b21   :  { %v10970_v38 = vpop.eup %10969 }
0x2b22   :  { %10744 = vpush %v10970_v38 }
0x2b53   :  { %s10745_s8 = spop %10744 }
0x2b54   :  { %4910 = sst [smem:[#allocation21 + $0x3]] %s10745_s8 }
0x2ba0   :  { %v5527_v61 = vpop.xlane.xlu1 %5526 }
0x2ba1   :  { %v5528_v63 = vcvt.f32.s32 %v5527_v61 }
0x2ba3   :  { %v5531_v48 = vadd.s32 %v5530_v34, %v5528_v63 }
0x2ba5   :  { %v5532_v45 = vrot.slane %v5531_v48, 4 }
0x2ba7   :  { %vm5533_vm6 = vcmp.lt.s32.totalorder %v5531_v48, %v5532_v45 }
0x2ba8   :  { %v5534_v13 = vsel %vm5533_vm6, %v5531_v48, %v5532_v45 }
0x2ba9   :  { %v5535_v25 = vrot.slane %v5534_v13, 2 }
0x2bab   :  { %vm5536_vm7 = vcmp.lt.s32.totalorder %v5534_v13, %v5535_v25 }
0x2bac   :  { %v5537_v11 = vsel %vm5536_vm7, %v5534_v13, %v5535_v25 }
0x2bad   :  { %v5538_v30 = vrot.slane %v5537_v11, 1 }
0x2baf   :  { %vm5539_vm10 = vcmp.lt.s32.totalorder %v5537_v11, %v5538_v30 }
0x2bb0   :  { %v5540_v46 = vsel %vm5539_vm10, %v5537_v11, %v5538_v30  ;;  %v6219_v11 = vld [vmem:[#allocation17 + $0x80] sm:$0xff] }
0x2bb1   :  { %10746 = vpush %v5540_v46  ;;  %v12982_v46 = vpack.c.bf16 %v6219_v11, %v6216_v37  ;;  %v6223_v11 = vld [vmem:[#allocation17 + $0xa0] sm:$0xff] }
0x2bb2   :  { %10748 = vpush %v12912_v3 }
0x2be2   :  { %s10747_s0 = spop %10746 }
0x2be3   :  { %s10749_s29 = spop %10748 }
0x2be4   :  { %p5543_p7 = scmp.gt.f32.partialorder %s10749_s29, -1e+30 }
0x2be6   :  { %s13359_s0 = smov (!%p5543_p7, %s10747_s0), 0 }
0x2be7   :  { %5548 = sst [smem:[#allocation20 + $0x4]] %s13359_s0  ;;  %s5554_s28 = sshra.s32 %s13359_s0, 3 }
0x2be8   :  { %s7612_s27 = smul.u32 24, %s5554_s28  ;;  %s5557_s15 = sand.u32 7, %s13359_s0 }
0x2bea   :  { %s5560_s12 = sadd.s32 %s7612_s27, %s5557_s15 }
0x2beb   :  { %s5561_s16 = scalar_lea.vmem [#allocation4], %s5560_s12 }
0x2bec   :  { %v5562_v42 = vld [vmem:[%s5561_s16] ss:$8 sm:$0x7] }
0x2bed   :  { %v5769_v43 = vadd.f32 %v5695_v31, %v5562_v42  ;;  %v5777_v36 = vrot.slane %v5562_v42, 1  ;;  %v5787_v61 = vrot.slane %v5562_v42, 2  ;;  %v6225_v31 = vld [vmem:[#allocation17 + $0xb0] sm:$0xff]  ;;  %v12985_v42 = vpack.c.bf16 %v6218_v10, %v6215_v58  ;;  %v6226_v58 = vld [vmem:[#allocation17 + $0xb8] sm:$0xff] }
0x2bee   :  { %v13040_v10 = vpack.c.bf16 %v6226_v58, %v6223_v11 }
0x2bef   :  { %v7613_v7 = vmul.f32 -1.442695, %v5769_v43  ;;  %v5779_v35 = vadd.f32 %v5777_v36, %v5697_v22  ;;  %v12988_v43 = vpack.c.bf16 %v6225_v31, %v6222_v33  ;;  %v6221_v36 = vld [vmem:[#allocation17 + $0x90] sm:$0xff]  ;;  %v6224_v22 = vld [vmem:[#allocation17 + $0xa8] sm:$0xff] }
0x2bf0   :  { %v6229_v33 = vld [vmem:[#allocation17 + $0xd0] sm:$0xff]  ;;  %v6232_v31 = vld [vmem:[#allocation17 + $0xe8] sm:$0xff] }
0x2bf1   :  { %10971 = vpow2.f32 %v7613_v7  ;;  %v7614_v5 = vmul.f32 -1.442695, %v5779_v35  ;;  %v6228_v7 = vld [vmem:[#allocation17 + $0xc8] sm:$0xff]  ;;  %v6231_v35 = vld [vmem:[#allocation17 + $0xe0] sm:$0xff] }
0x2bf3   :  { %10973 = vpow2.f32 %v7614_v5  ;;  %v12991_v5 = vpack.c.bf16 %v6224_v22, %v6221_v36  ;;  %v13044_v36 = vpack.c.bf16 %v6232_v31, %v6229_v33  ;;  %v6235_v22 = vld [vmem:[#allocation17 + $0x100] sm:$0xff] }
0x2bfb   :  { %v10972_v12 = vpop.eup %10971 }
0x2bfc   :  { %v5773_v16 = vadd.f32 1.0, %v10972_v12  ;;  %v12994_v12 = vpack.c.bf16 %v6231_v35, %v6228_v7  ;;  %v6238_v7 = vld [vmem:[#allocation17 + $0x118] sm:$0xff] }
0x2bfd   :  { %v10974_v29 = vpop.eup %10973 }
0x2bfe   :  { %10975 = vrcp.f32 %v5773_v16  ;;  %v5783_v59 = vadd.f32 1.0, %v10974_v29  ;;  %v6227_v16 = vld [vmem:[#allocation17 + $0xc0] sm:$0xff]  ;;  %v6230_v29 = vld [vmem:[#allocation17 + $0xd8] sm:$0xff] }
0x2c00   :  { %10977 = vrcp.f32 %v5783_v59  ;;  %v6237_v59 = vld [vmem:[#allocation17 + $0x110] sm:$0xff] }
0x2c08   :  { %v10976_v38 = vpop.eup %10975 }
0x2c09   :  { %v5786_v0 = vmul.f32 %v10976_v38, %v5766_v54  ;;  %v12997_v54 = vpack.c.bf16 %v6230_v29, %v6227_v16  ;;  %v13000_v38 = vpack.c.bf16 %v6237_v59, %v6234_v53  ;;  %v13052_v29 = vpack.c.bf16 %v6238_v7, %v6235_v22  ;;  %v6241_v53 = vld [vmem:[#allocation17 + $0x130] sm:$0xff]  ;;  %v6244_v59 = vld [vmem:[#allocation17 + $0x148] sm:$0xff] }
0x2c0a   :  { %v10978_v20 = vpop.eup %10977 }
0x2c0b   :  { %v5789_v34 = vadd.f32 %v5787_v61, %v5786_v0  ;;  %v5791_v63 = vsub.f32 1.0, %v10978_v20  ;;  %v5793_v13 = vmul.f32 %v10978_v20, %v12756_v49  ;;  %v6233_v0 = vld [vmem:[#allocation17 + $0xf0] sm:$0xff]  ;;  %v6236_v61 = vld [vmem:[#allocation17 + $0x108] sm:$0xff]  ;;  %v6243_v20 = vld [vmem:[#allocation17 + $0x140] sm:$0xff] }
0x2c0d   :  { %10979 = vtanh.f32 %v5789_v34  ;;  %v6240_v34 = vld [vmem:[#allocation17 + $0x128] sm:$0xff] }
0x2c17   :  { %v10980_v48 = vpop.eup %10979 }
0x2c18   :  { %v5792_v45 = vmul.f32 %v10980_v48, %v5791_v63  ;;  %v13003_v63 = vpack.c.bf16 %v6236_v61, %v6233_v0  ;;  %v13006_v48 = vpack.c.bf16 %v6243_v20, %v6240_v34  ;;  %v13056_v0 = vpack.c.bf16 %v6244_v59, %v6241_v53  ;;  %v6247_v61 = vld [vmem:[#allocation17 + $0x160] sm:$0xff]  ;;  %v6250_v34 = vld [vmem:[#allocation17 + $0x178] sm:$0xff] }
0x2c19   :  { %v13060_v20 = vpack.c.bf16 %v6250_v34, %v6247_v61 }
0x2c1a   :  { %v12930_v25 = vadd.f32 %v5793_v13, %v5792_v45  ;;  %v6239_v45 = vld [vmem:[#allocation17 + $0x120] sm:$0xff]  ;;  %v6242_v13 = vld [vmem:[#allocation17 + $0x138] sm:$0xff] }
0x2c1c   :  { %9120 = vmatmul.mubr.f32.vlgmr.msra.gmra.mrb[50].mxu0 %v12930_v25 }
0x2c1d   :  { %10445 = vmatpush3.bf16.msra.mxu0 %v12766_v9 }
0x2c1e   :  { %10447 = vmatprep.subr.bf16.mxu0 %v12768_v14 }
0x2c21   :  { %10449 = vmatpush3.bf16.msra.mxu0 %v12772_v28 }
0x2c22   :  { %10451 = vmatprep.subr.bf16.mxu0 %v12775_v2 }
0x2c25   :  { %10453 = vmatpush3.bf16.msra.mxu0 %v12778_v62 }
0x2c26   :  { %10455 = vmatprep.subr.bf16.mxu0 %v12781_v1 }
0x2c29   :  { %10457 = vmatpush3.bf16.msra.mxu0 %v12784_v52 }
0x2c2a   :  { %10459 = vmatprep.subr.bf16.mxu0 %v12787_v60 }
0x2c2d   :  { %10461 = vmatpush3.bf16.msra.mxu0 %v12790_v17 }
0x2c2e   :  { %10463 = vmatprep.subr.bf16.mxu0 %v12793_v4 }
0x2c31   :  { %10465 = vmatpush3.bf16.msra.mxu0 %v12796_v32  ;;  %v6204_v32 = vld [vmem:[#allocation17 + $0x8] sm:$0xff] }
0x2c32   :  { %10467 = vmatprep.subr.bf16.mxu0 %v12799_v40  ;;  %v6207_v40 = vld [vmem:[#allocation17 + $0x20] sm:$0xff] }
0x2c35   :  { %10469 = vmatpush3.bf16.msra.mxu0 %v12802_v24  ;;  %v12969_v24 = vpack.c.bf16 %v6207_v40, %v6204_v32  ;;  %v6205_v40 = vld [vmem:[#allocation17 + $0x10] sm:$0xff] }
0x2c36   :  { %10471 = vmatprep.subr.bf16.mxu0 %v12805_v47  ;;  %v6203_v47 = vld [vmem:[#allocation17] sm:$0xff] }
0x2c39   :  { %10473 = vmatpush3.bf16.msra.mxu0 %v12808_v50  ;;  %v6206_v50 = vld [vmem:[#allocation17 + $0x18] sm:$0xff] }
0x2c3a   :  { %10499 = vmatprep.subr.bf16.mxu0 %v12969_v24 }
0x2cef   :  { %v5861_v49 = vpop.f32.mrb[50].mxu0 }
0x2cf0   :  { %v9121_v9 = vpop.f32.mrb[51].mxu0  ;;  %v5865_v14 = vsel %vm2663_vm8, %v5861_v49, -inf }
0x2cf1   :  { %5866 = vmax.xlane.f32.xlu1 %v5865_v14  ;;  %v6249_v9 = vld [vmem:[#allocation17 + $0x170] sm:$0xff]  ;;  %v13009_v14 = vpack.c.bf16 %v6242_v13, %v6239_v45  ;;  %v6069_v45 = vld [vmem:[#allocation6] sm:$0x1] }
0x2d7e   :  { %v5867_v28 = vpop.xlane.xlu1 %5866 }
0x2d7f   :  { %v5868_v2 = vsub.f32 %v5861_v49, %v5867_v28  ;;  %v6246_v49 = vld [vmem:[#allocation17 + $0x158] sm:$0xff] }
0x2d80   :  { %v13012_v28 = vpack.c.bf16 %v6249_v9, %v6246_v49 }
0x2d81   :  { %v5869_v62 = vmul.f32 1.442695, %v5868_v2  ;;  %v6245_v2 = vld [vmem:[#allocation17 + $0x150] sm:$0xff] }
0x2d83   :  { %10981 = vpow2.f32 %v5869_v62  ;;  %v6248_v62 = vld [vmem:[#allocation17 + $0x168] sm:$0xff] }
0x2d8d   :  { %v10982_v1 = vpop.eup %10981 }
0x2d8e   :  { %v5871_v52 = vsel %vm2663_vm8, %v10982_v1, 0.0 }
0x2d8f   :  { %5872 = vadd.xlane.f32.xlu0 %v5871_v52 }
0x2e1c   :  { %v5873_v60 = vpop.xlane.xlu0 %5872 }
0x2e1d   :  { %10983 = vrcp.f32 %v5873_v60  ;;  %v5981_v60 = vld [vmem:[%s13344_s9] sm:$0x1] }
0x2e27   :  { %v10984_v17 = vpop.eup %10983 }
0x2e28   :  { %v5875_v4 = vmul.f32 %v10984_v17, %v10982_v1  ;;  %v13015_v1 = vpack.c.bf16 %v6248_v62, %v6245_v2 }
0x2e2a   :  { %9125 = vmatmul.mubr.msk.f32.vlgmr.msra.gmra.mrb[50].mxu1 %vm2675_vm9, %v5875_v4 }
0x2e2b   :  { %10476 = vmatpush3.bf16.msra.mxu1 %v12817_v23  ;;  %9159 = vmatprep.mubr.msk.f32.mxu1 %vm11262_vm0, %v11261_v8  ;;  %v6210_v23 = vld [vmem:[#allocation17 + $0x38] sm:$0xff] }
0x2e2c   :  { %10477 = vmatprep.subr.bf16.mxu1 %v11260_v6 }
0x2e2f   :  { %10479 = vmatpush3.bf16.msra.mxu1 %v12820_v15  ;;  %v6213_v15 = vld [vmem:[#allocation17 + $0x50] sm:$0xff] }
0x2e30   :  { %10480 = vmatprep.subr.bf16.mxu1 %v11260_v6 }
0x2e33   :  { %10482 = vmatpush3.bf16.msra.mxu1 %v12824_v19  ;;  %v12972_v19 = vpack.c.bf16 %v6206_v50, %v6203_v47  ;;  %v6208_v47 = vld [vmem:[#allocation17 + $0x28] sm:$0xff] }
0x2e34   :  { %10483 = vmatprep.subr.bf16.mxu1 %v11260_v6  ;;  %v13027_v50 = vpack.c.bf16 %v6208_v47, %v6205_v40 }
0x2e37   :  { %10485 = vmatpush3.bf16.msra.mxu1 %v12828_v21 }
0x2e38   :  { %10486 = vmatprep.subr.bf16.mxu1 %v11260_v6 }
0x2e3b   :  { %10488 = vmatpush3.bf16.msra.mxu1 %v12858_v26  ;;  %v12974_v26 = vpack.c.bf16 %v6213_v15, %v6210_v23  ;;  %v6211_v23 = vld [vmem:[#allocation17 + $0x40] sm:$0xff]  ;;  %v6214_v15 = vld [vmem:[#allocation17 + $0x58] sm:$0xff] }
0x2e3c   :  { %10489 = vmatprep.subr.bf16.mxu1 %v11260_v6 }
0x2e3f   :  { %10491 = vmatpush3.bf16.msra.mxu1 %v12862_v18  ;;  %v6209_v18 = vld [vmem:[#allocation17 + $0x30] sm:$0xff] }
0x2e40   :  { %10492 = vmatprep.subr.bf16.mxu1 %v11260_v6 }
0x2e43   :  { %10494 = vmatpush3.bf16.msra.mxu1 %v12866_v44  ;;  %v6212_v44 = vld [vmem:[#allocation17 + $0x48] sm:$0xff] }
0x2e44   :  { %10495 = vmatprep.subr.bf16.mxu1 %v11260_v6  ;;  %v12978_v30 = vpack.c.bf16 %v6212_v44, %v6209_v18  ;;  %v13030_v18 = vpack.c.bf16 %v6214_v15, %v6211_v23  ;;  %v6217_v44 = vld [vmem:[#allocation17 + $0x70] sm:$0xff] }
0x2e47   :  { %10497 = vmatpush3.bf16.msra.mxu1 %v12869_v41 }
0x2e48   :  { %10530 = vmatprep.subr.bf16.mxu1 %v11260_v6 }
0x2efd   :  { %v5945_v21 = vpop.f32.mrb[50].mxu1 }
0x2efe   :  { %v9126_v41 = vpop.f32.mrb[51].mxu1  ;;  %6046 = vmatprep.mubr.f32.mxu0 %v5945_v21 }
0x2eff   :  { %6047 = vmatmul.mubr.f32.vlgmr.msra.gmra.mrb[52].mxu0 %v12930_v25  ;;  %v6220_v41 = vld [vmem:[#allocation17 + $0x88] sm:$0xff] }
0x2f00   :  { %10501 = vmatpush1.bf16.msra.mxu0 %v12972_v19  ;;  %6332 = vmatprep.mubr.f32.mxu0 %v11261_v8  ;;  %v13036_v37 = vpack.c.bf16 %v6220_v41, %v6217_v44 }
0x2f01   :  { %10503 = vmatprep.subr.bf16.mxu0 %v12974_v26 }
0x2f04   :  { %10505 = vmatpush1.bf16.msra.mxu0 %v12978_v30 }
0x2f05   :  { %10507 = vmatprep.subr.bf16.mxu0 %v12982_v46 }
0x2f08   :  { %10509 = vmatpush1.bf16.msra.mxu0 %v12985_v42 }
0x2f09   :  { %10511 = vmatprep.subr.bf16.mxu0 %v12988_v43 }
0x2f0c   :  { %10513 = vmatpush1.bf16.msra.mxu0 %v12991_v5 }
0x2f0d   :  { %10515 = vmatprep.subr.bf16.mxu0 %v12994_v12 }
0x2f10   :  { %10517 = vmatpush1.bf16.msra.mxu0 %v12997_v54 }
0x2f11   :  { %10519 = vmatprep.subr.bf16.mxu0 %v13000_v38 }
0x2f14   :  { %10521 = vmatpush1.bf16.msra.mxu0 %v13003_v63 }
0x2f15   :  { %10523 = vmatprep.subr.bf16.mxu0 %v13006_v48 }
0x2f18   :  { %10525 = vmatpush1.bf16.msra.mxu0 %v13009_v14 }
0x2f19   :  { %10527 = vmatprep.subr.bf16.mxu0 %v13012_v28 }
0x2f1c   :  { %10529 = vmatpush1.bf16.msra.mxu0 %v13015_v1 }
0x2f1d   :  { %9197 = vmatprep.subr.mxu0 %v11261_v8 }
0x2f1f   :  { %6333 = vmatmul.mubr.f32.vlgmr.msra.gmra.mrb[54].mxu0 %v12930_v25 }
0x2f20   :  { %9199 = vmatprep.mubr.msk.f32.mxu0 %vm11262_vm0, %v11261_v8 }
0x2f25   :  { %9198 = vmatpush3.xpose.msra.mxu0 %v12854_v57 }
0x2fd2   :  { %v8201_v52 = vpop.f32.mrb[52].mxu0 }
0x2fd3   :  { %v8202_v17 = vpop.f32.mrb[53].mxu0 }
0x2fd4   :  { %v8203_v4 = vadd.f32 %v8202_v17, %v8201_v52 }
0x2fd6   :  { %v6049_v32 = vadd.f32 %v8203_v4, %v5981_v60  ;;  %v5503_v60 = vmax.f32 %v12912_v3, -1e+30 }
0x2fd8   :  { %10985 = vtanh.f32 %v6049_v32  ;;  %v5504_v3 = vsub.f32 -1e+30, %v5503_v60 }
0x2fe2   :  { %v10986_v21 = vpop.eup %10985 }
0x2fe3   :  { %9160 = vmatmul.mubr.f32.vlgmr.msra.gmra.mrb[52].mxu1 %v10986_v21 }
0x2fe4   :  { %10532 = vmatpush3.bf16.msra.mxu1 %v13027_v50  ;;  %9194 = vmatprep.mubr.msk.f32.mxu1 %vm11262_vm0, %v11261_v8 }
0x2fe5   :  { %10533 = vmatprep.subr.bf16.mxu1 %v11260_v6 }
0x2fe8   :  { %10535 = vmatpush3.bf16.msra.mxu1 %v13030_v18 }
0x2fe9   :  { %10536 = vmatprep.subr.bf16.mxu1 %v11260_v6 }
0x2fec   :  { %10538 = vmatpush3.bf16.msra.mxu1 %v13036_v37 }
0x2fed   :  { %10539 = vmatprep.subr.bf16.mxu1 %v11260_v6 }
0x2ff0   :  { %10541 = vmatpush3.bf16.msra.mxu1 %v13040_v10 }
0x2ff1   :  { %10542 = vmatprep.subr.bf16.mxu1 %v11260_v6 }
0x2ff2   :  { %v13047_v35 = vpop.f32.mrb[54].mxu0 }
0x2ff3   :  { %v13049_v16 = vpop.f32.mrb[55].mxu0 }
0x2ff4   :  { %10544 = vmatpush3.bf16.msra.mxu1 %v13044_v36 }
0x2ff5   :  { %10545 = vmatprep.subr.bf16.mxu1 %v11260_v6 }
0x2ff8   :  { %10547 = vmatpush3.bf16.msra.mxu1 %v13052_v29 }
0x2ff9   :  { %10548 = vmatprep.subr.bf16.mxu1 %v11260_v6 }
0x2ffc   :  { %10550 = vmatpush3.bf16.msra.mxu1 %v13056_v0 }
0x2ffd   :  { %10551 = vmatprep.subr.bf16.mxu1 %v11260_v6 }
0x3000   :  { %10553 = vmatpush3.bf16.msra.mxu1 %v13060_v20 }
0x3001   :  { %9202 = vmatprep.subr.mxu1 %v11261_v8 }
0x3003   :  { %9195 = vmatmul.mubr.f32.vlgmr.msra.gmra.mrb[54].mxu1 %v12930_v25 }
0x3004   :  { %9203 = vmatpush3.msra.mxu1 %v12854_v57  ;;  %9204 = vmatprep.mubr.msk.f32.mxu1 %vm11262_vm0, %v11261_v8  ;;  %v5508_v57 = vsub.f32 %v12904_v27, %v5503_v60  ;;  %v5505_v27 = vmul.f32 1.442695, %v5504_v3 }
0x3005   :  { %10586 = vmatprep.subr.bf16.mxu1 %v11260_v6 }
0x3006   :  { %v5509_v17 = vmul.f32 1.442695, %v5508_v57 }
0x3008   :  { %10987 = vpow2.f32 %v5509_v17 }
0x3009   :  { %10989 = vpow2.f32 %v5505_v27 }
0x3012   :  { %v10988_v15 = vpop.eup %10987 }
0x3013   :  { %v5511_v21 = vsel %vm234_vm1, %v10988_v15, 0.0  ;;  %v10990_v41 = vpop.eup %10989 }
0x3014   :  { %v5507_v31 = vmul.f32 0.0, %v10990_v41 }
0x30b6   :  { %v6136_v13 = vpop.f32.mrb[52].mxu1 }
0x30b7   :  { %v13070_v49 = vadd.f32 %v6136_v13, %v6069_v45  ;;  %v9161_v9 = vpop.f32.mrb[53].mxu1 }
0x30b9   :  { %v6140_v2 = vsel %vm234_vm1, %v13070_v49, -inf }
0x30ba   :  { %6141 = vmax.xlane.f32.xlu1 %v6140_v2 }
0x30d6   :  { %v13074_v62 = vpop.f32.mrb[54].mxu1 }
0x30d7   :  { %v9196_v52 = vpop.f32.mrb[55].mxu1 }
0x3147   :  { %v13078_v4 = vpop.xlane.xlu1 %6141 }
0x3148   :  { %vm6155_vm11 = vcmp.eq.f32.partialorder %v13070_v49, %v13078_v4 }
0x3149   :  { %v6156_v32 = vsel %vm6155_vm11, %v12232_v39, 128 }
0x314a   :  { %v6157_v40 = vsel %vm234_vm1, %v6156_v32, 2147483647  ;;  %v6251_v32 = vld [vmem:[%s13342_s7] sm:$0x7] }
0x314b   :  { %v6159_v47 = vshra.s32 %v6157_v40, 16  ;;  %v6158_v44 = vand.u32 65535, %v6157_v40  ;;  %v6256_v40 = vrot.slane %v6251_v32, %v11623_v51 }
0x314d   :  { %v6161_v23 = vcvt.s32.f32 %v6159_v47  ;;  %v6160_v58 = vcvt.s32.f32 %v6158_v44  ;;  %v6260_v47 = vrot.slane %v6251_v32, %v11628_v55 }
0x314f   :  { %6162 = vmin.xlane.f32.xlu0 %v6161_v23  ;;  %v6337_v27 = vadd.f32 %v13049_v16, %v6260_v47 }
0x3153   :  { %5512 = vadd.xlane.f32.xlu0 %v5511_v21 }
0x31dc   :  { %v6163_v11 = vpop.xlane.xlu0 %6162 }
0x31dd   :  { %vm6164_vm12 = vcmp.eq.f32.partialorder %v6161_v23, %v6163_v11  ;;  %v6169_v59 = vcvt.f32.s32 %v6163_v11  ;;  %v6335_v23 = vadd.f32 %v13047_v35, %v6256_v40 }
0x31de   :  { %v6165_v33 = vsel %vm6164_vm12, %v6160_v58, inf }
0x31df   :  { %6166 = vmin.xlane.f32.xlu1 %v6165_v33  ;;  %v6170_v34 = vshll.u32 %v6169_v59, 16 }
0x31e0   :  { %v5513_v22 = vpop.xlane.xlu0 %5512 }
0x31e1   :  { %v5514_v7 = vadd.f32 %v5513_v22, %v5507_v31  ;;  %v6264_v22 = vrot.slane %v6251_v32, %v11630_v56 }
0x31e3   :  { %10991 = vrcp.f32 %v5514_v7  ;;  %v6406_v35 = vadd.f32 %v13074_v62, %v6264_v22  ;;  %v6609_v22 = vld [vmem:[#allocation19 + $0xa0] sm:$0xff] }
0x31ed   :  { %v10992_v53 = vpop.eup %10991 }
0x31ee   :  { %10750 = vpush %v10992_v53 }
0x321f   :  { %s10751_s20 = spop %10750 }
0x3220   :  { %5550 = sst [smem:[#allocation21 + $0x4]] %s10751_s20 }
0x326c   :  { %v6167_v61 = vpop.xlane.xlu1 %6166 }
0x326d   :  { %v6168_v45 = vcvt.f32.s32 %v6167_v61 }
0x326f   :  { %v6171_v13 = vadd.s32 %v6170_v34, %v6168_v45 }
0x3271   :  { %v6172_v9 = vrot.slane %v6171_v13, 4 }
0x3273   :  { %vm6173_vm13 = vcmp.lt.s32.totalorder %v6171_v13, %v6172_v9 }
0x3274   :  { %v6174_v2 = vsel %vm6173_vm13, %v6171_v13, %v6172_v9 }
0x3275   :  { %v6175_v52 = vrot.slane %v6174_v2, 2 }
0x3277   :  { %vm6176_vm14 = vcmp.lt.s32.totalorder %v6174_v2, %v6175_v52 }
0x3278   :  { %v6177_v60 = vsel %vm6176_vm14, %v6174_v2, %v6175_v52 }
0x3279   :  { %v6178_v57 = vrot.slane %v6177_v60, 1 }
0x327b   :  { %vm6179_vm15 = vcmp.lt.s32.totalorder %v6177_v60, %v6178_v57 }
0x327c   :  { %v6180_v17 = vsel %vm6179_vm15, %v6177_v60, %v6178_v57 }
0x327d   :  { %10752 = vpush %v6180_v17 }
0x327e   :  { %10754 = vpush %v13078_v4 }
0x32ae   :  { %s10753_s21 = spop %10752 }
0x32af   :  { %s10755_s4 = spop %10754 }
0x32b0   :  { %p6183_p8 = scmp.gt.f32.partialorder %s10755_s4, -1e+30 }
0x32b2   :  { %s13361_s21 = smov (!%p6183_p8, %s10753_s21), 0 }
0x32b3   :  { %6188 = sst [smem:[#allocation20 + $0x5]] %s13361_s21  ;;  %s6194_s3 = sshra.s32 %s13361_s21, 3 }
0x32b4   :  { %s7617_s23 = smul.u32 24, %s6194_s3  ;;  %s6197_s24 = sand.u32 7, %s13361_s21 }
0x32b5   :  { %s11210_s21 = scalar_lea.hbm %s13349_s14, 16 }
0x32b6   :  { %s6200_s10 = sadd.s32 %s7617_s23, %s6197_s24  ;;  %p11211_p11 = scmp.ne.s32.totalorder %s13349_s14, %s11210_s21 }
0x32b7   :  { %s6201_s18 = scalar_lea.vmem [#allocation4], %s6200_s10  ;;  %p11214_p12 = scmp.lt.u32.totalorder %s11210_s21, %s13349_s14 }
0x32b8   :  { %v6202_v15 = vld [vmem:[%s6201_s18] ss:$8 sm:$0x7] }
0x32b9   :  { %v6409_v21 = vadd.f32 %v6335_v23, %v6202_v15  ;;  %v6417_v3 = vrot.slane %v6202_v15, 1  ;;  %v6427_v61 = vrot.slane %v6202_v15, 2  ;;  %v6606_v15 = vld [vmem:[#allocation19 + $0x88] sm:$0xff]  ;;  %p11216_p13 = pnand %p11214_p12, %p11211_p11 }
0x32bb   :  { %v7618_v44 = vmul.f32 -1.442695, %v6409_v21  ;;  %v6419_v41 = vadd.f32 %v6417_v3, %v6337_v27  ;;  %v6589_v21 = vld [vmem:[#allocation19] sm:$0xff]  ;;  %v6590_v27 = vld [vmem:[#allocation19 + $0x8] sm:$0xff] }
0x32bd   :  { %10993 = vpow2.f32 %v7618_v44  ;;  %v7619_v11 = vmul.f32 -1.442695, %v6419_v41  ;;  %v6607_v44 = vld [vmem:[#allocation19 + $0x90] sm:$0xff]  ;;  %v6608_v41 = vld [vmem:[#allocation19 + $0x98] sm:$0xff] }
0x32bf   :  { %10995 = vpow2.f32 %v7619_v11  ;;  %v13106_v11 = vpack.c.bf16 %v6590_v27, %v6589_v21  ;;  %v6599_v27 = vld [vmem:[#allocation19 + $0x50] sm:$0xff] }
0x32c7   :  { %v10994_v58 = vpop.eup %10993 }
0x32c8   :  { %v6413_v33 = vadd.f32 1.0, %v10994_v58  ;;  %v13108_v58 = vpack.c.bf16 %v6608_v41, %v6607_v44  ;;  %v6600_v44 = vld [vmem:[#allocation19 + $0x58] sm:$0xff]  ;;  %v6617_v41 = vld [vmem:[#allocation19 + $0xe0] sm:$0xff] }
0x32c9   :  { %v10996_v31 = vpop.eup %10995 }
0x32ca   :  { %10997 = vrcp.f32 %v6413_v33  ;;  %v6423_v7 = vadd.f32 1.0, %v10996_v31  ;;  %v6591_v33 = vld [vmem:[#allocation19 + $0x10] sm:$0xff]  ;;  %v6592_v31 = vld [vmem:[#allocation19 + $0x18] sm:$0xff] }
0x32cc   :  { %10999 = vrcp.f32 %v6423_v7  ;;  %v6610_v7 = vld [vmem:[#allocation19 + $0xa8] sm:$0xff] }
0x32d4   :  { %v10998_v53 = vpop.eup %10997 }
0x32d5   :  { %v6426_v59 = vmul.f32 %v10998_v53, %v6406_v35  ;;  %v13112_v35 = vpack.c.bf16 %v6592_v31, %v6591_v33  ;;  %v13115_v53 = vpack.c.bf16 %v6610_v7, %v6609_v22  ;;  %v6618_v33 = vld [vmem:[#allocation19 + $0xe8] sm:$0xff]  ;;  %v13136_v31 = vpack.c.bf16 %v6600_v44, %v6599_v27  ;;  %v6601_v7 = vld [vmem:[#allocation19 + $0x60] sm:$0xff] }
0x32d6   :  { %v11000_v16 = vpop.eup %10999  ;;  %v13139_v22 = vpack.c.bf16 %v6618_v33, %v6617_v41  ;;  %v6694_v27 = vld [vmem:[#allocation5 + $0x8] sm:$0xff]  ;;  %v6695_v44 = vld [vmem:[#allocation5 + $0x10] sm:$0xff]  ;;  %v6696_v33 = vld [vmem:[#allocation5 + $0x18] sm:$0xff] }
0x32d7   :  { %v6429_v34 = vadd.f32 %v6427_v61, %v6426_v59  ;;  %v6431_v45 = vsub.f32 1.0, %v11000_v16  ;;  %v6433_v2 = vmul.f32 %v11000_v16, %v12930_v25  ;;  %v6605_v25 = vld [vmem:[#allocation19 + $0x80] sm:$0xff]  ;;  %v6594_v61 = vld [vmem:[#allocation19 + $0x28] sm:$0xff]  ;;  %v6612_v16 = vld [vmem:[#allocation19 + $0xb8] sm:$0xff] }
0x32d8   :  { %v13104_v3 = vpack.c.bf16 %v6606_v15, %v6605_v25  ;;  %v6593_v59 = vld [vmem:[#allocation19 + $0x20] sm:$0xff]  ;;  %v6616_v25 = vld [vmem:[#allocation19 + $0xd8] sm:$0xff] }
0x32d9   :  { %11001 = vtanh.f32 %v6429_v34  ;;  %v6611_v34 = vld [vmem:[#allocation19 + $0xb0] sm:$0xff] }
0x32da   :  { %10555 = vmatprep.subr.bf16.mxu0 %v13104_v3 }
0x32e3   :  { %v11002_v13 = vpop.eup %11001 }
0x32e4   :  { %v6432_v9 = vmul.f32 %v11002_v13, %v6431_v45  ;;  %v13118_v45 = vpack.c.bf16 %v6594_v61, %v6593_v59  ;;  %v13121_v13 = vpack.c.bf16 %v6612_v16, %v6611_v34  ;;  %v6602_v59 = vld [vmem:[#allocation19 + $0x68] sm:$0xff]  ;;  %v6619_v61 = vld [vmem:[#allocation19 + $0xf0] sm:$0xff]  ;;  %v6620_v34 = vld [vmem:[#allocation19 + $0xf8] sm:$0xff] }
0x32e5   :  { %v13142_v16 = vpack.c.bf16 %v6602_v59, %v6601_v7  ;;  %v13160_v7 = vpack.c.bf16 %v6696_v33, %v6695_v44  ;;  %v6698_v59 = vld [vmem:[#allocation5 + $0x28] sm:$0xff]  ;;  %v6143_v44 = vmax.f32 %v13078_v4, -1e+30 }
0x32e6   :  { %v13096_v52 = vadd.f32 %v6433_v2, %v6432_v9  ;;  %v6595_v9 = vld [vmem:[#allocation19 + $0x30] sm:$0xff]  ;;  %v6596_v2 = vld [vmem:[#allocation19 + $0x38] sm:$0xff] }
0x32e7   :  { %v6148_v33 = vsub.f32 %v13070_v49, %v6143_v44  ;;  %v6144_v4 = vsub.f32 -1e+30, %v6143_v44 }
0x32e8   :  { %9200 = vmatmul.mubr.f32.vlgmr.msra.gmra.mrb[56].mxu0 %v13096_v52 }
0x32e9   :  { %10557 = vmatpush3.bf16.msra.mxu0 %v13106_v11  ;;  %v6145_v49 = vmul.f32 1.442695, %v6144_v4 }
0x32ea   :  { %10559 = vmatprep.subr.bf16.mxu0 %v13108_v58 }
0x32ed   :  { %10561 = vmatpush3.bf16.msra.mxu0 %v13112_v35 }
0x32ee   :  { %10563 = vmatprep.subr.bf16.mxu0 %v13115_v53 }
0x32f1   :  { %10565 = vmatpush3.bf16.msra.mxu0 %v13118_v45 }
0x32f2   :  { %10567 = vmatprep.subr.bf16.mxu0 %v13121_v13 }
0x33bb   :  { %v6501_v60 = vpop.f32.mrb[56].mxu0 }
0x33bc   :  { %v9201_v57 = vpop.f32.mrb[57].mxu0  ;;  %v6505_v62 = vsel %vm2663_vm8, %v6501_v60, -inf }
0x33bd   :  { %6506 = vmax.xlane.f32.xlu1 %v6505_v62  ;;  %v6614_v57 = vld [vmem:[#allocation19 + $0xc8] sm:$0xff]  ;;  %v13124_v62 = vpack.c.bf16 %v6596_v2, %v6595_v9  ;;  %v13145_v9 = vpack.c.bf16 %v6620_v34, %v6619_v61  ;;  %v6603_v2 = vld [vmem:[#allocation19 + $0x70] sm:$0xff] }
0x33be   :  { %v6699_v61 = vld [vmem:[#allocation5 + $0x30] sm:$0xff]  ;;  %v6700_v34 = vld [vmem:[#allocation5 + $0x38] sm:$0xff] }
0x33bf   :  { %10569 = vmatpush3.bf16.msra.mxu0 %v13124_v62 }
0x344a   :  { %v6507_v17 = vpop.xlane.xlu1 %6506 }
0x344b   :  { %v6508_v32 = vsub.f32 %v6501_v60, %v6507_v17  ;;  %v6613_v60 = vld [vmem:[#allocation19 + $0xc0] sm:$0xff] }
0x344c   :  { %v13127_v17 = vpack.c.bf16 %v6614_v57, %v6613_v60  ;;  %v6604_v60 = vld [vmem:[#allocation19 + $0x78] sm:$0xff] }
0x344d   :  { %v6509_v40 = vmul.f32 1.442695, %v6508_v32  ;;  %v6597_v32 = vld [vmem:[#allocation19 + $0x40] sm:$0xff]  ;;  %v13148_v57 = vpack.c.bf16 %v6604_v60, %v6603_v2  ;;  %v13168_v2 = vpack.c.bf16 %v6700_v34, %v6699_v61 }
0x344e   :  { %10571 = vmatprep.subr.bf16.mxu0 %v13127_v17 }
0x344f   :  { %11003 = vpow2.f32 %v6509_v40  ;;  %v6598_v40 = vld [vmem:[#allocation19 + $0x48] sm:$0xff] }
0x3450   :  { %v13130_v15 = vpack.c.bf16 %v6598_v40, %v6597_v32 }
0x3452   :  { %10573 = vmatpush3.bf16.msra.mxu0 %v13130_v15 }
0x3459   :  { %v13100_v47 = vpop.eup %11003 }
0x345a   :  { %v6511_v23 = vsel %vm2663_vm8, %v13100_v47, 0.0 }
0x345b   :  { %6512 = vadd.xlane.f32.xlu0 %v6511_v23  ;;  %v6615_v23 = vld [vmem:[#allocation19 + $0xd0] sm:$0xff] }
0x345c   :  { %v13133_v21 = vpack.c.bf16 %v6616_v25, %v6615_v23  ;;  %v6693_v25 = vld [vmem:[#allocation5] sm:$0xff] }
0x345d   :  { %v13157_v41 = vpack.c.bf16 %v6694_v27, %v6693_v25 }
0x345e   :  { %10575 = vmatprep.subr.bf16.mxu0 %v13133_v21 }
0x345f   :  { %10577 = vmatpush3.bf16.msra.mxu0 %v13136_v31 }
0x3460   :  { %10579 = vmatprep.subr.bf16.mxu0 %v13139_v22 }
0x3463   :  { %10581 = vmatpush3.bf16.msra.mxu0 %v13142_v16 }
0x3464   :  { %10583 = vmatprep.subr.bf16.mxu0 %v13145_v9 }
0x3467   :  { %10585 = vmatpush3.bf16.msra.mxu0 %v13148_v57 }
0x3468   :  { %10611 = vmatprep.subr.bf16.mxu0 %v12969_v24  ;;  %v6697_v24 = vld [vmem:[#allocation5 + $0x20] sm:$0xff] }
0x34e8   :  { %v6513_v32 = vpop.xlane.xlu0 %6512 }
0x34e9   :  { %11005 = vrcp.f32 %v6513_v32 }
0x34f3   :  { %v11006_v40 = vpop.eup %11005 }
0x34f4   :  { %v6515_v23 = vmul.f32 %v11006_v40, %v13100_v47  ;;  %v13164_v47 = vpack.c.bf16 %v6698_v59, %v6697_v24  ;;  %v6149_v24 = vmul.f32 1.442695, %v6148_v33 }
0x34f6   :  { %9205 = vmatmul.mubr.msk.f32.vlgmr.msra.gmra.mrb[56].mxu1 %vm2675_vm9, %v6515_v23 }
0x34f7   :  { %9239 = vmatprep.mubr.msk.f32.mxu1 %vm11262_vm0, %v11261_v8  ;;  %10588 = vmatpush3.bf16.msra.mxu1 %v13157_v41 }
0x34f8   :  { %10589 = vmatprep.subr.bf16.mxu1 %v11260_v6 }
0x34fb   :  { %10591 = vmatpush3.bf16.msra.mxu1 %v13160_v7 }
0x34fc   :  { %10592 = vmatprep.subr.bf16.mxu1 %v11260_v6 }
0x34ff   :  { %10594 = vmatpush3.bf16.msra.mxu1 %v13164_v47 }
0x3500   :  { %10595 = vmatprep.subr.bf16.mxu1 %v11260_v6 }
0x3503   :  { %10597 = vmatpush3.bf16.msra.mxu1 %v13168_v2 }
0x3504   :  { %10598 = vmatprep.subr.bf16.mxu1 %v11260_v6 }
0x35c9   :  { %v6585_v60 = vpop.f32.mrb[56].mxu1 }
0x35ca   :  { %v9206_v32 = vpop.f32.mrb[57].mxu1  ;;  %6686 = vmatprep.mubr.f32.mxu0 %v6585_v60 }
0x35cb   :  { %6687 = vmatmul.mubr.f32.vlgmr.msra.gmra.mrb[58].mxu0 %v13096_v52 }
0x35cc   :  { %10613 = vmatpush1.bf16.msra.mxu0 %v12972_v19  ;;  %6972 = vmatprep.mubr.f32.mxu0 %v11261_v8  ;;  %v11045_v19 = vld [vmem:[#allocation2] sm:$0xff] }
0x35cd   :  { %10615 = vmatprep.subr.bf16.mxu0 %v12974_v26  ;;  %v6701_v26 = vld [vmem:[#allocation5 + $0x40] sm:$0xff] }
0x35d0   :  { %10617 = vmatpush1.bf16.msra.mxu0 %v12978_v30  ;;  %v6702_v30 = vld [vmem:[#allocation5 + $0x48] sm:$0xff] }
0x35d1   :  { %10619 = vmatprep.subr.bf16.mxu0 %v12982_v46  ;;  %v13195_v46 = vpack.c.bf16 %v6702_v30, %v6701_v26 }
0x35d3   :  { %10600 = vmatpush3.bf16.msra.mxu1 %v13195_v46 }
0x35d4   :  { %10621 = vmatpush1.bf16.msra.mxu0 %v12985_v42  ;;  %10601 = vmatprep.subr.bf16.mxu1 %v11260_v6  ;;  %v6703_v42 = vld [vmem:[#allocation5 + $0x50] sm:$0xff] }
0x35d5   :  { %10623 = vmatprep.subr.bf16.mxu0 %v12988_v43  ;;  %v6704_v43 = vld [vmem:[#allocation5 + $0x58] sm:$0xff] }
0x35d8   :  { %10625 = vmatpush1.bf16.msra.mxu0 %v12991_v5  ;;  %v13199_v5 = vpack.c.bf16 %v6704_v43, %v6703_v42 }
0x35d9   :  { %10627 = vmatprep.subr.bf16.mxu0 %v12994_v12  ;;  %v6705_v12 = vld [vmem:[#allocation5 + $0x60] sm:$0xff] }
0x35da   :  { %10603 = vmatpush3.bf16.msra.mxu1 %v13199_v5 }
0x35db   :  { %10604 = vmatprep.subr.bf16.mxu1 %v11260_v6 }
0x35dc   :  { %10629 = vmatpush1.bf16.msra.mxu0 %v12997_v54  ;;  %v6706_v54 = vld [vmem:[#allocation5 + $0x68] sm:$0xff] }
0x35dd   :  { %10631 = vmatprep.subr.bf16.mxu0 %v13000_v38  ;;  %v13203_v38 = vpack.c.bf16 %v6706_v54, %v6705_v12 }
0x35df   :  { %10606 = vmatpush3.bf16.msra.mxu1 %v13203_v38 }
0x35e0   :  { %10633 = vmatpush1.bf16.msra.mxu0 %v13003_v63  ;;  %v6707_v63 = vld [vmem:[#allocation5 + $0x70] sm:$0xff]  ;;  %10607 = vmatprep.subr.bf16.mxu1 %v11260_v6 }
0x35e1   :  { %10635 = vmatprep.subr.bf16.mxu0 %v13006_v48  ;;  %v6708_v48 = vld [vmem:[#allocation5 + $0x78] sm:$0xff] }
0x35e4   :  { %10637 = vmatpush1.bf16.msra.mxu0 %v13009_v14  ;;  %v13206_v14 = vpack.c.bf16 %v6708_v48, %v6707_v63 }
0x35e5   :  { %10639 = vmatprep.subr.bf16.mxu0 %v13012_v28 }
0x35e6   :  { %10609 = vmatpush3.bf16.msra.mxu1 %v13206_v14 }
0x35e7   :  { %10642 = vmatprep.subr.bf16.mxu1 %v11260_v6 }
0x35e8   :  { %10641 = vmatpush1.bf16.msra.mxu0 %v13015_v1  ;;  %v6621_v1 = vld [vmem:[%s13344_s9] sm:$0x1] }
0x35e9   :  { %9277 = vmatprep.subr.mxu0 %v11261_v8 }
0x35eb   :  { %6973 = vmatmul.mubr.f32.vlgmr.msra.gmra.mrb[60].mxu0 %v13096_v52 }
0x35ec   :  { %9279 = vmatprep.mubr.msk.f32.mxu0 %vm11262_vm0, %v11261_v8 }
0x35f1   :  { %9278 = vmatpush3.xpose.msra.mxu0 %v11045_v19 }
0x35f2   :  { %10667 = vmatprep.subr.bf16.mxu0 %v13104_v3 }
0x369e   :  { %v8274_v28 = vpop.f32.mrb[58].mxu0 }
0x369f   :  { %v8275_v3 = vpop.f32.mrb[59].mxu0 }
0x36a0   :  { %v8276_v40 = vadd.f32 %v8275_v3, %v8274_v28 }
0x36a2   :  { %v6689_v23 = vadd.f32 %v8276_v40, %v6621_v1 }
0x36a4   :  { %11007 = vtanh.f32 %v6689_v23 }
0x36a5   :  { %11009 = vpow2.f32 %v6149_v24  ;;  %v6891_v24 = vld [vmem:[%s13342_s7] sm:$0x7] }
0x36a6   :  { %11011 = vpow2.f32 %v6145_v49 }
0x36ae   :  { %v11008_v25 = vpop.eup %11007 }
0x36af   :  { %9240 = vmatmul.mubr.f32.vlgmr.msra.gmra.mrb[58].mxu1 %v11008_v25 }
0x36b0   :  { %10644 = vmatpush3.bf16.msra.mxu1 %v13027_v50  ;;  %9274 = vmatprep.mubr.msk.f32.mxu1 %vm11262_vm0, %v11261_v8 }
0x36b1   :  { %10645 = vmatprep.subr.bf16.mxu1 %v11260_v6 }
0x36b4   :  { %10647 = vmatpush3.bf16.msra.mxu1 %v13030_v18  ;;  %v6709_v18 = vld [vmem:[#allocation6] sm:$0x1] }
0x36b5   :  { %10648 = vmatprep.subr.bf16.mxu1 %v11260_v6 }
0x36b8   :  { %10650 = vmatpush3.bf16.msra.mxu1 %v13036_v37 }
0x36b9   :  { %10651 = vmatprep.subr.bf16.mxu1 %v11260_v6 }
0x36bc   :  { %10653 = vmatpush3.bf16.msra.mxu1 %v13040_v10 }
0x36bd   :  { %10654 = vmatprep.subr.bf16.mxu1 %v11260_v6 }
0x36be   :  { %v13224_v27 = vpop.f32.mrb[60].mxu0 }
0x36bf   :  { %v13226_v50 = vpop.f32.mrb[61].mxu0 }
0x36c0   :  { %10656 = vmatpush3.bf16.msra.mxu1 %v13044_v36 }
0x36c1   :  { %10657 = vmatprep.subr.bf16.mxu1 %v11260_v6 }
0x36c4   :  { %10659 = vmatpush3.bf16.msra.mxu1 %v13052_v29 }
0x36c5   :  { %10660 = vmatprep.subr.bf16.mxu1 %v11260_v6 }
0x36c8   :  { %10662 = vmatpush3.bf16.msra.mxu1 %v13056_v0 }
0x36c9   :  { %10663 = vmatprep.subr.bf16.mxu1 %v11260_v6 }
0x36cc   :  { %10665 = vmatpush3.bf16.msra.mxu1 %v13060_v20 }
0x36cd   :  { %9282 = vmatprep.subr.mxu1 %v11261_v8 }
0x36cf   :  { %9275 = vmatmul.mubr.f32.vlgmr.msra.gmra.mrb[60].mxu1 %v13096_v52 }
0x36d0   :  { %9283 = vmatpush3.msra.mxu1 %v11045_v19  ;;  %9284 = vmatprep.mubr.msk.f32.mxu1 %vm11262_vm0, %v11261_v8  ;;  %v11010_v19 = vpop.eup %11009 }
0x36d1   :  { %10698 = vmatprep.subr.bf16.mxu1 %v11260_v6  ;;  %v6151_v26 = vsel %vm234_vm1, %v11010_v19, 0.0  ;;  %v11012_v42 = vpop.eup %11011 }
0x36d2   :  { %v6147_v63 = vmul.f32 0.0, %v11012_v42 }
0x3782   :  { %v6776_v37 = vpop.f32.mrb[58].mxu1 }
0x3783   :  { %v13240_v10 = vadd.f32 %v6776_v37, %v6709_v18  ;;  %v9241_v36 = vpop.f32.mrb[59].mxu1 }
0x3785   :  { %v6780_v29 = vsel %vm234_vm1, %v13240_v10, -inf }
0x3786   :  { %6781 = vmax.xlane.f32.xlu1 %v6780_v29 }
0x37a2   :  { %v13244_v0 = vpop.f32.mrb[60].mxu1 }
0x37a3   :  { %v9276_v20 = vpop.f32.mrb[61].mxu1 }
0x3813   :  { %v13248_v59 = vpop.xlane.xlu1 %6781 }
0x3814   :  { %vm6795_vm2 = vcmp.eq.f32.partialorder %v13240_v10, %v13248_v59 }
0x3815   :  { %v6796_v61 = vsel %vm6795_vm2, %v12232_v39, 128 }
0x3816   :  { %v6797_v34 = vsel %vm234_vm1, %v6796_v61, 2147483647  ;;  %v6896_v61 = vrot.slane %v6891_v24, %v11623_v51 }
0x3817   :  { %v6799_v60 = vshra.s32 %v6797_v34, 16  ;;  %v6798_v30 = vand.u32 65535, %v6797_v34  ;;  %v6900_v34 = vrot.slane %v6891_v24, %v11628_v55  ;;  %v6904_v55 = vrot.slane %v6891_v24, %v11630_v56 }
0x3819   :  { %v6801_v32 = vcvt.s32.f32 %v6799_v60  ;;  %v6800_v12 = vcvt.s32.f32 %v6798_v30  ;;  %v6975_v60 = vadd.f32 %v13224_v27, %v6896_v61  ;;  %v6977_v4 = vadd.f32 %v13226_v50, %v6900_v34 }
0x381a   :  { %v7046_v27 = vadd.f32 %v13244_v0, %v6904_v55 }
0x381b   :  { %6802 = vmin.xlane.f32.xlu0 %v6801_v32 }
0x381f   :  { %6152 = vadd.xlane.f32.xlu0 %v6151_v26 }
0x38a8   :  { %v6803_v43 = vpop.xlane.xlu0 %6802 }
0x38a9   :  { %vm6804_vm3 = vcmp.eq.f32.partialorder %v6801_v32, %v6803_v43  ;;  %v6809_v3 = vcvt.f32.s32 %v6803_v43 }
0x38aa   :  { %v6805_v54 = vsel %vm6804_vm3, %v6800_v12, inf }
0x38ab   :  { %6806 = vmin.xlane.f32.xlu1 %v6805_v54  ;;  %v6810_v23 = vshll.u32 %v6809_v3, 16 }
0x38ac   :  { %v6153_v48 = vpop.xlane.xlu0 %6152 }
0x38ad   :  { %v6154_v28 = vadd.f32 %v6153_v48, %v6147_v63 }
0x38af   :  { %11013 = vrcp.f32 %v6154_v28 }
0x38b9   :  { %v11014_v1 = vpop.eup %11013 }
0x38ba   :  { %10756 = vpush %v11014_v1 }
0x38eb   :  { %s10757_s25 = spop %10756 }
0x38ec   :  { %6190 = sst [smem:[#allocation21 + $0x5]] %s10757_s25 }
0x3938   :  { %v6807_v40 = vpop.xlane.xlu1 %6806 }
0x3939   :  { %v6808_v25 = vcvt.f32.s32 %v6807_v40 }
0x393b   :  { %v6811_v18 = vadd.s32 %v6810_v23, %v6808_v25 }
0x393d   :  { %v6812_v37 = vrot.slane %v6811_v18, 4 }
0x393f   :  { %vm6813_vm4 = vcmp.lt.s32.totalorder %v6811_v18, %v6812_v37 }
0x3940   :  { %v6814_v36 = vsel %vm6813_vm4, %v6811_v18, %v6812_v37 }
0x3941   :  { %v6815_v29 = vrot.slane %v6814_v36, 2 }
0x3943   :  { %vm6816_vm5 = vcmp.lt.s32.totalorder %v6814_v36, %v6815_v29 }
0x3944   :  { %v6817_v20 = vsel %vm6816_vm5, %v6814_v36, %v6815_v29 }
0x3945   :  { %v6818_v44 = vrot.slane %v6817_v20, 1 }
0x3947   :  { %vm6819_vm6 = vcmp.lt.s32.totalorder %v6817_v20, %v6818_v44 }
0x3948   :  { %v6820_v33 = vsel %vm6819_vm6, %v6817_v20, %v6818_v44 }
0x3949   :  { %10758 = vpush %v6820_v33 }
0x394a   :  { %10760 = vpush %v13248_v59 }
0x397a   :  { %s10759_s26 = spop %10758 }
0x397b   :  { %s10761_s1 = spop %10760 }
0x397c   :  { %p6823_p9 = scmp.gt.f32.partialorder %s10761_s1, -1e+30 }
0x397e   :  { %s13363_s26 = smov (!%p6823_p9, %s10759_s26), 0 }
0x397f   :  { %6828 = sst [smem:[#allocation20 + $0x6]] %s13363_s26  ;;  %s6834_s29 = sshra.s32 %s13363_s26, 3 }
0x3980   :  { %s7622_s5 = smul.u32 24, %s6834_s29  ;;  %s6837_s6 = sand.u32 7, %s13363_s26 }
0x3982   :  { %s6840_s28 = sadd.s32 %s7622_s5, %s6837_s6 }
0x3983   :  { %s6841_s27 = scalar_lea.vmem [#allocation4], %s6840_s28 }
0x3984   :  { %v6842_v32 = vld [vmem:[%s6841_s27] ss:$8 sm:$0x7] }
0x3985   :  { %v7049_v19 = vadd.f32 %v6975_v60, %v6842_v32  ;;  %v7057_v26 = vrot.slane %v6842_v32, 1  ;;  %v7067_v28 = vrot.slane %v6842_v32, 2 }
0x3987   :  { %v7623_v49 = vmul.f32 -1.442695, %v7049_v19  ;;  %v7059_v30 = vadd.f32 %v7057_v26, %v6977_v4 }
0x3989   :  { %11015 = vpow2.f32 %v7623_v49  ;;  %v7624_v42 = vmul.f32 -1.442695, %v7059_v30 }
0x398b   :  { %11017 = vpow2.f32 %v7624_v42 }
0x3993   :  { %v11016_v51 = vpop.eup %11015 }
0x3994   :  { %v7053_v43 = vadd.f32 1.0, %v11016_v51 }
0x3995   :  { %v11018_v12 = vpop.eup %11017 }
0x3996   :  { %11019 = vrcp.f32 %v7053_v43  ;;  %v7063_v54 = vadd.f32 1.0, %v11018_v12 }
0x3998   :  { %11021 = vrcp.f32 %v7063_v54 }
0x39a0   :  { %v11020_v63 = vpop.eup %11019 }
0x39a1   :  { %v7066_v48 = vmul.f32 %v11020_v63, %v7046_v27 }
0x39a2   :  { %v11022_v50 = vpop.eup %11021 }
0x39a3   :  { %v7069_v1 = vadd.f32 %v7067_v28, %v7066_v48  ;;  %v7071_v3 = vsub.f32 1.0, %v11022_v50  ;;  %v7073_v25 = vmul.f32 %v11022_v50, %v13096_v52 }
0x39a5   :  { %11023 = vtanh.f32 %v7069_v1 }
0x39af   :  { %v11024_v40 = vpop.eup %11023 }
0x39b0   :  { %v7072_v23 = vmul.f32 %v11024_v40, %v7071_v3 }
0x39b2   :  { %v7074_v18 = vadd.f32 %v7073_v25, %v7072_v23 }
0x39b4   :  { %9280 = vmatmul.mubr.f32.vlgmr.msra.gmra.mrb[62].mxu0 %v7074_v18 }
0x39b5   :  { %10669 = vmatpush3.bf16.msra.mxu0 %v13106_v11 }
0x39b6   :  { %10671 = vmatprep.subr.bf16.mxu0 %v13108_v58 }
0x39b9   :  { %10673 = vmatpush3.bf16.msra.mxu0 %v13112_v35 }
0x39ba   :  { %10675 = vmatprep.subr.bf16.mxu0 %v13115_v53 }
0x39bd   :  { %10677 = vmatpush3.bf16.msra.mxu0 %v13118_v45 }
0x39be   :  { %10679 = vmatprep.subr.bf16.mxu0 %v13121_v13 }
0x39c1   :  { %10681 = vmatpush3.bf16.msra.mxu0 %v13124_v62 }
0x39c2   :  { %10683 = vmatprep.subr.bf16.mxu0 %v13127_v17 }
0x39c5   :  { %10685 = vmatpush3.bf16.msra.mxu0 %v13130_v15 }
0x39c6   :  { %10687 = vmatprep.subr.bf16.mxu0 %v13133_v21 }
0x39c9   :  { %10689 = vmatpush3.bf16.msra.mxu0 %v13136_v31 }
0x39ca   :  { %10691 = vmatprep.subr.bf16.mxu0 %v13139_v22  ;;  %v7261_v22 = vld [vmem:[%s13344_s9] sm:$0x1] }
0x39cd   :  { %10693 = vmatpush3.bf16.msra.mxu0 %v13142_v16 }
0x39ce   :  { %10695 = vmatprep.subr.bf16.mxu0 %v13145_v9 }
0x39d1   :  { %10697 = vmatpush3.bf16.msra.mxu0 %v13148_v57 }
0x3a87   :  { %v7141_v56 = vpop.f32.mrb[62].mxu0 }
0x3a88   :  { %v9281_v52 = vpop.f32.mrb[63].mxu0  ;;  %v7145_v11 = vsel %vm2663_vm8, %v7141_v56, -inf }
0x3a89   :  { %7146 = vmax.xlane.f32.xlu1 %v7145_v11 }
0x3b16   :  { %v7147_v58 = vpop.xlane.xlu1 %7146 }
0x3b17   :  { %v7148_v35 = vsub.f32 %v7141_v56, %v7147_v58 }
0x3b19   :  { %v7149_v53 = vmul.f32 1.442695, %v7148_v35 }
0x3b1b   :  { %11025 = vpow2.f32 %v7149_v53 }
0x3b25   :  { %v11026_v45 = vpop.eup %11025 }
0x3b26   :  { %v7151_v13 = vsel %vm2663_vm8, %v11026_v45, 0.0 }
0x3b27   :  { %7152 = vadd.xlane.f32.xlu0 %v7151_v13 }
0x3bb4   :  { %v7153_v62 = vpop.xlane.xlu0 %7152 }
0x3bb5   :  { %11027 = vrcp.f32 %v7153_v62 }
0x3bbf   :  { %v11028_v17 = vpop.eup %11027 }
0x3bc0   :  { %v7155_v15 = vmul.f32 %v11028_v17, %v11026_v45 }
0x3bc2   :  { %9285 = vmatmul.mubr.msk.f32.vlgmr.msra.gmra.mrb[62].mxu1 %vm2675_vm9, %v7155_v15 }
0x3bc3   :  { %10700 = vmatpush3.bf16.msra.mxu1 %v13157_v41  ;;  %9319 = vmatprep.mubr.msk.f32.mxu1 %vm11262_vm0, %v11261_v8 }
0x3bc4   :  { %10701 = vmatprep.subr.bf16.mxu1 %v11260_v6 }
0x3bc7   :  { %10703 = vmatpush3.bf16.msra.mxu1 %v13160_v7  ;;  %v7349_v7 = vld [vmem:[#allocation6] sm:$0x1] }
0x3bc8   :  { %10704 = vmatprep.subr.bf16.mxu1 %v11260_v6 }
0x3bcb   :  { %10706 = vmatpush3.bf16.msra.mxu1 %v13164_v47 }
0x3bcc   :  { %10707 = vmatprep.subr.bf16.mxu1 %v11260_v6 }
0x3bcf   :  { %10709 = vmatpush3.bf16.msra.mxu1 %v13168_v2 }
0x3bd0   :  { %10710 = vmatprep.subr.bf16.mxu1 %v11260_v6 }
0x3bd3   :  { %10712 = vmatpush3.bf16.msra.mxu1 %v13195_v46 }
0x3bd4   :  { %10713 = vmatprep.subr.bf16.mxu1 %v11260_v6 }
0x3bd7   :  { %10715 = vmatpush3.bf16.msra.mxu1 %v13199_v5  ;;  %v6783_v5 = vmax.f32 %v13248_v59, -1e+30 }
0x3bd8   :  { %10716 = vmatprep.subr.bf16.mxu1 %v11260_v6 }
0x3bd9   :  { %v6784_v61 = vsub.f32 -1e+30, %v6783_v5 }
0x3bdb   :  { %10718 = vmatpush3.bf16.msra.mxu1 %v13203_v38  ;;  %v6788_v38 = vsub.f32 %v13240_v10, %v6783_v5  ;;  %v6785_v34 = vmul.f32 1.442695, %v6784_v61 }
0x3bdc   :  { %10719 = vmatprep.subr.bf16.mxu1 %v11260_v6 }
0x3bdf   :  { %10721 = vmatpush3.bf16.msra.mxu1 %v13206_v14  ;;  %v6789_v14 = vmul.f32 1.442695, %v6788_v38 }
0x3c95   :  { %v7225_v8 = vpop.f32.mrb[62].mxu1 }
0x3c96   :  { %v9286_v21 = vpop.f32.mrb[63].mxu1  ;;  %7326 = vmatprep.mubr.f32.mxu0 %v7225_v8 }
0x3c97   :  { %7327 = vmatmul.mubr.f32.vlgmr.msra.gmra.mrb[64].mxu0 %v7074_v18 }
0x3d6a   :  { %v8347_v31 = vpop.f32.mrb[64].mxu0 }
0x3d6b   :  { %v8348_v16 = vpop.f32.mrb[65].mxu0 }
0x3d6c   :  { %v8349_v9 = vadd.f32 %v8348_v16, %v8347_v31 }
0x3d6e   :  { %v7329_v57 = vadd.f32 %v8349_v9, %v7261_v22 }
0x3d70   :  { %11029 = vtanh.f32 %v7329_v57 }
0x3d71   :  { %11031 = vpow2.f32 %v6789_v14 }
0x3d72   :  { %11033 = vpow2.f32 %v6785_v34 }
0x3d7a   :  { %v11030_v41 = vpop.eup %11029 }
0x3d7b   :  { %9320 = vmatmul.mubr.f32.vlgmr.msra.gmra.mrb[64].mxu1 %v11030_v41  ;;  %v11032_v44 = vpop.eup %11031 }
0x3d7c   :  { %v6791_v33 = vsel %vm234_vm1, %v11032_v44, 0.0  ;;  %v11034_v32 = vpop.eup %11033 }
0x3d7d   :  { %v6787_v49 = vmul.f32 0.0, %v11034_v32 }
0x3e4e   :  { %v7416_v47 = vpop.f32.mrb[64].mxu1 }
0x3e4f   :  { %v7417_v6 = vadd.f32 %v7416_v47, %v7349_v7  ;;  %v9321_v2 = vpop.f32.mrb[65].mxu1 }
0x3e51   :  { %v7420_v46 = vsel %vm234_vm1, %v7417_v6, -inf }
0x3e52   :  { %7421 = vmax.xlane.f32.xlu1 %v7420_v46 }
0x3edf   :  { %v7422_v0 = vpop.xlane.xlu1 %7421 }
0x3ee0   :  { %vm7435_vm0 = vcmp.eq.f32.partialorder %v7417_v6, %v7422_v0  ;;  %v7423_v24 = vmax.f32 %v7422_v0, -1e+30 }
0x3ee1   :  { %v7436_v37 = vsel %vm7435_vm0, %v12232_v39, 128 }
0x3ee2   :  { %v7437_v36 = vsel %vm234_vm1, %v7436_v37, 2147483647  ;;  %v7428_v59 = vsub.f32 %v7417_v6, %v7423_v24  ;;  %v7424_v12 = vsub.f32 -1e+30, %v7423_v24 }
0x3ee3   :  { %v7439_v29 = vshra.s32 %v7437_v36, 16  ;;  %v7438_v60 = vand.u32 65535, %v7437_v36 }
0x3ee4   :  { %v7429_v10 = vmul.f32 1.442695, %v7428_v59  ;;  %v7425_v55 = vmul.f32 1.442695, %v7424_v12 }
0x3ee5   :  { %v7441_v20 = vcvt.s32.f32 %v7439_v29  ;;  %v7440_v39 = vcvt.s32.f32 %v7438_v60 }
0x3ee6   :  { %11035 = vpow2.f32 %v7429_v10 }
0x3ee7   :  { %7442 = vmin.xlane.f32.xlu0 %v7441_v20 }
0x3eeb   :  { %6792 = vadd.xlane.f32.xlu0 %v6791_v33 }
0x3ef0   :  { %v11036_v4 = vpop.eup %11035 }
0x3ef1   :  { %v7431_v51 = vsel %vm234_vm1, %v11036_v4, 0.0 }
0x3f74   :  { %v7443_v19 = vpop.xlane.xlu0 %7442 }
0x3f75   :  { %vm7444_vm8 = vcmp.eq.f32.partialorder %v7441_v20, %v7443_v19  ;;  %v7449_v54 = vcvt.f32.s32 %v7443_v19 }
0x3f76   :  { %v7445_v26 = vsel %vm7444_vm8, %v7440_v39, inf }
0x3f77   :  { %7446 = vmin.xlane.f32.xlu1 %v7445_v26  ;;  %v7450_v48 = vshll.u32 %v7449_v54, 16 }
0x3f78   :  { %v6793_v30 = vpop.xlane.xlu0 %6792 }
0x3f79   :  { %v6794_v42 = vadd.f32 %v6793_v30, %v6787_v49 }
0x3f7b   :  { %11037 = vrcp.f32 %v6794_v42  ;;  %7432 = vadd.xlane.f32.xlu1 %v7431_v51 }
0x3f7c   :  { %11039 = vpow2.f32 %v7425_v55 }
0x3f85   :  { %v11038_v43 = vpop.eup %11037 }
0x3f86   :  { %10762 = vpush %v11038_v43  ;;  %v11040_v27 = vpop.eup %11039 }
0x3f87   :  { %v7427_v50 = vmul.f32 0.0, %v11040_v27 }
0x3fb7   :  { %s10763_s9 = spop %10762 }
0x3fb8   :  { %6830 = sst [smem:[#allocation21 + $0x6]] %s10763_s9 }
0x4004   :  { %v7447_v63 = vpop.xlane.xlu1 %7446 }
0x4005   :  { %v7448_v28 = vcvt.f32.s32 %v7447_v63 }
0x4007   :  { %v7451_v1 = vadd.s32 %v7450_v48, %v7448_v28 }
0x4008   :  { %v7433_v3 = vpop.xlane.xlu1 %7432 }
0x4009   :  { %v7452_v40 = vrot.slane %v7451_v1, 4  ;;  %v7434_v23 = vadd.f32 %v7433_v3, %v7427_v50 }
0x400b   :  { %vm7453_vm1 = vcmp.lt.s32.totalorder %v7451_v1, %v7452_v40  ;;  %11041 = vrcp.f32 %v7434_v23 }
0x400c   :  { %v7454_v25 = vsel %vm7453_vm1, %v7451_v1, %v7452_v40 }
0x400d   :  { %v7455_v18 = vrot.slane %v7454_v25, 2 }
0x400f   :  { %vm7456_vm9 = vcmp.lt.s32.totalorder %v7454_v25, %v7455_v18 }
0x4010   :  { %v7457_v56 = vsel %vm7456_vm9, %v7454_v25, %v7455_v18 }
0x4011   :  { %v7458_v52 = vrot.slane %v7457_v56, 1 }
0x4013   :  { %vm7459_vm7 = vcmp.lt.s32.totalorder %v7457_v56, %v7458_v52 }
0x4014   :  { %v7460_v11 = vsel %vm7459_vm7, %v7457_v56, %v7458_v52 }
0x4015   :  { %v11042_v58 = vpop.eup %11041  ;;  %10764 = vpush %v7460_v11 }
0x4016   :  { %10766 = vpush %v7422_v0 }
0x4017   :  { %10768 = vpush %v11042_v58 }
0x4046   :  { %s10765_s12 = spop %10764 }
0x4047   :  { %s10767_s16 = spop %10766 }
0x4048   :  { %p7463_p10 = scmp.gt.f32.partialorder %s10767_s16, -1e+30  ;;  %s10769_s17 = spop %10768 }
0x4049   :  { %7470 = sst [smem:[#allocation21 + $0x7]] %s10769_s17 }
0x404a   :  { %s13365_s12 = smov (!%p7463_p10, %s10765_s12), 0 }
0x404b   :  { %11219 = shalt.err (!%p11216_p13)
}
0x404c   :  { %s11263_s23 = smov [#allocation21]   ;;  %7468 = sst [smem:[#allocation20 + $0x7]] %s13365_s12 }
0x404d   :  { %7488 = dma.smem_to_hbm %s11263_s23, 16, %s13349_s14, [#allocation22]  }
0x404e   :  { %s11220_s22 = scalar_lea.hbm %s13348_s13, 16 }
0x404f   :  { %p11221_p0 = scmp.ne.s32.totalorder %s13348_s13, %s11220_s22  ;;  %p11224_p1 = scmp.lt.u32.totalorder %s11220_s22, %s13348_s13 }
0x4051   :  { %p11226_p2 = pnand %p11224_p1, %p11221_p0 }
0x4053   :  { %11229 = shalt.err (!%p11226_p2)
}
0x4054   :  { %s11264_s0 = smov [#allocation20]  }
0x4055   :  { %7480 = dma.smem_to_hbm %s11264_s0, 16, %s13348_s13, [#allocation12]  }
0x4056   :  { %11244 = dma.done.wait [#allocation12], 16  }
0x4057   :  { %11245 = vsyncadd [#allocation12], 4294967280 }
0x4058   :  { %11246 = dma.done.wait [#allocation22], 16  }
0x4059   :  { %11247 = vsyncadd [#allocation22], 4294967280 }
0x405a   :  { %7495 = sfence }
0x405b   :  { %7496 = vsyncpa [#allocation10], 1 }
0x405c   :  { %7497 = vsyncpa [#allocation15], 1 }
0x405d   :  { %7498 = vsyncpa [#allocation18], 1 }
0x405e   :  { %7499 = vsyncpa [#allocation11], 1 }
0x405f   :  { %7500 = vsyncpa [#allocation12], 1 }
0x4060   :  { %7501 = vsyncpa [#allocation22], 1 }
0x4061   :  { %7502 = vsyncmov [#allocation7] }
0x4064   :  { %s7503_s14 = vpop.sfrf %7502 }
0x4065   :  { %p7626_p3 = scmp.ne.s32.totalorder %s7503_s14, 0 }
0x4067   :  { %7507 = shalt.err (%p7626_p3)  }
0x4068   :  { %7509 = vsyncmov [#allocation7 + $0x1] }
0x406b   :  { %s7510_s6 = vpop.sfrf %7509 }
0x406c   :  { %p7627_p4 = scmp.ne.s32.totalorder %s7510_s6, 0 }
0x406e   :  { %7514 = shalt.err (%p7627_p4)  }
0x406f   :  { %7516 = vsyncmov [#allocation7 + $0x2] }
0x4072   :  { %s7517_s13 = vpop.sfrf %7516 }
0x4073   :  { %p7628_p5 = scmp.ne.s32.totalorder %s7517_s13, 0 }
0x4075   :  { %7521 = shalt.err (%p7628_p5)  }

</bundles_post_ra>
